<compile_context>
chip_gen: v5e
topology: v5e:2x2
jax: 0.10.0
libtpu: 0.0.40
codegen_flags: <defaults>
</compile_context>

<pallas_src>
import functools

import jax
import jax.numpy as jnp
from jax import lax
from jax.experimental import pallas as pl
from jax.experimental.pallas import tpu as pltpu


_HALO = 128  # lane width of the halo window (minimum lane-aligned block)


# -----------------------------------------------------------------------------
# Pallas kernel: one (L-tile, batch) grid step.
# -----------------------------------------------------------------------------
def _output_module_x8_kernel(
    x_ref,               # (1, C, TL)  cdt   pre-summed input tile
    xh_ref,              # (1, C, 128) cdt   last 128 columns of previous tile
    w1c_ref, b1c_ref,    # (2C, C) cdt, (2C, 1) f32   deconv1, both phases stacked
    w2c_ref, b2c_ref,    # (2C, C) cdt, (2C, 1) f32   deconv2, both phases stacked
    w3c_ref, b3c_ref,    # (2C, C) cdt, (2C, 1) f32   deconv3, both phases stacked
    w4_ref, b4_ref,      # (2, C, C) cdt, (C, 1) f32  deconv4 (k=2, stride 1)
    wc1_ref, bc1_ref,    # (C, C) cdt, (C, 1) f32     conv1 (1x1)
    wc2_ref, bc2_ref,    # (C, C) cdt, (C, 1) f32     conv2 (1x1)
    o_ref,               # (1, C, TL) f32
):
    C = o_ref.shape[1]
    TL = o_ref.shape[2]
    HW = xh_ref.shape[2]
    li = pl.program_id(0)

    f32 = jnp.float32
    cdt = w1c_ref.dtype                       # matmul input dtype (bf16)

    def mm(w, h):                             # MXU matmul, f32 accumulate
        return jnp.dot(w, h, preferred_element_type=f32)

    def relu(v):
        return jnp.maximum(v, 0.0)

    # ---- per-column phase bookkeeping: r = global position % 8 ---------------
    lane = lax.broadcasted_iota(jnp.int32, (1, TL), 1)
    r = lane % 8                  # TL % 8 == 0, so lane % 8 == (li*TL+lane) % 8
    rp = (r + 7) % 8              # phase of the previous upsampled position
    a_m, b_m, c_m = r >= 4, (r & 2) != 0, (r & 1) != 0
    ap_m, bp_m, cp_m = rp >= 4, (rp & 2) != 0, (rp & 1) != 0
    r0_m = r == 0

    def sel(full, mask):          # per-column pick of phase-1 / phase-0 rows
        return jnp.where(mask, full[C:, :], full[:C, :])

    # ---- deconv1: both phases in one (2C,C)x(C,TL) wide matmul ----------------
    h1f = relu(mm(w1c_ref[...], x_ref[0]) + b1c_ref[...])        # (2C, TL) f32

    # halo: H1[phase 1] at the last column of the previous tile (r==0, lane==0)
    hh1 = relu(mm(w1c_ref[C:, :], xh_ref[0]) + b1c_ref[C:, :])   # (C, 128) f32
    halo_col = hh1[:, HW - 1:HW]                                 # (C, 1)

    # selected stream:        h1_sel[:, t]  = H1[a(t),  t]
    # previous-pos stream:    h1_prev[:, t] = H1[a'(t), t]  (r>=1)
    #                                       = H1[1, t-1]    (r==0, via roll/halo)
    h1_sel = sel(h1f, a_m).astype(cdt)
    h1p_shift = jnp.where(lane == 0, halo_col,
                          pltpu.roll(h1f[C:, :], shift=1, axis=1))
    h1_prev = jnp.where(r0_m, h1p_shift, sel(h1f, ap_m)).astype(cdt)

    # ---- deconv2 / deconv3 on the two gathered streams ------------------------
    w2c, b2c = w2c_ref[...], b2c_ref[...]
    h2_sel = sel(relu(mm(w2c, h1_sel) + b2c), b_m).astype(cdt)
    h2_prev = sel(relu(mm(w2c, h1_prev) + b2c), bp_m).astype(cdt)

    w3c, b3c = w3c_ref[...], b3c_ref[...]
    h3_sel = sel(relu(mm(w3c, h2_sel) + b3c), c_m).astype(cdt)
    h3_prev = sel(relu(mm(w3c, h2_prev) + b3c), cp_m)
    # true sequence start: Y4[0] has no k=1 tap of deconv4
    h3_prev = jnp.where(jnp.logical_and(li == 0, lane == 0), 0.0,
                        h3_prev).astype(cdt)

    # ---- deconv4 (k=2, s=1) on the gathered columns only ----------------------
    g = relu(mm(w4_ref[0], h3_sel) + mm(w4_ref[1], h3_prev) + b4_ref[...])

    # ---- head once, on the gathered matrix: conv1 -> relu -> conv2 -> softmax -
    # (the module's extra relu before conv1 is a no-op since g >= 0)
    z = relu(mm(wc1_ref[...], g.astype(cdt)) + bc1_ref[...]).astype(cdt)
    z = mm(wc2_ref[...], z) + bc2_ref[...]                        # (C, TL) logits
    z = z - jnp.max(z, axis=0, keepdims=True)
    e = jnp.exp(z)
    o_ref[0] = e * pl.reciprocal(jnp.sum(e, axis=0, keepdims=True), approx=False)


# -----------------------------------------------------------------------------
# Wrapper: parameter plumbing, tiling, pallas_call.
# -----------------------------------------------------------------------------
def _round_up(v, m):
    return (v + m - 1) // m * m


def _default_vmem_limit_bytes():
    """~0.85 x physical VMEM per core (100 MiB cap); conservative 64 MiB fallback."""
    try:
        cap = int(pltpu.get_tpu_info().vmem_capacity_bytes)
    except Exception:
        cap = 64 * 2 ** 20          # v7x-sized fallback: safe on every generation
    return int(min(0.85 * cap, 100 * 2 ** 20))


@functools.partial(jax.jit,
                   static_argnames=("tile_l", "matmul_dtype", "vmem_limit_bytes"))
def _output_module_x8_impl(x, params, *, tile_l, matmul_dtype, vmem_limit_bytes):
    S, B, C, L = x.shape
    TL = tile_l
    f32, cdt = jnp.float32, matmul_dtype

    def pt(name, k):       # ConvTranspose1d weight (Cin, Cout, K) -> (Cout, Cin)
        return jnp.asarray(params[name][:, :, k]).T.astype(cdt)

    def colv(name):        # bias (C,) -> (C, 1) f32 (lane-broadcast in kernel)
        return jnp.asarray(params[name]).reshape(-1, 1).astype(f32)

    w1c = jnp.concatenate([pt("w1", 0), pt("w1", 1)], axis=0)       # (2C, C)
    w2c = jnp.concatenate([pt("w2", 0), pt("w2", 1)], axis=0)
    w3c = jnp.concatenate([pt("w3", 0), pt("w3", 1)], axis=0)
    w4s = jnp.stack([pt("w4", 0), pt("w4", 1)], axis=0)             # (2, C, C)
    b1c = jnp.concatenate([colv("b1")] * 2, axis=0)                 # (2C, 1)
    b2c = jnp.concatenate([colv("b2")] * 2, axis=0)
    b3c = jnp.concatenate([colv("b3")] * 2, axis=0)
    b4 = colv("b4")
    wc1 = jnp.asarray(params["wc1"]).astype(cdt)                    # (Cout, Cin)
    wc2 = jnp.asarray(params["wc2"]).astype(cdt)
    bc1, bc2 = colv("bc1"), colv("bc2")

    # Pre-sum over the stack axis in the wrapper (mem-bound, cheap vs the
    # compute-bound kernel); store in the matmul dtype to halve DMA/VMEM.
    xs = jnp.sum(x.astype(f32), axis=0).astype(cdt)                 # (B, C, L)
    Lp = _round_up(L, TL)
    if Lp != L:
        xs = jnp.pad(xs, ((0, 0), (0, 0), (0, Lp - L)))
    nl = Lp // TL
    ratio = TL // _HALO

    def full(shape):
        return pl.BlockSpec(shape, lambda l, b: (0,) * len(shape))

    out = pl.pallas_call(
        _output_module_x8_kernel,
        out_shape=jax.ShapeDtypeStruct((B, C, Lp), jnp.float32),
        grid=(nl, B),          # long axis leading: balances v7x's 2 TensorCores
        in_specs=[
            pl.BlockSpec((1, C, TL), lambda l, b: (b, 0, l)),
            pl.BlockSpec((1, C, _HALO),
                         lambda l, b: (b, 0, jnp.maximum(l * ratio - 1, 0))),
            full((2 * C, C)), full((2 * C, 1)),     # deconv1
            full((2 * C, C)), full((2 * C, 1)),     # deconv2
            full((2 * C, C)), full((2 * C, 1)),     # deconv3
            full((2, C, C)), full((C, 1)),          # deconv4 (stride 1)
            full((C, C)), full((C, 1)),             # conv1 (1x1)
            full((C, C)), full((C, 1)),             # conv2 (1x1)
        ],
        out_specs=pl.BlockSpec((1, C, TL), lambda l, b: (b, 0, l)),
        compiler_params=pltpu.CompilerParams(
            dimension_semantics=("parallel", "parallel"),
            vmem_limit_bytes=vmem_limit_bytes),
    )(xs, xs, w1c, b1c, w2c, b2c, w3c, b3c, w4s, b4, wc1, bc1, wc2, bc2)

    return out if Lp == L else out[:, :, :L]


def output_module_x8(x, params, *, tile_l=None, matmul_dtype=jnp.bfloat16,
                     vmem_limit_bytes=None):
    """x: (S, B, C, L) float (stack, batch, channels, length) -> (B, C, L) f32."""
    S, B, C, L = x.shape
    if C % 16:
        raise ValueError("channels must be a multiple of 16")

    if vmem_limit_bytes is None:
        vmem_limit_bytes = _default_vmem_limit_bytes()
    if tile_l is None:
        # ~56 bytes/column/channel covers the peak live activation set plus the
        # double-buffered (bf16 in / f32 out) I/O tiles; stay under ~half of the
        # VMEM limit so Mosaic has headroom (critical on v7x's 64 MiB per core).
        per_col = 56 * C
        tile_l = max(128, min(4096,
                              vmem_limit_bytes // 2 // per_col // 128 * 128))
        tile_l = min(tile_l, _round_up(L, 128))
    if tile_l % _HALO:
        raise ValueError("tile_l must be a multiple of 128")

    return _output_module_x8_impl(x, params, tile_l=int(tile_l),
                                  matmul_dtype=matmul_dtype,
                                  vmem_limit_bytes=int(vmem_limit_bytes))


# -----------------------------------------------------------------------------
# Pure-JAX float32 reference (mirrors the PyTorch forward literally, NCL layout).
# -----------------------------------------------------------------------------
def output_module_x8_reference(x, params):
    out = jnp.sum(x, axis=0)                                     # (B, C, L)
    B, C, _ = out.shape

    def deconv_s2(h, w, b):                                      # k=2, s=2
        even = jnp.einsum("bil,io->bol", h, w[:, :, 0])
        odd = jnp.einsum("bil,io->bol", h, w[:, :, 1])
        inter = jnp.stack([even, odd], axis=-1)                  # (B, C, L, 2)
        return inter.reshape(B, C, -1) + b[None, :, None]

    def deconv_s1(h, w, b):                                      # k=2, s=1
        a = jnp.einsum("bil,io->bol", h, w[:, :, 0])
        m = jnp.einsum("bil,io->bol", h, w[:, :, 1])
        z = jnp.zeros((B, C, 1), h.dtype)
        return (jnp.concatenate([a, z], -1)
                + jnp.concatenate([z, m], -1)
                + b[None, :, None])

    relu = lambda v: jnp.maximum(v, 0.0)
    out = relu(deconv_s2(out, params["w1"], params["b1"]))
    out = relu(deconv_s2(out, params["w2"], params["b2"]))
    out = relu(deconv_s2(out, params["w3"], params["b3"]))
    out = relu(deconv_s1(out, params["w4"], params["b4"]))
    out = out[:, :, : x.shape[-1] * 8]

    Lb = out.shape[-1] // 8
    acc = jnp.zeros((B, C, Lb), jnp.float32)
    pos = jnp.arange(Lb)
    for k in range(8):
        sel = out[:, :, k::8]
        z = relu(sel)
        z = jnp.einsum("oi,bil->bol", params["wc1"], z) + params["bc1"][None, :, None]
        z = relu(z)
        z = jnp.einsum("oi,bil->bol", params["wc2"], z) + params["bc2"][None, :, None]
        z = jax.nn.softmax(z, axis=1)
        mask = (pos % 8 == k).astype(jnp.float32)
        acc = acc + z * mask[None, None, :]
    return acc


# -----------------------------------------------------------------------------
# Main
# -----------------------------------------------------------------------------
if __name__ == "__main__":
    S, B, C, L = 3, 2, 128, 1024      # small shapes (module default channels=256)
    TL = 256                          # 4 L-tiles -> exercises tiling + deconv4 halo

    key = jax.random.PRNGKey(0)
    keys = jax.random.split(key, 16)
    x = jax.random.normal(keys[0], (S, B, C, L), dtype=jnp.float32)

    params = {
        "w1": 0.1 * jax.random.normal(keys[1], (C, C, 2), jnp.float32),
        "b1": 0.1 * jax.random.normal(keys[2], (C,), jnp.float32),
        "w2": 0.1 * jax.random.normal(keys[3], (C, C, 2), jnp.float32),
        "b2": 0.1 * jax.random.normal(keys[4], (C,), jnp.float32),
        "w3": 0.1 * jax.random.normal(keys[5], (C, C, 2), jnp.float32),
        "b3": 0.1 * jax.random.normal(keys[6], (C,), jnp.float32),
        "w4": 0.1 * jax.random.normal(keys[7], (C, C, 2), jnp.float32),
        "b4": 0.1 * jax.random.normal(keys[8], (C,), jnp.float32),
        "wc1": 0.1 * jax.random.normal(keys[9], (C, C), jnp.float32),
        "bc1": 0.1 * jax.random.normal(keys[10], (C,), jnp.float32),
        "wc2": 0.1 * jax.random.normal(keys[11], (C, C), jnp.float32),
        "bc2": 0.1 * jax.random.normal(keys[12], (C,), jnp.float32),
    }

    out = output_module_x8(x, params, tile_l=TL)
    out = jax.block_until_ready(out)

    ref = output_module_x8_reference(x, params)
    assert out.shape == (B, C, L), (out.shape, (B, C, L))

    # bf16 matmuls => loosened tolerances (outputs are softmax probabilities).
    max_err = float(jnp.max(jnp.abs(out - ref)))
    mean_err = float(jnp.mean(jnp.abs(out - ref)))
    assert max_err < 6e-2, ("max abs err", max_err)
    assert mean_err < 3e-3, ("mean abs err", mean_err)

    print("KERNEL_OK")
</pallas_src>

<mosaic_0001>
module attributes {stable_mosaic.version = 11 : i64} {
  func.func @_output_module_x8_kernel(%arg0: i32, %arg1: i32, %arg2: memref<1x128x256xbf16, #tpu.memory_space<vmem>>, %arg3: memref<1x128x128xbf16, #tpu.memory_space<vmem>>, %arg4: memref<256x128xbf16, #tpu.memory_space<vmem>>, %arg5: memref<256x1xf32, #tpu.memory_space<vmem>>, %arg6: memref<256x128xbf16, #tpu.memory_space<vmem>>, %arg7: memref<256x1xf32, #tpu.memory_space<vmem>>, %arg8: memref<256x128xbf16, #tpu.memory_space<vmem>>, %arg9: memref<256x1xf32, #tpu.memory_space<vmem>>, %arg10: memref<2x128x128xbf16, #tpu.memory_space<vmem>>, %arg11: memref<128x1xf32, #tpu.memory_space<vmem>>, %arg12: memref<128x128xbf16, #tpu.memory_space<vmem>>, %arg13: memref<128x1xf32, #tpu.memory_space<vmem>>, %arg14: memref<128x128xbf16, #tpu.memory_space<vmem>>, %arg15: memref<128x1xf32, #tpu.memory_space<vmem>>, %arg16: memref<1x128x256xf32, #tpu.memory_space<vmem>>) attributes {dimension_semantics = [#tpu.dimension_semantics<parallel>, #tpu.dimension_semantics<parallel>], iteration_bounds = array<i64: 4, 2>, scalar_prefetch = 0 : i64, scratch_operands = 0 : i64, tpu.core_type = #tpu.core_type<tc>, window_params = [{transform_indices = @transform_0, window_bounds = array<i64: 1, 128, 256>}, {transform_indices = @transform_1, window_bounds = array<i64: 1, 128, 128>}, {pipeline_mode = #tpu.pipeline_mode<synchronous>, transform_indices = @transform_2, window_bounds = array<i64: 256, 128>}, {pipeline_mode = #tpu.pipeline_mode<synchronous>, transform_indices = @transform_3, window_bounds = array<i64: 256, 1>}, {pipeline_mode = #tpu.pipeline_mode<synchronous>, transform_indices = @transform_4, window_bounds = array<i64: 256, 128>}, {pipeline_mode = #tpu.pipeline_mode<synchronous>, transform_indices = @transform_5, window_bounds = array<i64: 256, 1>}, {pipeline_mode = #tpu.pipeline_mode<synchronous>, transform_indices = @transform_6, window_bounds = array<i64: 256, 128>}, {pipeline_mode = #tpu.pipeline_mode<synchronous>, transform_indices = @transform_7, window_bounds = array<i64: 256, 1>}, {pipeline_mode = #tpu.pipeline_mode<synchronous>, transform_indices = @transform_8, window_bounds = array<i64: 2, 128, 128>}, {pipeline_mode = #tpu.pipeline_mode<synchronous>, transform_indices = @transform_9, window_bounds = array<i64: 128, 1>}, {pipeline_mode = #tpu.pipeline_mode<synchronous>, transform_indices = @transform_10, window_bounds = array<i64: 128, 128>}, {pipeline_mode = #tpu.pipeline_mode<synchronous>, transform_indices = @transform_11, window_bounds = array<i64: 128, 1>}, {pipeline_mode = #tpu.pipeline_mode<synchronous>, transform_indices = @transform_12, window_bounds = array<i64: 128, 128>}, {pipeline_mode = #tpu.pipeline_mode<synchronous>, transform_indices = @transform_13, window_bounds = array<i64: 128, 1>}, {transform_indices = @transform_14, window_bounds = array<i64: 1, 128, 256>}]} {
    %0 = tpu.iota {dimensions = array<i32: 1>} : vector<1x256xi32>
    %c8_i32 = arith.constant 8 : i32
    %c0_i32 = arith.constant 0 : i32
    %1 = arith.cmpi eq, %c8_i32, %c0_i32 : i32
    %c1_i32 = arith.constant 1 : i32
    %2 = arith.select %1, %c1_i32, %c8_i32 : i32
    %3 = vector.broadcast %2 : i32 to vector<1x256xi32>
    %4 = arith.remsi %0, %3 : vector<1x256xi32>
    %c0_i32_0 = arith.constant 0 : i32
    %5 = vector.broadcast %c0_i32_0 : i32 to vector<1x256xi32>
    %6 = arith.cmpi ne, %4, %5 : vector<1x256xi32>
    %c0_i32_1 = arith.constant 0 : i32
    %7 = vector.broadcast %c0_i32_1 : i32 to vector<1x256xi32>
    %8 = arith.cmpi slt, %4, %7 : vector<1x256xi32>
    %c0_i32_2 = arith.constant 0 : i32
    %9 = arith.cmpi slt, %2, %c0_i32_2 : i32
    %10 = vector.broadcast %9 : i1 to vector<1x256xi1>
    %11 = vector.broadcast %10 : vector<1x256xi1> to vector<1x256xi1>
    %12 = arith.xori %8, %11 : vector<1x256xi1>
    %13 = arith.andi %12, %6 : vector<1x256xi1>
    %14 = vector.broadcast %2 : i32 to vector<1x256xi32>
    %15 = arith.addi %4, %14 : vector<1x256xi32>
    %16 = arith.select %13, %15, %4 : vector<1x256xi1>, vector<1x256xi32>
    %c7_i32 = arith.constant 7 : i32
    %17 = vector.broadcast %c7_i32 : i32 to vector<1x256xi32>
    %18 = arith.addi %16, %17 : vector<1x256xi32>
    %c8_i32_3 = arith.constant 8 : i32
    %c0_i32_4 = arith.constant 0 : i32
    %19 = arith.cmpi eq, %c8_i32_3, %c0_i32_4 : i32
    %c1_i32_5 = arith.constant 1 : i32
    %20 = arith.select %19, %c1_i32_5, %c8_i32_3 : i32
    %21 = vector.broadcast %20 : i32 to vector<1x256xi32>
    %22 = arith.remsi %18, %21 : vector<1x256xi32>
    %c0_i32_6 = arith.constant 0 : i32
    %23 = vector.broadcast %c0_i32_6 : i32 to vector<1x256xi32>
    %24 = arith.cmpi ne, %22, %23 : vector<1x256xi32>
    %c0_i32_7 = arith.constant 0 : i32
    %25 = vector.broadcast %c0_i32_7 : i32 to vector<1x256xi32>
    %26 = arith.cmpi slt, %22, %25 : vector<1x256xi32>
    %c0_i32_8 = arith.constant 0 : i32
    %27 = arith.cmpi slt, %20, %c0_i32_8 : i32
    %28 = vector.broadcast %27 : i1 to vector<1x256xi1>
    %29 = vector.broadcast %28 : vector<1x256xi1> to vector<1x256xi1>
    %30 = arith.xori %26, %29 : vector<1x256xi1>
    %31 = arith.andi %30, %24 : vector<1x256xi1>
    %32 = vector.broadcast %20 : i32 to vector<1x256xi32>
    %33 = arith.addi %22, %32 : vector<1x256xi32>
    %34 = arith.select %31, %33, %22 : vector<1x256xi1>, vector<1x256xi32>
    %c4_i32 = arith.constant 4 : i32
    %35 = vector.broadcast %c4_i32 : i32 to vector<1x256xi32>
    %36 = arith.cmpi sge, %16, %35 : vector<1x256xi32>
    %c2_i32 = arith.constant 2 : i32
    %37 = vector.broadcast %c2_i32 : i32 to vector<1x256xi32>
    %38 = arith.andi %16, %37 : vector<1x256xi32>
    %c0_i32_9 = arith.constant 0 : i32
    %39 = vector.broadcast %c0_i32_9 : i32 to vector<1x256xi32>
    %40 = arith.cmpi ne, %38, %39 : vector<1x256xi32>
    %c1_i32_10 = arith.constant 1 : i32
    %41 = vector.broadcast %c1_i32_10 : i32 to vector<1x256xi32>
    %42 = arith.andi %16, %41 : vector<1x256xi32>
    %c0_i32_11 = arith.constant 0 : i32
    %43 = vector.broadcast %c0_i32_11 : i32 to vector<1x256xi32>
    %44 = arith.cmpi ne, %42, %43 : vector<1x256xi32>
    %c4_i32_12 = arith.constant 4 : i32
    %45 = vector.broadcast %c4_i32_12 : i32 to vector<1x256xi32>
    %46 = arith.cmpi sge, %34, %45 : vector<1x256xi32>
    %c2_i32_13 = arith.constant 2 : i32
    %47 = vector.broadcast %c2_i32_13 : i32 to vector<1x256xi32>
    %48 = arith.andi %34, %47 : vector<1x256xi32>
    %c0_i32_14 = arith.constant 0 : i32
    %49 = vector.broadcast %c0_i32_14 : i32 to vector<1x256xi32>
    %50 = arith.cmpi ne, %48, %49 : vector<1x256xi32>
    %c1_i32_15 = arith.constant 1 : i32
    %51 = vector.broadcast %c1_i32_15 : i32 to vector<1x256xi32>
    %52 = arith.andi %34, %51 : vector<1x256xi32>
    %c0_i32_16 = arith.constant 0 : i32
    %53 = vector.broadcast %c0_i32_16 : i32 to vector<1x256xi32>
    %54 = arith.cmpi ne, %52, %53 : vector<1x256xi32>
    %c0_i32_17 = arith.constant 0 : i32
    %55 = vector.broadcast %c0_i32_17 : i32 to vector<1x256xi32>
    %56 = arith.cmpi eq, %16, %55 : vector<1x256xi32>
    %c0 = arith.constant 0 : index
    %c0_18 = arith.constant 0 : index
    %57 = vector.load %arg4[%c0, %c0_18] : memref<256x128xbf16, #tpu.memory_space<vmem>>, vector<256x128xbf16>
    %c0_19 = arith.constant 0 : index
    %c0_20 = arith.constant 0 : index
    %c0_21 = arith.constant 0 : index
    %58 = vector.load %arg2[%c0_19, %c0_20, %c0_21] : memref<1x128x256xbf16, #tpu.memory_space<vmem>>, vector<1x128x256xbf16>
    %59 = vector.shape_cast %58 : vector<1x128x256xbf16> to vector<128x256xbf16>
    %cst = arith.constant dense<0.000000e+00> : vector<256x256xf32>
    %60 = tpu.matmul %57, %59, %cst {dimension_numbers = #tpu.dot_dimension_numbers<[1], [0], [0], [1], [0, 0, 1, 1], [], []>} : vector<256x128xbf16>, vector<128x256xbf16>, vector<256x256xf32> -> vector<256x256xf32>
    %c0_22 = arith.constant 0 : index
    %c0_23 = arith.constant 0 : index
    %61 = vector.load %arg5[%c0_22, %c0_23] : memref<256x1xf32, #tpu.memory_space<vmem>>, vector<256x1xf32>
    %62 = vector.broadcast %61 : vector<256x1xf32> to vector<256x256xf32>
    %63 = arith.addf %60, %62 : vector<256x256xf32>
    %cst_24 = arith.constant 0.000000e+00 : f32
    %64 = vector.broadcast %cst_24 : f32 to vector<256x256xf32>
    %65 = arith.maximumf %63, %64 : vector<256x256xf32>
    %c128 = arith.constant 128 : index
    %c0_25 = arith.constant 0 : index
    %66 = vector.load %arg4[%c128, %c0_25] : memref<256x128xbf16, #tpu.memory_space<vmem>>, vector<128x128xbf16>
    %c0_26 = arith.constant 0 : index
    %c0_27 = arith.constant 0 : index
    %c0_28 = arith.constant 0 : index
    %67 = vector.load %arg3[%c0_26, %c0_27, %c0_28] : memref<1x128x128xbf16, #tpu.memory_space<vmem>>, vector<1x128x128xbf16>
    %68 = vector.shape_cast %67 : vector<1x128x128xbf16> to vector<128x128xbf16>
    %cst_29 = arith.constant dense<0.000000e+00> : vector<128x128xf32>
    %69 = tpu.matmul %66, %68, %cst_29 {dimension_numbers = #tpu.dot_dimension_numbers<[1], [0], [0], [1], [0, 0, 1, 1], [], []>} : vector<128x128xbf16>, vector<128x128xbf16>, vector<128x128xf32> -> vector<128x128xf32>
    %c128_30 = arith.constant 128 : index
    %c0_31 = arith.constant 0 : index
    %70 = vector.load %arg5[%c128_30, %c0_31] : memref<256x1xf32, #tpu.memory_space<vmem>>, vector<128x1xf32>
    %71 = vector.broadcast %70 : vector<128x1xf32> to vector<128x128xf32>
    %72 = arith.addf %69, %71 : vector<128x128xf32>
    %cst_32 = arith.constant 0.000000e+00 : f32
    %73 = vector.broadcast %cst_32 : f32 to vector<128x128xf32>
    %74 = arith.maximumf %72, %73 : vector<128x128xf32>
    %75 = vector.extract_strided_slice %74 {offsets = [0, 127], sizes = [128, 1], strides = [1, 1]} : vector<128x128xf32> to vector<128x1xf32>
    %76 = vector.extract_strided_slice %65 {offsets = [128, 0], sizes = [128, 256], strides = [1, 1]} : vector<256x256xf32> to vector<128x256xf32>
    %77 = vector.extract_strided_slice %65 {offsets = [0, 0], sizes = [128, 256], strides = [1, 1]} : vector<256x256xf32> to vector<128x256xf32>
    %78 = vector.shape_cast %36 : vector<1x256xi1> to vector<1x256xi1>
    %79 = vector.broadcast %78 : vector<1x256xi1> to vector<128x256xi1>
    %80 = arith.select %79, %76, %77 : vector<128x256xi1>, vector<128x256xf32>
    %81 = arith.truncf %80 : vector<128x256xf32> to vector<128x256xbf16>
    %c0_i32_33 = arith.constant 0 : i32
    %82 = vector.broadcast %c0_i32_33 : i32 to vector<1x256xi32>
    %83 = arith.cmpi eq, %0, %82 : vector<1x256xi32>
    %84 = vector.extract_strided_slice %65 {offsets = [128, 0], sizes = [128, 256], strides = [1, 1]} : vector<256x256xf32> to vector<128x256xf32>
    %c1_i32_34 = arith.constant 1 : i32
    %85 = tpu.dynamic_rotate %84 by %c1_i32_34 dim 1 : vector<128x256xf32>, i32 -> vector<128x256xf32>
    %86 = vector.shape_cast %83 : vector<1x256xi1> to vector<1x256xi1>
    %87 = vector.broadcast %86 : vector<1x256xi1> to vector<128x256xi1>
    %88 = vector.shape_cast %75 : vector<128x1xf32> to vector<128x1xf32>
    %89 = vector.broadcast %88 : vector<128x1xf32> to vector<128x256xf32>
    %90 = arith.select %87, %89, %85 : vector<128x256xi1>, vector<128x256xf32>
    %91 = vector.extract_strided_slice %65 {offsets = [128, 0], sizes = [128, 256], strides = [1, 1]} : vector<256x256xf32> to vector<128x256xf32>
    %92 = vector.extract_strided_slice %65 {offsets = [0, 0], sizes = [128, 256], strides = [1, 1]} : vector<256x256xf32> to vector<128x256xf32>
    %93 = vector.shape_cast %46 : vector<1x256xi1> to vector<1x256xi1>
    %94 = vector.broadcast %93 : vector<1x256xi1> to vector<128x256xi1>
    %95 = arith.select %94, %91, %92 : vector<128x256xi1>, vector<128x256xf32>
    %96 = vector.shape_cast %56 : vector<1x256xi1> to vector<1x256xi1>
    %97 = vector.broadcast %96 : vector<1x256xi1> to vector<128x256xi1>
    %98 = arith.select %97, %90, %95 : vector<128x256xi1>, vector<128x256xf32>
    %99 = arith.truncf %98 : vector<128x256xf32> to vector<128x256xbf16>
    %c0_35 = arith.constant 0 : index
    %c0_36 = arith.constant 0 : index
    %100 = vector.load %arg6[%c0_35, %c0_36] : memref<256x128xbf16, #tpu.memory_space<vmem>>, vector<256x128xbf16>
    %c0_37 = arith.constant 0 : index
    %c0_38 = arith.constant 0 : index
    %101 = vector.load %arg7[%c0_37, %c0_38] : memref<256x1xf32, #tpu.memory_space<vmem>>, vector<256x1xf32>
    %cst_39 = arith.constant dense<0.000000e+00> : vector<256x256xf32>
    %102 = tpu.matmul %100, %81, %cst_39 {dimension_numbers = #tpu.dot_dimension_numbers<[1], [0], [0], [1], [0, 0, 1, 1], [], []>} : vector<256x128xbf16>, vector<128x256xbf16>, vector<256x256xf32> -> vector<256x256xf32>
    %103 = vector.broadcast %101 : vector<256x1xf32> to vector<256x256xf32>
    %104 = arith.addf %102, %103 : vector<256x256xf32>
    %cst_40 = arith.constant 0.000000e+00 : f32
    %105 = vector.broadcast %cst_40 : f32 to vector<256x256xf32>
    %106 = arith.maximumf %104, %105 : vector<256x256xf32>
    %107 = vector.extract_strided_slice %106 {offsets = [128, 0], sizes = [128, 256], strides = [1, 1]} : vector<256x256xf32> to vector<128x256xf32>
    %108 = vector.extract_strided_slice %106 {offsets = [0, 0], sizes = [128, 256], strides = [1, 1]} : vector<256x256xf32> to vector<128x256xf32>
    %109 = vector.shape_cast %40 : vector<1x256xi1> to vector<1x256xi1>
    %110 = vector.broadcast %109 : vector<1x256xi1> to vector<128x256xi1>
    %111 = arith.select %110, %107, %108 : vector<128x256xi1>, vector<128x256xf32>
    %112 = arith.truncf %111 : vector<128x256xf32> to vector<128x256xbf16>
    %cst_41 = arith.constant dense<0.000000e+00> : vector<256x256xf32>
    %113 = tpu.matmul %100, %99, %cst_41 {dimension_numbers = #tpu.dot_dimension_numbers<[1], [0], [0], [1], [0, 0, 1, 1], [], []>} : vector<256x128xbf16>, vector<128x256xbf16>, vector<256x256xf32> -> vector<256x256xf32>
    %114 = vector.broadcast %101 : vector<256x1xf32> to vector<256x256xf32>
    %115 = arith.addf %113, %114 : vector<256x256xf32>
    %cst_42 = arith.constant 0.000000e+00 : f32
    %116 = vector.broadcast %cst_42 : f32 to vector<256x256xf32>
    %117 = arith.maximumf %115, %116 : vector<256x256xf32>
    %118 = vector.extract_strided_slice %117 {offsets = [128, 0], sizes = [128, 256], strides = [1, 1]} : vector<256x256xf32> to vector<128x256xf32>
    %119 = vector.extract_strided_slice %117 {offsets = [0, 0], sizes = [128, 256], strides = [1, 1]} : vector<256x256xf32> to vector<128x256xf32>
    %120 = vector.shape_cast %50 : vector<1x256xi1> to vector<1x256xi1>
    %121 = vector.broadcast %120 : vector<1x256xi1> to vector<128x256xi1>
    %122 = arith.select %121, %118, %119 : vector<128x256xi1>, vector<128x256xf32>
    %123 = arith.truncf %122 : vector<128x256xf32> to vector<128x256xbf16>
    %c0_43 = arith.constant 0 : index
    %c0_44 = arith.constant 0 : index
    %124 = vector.load %arg8[%c0_43, %c0_44] : memref<256x128xbf16, #tpu.memory_space<vmem>>, vector<256x128xbf16>
    %c0_45 = arith.constant 0 : index
    %c0_46 = arith.constant 0 : index
    %125 = vector.load %arg9[%c0_45, %c0_46] : memref<256x1xf32, #tpu.memory_space<vmem>>, vector<256x1xf32>
    %cst_47 = arith.constant dense<0.000000e+00> : vector<256x256xf32>
    %126 = tpu.matmul %124, %112, %cst_47 {dimension_numbers = #tpu.dot_dimension_numbers<[1], [0], [0], [1], [0, 0, 1, 1], [], []>} : vector<256x128xbf16>, vector<128x256xbf16>, vector<256x256xf32> -> vector<256x256xf32>
    %127 = vector.broadcast %125 : vector<256x1xf32> to vector<256x256xf32>
    %128 = arith.addf %126, %127 : vector<256x256xf32>
    %cst_48 = arith.constant 0.000000e+00 : f32
    %129 = vector.broadcast %cst_48 : f32 to vector<256x256xf32>
    %130 = arith.maximumf %128, %129 : vector<256x256xf32>
    %131 = vector.extract_strided_slice %130 {offsets = [128, 0], sizes = [128, 256], strides = [1, 1]} : vector<256x256xf32> to vector<128x256xf32>
    %132 = vector.extract_strided_slice %130 {offsets = [0, 0], sizes = [128, 256], strides = [1, 1]} : vector<256x256xf32> to vector<128x256xf32>
    %133 = vector.shape_cast %44 : vector<1x256xi1> to vector<1x256xi1>
    %134 = vector.broadcast %133 : vector<1x256xi1> to vector<128x256xi1>
    %135 = arith.select %134, %131, %132 : vector<128x256xi1>, vector<128x256xf32>
    %136 = arith.truncf %135 : vector<128x256xf32> to vector<128x256xbf16>
    %cst_49 = arith.constant dense<0.000000e+00> : vector<256x256xf32>
    %137 = tpu.matmul %124, %123, %cst_49 {dimension_numbers = #tpu.dot_dimension_numbers<[1], [0], [0], [1], [0, 0, 1, 1], [], []>} : vector<256x128xbf16>, vector<128x256xbf16>, vector<256x256xf32> -> vector<256x256xf32>
    %138 = vector.broadcast %125 : vector<256x1xf32> to vector<256x256xf32>
    %139 = arith.addf %137, %138 : vector<256x256xf32>
    %cst_50 = arith.constant 0.000000e+00 : f32
    %140 = vector.broadcast %cst_50 : f32 to vector<256x256xf32>
    %141 = arith.maximumf %139, %140 : vector<256x256xf32>
    %142 = vector.extract_strided_slice %141 {offsets = [128, 0], sizes = [128, 256], strides = [1, 1]} : vector<256x256xf32> to vector<128x256xf32>
    %143 = vector.extract_strided_slice %141 {offsets = [0, 0], sizes = [128, 256], strides = [1, 1]} : vector<256x256xf32> to vector<128x256xf32>
    %144 = vector.shape_cast %54 : vector<1x256xi1> to vector<1x256xi1>
    %145 = vector.broadcast %144 : vector<1x256xi1> to vector<128x256xi1>
    %146 = arith.select %145, %142, %143 : vector<128x256xi1>, vector<128x256xf32>
    %c0_i32_51 = arith.constant 0 : i32
    %147 = arith.cmpi eq, %arg0, %c0_i32_51 : i32
    %c0_i32_52 = arith.constant 0 : i32
    %148 = vector.broadcast %c0_i32_52 : i32 to vector<1x256xi32>
    %149 = arith.cmpi eq, %0, %148 : vector<1x256xi32>
    %150 = vector.broadcast %147 : i1 to vector<1x256xi1>
    %151 = arith.andi %150, %149 : vector<1x256xi1>
    %cst_53 = arith.constant 0.000000e+00 : f32
    %152 = vector.shape_cast %151 : vector<1x256xi1> to vector<1x256xi1>
    %153 = vector.broadcast %152 : vector<1x256xi1> to vector<128x256xi1>
    %154 = vector.broadcast %cst_53 : f32 to vector<128x256xf32>
    %155 = arith.select %153, %154, %146 : vector<128x256xi1>, vector<128x256xf32>
    %156 = arith.truncf %155 : vector<128x256xf32> to vector<128x256xbf16>
    %c0_54 = arith.constant 0 : index
    %c0_55 = arith.constant 0 : index
    %c0_56 = arith.constant 0 : index
    %157 = vector.load %arg10[%c0_54, %c0_55, %c0_56] : memref<2x128x128xbf16, #tpu.memory_space<vmem>>, vector<1x128x128xbf16>
    %158 = vector.shape_cast %157 : vector<1x128x128xbf16> to vector<128x128xbf16>
    %cst_57 = arith.constant dense<0.000000e+00> : vector<128x256xf32>
    %159 = tpu.matmul %158, %136, %cst_57 {dimension_numbers = #tpu.dot_dimension_numbers<[1], [0], [0], [1], [0, 0, 1, 1], [], []>} : vector<128x128xbf16>, vector<128x256xbf16>, vector<128x256xf32> -> vector<128x256xf32>
    %c1 = arith.constant 1 : index
    %c0_58 = arith.constant 0 : index
    %c0_59 = arith.constant 0 : index
    %160 = vector.load %arg10[%c1, %c0_58, %c0_59] : memref<2x128x128xbf16, #tpu.memory_space<vmem>>, vector<1x128x128xbf16>
    %161 = vector.shape_cast %160 : vector<1x128x128xbf16> to vector<128x128xbf16>
    %cst_60 = arith.constant dense<0.000000e+00> : vector<128x256xf32>
    %162 = tpu.matmul %161, %156, %cst_60 {dimension_numbers = #tpu.dot_dimension_numbers<[1], [0], [0], [1], [0, 0, 1, 1], [], []>} : vector<128x128xbf16>, vector<128x256xbf16>, vector<128x256xf32> -> vector<128x256xf32>
    %163 = arith.addf %159, %162 : vector<128x256xf32>
    %c0_61 = arith.constant 0 : index
    %c0_62 = arith.constant 0 : index
    %164 = vector.load %arg11[%c0_61, %c0_62] : memref<128x1xf32, #tpu.memory_space<vmem>>, vector<128x1xf32>
    %165 = vector.broadcast %164 : vector<128x1xf32> to vector<128x256xf32>
    %166 = arith.addf %163, %165 : vector<128x256xf32>
    %cst_63 = arith.constant 0.000000e+00 : f32
    %167 = vector.broadcast %cst_63 : f32 to vector<128x256xf32>
    %168 = arith.maximumf %166, %167 : vector<128x256xf32>
    %c0_64 = arith.constant 0 : index
    %c0_65 = arith.constant 0 : index
    %169 = vector.load %arg12[%c0_64, %c0_65] : memref<128x128xbf16, #tpu.memory_space<vmem>>, vector<128x128xbf16>
    %170 = arith.truncf %168 : vector<128x256xf32> to vector<128x256xbf16>
    %cst_66 = arith.constant dense<0.000000e+00> : vector<128x256xf32>
    %171 = tpu.matmul %169, %170, %cst_66 {dimension_numbers = #tpu.dot_dimension_numbers<[1], [0], [0], [1], [0, 0, 1, 1], [], []>} : vector<128x128xbf16>, vector<128x256xbf16>, vector<128x256xf32> -> vector<128x256xf32>
    %c0_67 = arith.constant 0 : index
    %c0_68 = arith.constant 0 : index
    %172 = vector.load %arg13[%c0_67, %c0_68] : memref<128x1xf32, #tpu.memory_space<vmem>>, vector<128x1xf32>
    %173 = vector.broadcast %172 : vector<128x1xf32> to vector<128x256xf32>
    %174 = arith.addf %171, %173 : vector<128x256xf32>
    %cst_69 = arith.constant 0.000000e+00 : f32
    %175 = vector.broadcast %cst_69 : f32 to vector<128x256xf32>
    %176 = arith.maximumf %174, %175 : vector<128x256xf32>
    %177 = arith.truncf %176 : vector<128x256xf32> to vector<128x256xbf16>
    %c0_70 = arith.constant 0 : index
    %c0_71 = arith.constant 0 : index
    %178 = vector.load %arg14[%c0_70, %c0_71] : memref<128x128xbf16, #tpu.memory_space<vmem>>, vector<128x128xbf16>
    %cst_72 = arith.constant dense<0.000000e+00> : vector<128x256xf32>
    %179 = tpu.matmul %178, %177, %cst_72 {dimension_numbers = #tpu.dot_dimension_numbers<[1], [0], [0], [1], [0, 0, 1, 1], [], []>} : vector<128x128xbf16>, vector<128x256xbf16>, vector<128x256xf32> -> vector<128x256xf32>
    %c0_73 = arith.constant 0 : index
    %c0_74 = arith.constant 0 : index
    %180 = vector.load %arg15[%c0_73, %c0_74] : memref<128x1xf32, #tpu.memory_space<vmem>>, vector<128x1xf32>
    %181 = vector.broadcast %180 : vector<128x1xf32> to vector<128x256xf32>
    %182 = arith.addf %179, %181 : vector<128x256xf32>
    %cst_75 = arith.constant dense<0xFF800000> : vector<256xf32>
    %183 = vector.multi_reduction <maximumf>, %182, %cst_75 [0] : vector<128x256xf32> to vector<256xf32>
    %184 = vector.shape_cast %183 : vector<256xf32> to vector<1x256xf32>
    %185 = vector.broadcast %184 : vector<1x256xf32> to vector<128x256xf32>
    %186 = arith.subf %182, %185 : vector<128x256xf32>
    %187 = math.exp %186 : vector<128x256xf32>
    %cst_76 = arith.constant dense<0.000000e+00> : vector<256xf32>
    %188 = vector.multi_reduction <add>, %187, %cst_76 [0] : vector<128x256xf32> to vector<256xf32>
    %189 = vector.shape_cast %188 : vector<256xf32> to vector<1x256xf32>
    %190 = tpu.reciprocal %189 : vector<1x256xf32> -> vector<1x256xf32>
    %191 = vector.broadcast %190 : vector<1x256xf32> to vector<128x256xf32>
    %192 = arith.mulf %187, %191 : vector<128x256xf32>
    %c0_77 = arith.constant 0 : index
    %c0_78 = arith.constant 0 : index
    %c0_79 = arith.constant 0 : index
    %193 = vector.load %arg16[%c0_77, %c0_78, %c0_79] : memref<1x128x256xf32, #tpu.memory_space<vmem>>, vector<1x128x256xf32>
    %194 = vector.shape_cast %193 : vector<1x128x256xf32> to vector<128x256xf32>
    %195 = vector.shape_cast %192 : vector<128x256xf32> to vector<1x128x256xf32>
    tpu.vector_store %arg16[%c0_77, %c0_78, %c0_79], %195 {strides = array<i32>} : memref<1x128x256xf32, #tpu.memory_space<vmem>>, vector<1x128x256xf32>,
    return
  }
  func.func @transform_0(%arg0: i32, %arg1: i32) -> (i32, i32, i32) {
    %c0_i32 = arith.constant 0 : i32
    %c0_i32_0 = arith.constant 0 : i32
    return %arg1, %c0_i32, %arg0 : i32, i32, i32
  }
  func.func @transform_1(%arg0: i32, %arg1: i32) -> (i32, i32, i32) {
    %c2_i32 = arith.constant 2 : i32
    %0 = arith.muli %arg0, %c2_i32 : i32
    %c1_i32 = arith.constant 1 : i32
    %1 = arith.subi %0, %c1_i32 : i32
    %c0_i32 = arith.constant 0 : i32
    %2 = arith.maxsi %1, %c0_i32 : i32
    %c0_i32_0 = arith.constant 0 : i32
    %c0_i32_1 = arith.constant 0 : i32
    return %arg1, %c0_i32_0, %2 : i32, i32, i32
  }
  func.func @transform_2(%arg0: i32, %arg1: i32) -> (i32, i32) {
    %c0_i32 = arith.constant 0 : i32
    %c0_i32_0 = arith.constant 0 : i32
    %c0_i32_1 = arith.constant 0 : i32
    return %c0_i32, %c0_i32_0 : i32, i32
  }
  func.func @transform_3(%arg0: i32, %arg1: i32) -> (i32, i32) {
    %c0_i32 = arith.constant 0 : i32
    %c0_i32_0 = arith.constant 0 : i32
    %c0_i32_1 = arith.constant 0 : i32
    return %c0_i32, %c0_i32_0 : i32, i32
  }
  func.func @transform_4(%arg0: i32, %arg1: i32) -> (i32, i32) {
    %c0_i32 = arith.constant 0 : i32
    %c0_i32_0 = arith.constant 0 : i32
    %c0_i32_1 = arith.constant 0 : i32
    return %c0_i32, %c0_i32_0 : i32, i32
  }
  func.func @transform_5(%arg0: i32, %arg1: i32) -> (i32, i32) {
    %c0_i32 = arith.constant 0 : i32
    %c0_i32_0 = arith.constant 0 : i32
    %c0_i32_1 = arith.constant 0 : i32
    return %c0_i32, %c0_i32_0 : i32, i32
  }
  func.func @transform_6(%arg0: i32, %arg1: i32) -> (i32, i32) {
    %c0_i32 = arith.constant 0 : i32
    %c0_i32_0 = arith.constant 0 : i32
    %c0_i32_1 = arith.constant 0 : i32
    return %c0_i32, %c0_i32_0 : i32, i32
  }
  func.func @transform_7(%arg0: i32, %arg1: i32) -> (i32, i32) {
    %c0_i32 = arith.constant 0 : i32
    %c0_i32_0 = arith.constant 0 : i32
    %c0_i32_1 = arith.constant 0 : i32
    return %c0_i32, %c0_i32_0 : i32, i32
  }
  func.func @transform_8(%arg0: i32, %arg1: i32) -> (i32, i32, i32) {
    %c0_i32 = arith.constant 0 : i32
    %c0_i32_0 = arith.constant 0 : i32
    %c0_i32_1 = arith.constant 0 : i32
    %c0_i32_2 = arith.constant 0 : i32
    return %c0_i32, %c0_i32_0, %c0_i32_1 : i32, i32, i32
  }
  func.func @transform_9(%arg0: i32, %arg1: i32) -> (i32, i32) {
    %c0_i32 = arith.constant 0 : i32
    %c0_i32_0 = arith.constant 0 : i32
    %c0_i32_1 = arith.constant 0 : i32
    return %c0_i32, %c0_i32_0 : i32, i32
  }
  func.func @transform_10(%arg0: i32, %arg1: i32) -> (i32, i32) {
    %c0_i32 = arith.constant 0 : i32
    %c0_i32_0 = arith.constant 0 : i32
    %c0_i32_1 = arith.constant 0 : i32
    return %c0_i32, %c0_i32_0 : i32, i32
  }
  func.func @transform_11(%arg0: i32, %arg1: i32) -> (i32, i32) {
    %c0_i32 = arith.constant 0 : i32
    %c0_i32_0 = arith.constant 0 : i32
    %c0_i32_1 = arith.constant 0 : i32
    return %c0_i32, %c0_i32_0 : i32, i32
  }
  func.func @transform_12(%arg0: i32, %arg1: i32) -> (i32, i32) {
    %c0_i32 = arith.constant 0 : i32
    %c0_i32_0 = arith.constant 0 : i32
    %c0_i32_1 = arith.constant 0 : i32
    return %c0_i32, %c0_i32_0 : i32, i32
  }
  func.func @transform_13(%arg0: i32, %arg1: i32) -> (i32, i32) {
    %c0_i32 = arith.constant 0 : i32
    %c0_i32_0 = arith.constant 0 : i32
    %c0_i32_1 = arith.constant 0 : i32
    return %c0_i32, %c0_i32_0 : i32, i32
  }
  func.func @transform_14(%arg0: i32, %arg1: i32) -> (i32, i32, i32) {
    %c0_i32 = arith.constant 0 : i32
    %c0_i32_0 = arith.constant 0 : i32
    return %arg1, %c0_i32, %arg0 : i32, i32, i32
  }
}

</mosaic_0001>

<bundles_post_ra>
// kernel: _output_module_x8_impl.1
= control target key start
LH: loop header
LB: loop body
LE: loop exit
PB: predicated region body
PF: predicated region fallthrough
CT: control target
= control target key end

     0   :  { %s10690_s0 = inlined_call_operand.vmem [shape: bf16[2,128,1024], index: 0, kind: input, shape index: {}, may-alias: {0,1}]   ;;  %s10691_s1 = inlined_call_operand.vmem [shape: bf16[2,128,1024], index: 1, kind: input, shape index: {}, may-alias: {0,1}]   ;;  %s10692_s2 = inlined_call_operand.vmem [shape: bf16[256,128], index: 2, kind: input, shape index: {}]   ;;  %s10693_s3 = inlined_call_operand.vmem [shape: f32[256,1], index: 3, kind: input, shape index: {}]   ;;  %s10694_s4 = inlined_call_operand.vmem [shape: bf16[256,128], index: 4, kind: input, shape index: {}]   ;;  %s10695_s5 = inlined_call_operand.vmem [shape: f32[256,1], index: 5, kind: input, shape index: {}]   ;;  %s10696_s6 = inlined_call_operand.vmem [shape: bf16[256,128], index: 6, kind: input, shape index: {}]   ;;  %s10697_s7 = inlined_call_operand.vmem [shape: f32[256,1], index: 7, kind: input, shape index: {}]   ;;  %s10698_s8 = inlined_call_operand.vmem [shape: bf16[2,128,128], index: 8, kind: input, shape index: {}]   ;;  %s10699_s9 = inlined_call_operand.vmem [shape: f32[128,1], index: 9, kind: input, shape index: {}]   ;;  %s10700_s10 = inlined_call_operand.vmem [shape: bf16[128,128], index: 10, kind: input, shape index: {}]   ;;  %s10701_s11 = inlined_call_operand.vmem [shape: f32[128,1], index: 11, kind: input, shape index: {}]   ;;  %s10702_s12 = inlined_call_operand.vmem [shape: bf16[128,128], index: 12, kind: input, shape index: {}]   ;;  %s10703_s13 = inlined_call_operand.vmem [shape: f32[128,1], index: 13, kind: input, shape index: {}]   ;;  %s10704_s14 = inlined_call_operand.hbm [shape: f32[2,128,1024], index: 14, kind: output, shape index: {}]  }
   0x1   :  { %10879 = sst [smem:[#allocation97_spill]] %s10690_s0 }
   0x2   :  { %10880 = sst [smem:[#allocation98_spill]] %s10691_s1 }
   0x3   :  { %10881 = sst [smem:[#allocation99_spill]] %s10692_s2 }
   0x4   :  { %10882 = sst [smem:[#allocation100_spill]] %s10693_s3 }
   0x5   :  { %10883 = sst [smem:[#allocation101_spill]] %s10694_s4 }
   0x6   :  { %10884 = sst [smem:[#allocation102_spill]] %s10695_s5 }
   0x7   :  { %10885 = sst [smem:[#allocation103_spill]] %s10696_s6 }
   0x8   :  { %10886 = sst [smem:[#allocation104_spill]] %s10698_s8 }
   0x9   :  { %10887 = sst [smem:[#allocation105_spill]] %s10700_s10 }
   0xa   :  { %10888 = sst [smem:[#allocation106_spill]] %s10702_s12 }
   0xb   :  { %10889 = sst [smem:[#allocation107_spill]] %s10703_s13 }
   0xc   :  { %10890 = sst [smem:[#allocation108_spill]] %s10704_s14 }
   0xd   :  { %19 = vsyncpa [#allocation5], 0 }
   0xe   :  { %21 = vsyncpa [#allocation5 + $0x1], 0  ;;  %s6372_s29 = smov 0   ;;  %s6374_s30 = smov 0  }
   0xf   :  { %s6376_s15 = smov 0   ;;  %s6378_s16 = smov 0  }
  0x10   :  { %s6380_s17 = smov 0   ;;  %s6382_s18 = smov 0  }
  0x11   :  { %s6384_s19 = smov 0   ;;  %s6386_s20 = smov 0  }
  0x12   :  { %s6388_s21 = smov 0   ;;  %s6390_s22 = smov 0  }
  0x13 LB: > { %10891 = sst [smem:[#allocation7_spill]] %s6273_s18  ;;  %s5260_s23 = sadd.s32 4294967295, %s6289_s22   ;;  %s6289_s22 = sphi %s6390_s22, %s27_s22   ;;  %s6285_s21 = sphi %s6388_s21, %s11519_s21   ;;  %s6281_s20 = sphi %s6386_s20, %s11518_s20   ;;  %s6277_s19 = sphi %s6384_s19, %s11517_s19   ;;  %s6273_s18 = sphi %s6382_s18, %s11516_s18   ;;  %s6269_s17 = sphi %s6380_s17, %s11515_s17   ;;  %s6265_s16 = sphi %s6378_s16, %s11514_s16   ;;  %s6261_s15 = sphi %s6376_s15, %s11513_s15   ;;  %s6257_s30 = sphi %s6374_s30, %s11512_s30   ;;  %s6253_s29 = sphi %s6372_s29, %s11511_s29  }
  0x14   : > { %10892 = sst [smem:[#allocation8_spill]] %s6277_s19  ;;  %s36_s25 = sadd.s32 1, %s6281_s20 }
  0x15   : > { %s39_s26 = sadd.s32 1, %s6285_s21  ;;  %p37_p0 = scmp.ge.s32.totalorder %s36_s25, 2 }
  0x16   : > { %s48_s27 = sadd.s32 1, %s6269_s17  ;;  %p55_p1 = scmp.ne.s32.totalorder %s6269_s17, %s6265_s16 }
  0x17   : > { %p56_p2 = scmp.eq.s32.totalorder %s6289_s22, 0  ;;  %s11521_s25 = smov (%p37_p0, %s36_s25), 0 }
  0x18   : > { %10893 = sst [smem:[#allocation9_spill]] %s11521_s25  ;;  %s11523_s26 = smov (!%p37_p0, %s39_s26), %s6285_s21 }
  0x19   : > { %s43_s28 = ssub.s32 %s6281_s20, %s11521_s25  ;;  %p6440_p3 = por %p56_p2, %p55_p1 }
  0x1a   : > { %p41_p4 = scmp.ge.s32.totalorder %s11523_s26, 4  ;;  %s10711_s24 = sshll.u32 %s6285_s21, 1 }
  0x1b   : > { %s5263_s18 = sadd.s32 4294967295, %s10711_s24  ;;  %s84_s12 = sadd.s32 1, %s6261_s15 }
  0x1c   : > { %s11525_s26 = smov (%p41_p4, %s11523_s26), 0  ;;  %p73_p5 = scmp.gt.s32.totalorder %s5263_s18, 0 }
  0x1d   : > { %10895 = sst [smem:[#allocation10_spill]] %s11525_s26  ;;  %p91_p6 = scmp.ne.s32.totalorder %s6261_s15, %s6257_s30 }
  0x1e   : > { %s44_s25 = ssub.s32 %s6285_s21, %s11525_s26  ;;  %s5264_s10 = sshll.u32 %s11525_s26, 1 }
  0x1f   : > { %s45_s8 = sor.u32 %s44_s25, %s43_s28  ;;  %s5265_s19 = sadd.s32 4294967295, %s5264_s10 }
  0x20   : > { %p46_p7 = scmp.eq.s32.totalorder %s45_s8, 0  ;;  %p77_p8 = scmp.gt.s32.totalorder %s5265_s19, 0 }
  0x21   : > { %s11527_s18 = smov (!%p73_p5, %s5263_s18), 0  ;;  %p6462_p9 = por %p91_p6, %p56_p2 }
  0x22   : > { %s6458_s24 = scalar_select %p46_p7, %s6269_s17, %s48_s27  }
  0x23   : > { %s11529_s19 = smov (!%p77_p8, %s5265_s19), 0  ;;  %p375_p10 = scmp.eq.s32.totalorder %s5260_s23, 7 }
  0x24   : > { %10896 = sst [smem:[#allocation11_spill]] %s6458_s24  ;;  %s80_s13 = ssub.s32 %s11527_s18, %s11529_s19 }
  0x25   : > { %p380_p11 = scmp.ne.s32.totalorder %s6265_s16, %s6253_s29  ;;  %s81_s26 = sor.u32 %s80_s13, %s43_s28 }
  0x26   : > { %p6472_p12 = por %p375_p10, %p55_p1  ;;  %p82_p13 = scmp.eq.s32.totalorder %s81_s26, 0 }
  0x27   : > { %s10899_s8 = sadd.s32 4294967294, %s6289_s22   ;;  %p5267_p2 = scmp.ge.s32.totalorder %s6289_s22, 8 }
  0x28   : > { %p381_p0 = scmp.eq.s32.totalorder %s10899_s8, 7 }
  0x29   : > { %s6479_s25 = scalar_select %p82_p13, %s6261_s15, %s84_s12  }
  0x2a   : > { %p6481_p4 = por %p381_p0, %p380_p11  ;;  %433 = sbr.rel (%p5267_p2) target bundleno = 99 (0x63), region = 64 }
  0x2b   : > { %10900 = sst [smem:[#allocation12_spill]] %s6479_s25 }
  0x2f   : > { %436 = sbr.rel (!%p6440_p3) target bundleno = 73 (0x49), region = 68  ;;  %s438_s13 = sand.u32 (%p6440_p3), 1, %s6269_s17  }
  0x30   : > { %s5270_s19 = sshll.u32 (%p6440_p3), %s6281_s20, 7  ;;  %s5268_s23 = sshll.u32 (%p6440_p3), %s438_s13, 7 }
  0x31   : > { %s10902_s26 = sshll.u32 (%p6440_p3), %s6285_s21, 1  ;;  %s10903_s0 = sld [smem:[#allocation97_spill]] (%p6440_p3) }
  0x32   : > { %s443_s28 = sadd.s32 (%p6440_p3), %s5270_s19, %s10902_s26  ;;  %s440_s14 = scalar_lea.vmem (%p6440_p3), [#allocation2], %s5268_s23 }
  0x33   : > { %s5271_s12 = sshll.u32 (%p6440_p3), %s443_s28, 2 }
  0x37   : > { %s6495_s25 = scalar_lea.vmem %s10903_s0, %s5271_s12 }
  0x38   : > { %v504_v0 = vld [vmem:[%s6495_s25] sm:$0xff] }
  0x39   : > { %v506_v1 = vld [vmem:[%s6495_s25 + $0x20] sm:$0xff]  ;;  %505 = vst [vmem:[%s440_s14] sm:$0xff] %v504_v0 }
  0x3a   : > { %v508_v2 = vld [vmem:[%s6495_s25 + $0x40] sm:$0xff]  ;;  %507 = vst [vmem:[%s440_s14 + $0x8] sm:$0xff] %v506_v1 }
  0x3b   : > { %v510_v3 = vld [vmem:[%s6495_s25 + $0x60] sm:$0xff]  ;;  %509 = vst [vmem:[%s440_s14 + $0x10] sm:$0xff] %v508_v2 }
  0x3c   : > { %v512_v4 = vld [vmem:[%s6495_s25 + $0x80] sm:$0xff]  ;;  %511 = vst [vmem:[%s440_s14 + $0x18] sm:$0xff] %v510_v3 }
  0x3d   : > { %v514_v5 = vld [vmem:[%s6495_s25 + $0xa0] sm:$0xff]  ;;  %513 = vst [vmem:[%s440_s14 + $0x20] sm:$0xff] %v512_v4 }
  0x3e   : > { %v516_v6 = vld [vmem:[%s6495_s25 + $0xc0] sm:$0xff]  ;;  %515 = vst [vmem:[%s440_s14 + $0x28] sm:$0xff] %v514_v5 }
  0x3f   : > { %v518_v7 = vld [vmem:[%s6495_s25 + $0xe0] sm:$0xff]  ;;  %517 = vst [vmem:[%s440_s14 + $0x30] sm:$0xff] %v516_v6 }
  0x40   : > { %v520_v8 = vld [vmem:[%s6495_s25 + $0x100] sm:$0xff]  ;;  %519 = vst [vmem:[%s440_s14 + $0x38] sm:$0xff] %v518_v7 }
  0x41   : > { %v522_v9 = vld [vmem:[%s6495_s25 + $0x120] sm:$0xff]  ;;  %521 = vst [vmem:[%s440_s14 + $0x40] sm:$0xff] %v520_v8 }
  0x42   : > { %v524_v10 = vld [vmem:[%s6495_s25 + $0x140] sm:$0xff]  ;;  %523 = vst [vmem:[%s440_s14 + $0x48] sm:$0xff] %v522_v9 }
  0x43   : > { %v526_v11 = vld [vmem:[%s6495_s25 + $0x160] sm:$0xff]  ;;  %525 = vst [vmem:[%s440_s14 + $0x50] sm:$0xff] %v524_v10 }
  0x44   : > { %v528_v12 = vld [vmem:[%s6495_s25 + $0x180] sm:$0xff]  ;;  %527 = vst [vmem:[%s440_s14 + $0x58] sm:$0xff] %v526_v11 }
  0x45   : > { %v530_v13 = vld [vmem:[%s6495_s25 + $0x1a0] sm:$0xff]  ;;  %529 = vst [vmem:[%s440_s14 + $0x60] sm:$0xff] %v528_v12 }
  0x46   : > { %v532_v14 = vld [vmem:[%s6495_s25 + $0x1c0] sm:$0xff]  ;;  %531 = vst [vmem:[%s440_s14 + $0x68] sm:$0xff] %v530_v13 }
  0x47   : > { %v534_v15 = vld [vmem:[%s6495_s25 + $0x1e0] sm:$0xff]  ;;  %533 = vst [vmem:[%s440_s14 + $0x70] sm:$0xff] %v532_v14 }
  0x48   : > { %535 = vst [vmem:[%s440_s14 + $0x78] sm:$0xff] %v534_v15 }
  0x49 PF: > { %541 = sbr.rel (!%p6462_p9) target bundleno = 99 (0x63), region = 106  ;;  %s543_s24 = sand.u32 (%p6462_p9), 1, %s6261_s15  }
  0x4a   : > { %s5275_s13 = sshll.u32 (%p6462_p9), %s6281_s20, 7  ;;  %s5272_s19 = sshll.u32 (%p6462_p9), %s543_s24, 6 }
  0x4b   : > { %s551_s23 = sadd.s32 (%p6462_p9), %s5275_s13, %s11527_s18  ;;  %s10904_s1 = sld [smem:[#allocation98_spill]] (%p6462_p9) }
  0x4c   : > { %s5276_s26 = sshll.u32 (%p6462_p9), %s551_s23, 2  ;;  %s545_s6 = scalar_lea.vmem (%p6462_p9), [#allocation3], %s5272_s19 }
  0x51   : > { %s6521_s8 = scalar_lea.vmem %s10904_s1, %s5276_s26 }
  0x52   : > { %v570_v16 = vld [vmem:[%s6521_s8] sm:$0xf] }
  0x53   : > { %v572_v17 = vld [vmem:[%s6521_s8 + $0x20] sm:$0xf]  ;;  %571 = vst [vmem:[%s545_s6] sm:$0xf] %v570_v16 }
  0x54   : > { %v574_v18 = vld [vmem:[%s6521_s8 + $0x40] sm:$0xf]  ;;  %573 = vst [vmem:[%s545_s6 + $0x4] sm:$0xf] %v572_v17 }
  0x55   : > { %v576_v19 = vld [vmem:[%s6521_s8 + $0x60] sm:$0xf]  ;;  %575 = vst [vmem:[%s545_s6 + $0x8] sm:$0xf] %v574_v18 }
  0x56   : > { %v578_v20 = vld [vmem:[%s6521_s8 + $0x80] sm:$0xf]  ;;  %577 = vst [vmem:[%s545_s6 + $0xc] sm:$0xf] %v576_v19 }
  0x57   : > { %v580_v21 = vld [vmem:[%s6521_s8 + $0xa0] sm:$0xf]  ;;  %579 = vst [vmem:[%s545_s6 + $0x10] sm:$0xf] %v578_v20 }
  0x58   : > { %v582_v22 = vld [vmem:[%s6521_s8 + $0xc0] sm:$0xf]  ;;  %581 = vst [vmem:[%s545_s6 + $0x14] sm:$0xf] %v580_v21 }
  0x59   : > { %v584_v23 = vld [vmem:[%s6521_s8 + $0xe0] sm:$0xf]  ;;  %583 = vst [vmem:[%s545_s6 + $0x18] sm:$0xf] %v582_v22 }
  0x5a   : > { %v586_v24 = vld [vmem:[%s6521_s8 + $0x100] sm:$0xf]  ;;  %585 = vst [vmem:[%s545_s6 + $0x1c] sm:$0xf] %v584_v23 }
  0x5b   : > { %v588_v25 = vld [vmem:[%s6521_s8 + $0x120] sm:$0xf]  ;;  %587 = vst [vmem:[%s545_s6 + $0x20] sm:$0xf] %v586_v24 }
  0x5c   : > { %v590_v26 = vld [vmem:[%s6521_s8 + $0x140] sm:$0xf]  ;;  %589 = vst [vmem:[%s545_s6 + $0x24] sm:$0xf] %v588_v25 }
  0x5d   : > { %v592_v27 = vld [vmem:[%s6521_s8 + $0x160] sm:$0xf]  ;;  %591 = vst [vmem:[%s545_s6 + $0x28] sm:$0xf] %v590_v26 }
  0x5e   : > { %v594_v28 = vld [vmem:[%s6521_s8 + $0x180] sm:$0xf]  ;;  %593 = vst [vmem:[%s545_s6 + $0x2c] sm:$0xf] %v592_v27 }
  0x5f   : > { %v596_v29 = vld [vmem:[%s6521_s8 + $0x1a0] sm:$0xf]  ;;  %595 = vst [vmem:[%s545_s6 + $0x30] sm:$0xf] %v594_v28 }
  0x60   : > { %v598_v30 = vld [vmem:[%s6521_s8 + $0x1c0] sm:$0xf]  ;;  %597 = vst [vmem:[%s545_s6 + $0x34] sm:$0xf] %v596_v29 }
  0x61   : > { %v600_v31 = vld [vmem:[%s6521_s8 + $0x1e0] sm:$0xf]  ;;  %599 = vst [vmem:[%s545_s6 + $0x38] sm:$0xf] %v598_v30 }
  0x62   : > { %601 = vst [vmem:[%s545_s6 + $0x3c] sm:$0xf] %v600_v31 }
  0x63 PF: > { %p5277_p1 = scmp.ge.s32.totalorder %s6289_s22, 1  ;;  %p656_p3 = scmp.lt.s32.totalorder %s6289_s22, 9 }
  0x65   : > { %p657_p5 = pnand %p5277_p1, %p656_p3 }
  0x67   : > { %660 = sbr.rel (%p657_p5) target bundleno = 2607 (0xa2f), region = 147 }
  0x6c   : > { %s6542_s18 = sand.u32 1, %s6265_s16   ;;  %s10905_s3 = sld [smem:[#allocation100_spill]]  ;;  %v10715_v34 = vmov 0  }
  0x6d   : > { %s5278_s19 = sshll.u32 %s6542_s18, 7  ;;  %5981 = vset.pattern.permute.xlu1 %v10715_v34  ;;  %5980 = vset.pattern.permute.xlu0 %v10715_v34  ;;  %s670_s13 = sand.u32 1, %s6257_s30  }
  0x6e   : > { %s6553_s23 = scalar_lea.vmem [#allocation2], %s5278_s19  ;;  %5982 = vset.pattern.permute.xlu2 %v10715_v34  ;;  %s10906_s2 = sld [smem:[#allocation99_spill]] }
  0x6f   : > { %v5403_v35 = vld [vmem:[%s6553_s23 + $0x70] sm:$0xf]  ;;  %v5790_v36 = vld [vmem:[%s6553_s23 + $0x74] sm:$0xf0]  ;;  %v5395_v38 = vld [vmem:[%s6553_s23 + $0x60] sm:$0xf] }
  0x70   : > { %v5404_v37 = vor.u32 %v5790_v36, %v5403_v35  ;;  %v5788_v39 = vld [vmem:[%s6553_s23 + $0x64] sm:$0xf0]  ;;  %v5387_v41 = vld [vmem:[%s6553_s23 + $0x50] sm:$0xf]  ;;  %v5786_v42 = vld [vmem:[%s6553_s23 + $0x54] sm:$0xf0] }
  0x71   : > { %v5396_v40 = vor.u32 %v5788_v39, %v5395_v38  ;;  %v5388_v45 = vor.u32 %v5786_v42, %v5387_v41  ;;  %v5379_v46 = vld [vmem:[%s6553_s23 + $0x40] sm:$0xf]  ;;  %v5784_v47 = vld [vmem:[%s6553_s23 + $0x44] sm:$0xf0]  ;;  %v5371_v50 = vld [vmem:[%s6553_s23 + $0x30] sm:$0xf] }
  0x72   : > { %v878_v32 = vld [vmem:[%s10905_s3 + $0xf0] sm:$0xff]  ;;  %v876_v33 = vld [vmem:[%s10905_s3 + $0xe0] sm:$0xff]  ;;  %1216 = vmatpush.bf16.msra.mxu0 %v5404_v37  ;;  %5863 = vmatpush.bf16.msra.mxu1 %v5404_v37  ;;  %v879_v43 = vld [vmem:[%s10905_s3 + $0xf8] sm:$0xff]  ;;  %v5380_v49 = vor.u32 %v5784_v47, %v5379_v46  ;;  %s5279_s28 = sshll.u32 %s670_s13, 6  ;;  %s6292_s25 = smov 1  }
  0x73   : > { %1032 = vperm.xlu0 %5980, %v878_v32   ;;  %1022 = vperm.xlu1 %5981, %v876_v33   ;;  %v877_v44 = vld [vmem:[%s10905_s3 + $0xe8] sm:$0xff]  ;;  %v874_v48 = vld [vmem:[%s10905_s3 + $0xd0] sm:$0xff]  ;;  %v5782_v51 = vld [vmem:[%s6553_s23 + $0x34] sm:$0xf0]  ;;  %s6633_s12 = scalar_lea.vmem [#allocation3], %s5279_s28  ;;  %s10975_s5 = sld [smem:[#allocation102_spill]] }
  0x74   : > { %5864 = vmatpush.bf16.msra.mxu2 %v5404_v37  ;;  %5865 = vmatpush.bf16.msra.mxu3 %v5404_v37  ;;  %v872_v52 = vld [vmem:[%s10905_s3 + $0xc0] sm:$0xff]  ;;  %v873_v53 = vld [vmem:[%s10905_s3 + $0xc8] sm:$0xff]  ;;  %v5372_v54 = vor.u32 %v5782_v51, %v5371_v50  ;;  %v875_v57 = vld [vmem:[%s10905_s3 + $0xd8] sm:$0xff]  ;;  %s11024_s4 = sld [smem:[#allocation101_spill]]  ;;  %s5280_s30 = sshll.u32 %s6542_s18, 8 }
  0x75   : > { %1012 = vperm.xlu2 %5982, %v874_v48   ;;  %v5363_v55 = vld [vmem:[%s6553_s23 + $0x20] sm:$0xf]  ;;  %v5780_v56 = vld [vmem:[%s6553_s23 + $0x24] sm:$0xf0]  ;;  %v5355_v59 = vld [vmem:[%s6553_s23 + $0x10] sm:$0xf] }
  0x76   : > { %1217 = vmatpush.bf16.msra.mxu0 %v5396_v40  ;;  %5866 = vmatpush.bf16.msra.mxu1 %v5396_v40  ;;  %v5364_v58 = vor.u32 %v5780_v56, %v5363_v55  ;;  %v5778_v60 = vld [vmem:[%s6553_s23 + $0x14] sm:$0xf0]  ;;  %v868_v62 = vld [vmem:[%s10905_s3 + $0xa0] sm:$0xff]  ;;  %v5776_v1 = vld [vmem:[%s6553_s23 + $0x4] sm:$0xf0]  ;;  %s11026_s28 = sld [smem:[#allocation107_spill]] }
  0x77   : > { %v871_v61 = vld [vmem:[%s10905_s3 + $0xb8] sm:$0xff]  ;;  %v5356_v63 = vor.u32 %v5778_v60, %v5355_v59  ;;  %v5347_v0 = vld [vmem:[%s6553_s23] sm:$0xf]  ;;  %v5789_v2 = vld [vmem:[%s6553_s23 + $0x74] sm:$0xf]  ;;  %s11247_s19 = sld [smem:[#allocation103_spill]] }
  0x78   : > { %5867 = vmatpush.bf16.msra.mxu2 %v5396_v40  ;;  %5868 = vmatpush.bf16.msra.mxu3 %v5396_v40  ;;  %v5405_v3 = vld [vmem:[%s6553_s23 + $0x78] sm:$0xf0]  ;;  %v870_v4 = vld [vmem:[%s10905_s3 + $0xb0] sm:$0xff]  ;;  %v5348_v5 = vor.u32 %v5776_v1, %v5347_v0  ;;  %v6605_v7 = vld [vmem:[%s10906_s2] sm:$0xff]  ;;  %s11388_s26 = sld [smem:[#allocation8_spill]]  ;;  %s10515_s6 = scalar_lea.vmem [#allocation4], %s5280_s30 }
  0x79   : > { %v5408_v6 = vor.u32 %v5789_v2, %v5405_v3  ;;  %v5787_v8 = vld [vmem:[%s6553_s23 + $0x64] sm:$0xf]  ;;  %v5397_v9 = vld [vmem:[%s6553_s23 + $0x68] sm:$0xf0]  ;;  %v6612_v10 = vld [vmem:[%s10906_s2 + $0x50] sm:$0xff]  ;;  %s11504_s24 = sld [smem:[#allocation106_spill]] }
  0x7a   : > { %1218 = vmatpush.bf16.msra.mxu0 %v5388_v45  ;;  %5869 = vmatpush.bf16.msra.mxu1 %v5388_v45  ;;  %v867_v11 = vld [vmem:[%s10905_s3 + $0x98] sm:$0xff]  ;;  %v866_v12 = vld [vmem:[%s10905_s3 + $0x90] sm:$0xff]  ;;  %v6623_v13 = vld [vmem:[%s10906_s2 + $0x60] sm:$0xff]  ;;  %v5400_v14 = vor.u32 %v5787_v8, %v5397_v9  ;;  %s5152_s0 = sshll.u32 %s10515_s6, 4  ;;  %s5153_s0 = int_to_ptr.vmem [resolvable:$true] %s5152_s0 }
  0x7b   : > { %1037 = vperm.xlu0 %5980, %v879_v43   ;;  %1027 = vperm.xlu1 %5981, %v877_v44   ;;  %v5785_v15 = vld [vmem:[%s6553_s23 + $0x54] sm:$0xf]  ;;  %v5389_v16 = vld [vmem:[%s6553_s23 + $0x58] sm:$0xf0]  ;;  %v869_v17 = vld [vmem:[%s10905_s3 + $0xa8] sm:$0xff] }
  0x7c   : > { %5870 = vmatpush.bf16.msra.mxu2 %v5388_v45  ;;  %5871 = vmatpush.bf16.msra.mxu3 %v5388_v45  ;;  %v5798_v18 = vld [vmem:[%s6633_s12 + $0x38] sm:$0xff]  ;;  %v5392_v19 = vor.u32 %v5785_v15, %v5389_v16  ;;  %v5783_v20 = vld [vmem:[%s6553_s23 + $0x44] sm:$0xf]  ;;  %v5381_v21 = vld [vmem:[%s6553_s23 + $0x48] sm:$0xf0] }
  0x7d   : > { %1017 = vperm.xlu2 %5982, %v875_v57   ;;  %v865_v22 = vld [vmem:[%s10905_s3 + $0x88] sm:$0xff]  ;;  %v862_v23 = vld [vmem:[%s10905_s3 + $0x70] sm:$0xff]  ;;  %v5384_v25 = vor.u32 %v5783_v20, %v5381_v21  ;;  %v5373_v27 = vld [vmem:[%s6553_s23 + $0x38] sm:$0xf0]  ;;  %s11248_s13 = smov %s11247_s19 }
  0x7e   : > { %1219 = vmatpush.bf16.msra.mxu0 %v5380_v49  ;;  %5872 = vmatpush.bf16.msra.mxu1 %v5380_v49  ;;  %v5797_v24 = vld [vmem:[%s6633_s12 + $0x30] sm:$0xff]  ;;  %v864_v28 = vld [vmem:[%s10905_s3 + $0x80] sm:$0xff]  ;;  %v5796_v29 = vld [vmem:[%s6633_s12 + $0x28] sm:$0xff]  ;;  %p3742_p6 = scmp.eq.s32.totalorder %s11388_s26, 0  ;;  %s5754_s14 = sshll.u32 %s11388_s26, 1 }
  0x7f   : > { %v5781_v26 = vld [vmem:[%s6553_s23 + $0x34] sm:$0xf]  ;;  %v5760_v31 = vld [vmem:[%s10906_s2 + $0x8] sm:$0xff]  ;;  %v5779_v32 = vld [vmem:[%s6553_s23 + $0x24] sm:$0xf] }
  0x80   : > { %5873 = vmatpush.bf16.msra.mxu2 %v5380_v49  ;;  %5874 = vmatpush.bf16.msra.mxu3 %v5380_v49  ;;  %v5376_v30 = vor.u32 %v5781_v26, %v5373_v27  ;;  %v5365_v33 = vld [vmem:[%s6553_s23 + $0x28] sm:$0xf0]  ;;  %v6659_v35 = vld [vmem:[%s10906_s2 + $0x58] sm:$0xff]  ;;  %v858_v37 = vld [vmem:[%s10905_s3 + $0x50] sm:$0xff]  ;;  %s9673_s8 = scalar_select %p3742_p6, 1, 0 }
  0x81   : > { %v861_v36 = vld [vmem:[%s10905_s3 + $0x68] sm:$0xff]  ;;  %v5795_v38 = vld [vmem:[%s6633_s12 + $0x20] sm:$0xff]  ;;  %v5368_v39 = vor.u32 %v5779_v32, %v5365_v33  ;;  %v5777_v40 = vld [vmem:[%s6553_s23 + $0x14] sm:$0xf] }
  0x82   : > { %1220 = vmatpush.bf16.msra.mxu0 %v5372_v54  ;;  %5875 = vmatpush.bf16.msra.mxu1 %v5372_v54  ;;  %v5357_v41 = vld [vmem:[%s6553_s23 + $0x18] sm:$0xf0]  ;;  %v6674_v42 = vld [vmem:[%s10906_s2 + $0x68] sm:$0xff]  ;;  %v5775_v46 = vld [vmem:[%s6553_s23 + $0x4] sm:$0xf] }
  0x83   : > { %1002 = vperm.xlu0 %5980, %v872_v52   ;;  %1007 = vperm.xlu1 %5981, %v873_v53   ;;  %v863_v43 = vld [vmem:[%s10905_s3 + $0x78] sm:$0xff]  ;;  %v5360_v45 = vor.u32 %v5777_v40, %v5357_v41  ;;  %v5349_v47 = vld [vmem:[%s6553_s23 + $0x8] sm:$0xf0]  ;;  %v856_v48 = vld [vmem:[%s10905_s3 + $0x40] sm:$0xff]  ;;  %v725_v41 = vlaneseq  ;;  %s11469_s23 = sld [smem:[#allocation104_spill]] }
  0x84   : > { %5876 = vmatpush.bf16.msra.mxu2 %v5372_v54  ;;  %5877 = vmatpush.bf16.msra.mxu3 %v5372_v54  ;;  %v5794_v44 = vld [vmem:[%s6633_s12 + $0x18] sm:$0xff]  ;;  %v854_v49 = vld [vmem:[%s10905_s3 + $0x30] sm:$0xff]  ;;  %v5352_v51 = vor.u32 %v5775_v46, %v5349_v47  ;;  %v860_v52 = vld [vmem:[%s10905_s3 + $0x60] sm:$0xff] }
  0x85   : > { %992 = vperm.xlu2 %5982, %v870_v4   ;;  %v5793_v50 = vld [vmem:[%s6633_s12 + $0x10] sm:$0xff]  ;;  %v5792_v53 = vld [vmem:[%s6633_s12 + $0x8] sm:$0xff]  ;;  %v855_v55 = vld [vmem:[%s10905_s3 + $0x38] sm:$0xff] }
  0x86   : > { %1221 = vmatpush.bf16.msra.mxu0 %v5364_v58  ;;  %5878 = vmatpush.bf16.msra.mxu1 %v5364_v58  ;;  %v5761_v54 = vld [vmem:[%s10906_s2 + $0x10] sm:$0xff]  ;;  %v852_v56 = vld [vmem:[%s10905_s3 + $0x20] sm:$0xff]  ;;  %v859_v59 = vld [vmem:[%s10905_s3 + $0x58] sm:$0xff] }
  0x87   : > { %v5791_v57 = vld [vmem:[%s6633_s12] sm:$0xff]  ;;  %v853_v60 = vld [vmem:[%s10905_s3 + $0x28] sm:$0xff]  ;;  %v850_v1 = vld [vmem:[%s10905_s3 + $0x10] sm:$0xff]  ;;  %s11505_s12 = sld [smem:[#allocation7_spill]] }
  0x88   : > { %5879 = vmatpush.bf16.msra.mxu2 %v5364_v58  ;;  %5880 = vmatpush.bf16.msra.mxu3 %v5364_v58  ;;  %v6708_v58 = vld [vmem:[%s10906_s2 + $0x40] sm:$0xff]  ;;  %v6729_v0 = vld [vmem:[%s10906_s2 + $0x48] sm:$0xff]  ;;  %v6737_v2 = vld [vmem:[%s10906_s2 + $0x70] sm:$0xff] }
  0x89   : > { %v5763_v3 = vld [vmem:[%s10906_s2 + $0x20] sm:$0xff]  ;;  %v6747_v4 = vld [vmem:[%s10906_s2 + $0x78] sm:$0xff] }
  0x8a   : > { %1222 = vmatpush.bf16.msra.mxu0 %v5356_v63  ;;  %5881 = vmatpush.bf16.msra.mxu1 %v5356_v63 }
  0x8b   : > { %997 = vperm.xlu0 %5980, %v871_v61   ;;  %982 = vperm.xlu1 %5981, %v868_v62   ;;  %v851_v61 = vld [vmem:[%s10905_s3 + $0x18] sm:$0xff]  ;;  %v857_v62 = vld [vmem:[%s10905_s3 + $0x48] sm:$0xff] }
  0x8c   : > { %5882 = vmatpush.bf16.msra.mxu2 %v5356_v63  ;;  %5883 = vmatpush.bf16.msra.mxu3 %v5356_v63  ;;  %v5762_v63 = vld [vmem:[%s10906_s2 + $0x18] sm:$0xff] }
  0x8d   : > { %987 = vperm.xlu2 %5982, %v869_v17  }
  0x8e   : > { %1223 = vmatpush.bf16.msra.mxu0 %v5348_v5  ;;  %5884 = vmatpush.bf16.msra.mxu1 %v5348_v5 }
  0x90   : > { %5885 = vmatpush.bf16.msra.mxu2 %v5348_v5  ;;  %5886 = vmatpush.bf16.msra.mxu3 %v5348_v5  ;;  %v5764_v5 = vld [vmem:[%s10906_s2 + $0x28] sm:$0xff] }
  0x91   : > { %1224 = vmatmul.bf16.vlgmr.msra.gmra.mxu0 %v6605_v7  ;;  %1274 = vmatmul.bf16.vlgmr.msra.gmra.mxu1 %v6612_v10 }
  0x92   : > { %1305 = vmatpush.bf16.msrb.mxu1 %v5408_v6 }
  0x93   : > { %977 = vperm.xlu1 %5981, %v867_v11   ;;  %972 = vperm.xlu0 %5980, %v866_v12   ;;  %v5765_v11 = vld [vmem:[%s10906_s2 + $0x30] sm:$0xff] }
  0x94   : > { %1284 = vmatmul.bf16.vlgmr.msra.gmra.mxu2 %v6623_v13  ;;  %1294 = vmatmul.bf16.vlgmr.msra.gmra.mxu3 %v6737_v2 }
  0x95   : > { %1522 = vmatpush.bf16.msrb.mxu2 %v5798_v18  ;;  %962 = vperm.xlu2 %5982, %v864_v28   ;;  %v5766_v18 = vld [vmem:[%s10906_s2 + $0x38] sm:$0xff] }
  0x96   : > { %1306 = vmatpush.bf16.msrb.mxu1 %v5400_v14 }
  0x99   : > { %1523 = vmatpush.bf16.msrb.mxu2 %v5797_v24 }
  0x9a   : > { %1307 = vmatpush.bf16.msrb.mxu1 %v5392_v19 }
  0x9b   : > { %967 = vperm.xlu0 %5980, %v865_v22   ;;  %952 = vperm.xlu1 %5981, %v862_v23  }
  0x9d   : > { %1524 = vmatpush.bf16.msrb.mxu2 %v5796_v29  ;;  %957 = vperm.xlu2 %5982, %v863_v43  }
  0x9e   : > { %1308 = vmatpush.bf16.msrb.mxu1 %v5384_v25 }
  0xa1   : > { %1229 = vmatmul.bf16.gmra.mxu0 %v5760_v31  ;;  %1279 = vmatmul.bf16.gmra.mxu1 %v6659_v35 }
  0xa2   : > { %1309 = vmatpush.bf16.msrb.mxu1 %v5376_v30  ;;  %1525 = vmatpush.bf16.msrb.mxu2 %v5795_v38 }
  0xa3   : > { %947 = vperm.xlu0 %5980, %v861_v36   ;;  %932 = vperm.xlu1 %5981, %v858_v37  }
  0xa4   : > { %1289 = vmatmul.bf16.gmra.mxu2 %v6674_v42  ;;  %1299 = vmatmul.bf16.gmra.mxu3 %v6747_v4 }
  0xa5   : > { %942 = vperm.xlu2 %5982, %v860_v52  }
  0xa6   : > { %1310 = vmatpush.bf16.msrb.mxu1 %v5368_v39  ;;  %1526 = vmatpush.bf16.msrb.mxu2 %v5794_v44 }
  0xaa   : > { %1311 = vmatpush.bf16.msrb.mxu1 %v5360_v45  ;;  %1527 = vmatpush.bf16.msrb.mxu2 %v5793_v50  ;;  %v6818_v50 = vand.u32 127, %v725_v41 }
  0xab   : > { %922 = vperm.xlu1 %5981, %v856_v48   ;;  %912 = vperm.xlu0 %5980, %v854_v49  }
  0xac   : > { %10917 = vst [vmem:[#allocation23_spill] sm:$0xff] %v6818_v50  ;;  %vm1705_vm7 = vcmp.lt.s32.totalorder %v6818_v50, 1  ;;  %vm1639_vm9 = vcmp.eq.s32.totalorder %v6818_v50, 0 }
  0xad   : > { %937 = vperm.xlu2 %5982, %v859_v59  }
  0xae   : > { %1312 = vmatpush.bf16.msrb.mxu1 %v5352_v51  ;;  %1528 = vmatpush.bf16.msrb.mxu2 %v5792_v53  ;;  %v6827_v53 = vand.u32 7, %v6818_v50 }
  0xb0   : > { %10918 = vst [vmem:[#allocation24_spill] sm:$0xff] %v6827_v53  ;;  %vm778_vm0 = vcmp.ge.s32.totalorder %v6827_v53, 4 }
  0xb1   : > { %1234 = vmatmul.bf16.gmra.mxu0 %v5761_v54  ;;  %1313 = vmatmul.bf16.vlgmr.msrb.gmra.mxu1 %v6605_v7 }
  0xb2   : > { %1529 = vmatpush.bf16.msrb.mxu2 %v5791_v57 }
  0xb3   : > { %917 = vperm.xlu1 %5981, %v855_v55   ;;  %902 = vperm.xlu0 %5980, %v852_v56  }
  0xb5   : > { %1530 = vmatmul.bf16.vlgmr.msrb.gmra.mxu2 %v6708_v58  ;;  %927 = vperm.xlu2 %5982, %v857_v62  }
  0xbb   : > { %907 = vperm.xlu1 %5981, %v853_v60   ;;  %897 = vperm.xlu0 %5980, %v851_v61   ;;  %v752_v60 = vadd.s32 7, %v6827_v53  ;;  %v10746_v53 = vmov 127  }
  0xbd   : > { %892 = vperm.xlu2 %5982, %v850_v1  }
  0xc1   : > { %1239 = vmatmul.bf16.gmra.mxu0 %v5762_v63  ;;  %1318 = vmatmul.bf16.gmra.mxu1 %v5760_v31 }
  0xc3   : > { %6030 = vset.pattern.permute.xlu1 %v10746_v53  ;;  %6024 = vset.pattern.permute.xlu0 %v10746_v53 }
  0xc5   : > { %1535 = vmatmul.bf16.gmra.mxu2 %v6729_v0  ;;  %6013 = vset.pattern.permute.xlu2 %v10746_v53 }
  0xcf   : > { %v6771_v15 = vpop.permute.xlu2 %1012 }
  0xd0   : > { %10907 = vst [vmem:[#allocation13_spill] sm:$0xff] %v6771_v15 }
  0xd1   : > { %1244 = vmatmul.bf16.gmra.mxu0 %v5763_v3  ;;  %1323 = vmatmul.bf16.gmra.mxu1 %v5761_v54 }
  0xd5   : > { %1540 = vmatmul.bf16.gmra.mxu2 %v6612_v10 }
  0xd7   : > { %v6780_v19 = vpop.permute.xlu2 %1017 }
  0xd8   : > { %10908 = vst [vmem:[#allocation14_spill] sm:$0xff] %v6780_v19 }
  0xdf   : > { %v6787_v22 = vpop.permute.xlu2 %992 }
  0xe1   : > { %1249 = vmatmul.bf16.gmra.mxu0 %v5764_v5  ;;  %1328 = vmatmul.bf16.gmra.mxu1 %v5762_v63 }
  0xe5   : > { %v6754_v6 = vpop.permute.xlu0 %1032  ;;  %v6756_v7 = vpop.permute.xlu1 %1022  ;;  %1545 = vmatmul.bf16.gmra.mxu2 %v6659_v35 }
  0xe7   : > { %v6796_v27 = vpop.permute.xlu2 %987 }
  0xed   : > { %v6759_v8 = vpop.permute.xlu0 %1037  ;;  %v6761_v9 = vpop.permute.xlu1 %1027 }
  0xf1   : > { %1254 = vmatmul.bf16.gmra.mxu0 %v5765_v11  ;;  %1333 = vmatmul.bf16.gmra.mxu1 %v5763_v3 }
  0xf5   : > { %v6766_v12 = vpop.permute.xlu0 %1002  ;;  %v6768_v14 = vpop.permute.xlu1 %1007  ;;  %1550 = vmatmul.bf16.gmra.mxu2 %v6623_v13 }
  0xfd   : > { %v6773_v16 = vpop.permute.xlu0 %997  ;;  %v6775_v17 = vpop.permute.xlu1 %982 }
 0x101   : > { %1259 = vmatmul.bf16.gmra.mxu0 %v5766_v18  ;;  %1338 = vmatmul.bf16.gmra.mxu1 %v5764_v5  ;;  %v6837_v5 = vand.u32 7, %v752_v60 }
 0x103   : > { %10919 = vst [vmem:[#allocation25_spill] sm:$0xff] %v6837_v5  ;;  %vm788_vm1 = vcmp.ge.s32.totalorder %v6837_v5, 4 }
 0x105   : > { %v6782_v20 = vpop.permute.xlu1 %977  ;;  %v6784_v21 = vpop.permute.xlu0 %972  ;;  %1555 = vmatmul.bf16.gmra.mxu2 %v6674_v42 }
 0x10d   : > { %v6789_v23 = vpop.permute.xlu1 %952  ;;  %v6791_v24 = vpop.permute.xlu0 %967 }
 0x10e   : > { %10909 = vst [vmem:[#allocation15_spill] sm:$0xff] %v6789_v23  ;;  %v6793_v25 = vpop.f32.mrf.mxu0  ;;  %v1275_v26 = vpop.f32.mrf.mxu1 }
 0x10f   : > { %10910 = vst [vmem:[#allocation16_spill] sm:$0xff] %v6791_v24  ;;  %v1276_v28 = vadd.f32 %v1275_v26, %v6775_v17 }
 0x110   : > { %10911 = vst [vmem:[#allocation17_spill] sm:$0xff] %v6793_v25 }
 0x111   : > { %1343 = vmatmul.bf16.gmra.mxu1 %v5765_v11  ;;  %1264 = vmatmul.bf16.gmra.mxu0 %v6708_v58  ;;  %v1434_v37 = vmax.f32 %v1276_v28, 0.0 }
 0x115   : > { %v6799_v30 = vpop.permute.xlu1 %932  ;;  %1560 = vmatmul.bf16.gmra.mxu2 %v6737_v2  ;;  %v6805_v36 = vpop.permute.xlu0 %947 }
 0x116   : > { %10912 = vst [vmem:[#allocation18_spill] sm:$0xff] %v6799_v30  ;;  %v6802_v31 = vpop.f32.mrf.mxu0  ;;  %v1277_v32 = vpop.f32.mrf.mxu1 }
 0x117   : > { %v1285_v29 = vpop.f32.mrf.mxu2  ;;  %10913 = vst [vmem:[#allocation19_spill] sm:$0xff] %v6802_v31  ;;  %v1278_v33 = vadd.f32 %v1277_v32, %v6796_v27 }
 0x118   : > { %10914 = vst [vmem:[#allocation20_spill] sm:$0xff] %v6805_v36  ;;  %v1286_v39 = vadd.f32 %v1285_v29, %v6766_v12 }
 0x119   : > { %v1436_v38 = vmax.f32 %v1278_v33, 0.0 }
 0x11a   : > { %v6809_v44 = vmax.f32 %v1286_v39, 0.0 }
 0x11b   : > { %v5983_v40 = vpack.i.bf16 %v1436_v38, %v1434_v37 }
 0x11c   : > { %10915 = vst [vmem:[#allocation21_spill] sm:$0xff] %v6809_v44 }
 0x11d   : > { %5984 = vrot.lane.b32.xlu0 %v5983_v40, %s6292_s25  ;;  %v6816_v49 = vpop.permute.xlu1 %922  ;;  %v6823_v52 = vpop.permute.xlu0 %912  ;;  %v10959_v53 = vld [vmem:[#allocation18_spill] sm:$0xff] }
 0x11e   : > { %v6811_v45 = vpop.f32.mrf.mxu0  ;;  %v1280_v46 = vpop.f32.mrf.mxu1 }
 0x11f   : > { %v1287_v43 = vpop.f32.mrf.mxu2  ;;  %v1281_v54 = vadd.f32 %v1280_v46, %v6787_v22 }
 0x120   : > { %v1288_v47 = vadd.f32 %v1287_v43, %v6768_v14 }
 0x121   : > { %1348 = vmatmul.bf16.gmra.mxu1 %v5766_v18  ;;  %1269 = vmatmul.bf16.gmra.mxu0 %v6729_v0  ;;  %v1438_v61 = vmax.f32 %v1281_v54, 0.0 }
 0x122   : > { %v6814_v48 = vmax.f32 %v1288_v47, 0.0 }
 0x124   : > { %10916 = vst [vmem:[#allocation22_spill] sm:$0xff] %v6814_v48  ;;  %v5993_v51 = vpack.i.bf16 %v6814_v48, %v6809_v44 }
 0x125   : > { %1565 = vmatmul.bf16.gmra.mxu2 %v6747_v4  ;;  %v918_v63 = vpop.permute.xlu1 %917  ;;  %v903_v3 = vpop.permute.xlu0 %902 }
 0x126   : > { %5994 = vrot.lane.b32.xlu1 %v5993_v51, %s6292_s25  ;;  %v6831_v55 = vpop.f32.mrf.mxu0  ;;  %v1282_v56 = vpop.f32.mrf.mxu1 }
 0x127   : > { %v1283_v57 = vadd.f32 %v1282_v56, %v6773_v16  ;;  %v6834_v59 = vpop.f32.mrf.mxu2 }
 0x129   : > { %v1440_v62 = vmax.f32 %v1283_v57, 0.0 }
 0x12b   : > { %v5998_v1 = vpack.i.bf16 %v1440_v62, %v1438_v61 }
 0x12d   : > { %v6853_v39 = vpop.permute.xlu1 %907 }
 0x12e   : > { %5999 = vrot.lane.b32.xlu1 %v5998_v1, %s6292_s25  ;;  %v1235_v11 = vpop.f32.mrf.mxu0  ;;  %v6840_v18 = vpop.f32.mrf.mxu1 }
 0x12f   : > { %10920 = vst [vmem:[#allocation26_spill] sm:$0xff] %v6840_v18  ;;  %v1236_v26 = vadd.f32 %v1235_v11, %v903_v3  ;;  %v1292_v28 = vpop.f32.mrf.mxu2 }
 0x131   : > { %v1402_v29 = vmax.f32 %v1236_v26, 0.0  ;;  %1353 = vmatmul.bf16.gmra.mxu1 %v6708_v58 }
 0x133   : > { %v6847_v32 = vsel %vm778_vm0, %v1434_v37, %v1402_v29  ;;  %v6851_v33 = vsel %vm788_vm1, %v1434_v37, %v1402_v29 }
 0x134   : > { %10921 = vst [vmem:[#allocation27_spill] sm:$0xff] %v6851_v33 }
 0x136   : > { %v1237_v40 = vpop.f32.mrf.mxu0  ;;  %v6855_v41 = vpop.f32.mrf.mxu1 }
 0x137   : > { %10922 = vst [vmem:[#allocation28_spill] sm:$0xff] %v6855_v41  ;;  %v1238_v43 = vadd.f32 %v1237_v40, %v6853_v39 }
 0x138   : > { %v6858_v46 = vpop.f32.mrf.mxu2 }
 0x139   : > { %10923 = vst [vmem:[#allocation29_spill] sm:$0xff] %v6858_v46  ;;  %v1404_v47 = vmax.f32 %v1238_v43, 0.0 }
 0x13b   : > { %v6862_v58 = vsel %vm778_vm0, %v1436_v38, %v1404_v47  ;;  %v6866_v51 = vsel %vm788_vm1, %v1436_v38, %v1404_v47 }
 0x13c   : > { %10924 = vst [vmem:[#allocation30_spill] sm:$0xff] %v6866_v51 }
 0x13e   : > { %v1240_v54 = vpop.f32.mrf.mxu0  ;;  %v6870_v56 = vpop.f32.mrf.mxu1 }
 0x13f   : > { %v1241_v57 = vadd.f32 %v1240_v54, %v6823_v52 }
 0x140   : > { %v6873_v60 = vpop.f32.mrf.mxu2 }
 0x141   : > { %10925 = vst [vmem:[#allocation31_spill] sm:$0xff] %v6873_v60  ;;  %v1406_v1 = vmax.f32 %v1241_v57, 0.0  ;;  %1358 = vmatmul.bf16.gmra.mxu1 %v6729_v0  ;;  %v1293_v60 = vadd.f32 %v1292_v28, %v6780_v19 }
 0x143   : > { %v6878_v11 = vsel %vm778_vm0, %v1438_v61, %v1406_v1  ;;  %v6882_v38 = vsel %vm788_vm1, %v1438_v61, %v1406_v1  ;;  %v6898_v61 = vpop.permute.xlu2 %962 }
 0x144   : > { %10926 = vst [vmem:[#allocation32_spill] sm:$0xff] %v6882_v38  ;;  %v1291_v38 = vadd.f32 %v6834_v59, %v6771_v15 }
 0x145   : > { %10929 = vst [vmem:[#allocation35_spill] sm:$0xff] %v6898_v61 }
 0x146   : > { %v1242_v26 = vpop.f32.mrf.mxu0  ;;  %v6884_v29 = vpop.f32.mrf.mxu1 }
 0x147   : > { %v1243_v40 = vadd.f32 %v1242_v26, %v918_v63 }
 0x148   : > { %v6886_v43 = vpop.f32.mrf.mxu2 }
 0x149   : > { %10927 = vst [vmem:[#allocation33_spill] sm:$0xff] %v6886_v43  ;;  %v1408_v47 = vmax.f32 %v1243_v40, 0.0 }
 0x14b   : > { %v6890_v54 = vsel %vm778_vm0, %v1440_v62, %v1408_v47  ;;  %v6894_v0 = vsel %vm788_vm1, %v1440_v62, %v1408_v47  ;;  %v6911_v62 = vpop.permute.xlu2 %957 }
 0x14c   : > { %10928 = vst [vmem:[#allocation34_spill] sm:$0xff] %v6894_v0 }
 0x14d   : > { %10931 = vst [vmem:[#allocation37_spill] sm:$0xff] %v6911_v62 }
 0x14e   : > { %v6900_v1 = vpop.f32.mrf.mxu0  ;;  %v1324_v34 = vpop.f32.mrf.mxu1 }
 0x14f   : > { %v6902_v26 = vadd.f32 %v1324_v34, %v903_v3 }
 0x150   : > { %v6904_v37 = vpop.f32.mrf.mxu2 }
 0x151   : > { %10930 = vst [vmem:[#allocation36_spill] sm:$0xff] %v6904_v37  ;;  %1363 = vmatmul.bf16.gmra.mxu1 %v6612_v10  ;;  %v1295_v10 = vpop.f32.mrf.mxu3 }
 0x153   : > { %v6920_v34 = vpop.permute.xlu2 %942 }
 0x156   : > { %v6907_v40 = vpop.f32.mrf.mxu0  ;;  %v6909_v18 = vpop.f32.mrf.mxu1 }
 0x158   : > { %v6913_v47 = vpop.f32.mrf.mxu2 }
 0x159   : > { %10932 = vst [vmem:[#allocation38_spill] sm:$0xff] %v6913_v47  ;;  %v1448_v47 = vmax.f32 %v1293_v60, 0.0 }
 0x15e   : > { %v1250_v57 = vpop.f32.mrf.mxu0  ;;  %v1329_v25 = vpop.f32.mrf.mxu1 }
 0x15f   : > { %v6916_v41 = vadd.f32 %v1329_v25, %v6823_v52  ;;  %v6930_v25 = vpop.permute.xlu2 %937  ;;  %v1297_v52 = vpop.f32.mrf.mxu3  ;;  %v1251_v46 = vadd.f32 %v1250_v57, %v6799_v30 }
 0x160   : > { %v6918_v31 = vpop.f32.mrf.mxu2  ;;  %10934 = vst [vmem:[#allocation40_spill] sm:$0xff] %v6930_v25 }
 0x161   : > { %10933 = vst [vmem:[#allocation39_spill] sm:$0xff] %v6918_v31  ;;  %1368 = vmatmul.bf16.gmra.mxu1 %v6659_v35  ;;  %v1446_v35 = vmax.f32 %v1291_v38, 0.0 }
 0x163   : > { %v6008_v59 = vpack.i.bf16 %v1448_v47, %v1446_v35 }
 0x165   : > { %6009 = vrot.lane.b32.xlu1 %v6008_v59, %s6292_s25 }
 0x166   : > { %v1252_v3 = vpop.f32.mrf.mxu0  ;;  %v1331_v51 = vpop.f32.mrf.mxu1 }
 0x167   : > { %v6923_v33 = vadd.f32 %v1331_v51, %v918_v63  ;;  %v1253_v31 = vadd.f32 %v1252_v3, %v6930_v25  ;;  %v1414_v63 = vmax.f32 %v1251_v46, 0.0  ;;  %v1300_v60 = vpop.f32.mrf.mxu3  ;;  %v1298_v25 = vadd.f32 %v1297_v52, %v6761_v9 }
 0x168   : > { %v6925_v0 = vpop.f32.mrf.mxu2 }
 0x169   : > { %v1416_v51 = vmax.f32 %v1253_v31, 0.0  ;;  %v6942_v28 = vsel %vm788_vm1, %v1446_v35, %v1414_v63 }
 0x16a   : > { %10935 = vst [vmem:[#allocation41_spill] sm:$0xff] %v6942_v28  ;;  %v1301_v28 = vadd.f32 %v1300_v60, %v6754_v6  ;;  %v6975_v60 = vmax.f32 %v1298_v25, 0.0 }
 0x16b   : > { %v6946_v38 = vsel %vm788_vm1, %v1448_v47, %v1416_v51 }
 0x16c   : > { %10936 = vst [vmem:[#allocation42_spill] sm:$0xff] %v6946_v38  ;;  %v1296_v38 = vadd.f32 %v1295_v10, %v6756_v7 }
 0x16d   : > { %10944 = vst [vmem:[#allocation50_spill] sm:$0xff] %v6975_v60 }
 0x16e   : > { %v1255_v37 = vpop.f32.mrf.mxu0  ;;  %v6934_v43 = vpop.f32.mrf.mxu1 }
 0x16f   : > { %v6964_v15 = vadd.f32 %v1255_v37, %v6920_v34 }
 0x170   : > { %v6936_v61 = vpop.f32.mrf.mxu2 }
 0x171   : > { %1373 = vmatmul.bf16.gmra.mxu1 %v6623_v13  ;;  %v1302_v13 = vpop.f32.mrf.mxu3  ;;  %10940 = vst [vmem:[#allocation46_spill] sm:$0xff] %v6964_v15  ;;  %v10732_v52 = vmax.f32 %v6964_v15, 0.0 }
 0x176   : > { %v1257_v57 = vpop.f32.mrf.mxu0  ;;  %v6948_v3 = vpop.f32.mrf.mxu1 }
 0x177   : > { %10937 = vst [vmem:[#allocation43_spill] sm:$0xff] %v6948_v3  ;;  %v6967_v30 = vadd.f32 %v1257_v57, %v6805_v36 }
 0x178   : > { %v6950_v31 = vpop.f32.mrf.mxu2 }
 0x179   : > { %10941 = vst [vmem:[#allocation47_spill] sm:$0xff] %v6967_v30  ;;  %v10734_v37 = vmax.f32 %v6967_v30, 0.0 }
 0x17e   : > { %v1260_v46 = vpop.f32.mrf.mxu0  ;;  %v6952_v24 = vpop.f32.mrf.mxu1 }
 0x17f   : > { %10938 = vst [vmem:[#allocation44_spill] sm:$0xff] %v6952_v24  ;;  %v6957_v59 = vadd.f32 %v1260_v46, %v6789_v23  ;;  %v1303_v24 = vadd.f32 %v1302_v13, %v6759_v8  ;;  %v6971_v46 = vmax.f32 %v1301_v28, 0.0  ;;  %v6973_v23 = vmax.f32 %v1296_v38, 0.0 }
 0x180   : > { %v6954_v19 = vpop.f32.mrf.mxu2 }
 0x181   : > { %10939 = vst [vmem:[#allocation45_spill] sm:$0xff] %v6957_v59  ;;  %1378 = vmatmul.bf16.gmra.mxu1 %v6674_v42  ;;  %v10728_v3 = vmax.f32 %v6957_v59, 0.0  ;;  %v6984_v36 = vmax.f32 %v1303_v24, 0.0  ;;  %v1615_v24 = vsel %vm778_vm0, %v6973_v23, %v10732_v52  ;;  %v7009_v59 = vpop.permute.xlu2 %927 }
 0x182   : > { %10942 = vst [vmem:[#allocation48_spill] sm:$0xff] %v6971_v46 }
 0x183   : > { %10943 = vst [vmem:[#allocation49_spill] sm:$0xff] %v6973_v23  ;;  %v1619_v25 = vsel %vm778_vm0, %v6971_v46, %v10728_v3 }
 0x184   : > { %10946 = vst [vmem:[#allocation52_spill] sm:$0xff] %v6984_v36 }
 0x186   : > { %v1262_v42 = vpop.f32.mrf.mxu0  ;;  %v6977_v10 = vpop.f32.mrf.mxu1 }
 0x187   : > { %v6982_v57 = vadd.f32 %v1262_v42, %v6911_v62  ;;  %v1617_v42 = vsel %vm778_vm0, %v6975_v60, %v10734_v37  ;;  %v1611_v37 = vsel %vm778_vm0, %v1446_v35, %v1414_v63 }
 0x188   : > { %v6986_v13 = vpop.f32.mrf.mxu2  ;;  %v1635_v52 = vpack.c.bf16 %v1617_v42, %v1615_v24 }
 0x189   : > { %10945 = vst [vmem:[#allocation51_spill] sm:$0xff] %v6982_v57  ;;  %v10730_v28 = vmax.f32 %v6982_v57, 0.0  ;;  %v7013_v57 = vadd.f32 %v6900_v1, %v6816_v49 }
 0x18b   : > { %v1621_v38 = vsel %vm778_vm0, %v6984_v36, %v10730_v28  ;;  %10947 = vst [vmem:[#allocation53_spill] sm:$0xff] %v7013_v57  ;;  %v7017_v28 = vadd.f32 %v6907_v40, %v7009_v59  ;;  %v10737_v1 = vmax.f32 %v7013_v57, 0.0 }
 0x18c   : > { %v1637_v3 = vpack.c.bf16 %v1621_v38, %v1619_v25  ;;  %v1613_v25 = vsel %vm778_vm0, %v1448_v47, %v1416_v51 }
 0x18d   : > { %10948 = vst [vmem:[#allocation54_spill] sm:$0xff] %v7017_v28  ;;  %v10736_v62 = vmax.f32 %v7017_v28, 0.0  ;;  %v1633_v40 = vpack.c.bf16 %v1613_v25, %v1611_v37  ;;  %v10949_v37 = vpack.c.bf16 %v6890_v54, %v6878_v11  ;;  %v893_v25 = vpop.permute.xlu2 %892 }
 0x18e   : > { %v7019_v15 = vpop.f32.mrf.mxu1  ;;  %2262 = vmatpush.bf16.msrb.mxu3 %v1637_v3  ;;  %v7021_v30 = vpop.f32.mrf.mxu0  ;;  %v1607_v3 = vsel %vm778_vm0, %v6809_v44, %v10737_v1 }
 0x18f   : > { %v1609_v47 = vsel %vm778_vm0, %v6814_v48, %v10736_v62 }
 0x190   : > { %v7027_v38 = vpop.f32.mrf.mxu2 }
 0x191   : > { %1383 = vmatmul.bf16.gmra.mxu1 %v6737_v2  ;;  %v1631_v2 = vpack.c.bf16 %v1609_v47, %v1607_v3  ;;  %v1231_v3 = vadd.f32 %v6811_v45, %v893_v25  ;;  %v898_v47 = vpop.permute.xlu0 %897  ;;  %v1547_v45 = vadd.f32 %v6925_v0, %v6787_v22 }
 0x192   : > { %2263 = vmatpush.bf16.msrb.mxu3 %v1635_v52  ;;  %v1233_v62 = vadd.f32 %v6831_v55, %v898_v47  ;;  %v1549_v55 = vadd.f32 %v6936_v61, %v6773_v16 }
 0x193   : > { %v1398_v11 = vmax.f32 %v1231_v3, 0.0 }
 0x194   : > { %v1400_v48 = vmax.f32 %v1233_v62, 0.0 }
 0x196   : > { %v7042_v35 = vpop.f32.mrf.mxu1  ;;  %2264 = vmatpush.bf16.msrb.mxu3 %v1633_v40  ;;  %v7044_v63 = vpop.f32.mrf.mxu0  ;;  %v10950_v40 = vpack.c.bf16 %v6862_v58, %v6847_v32 }
 0x198   : > { %v7046_v51 = vpop.f32.mrf.mxu2 }
 0x19a   : > { %2265 = vmatpush.bf16.msrb.mxu3 %v1631_v2 }
 0x19e   : > { %v7048_v52 = vpop.f32.mrf.mxu1  ;;  %2266 = vmatpush.bf16.msrb.mxu3 %v10949_v37  ;;  %v1270_v24 = vpop.f32.mrf.mxu0  ;;  %v727_v37 = vadd.s32 128, %v6818_v50 }
 0x19f   : > { %v1271_v2 = vadd.f32 %v1270_v24, %v6784_v21 }
 0x1a0   : > { %v7053_v42 = vpop.f32.mrf.mxu2  ;;  %v7074_v24 = vand.u32 7, %v727_v37 }
 0x1a1   : > { %1388 = vmatmul.bf16.gmra.mxu1 %v6747_v4  ;;  %v7064_v54 = vmax.f32 %v1271_v2, 0.0 }
 0x1a2   : > { %2267 = vmatpush.bf16.msrb.mxu3 %v10950_v40  ;;  %10951 = vst [vmem:[#allocation55_spill] sm:$0xff] %v7074_v24  ;;  %v5988_v40 = vpack.i.bf16 %v6975_v60, %v6973_v23  ;;  %v1578_v60 = vmax.f32 %v1549_v55, 0.0  ;;  %v753_v23 = vadd.s32 7, %v7074_v24  ;;  %v1320_v55 = vadd.f32 %v6870_v56, %v893_v25 }
 0x1a3   : > { %v1595_v62 = vsel %vm778_vm0, %v7064_v54, %v1398_v11  ;;  %v7091_v61 = vsel %vm788_vm1, %v7064_v54, %v1398_v11  ;;  %vm779_vm6 = vcmp.ge.s32.totalorder %v7074_v24, 4  ;;  %v1322_v25 = vadd.f32 %v6884_v29, %v898_v47 }
 0x1a4   : > { %5989 = vrot.lane.b32.xlu2 %v5988_v40, %s6292_s25  ;;  %10952 = vst [vmem:[#allocation56_spill] sm:$0xff] %v7091_v61  ;;  %v6003_v29 = vpack.i.bf16 %v6984_v36, %v6971_v46  ;;  %vm799_vm8 = vcmp.eq.s32.totalorder %v7074_v24, 0 }
 0x1a6   : > { %v7062_v1 = vpop.f32.mrf.mxu1  ;;  %v1272_v4 = vpop.f32.mrf.mxu0  ;;  %6004 = vrot.lane.b32.xlu0 %v6003_v29, %s6292_s25 }
 0x1a7   : > { %v1273_v28 = vadd.f32 %v1272_v4, %v6782_v20  ;;  %v1577_v4 = vmax.f32 %v1547_v45, 0.0 }
 0x1a8   : > { %v1566_v32 = vpop.f32.mrf.mxu2 }
 0x1a9   : > { %v7070_v58 = vmax.f32 %v1273_v28, 0.0  ;;  %v1567_v0 = vadd.f32 %v1566_v32, %v6754_v6  ;;  %v6014_v57 = vpack.i.bf16 %v1578_v60, %v1577_v4  ;;  %v1554_v60 = vadd.f32 %v6954_v19, %v6768_v14 }
 0x1ab   : > { %v1597_v3 = vsel %vm778_vm0, %v7070_v58, %v1400_v48  ;;  %v7096_v37 = vsel %vm788_vm1, %v7070_v58, %v1400_v48  ;;  %v1585_v40 = vmax.f32 %v1567_v0, 0.0 }
 0x1ac   : > { %v1625_v28 = vpack.c.bf16 %v1597_v3, %v1595_v62  ;;  %10953 = vst [vmem:[#allocation57_spill] sm:$0xff] %v7096_v37  ;;  %v765_v3 = vand.u32 7, %v753_v23  ;;  %6015 = vperm.xlu2 %6013, %v6014_v57   ;;  %v1552_v23 = vadd.f32 %v6950_v31, %v6766_v12 }
 0x1ae   : > { %v7086_v2 = vpop.f32.mrf.mxu1  ;;  %2268 = vmatpush.bf16.msrb.mxu3 %v1625_v28  ;;  %vm769_vm2 = vcmp.ne.s32.totalorder %v765_v3, 0  ;;  %vm771_vm3 = vcmp.lt.s32.totalorder %v765_v3, 0  ;;  %v775_v45 = vadd.s32 8, %v765_v3  ;;  %v1579_v57 = vmax.f32 %v1552_v23, 0.0 }
 0x1af   : > { %vm773_vm4 = vmand %vm771_vm3, %vm769_vm2  ;;  %v1580_v28 = vmax.f32 %v1554_v60, 0.0  ;;  %v1562_v23 = vadd.f32 %v7046_v51, %v6756_v7  ;;  %v1564_v60 = vadd.f32 %v7053_v42, %v6761_v9  ;;  %v10957_v51 = vmov 0  }
 0x1b0   : > { %v1568_v32 = vpop.f32.mrf.mxu2  ;;  %v7110_v0 = vsel %vm773_vm4, %v775_v45, %v765_v3 }
 0x1b1   : > { %v1569_v62 = vadd.f32 %v1568_v32, %v6759_v8  ;;  %10954 = vst [vmem:[#allocation58_spill] sm:$0xff] %v7110_v0  ;;  %vm789_vm5 = vcmp.ge.s32.totalorder %v7110_v0, 4  ;;  %v1399_v32 = vmax.f32 %v1320_v55, 0.0  ;;  %v6019_v56 = vpack.i.bf16 %v1580_v28, %v1579_v57 }
 0x1b2   : > { %v1583_v57 = vmax.f32 %v1562_v23, 0.0  ;;  %v1584_v28 = vmax.f32 %v1564_v60, 0.0  ;;  %v1327_v23 = vadd.f32 %v6909_v18, %v6853_v39 }
 0x1b3   : > { %v1586_v44 = vmax.f32 %v1569_v62, 0.0 }
 0x1b4   : > { %6020 = vperm.xlu2 %6013, %v6019_v56   ;;  %v1405_v29 = vmax.f32 %v1327_v23, 0.0 }
 0x1b5   : > { %v6031_v48 = vpack.i.bf16 %v1586_v44, %v1585_v40 }
 0x1b6   : > { %v7103_v11 = vpop.f32.mrf.mxu1 }
 0x1b7   : > { %6032 = vperm.xlu1 %6030, %v6031_v48   ;;  %v1401_v48 = vmax.f32 %v1322_v25, 0.0 }
 0x1bc   : > { %6087 = vset.pattern.permute.xlu2 %v10957_v51 }
 0x1be   : > { %v1359_v44 = vpop.f32.mrf.mxu1 }
 0x1bf   : > { %v1360_v4 = vadd.f32 %v1359_v44, %v6784_v21 }
 0x1c1   : > { %v7115_v40 = vmax.f32 %v1360_v4, 0.0 }
 0x1c3   : > { %v7120_v19 = vsel %vm789_vm5, %v7115_v40, %v1399_v32  ;;  %v7125_v31 = vsel %vm779_vm6, %v7115_v40, %v1399_v32  ;;  %v1403_v32 = vmax.f32 %v6902_v26, 0.0 }
 0x1c4   : > { %10955 = vst [vmem:[#allocation59_spill] sm:$0xff] %v7120_v19 }
 0x1c6   : > { %v1361_v62 = vpop.f32.mrf.mxu1 }
 0x1c7   : > { %v1362_v3 = vadd.f32 %v1361_v62, %v6782_v20  ;;  %v6025_v62 = vpack.i.bf16 %v1584_v28, %v1583_v57 }
 0x1c9   : > { %v7129_v45 = vmax.f32 %v1362_v3, 0.0  ;;  %6026 = vperm.xlu0 %6024, %v6025_v62   ;;  %v1407_v62 = vmax.f32 %v6916_v41, 0.0 }
 0x1cb   : > { %v7138_v55 = vsel %vm789_vm5, %v7129_v45, %v1401_v48  ;;  %v7145_v47 = vsel %vm779_vm6, %v7129_v45, %v1401_v48 }
 0x1cc   : > { %10956 = vst [vmem:[#allocation60_spill] sm:$0xff] %v7138_v55 }
 0x1ce   : > { %v1364_v42 = vpop.f32.mrf.mxu1 }
 0x1cf   : > { %v1365_v4 = vadd.f32 %v1364_v42, %v6775_v17 }
 0x1d1   : > { %v1435_v56 = vmax.f32 %v1365_v4, 0.0 }
 0x1d3   : > { %v7155_v25 = vsel %vm789_vm5, %v1435_v56, %v1403_v32  ;;  %v7161_v48 = vsel %vm779_vm6, %v1435_v56, %v1403_v32 }
 0x1d6   : > { %v1366_v60 = vpop.f32.mrf.mxu1 }
 0x1d7   : > { %v1367_v26 = vadd.f32 %v1366_v60, %v6796_v27 }
 0x1d9   : > { %v1437_v42 = vmax.f32 %v1367_v26, 0.0 }
 0x1db   : > { %v7168_v4 = vsel %vm789_vm5, %v1437_v42, %v1405_v29  ;;  %v6036_v57 = vpack.i.bf16 %v1437_v42, %v1435_v56  ;;  %v7172_v28 = vsel %vm779_vm6, %v1437_v42, %v1405_v29  ;;  %v1409_v42 = vmax.f32 %v6923_v33, 0.0 }
 0x1dd   : > { %6037 = vrot.lane.b32.xlu1 %v6036_v57, %s6292_s25 }
 0x1de   : > { %v1369_v18 = vpop.f32.mrf.mxu1 }
 0x1df   : > { %v1370_v39 = vadd.f32 %v1369_v18, %v6787_v22 }
 0x1e1   : > { %v1439_v23 = vmax.f32 %v1370_v39, 0.0 }
 0x1e3   : > { %v7181_v60 = vsel %vm789_vm5, %v1439_v23, %v1407_v62  ;;  %v7185_v56 = vsel %vm779_vm6, %v1439_v23, %v1407_v62  ;;  %v7201_v62 = vadd.f32 %v6934_v43, %v6816_v49 }
 0x1e6   : > { %v1371_v26 = vpop.f32.mrf.mxu1 }
 0x1e7   : > { %v1372_v29 = vadd.f32 %v1371_v26, %v6773_v16  ;;  %v10747_v26 = vmax.f32 %v7201_v62, 0.0 }
 0x1e9   : > { %v1441_v57 = vmax.f32 %v1372_v29, 0.0 }
 0x1eb   : > { %v7191_v22 = vsel %vm789_vm5, %v1441_v57, %v1409_v42  ;;  %v6041_v41 = vpack.i.bf16 %v1441_v57, %v1439_v23  ;;  %v7195_v18 = vsel %vm779_vm6, %v1441_v57, %v1409_v42  ;;  %v10958_v42 = vld [vmem:[#allocation43_spill] sm:$0xff] }
 0x1ec   : > { %v7217_v49 = vadd.f32 %v10958_v42, %v7009_v59  ;;  %v10960_v59 = vld [vmem:[#allocation44_spill] sm:$0xff] }
 0x1ed   : > { %6042 = vrot.lane.b32.xlu2 %v6041_v41, %s6292_s25  ;;  %v7234_v42 = vadd.f32 %v10960_v59, %v10959_v53 }
 0x1ee   : > { %v1374_v16 = vpop.f32.mrf.mxu1 }
 0x1ef   : > { %v1375_v33 = vadd.f32 %v1374_v16, %v6766_v12  ;;  %v10748_v12 = vmax.f32 %v7217_v49, 0.0  ;;  %v10749_v44 = vmax.f32 %v7234_v42, 0.0 }
 0x1f1   : > { %v7206_v29 = vmax.f32 %v1375_v33, 0.0 }
 0x1f3   : > { %v7213_v23 = vsel %vm789_vm5, %v7206_v29, %v10747_v26  ;;  %v10962_v26 = vld [vmem:[#allocation40_spill] sm:$0xff] }
 0x1f4   : > { %v7250_v53 = vadd.f32 %v6977_v10, %v10962_v26  ;;  %v7267_v10 = vadd.f32 %v7019_v15, %v6920_v34  ;;  %v10965_v15 = vpack.i.bf16 %v7070_v58, %v7064_v54  ;;  %v10967_v58 = vld [vmem:[#allocation15_spill] sm:$0xff] }
 0x1f6   : > { %v1376_v43 = vpop.f32.mrf.mxu1 }
 0x1f7   : > { %v1377_v57 = vadd.f32 %v1376_v43, %v6768_v14  ;;  %v10961_v43 = vld [vmem:[#allocation13_spill] sm:$0xff] }
 0x1f9   : > { %v7221_v41 = vmax.f32 %v1377_v57, 0.0 }
 0x1fb   : > { %v7228_v16 = vsel %vm789_vm5, %v7221_v41, %v10748_v12  ;;  %v6046_v33 = vpack.i.bf16 %v7221_v41, %v7206_v29 }
 0x1fd   : > { %6047 = vrot.lane.b32.xlu2 %v6046_v33, %s6292_s25  ;;  %v10963_v33 = vld [vmem:[#allocation14_spill] sm:$0xff] }
 0x1fe   : > { %v1379_v14 = vpop.f32.mrf.mxu1 }
 0x1ff   : > { %v1380_v57 = vadd.f32 %v1379_v14, %v10961_v43  ;;  %v10750_v14 = vmax.f32 %v7250_v53, 0.0 }
 0x201   : > { %v7239_v32 = vmax.f32 %v1380_v57, 0.0 }
 0x203   : > { %v7246_v39 = vsel %vm789_vm5, %v7239_v32, %v10749_v44 }
 0x206   : > { %v1381_v59 = vpop.f32.mrf.mxu1 }
 0x207   : > { %v1382_v12 = vadd.f32 %v1381_v59, %v10963_v33  ;;  %v1419_v59 = vmax.f32 %v7267_v10, 0.0  ;;  %v1557_v10 = vadd.f32 %v6986_v13, %v10961_v43 }
 0x209   : > { %v7254_v3 = vmax.f32 %v1382_v12, 0.0 }
 0x20b   : > { %v7261_v57 = vsel %vm789_vm5, %v7254_v3, %v10750_v14  ;;  %v6051_v44 = vpack.i.bf16 %v7254_v3, %v7239_v32  ;;  %v10964_v14 = vld [vmem:[#allocation20_spill] sm:$0xff] }
 0x20c   : > { %v1347_v55 = vadd.f32 %v7042_v35, %v10964_v14  ;;  %v1559_v35 = vadd.f32 %v7027_v38, %v10963_v33  ;;  %v10966_v14 = vld [vmem:[#allocation16_spill] sm:$0xff] }
 0x20d   : > { %6052 = vrot.lane.b32.xlu2 %v6051_v44, %s6292_s25 }
 0x20e   : > { %v1384_v26 = vpop.f32.mrf.mxu1  ;;  %v1421_v19 = vmax.f32 %v1347_v55, 0.0  ;;  %v1350_v55 = vadd.f32 %v7048_v52, %v10967_v58  ;;  %v1582_v38 = vmax.f32 %v1559_v35, 0.0 }
 0x20f   : > { %v1385_v12 = vadd.f32 %v1384_v26, %v6756_v7  ;;  %v849_v26 = vld [vmem:[%s10905_s3 + $0x8] sm:$0xff] }
 0x211   : > { %v1451_v37 = vmax.f32 %v1385_v12, 0.0  ;;  %v1357_v12 = vadd.f32 %v7103_v11, %v10966_v14 }
 0x213   : > { %v7274_v61 = vsel %vm789_vm5, %v1451_v37, %v1419_v59  ;;  %v7301_v33 = vmax.f32 %v1357_v12, 0.0  ;;  %v10971_v12 = vld [vmem:[#allocation33_spill] sm:$0xff] }
 0x215   : > { %6077 = vrot.lane.b32.xlu2 %v10965_v15, %s6292_s25  ;;  %v10968_v15 = vld [vmem:[#allocation35_spill] sm:$0xff]  ;;  %10969 = vst [vmem:[#allocation43_spill] sm:$0xff] %v7301_v33 }
 0x216   : > { %v1386_v34 = vpop.f32.mrf.mxu1  ;;  %v1355_v13 = vadd.f32 %v7086_v2, %v10968_v15 }
 0x217   : > { %v1387_v44 = vadd.f32 %v1386_v34, %v6761_v9  ;;  %v1581_v34 = vmax.f32 %v1557_v10, 0.0 }
 0x218   : > { %v7304_v36 = vmax.f32 %v1355_v13, 0.0 }
 0x219   : > { %v1453_v7 = vmax.f32 %v1387_v44, 0.0  ;;  %v1423_v44 = vmax.f32 %v1350_v55, 0.0  ;;  %v6061_v58 = vpack.i.bf16 %v1582_v38, %v1581_v34  ;;  %v10973_v38 = vld [vmem:[#allocation38_spill] sm:$0xff] }
 0x21a   : > { %v6098_v2 = vpack.i.bf16 %v7301_v33, %v7304_v36  ;;  %v10974_v33 = vld [vmem:[#allocation39_spill] sm:$0xff] }
 0x21b   : > { %v7294_v54 = vsel %vm789_vm5, %v1453_v7, %v1421_v19  ;;  %v6056_v9 = vpack.i.bf16 %v1453_v7, %v1451_v37 }
 0x21d   : > { %6057 = vrot.lane.b32.xlu0 %v6056_v9, %s6292_s25  ;;  %887 = vperm.xlu2 %6087, %v849_v26   ;;  %v10970_v26 = vld [vmem:[#allocation37_spill] sm:$0xff]  ;;  %v1537_v9 = vadd.f32 %v10971_v12, %v6784_v21  ;;  %v10976_v12 = vmax.f32 %v7250_v53, 0.0 }
 0x21e   : > { %v1389_v43 = vpop.f32.mrf.mxu1  ;;  %v1352_v10 = vadd.f32 %v7062_v1, %v10970_v26  ;;  %v1544_v1 = vadd.f32 %v10974_v33, %v6796_v27  ;;  %v7336_v26 = vpop.permute.xlu2 %5989  ;;  %v1988_v27 = vld [vmem:[%s10975_s5 + $0x70] sm:$0xff] }
 0x21f   : > { %v1390_v11 = vadd.f32 %v1389_v43, %v6754_v6  ;;  %v10972_v43 = vld [vmem:[#allocation36_spill] sm:$0xff]  ;;  %v1573_v33 = vmax.f32 %v1537_v9, 0.0 }
 0x220   : > { %v1425_v55 = vmax.f32 %v1352_v10, 0.0  ;;  %v1539_v34 = vadd.f32 %v10972_v43, %v6782_v20 }
 0x221   : > { %v1455_v46 = vmax.f32 %v1390_v11, 0.0  ;;  %v1542_v11 = vadd.f32 %v10973_v38, %v6775_v17  ;;  %v10979_v38 = vmax.f32 %v7201_v62, 0.0  ;;  %v1268_v62 = vadd.f32 %v7044_v63, %v10966_v14  ;;  %v10981_v63 = vld [vmem:[#allocation29_spill] sm:$0xff] }
 0x223   : > { %v7308_v52 = vsel %vm789_vm5, %v1455_v46, %v1423_v44  ;;  %v1575_v10 = vmax.f32 %v1542_v11, 0.0  ;;  %v1987_v11 = vld [vmem:[%s10975_s5 + $0x68] sm:$0xff] }
 0x225   : > { %6062 = vperm.xlu0 %6024, %v6061_v58   ;;  %6099 = vrot.lane.b32.xlu2 %v6098_v2, %s6292_s25  ;;  %v6081_v58 = vpack.i.bf16 %v7129_v45, %v7115_v40  ;;  %v7326_v2 = vpop.permute.xlu1 %5994  ;;  %v1618_v45 = vsel %vm779_vm6, %v1453_v7, %v1421_v19  ;;  %v2005_v19 = vld [vmem:[%s10975_s5 + $0xf8] sm:$0xff]  ;;  %v10977_v7 = vmax.f32 %v7234_v42, 0.0  ;;  %v1608_v42 = vsel %vm779_vm6, %v7206_v29, %v10979_v38  ;;  %v10988_v38 = vld [vmem:[#allocation34_spill] sm:$0xff] }
 0x226   : > { %v1391_v35 = vpop.f32.mrf.mxu1  ;;  %v6016_v53 = vpop.permute.xlu2 %6015 }
 0x227   : > { %v1392_v6 = vadd.f32 %v1391_v35, %v6759_v8  ;;  %v1620_v8 = vsel %vm779_vm6, %v1455_v46, %v1423_v44  ;;  %v1574_v44 = vmax.f32 %v1539_v34, 0.0  ;;  %v1576_v35 = vmax.f32 %v1544_v1, 0.0 }
 0x229   : > { %v1457_v13 = vmax.f32 %v1392_v6, 0.0  ;;  %v6088_v43 = vpack.i.bf16 %v1574_v44, %v1573_v33 }
 0x22b   : > { %v1622_v21 = vsel %vm779_vm6, %v1457_v13, %v1425_v55  ;;  %v7334_v20 = vsel %vm789_vm5, %v1457_v13, %v1425_v55  ;;  %v6066_v17 = vpack.i.bf16 %v1457_v13, %v1455_v46  ;;  %v1616_v46 = vsel %vm779_vm6, %v1451_v37, %v1419_v59 }
 0x22c   : > { %v1638_v40 = vpack.c.bf16 %v1622_v21, %v1620_v8  ;;  %v1636_v6 = vpack.c.bf16 %v1618_v45, %v1616_v46  ;;  %v1614_v55 = vsel %vm779_vm6, %v7254_v3, %v10976_v12  ;;  %v6071_v13 = vpack.i.bf16 %v1576_v35, %v1575_v10  ;;  %v1984_v45 = vld [vmem:[%s10975_s5 + $0x50] sm:$0xff] }
 0x22d   : > { %6067 = vrot.lane.b32.xlu1 %v6066_v17, %s6292_s25  ;;  %6082 = vrot.lane.b32.xlu0 %v6081_v58, %s6292_s25  ;;  %v1612_v37 = vsel %vm779_vm6, %v7239_v32, %v10977_v7  ;;  %v6000_v9 = vpop.permute.xlu1 %5999  ;;  %v10978_v3 = vmax.f32 %v7217_v49, 0.0  ;;  %v848_v49 = vld [vmem:[%s10905_s3] sm:$0xff]  ;;  %v10980_v58 = vpack.c.bf16 %v7195_v18, %v7185_v56  ;;  %v1532_v21 = vadd.f32 %v10981_v63, %v10968_v15  ;;  %v10982_v17 = vld [vmem:[#allocation31_spill] sm:$0xff] }
 0x22e   : > { %2078 = vperm.xlu2 %6087, %v1988_v27   ;;  %2351 = vmatpush.bf16.msra.mxu2 %v1638_v40  ;;  %v1634_v59 = vpack.c.bf16 %v1614_v55, %v1612_v37  ;;  %v7383_v29 = vpop.permute.xlu2 %6020  ;;  %v1534_v27 = vadd.f32 %v10982_v17, %v10966_v14  ;;  %v10983_v40 = vpack.c.bf16 %v7172_v28, %v7161_v48  ;;  %v6002_v14 = vunpack.i.h.bf16 %v6000_v9  ;;  %v10986_v55 = vld [vmem:[#allocation24_spill] sm:$0xff]  ;;  %v1998_v17 = vld [vmem:[%s10975_s5 + $0xc0] sm:$0xff] }
 0x22f   : > { %v1610_v34 = vsel %vm779_vm6, %v7221_v41, %v10978_v3  ;;  %v1266_v41 = vadd.f32 %v7021_v30, %v10968_v15  ;;  %v7391_v30 = vmax.f32 %v1268_v62, 0.0  ;;  %v1571_v33 = vmax.f32 %v1532_v21, 0.0 }
 0x230   : > { %v1632_v32 = vpack.c.bf16 %v1610_v34, %v1608_v42  ;;  %v1572_v15 = vmax.f32 %v1534_v27, 0.0  ;;  %v6001_v44 = vunpack.i.l.bf16 %v6000_v9  ;;  %v10984_v48 = vpack.c.bf16 %v7145_v47, %v7125_v31  ;;  %v10987_v34 = vld [vmem:[#allocation32_spill] sm:$0xff]  ;;  %v7453_v42 = vpop.permute.xlu0 %5984 }
 0x231   : > { %v7389_v8 = vmax.f32 %v1266_v41, 0.0  ;;  %v10985_v10 = vmov 127   ;;  %v6017_v12 = vunpack.i.l.bf16 %v6016_v53  ;;  %vm798_vm10 = vcmp.eq.s32.totalorder %v10986_v55, 0 }
 0x232   : > { %2352 = vmatpush.bf16.msra.mxu2 %v1636_v6  ;;  %v6018_v6 = vunpack.i.h.bf16 %v6016_v53  ;;  %v6104_v53 = vpack.i.bf16 %v1572_v15, %v1571_v33  ;;  %v5986_v41 = vunpack.i.l.bf16 %v7453_v42  ;;  %v5997_v33 = vunpack.i.h.bf16 %v7326_v2 }
 0x233   : > { %v6093_v56 = vpack.i.bf16 %v7391_v30, %v7389_v8  ;;  %v5996_v15 = vunpack.i.l.bf16 %v7326_v2 }
 0x235   : > { %6072 = vperm.xlu1 %6030, %v6071_v13   ;;  %6089 = vperm.xlu0 %6024, %v6088_v43   ;;  %v7380_v1 = vpop.permute.xlu1 %6009 }
 0x236   : > { %2163 = vperm.xlu2 %6087, %v2005_v19   ;;  %2353 = vmatpush.bf16.msra.mxu2 %v1634_v59  ;;  %v2001_v19 = vld [vmem:[%s10975_s5 + $0xd8] sm:$0xff] }
 0x23a   : > { %2354 = vmatpush.bf16.msra.mxu2 %v1632_v32 }
 0x23d   : > { %6086 = vset.pattern.permute.xlu1 %v10957_v51  ;;  %6109 = vset.pattern.permute.xlu0 %v10957_v51  ;;  %v7405_v18 = vpop.permute.xlu1 %6032 }
 0x23e   : > { %2073 = vperm.xlu2 %6087, %v1987_v11   ;;  %882 = vperm.xlu1 %6086, %v848_v49   ;;  %v5987_v49 = vunpack.i.h.bf16 %v7453_v42 }
 0x23f   : > { %2355 = vmatpush.bf16.msra.mxu2 %v10980_v58 }
 0x243   : > { %2356 = vmatpush.bf16.msra.mxu2 %v10983_v40 }
 0x246   : > { %2058 = vperm.xlu2 %6087, %v1984_v45   ;;  %6094 = vrot.lane.b32.xlu1 %v6093_v56, %s6292_s25  ;;  %s11503_s25 = sld [smem:[#allocation105_spill]] }
 0x247   : > { %2357 = vmatpush.bf16.msra.mxu2 %v10984_v48  ;;  %v6043_v28 = vpop.permute.xlu2 %6042  ;;  %6103 = vset.pattern.permute.xlu1 %v10985_v10  ;;  %v6022_v48 = vunpack.i.l.bf16 %v7383_v29 }
 0x248   : > { %v6045_v35 = vunpack.i.h.bf16 %v6043_v28  ;;  %v6044_v46 = vunpack.i.l.bf16 %v6043_v28  ;;  %v10989_v28 = vld [vmem:[#allocation53_spill] sm:$0xff] }
 0x249   : > { %v10990_v10 = vmax.f32 %v10989_v28, 0.0 }
 0x24a   : > { %v1713_v13 = vsel %vm1705_vm7, %v6002_v14, %v6045_v35  ;;  %v1729_v31 = vsel %vm1705_vm7, %v6045_v35, %v6002_v14  ;;  %v1712_v47 = vsel %vm1705_vm7, %v6001_v44, %v6044_v46  ;;  %v1728_v43 = vsel %vm1705_vm7, %v6044_v46, %v6001_v44  ;;  %v10991_v35 = vld [vmem:[#allocation21_spill] sm:$0xff]  ;;  %v10992_v46 = vld [vmem:[#allocation54_spill] sm:$0xff] }
 0x24b   : > { %v7430_v7 = vsel %vm799_vm8, %v1712_v47, %v7181_v60  ;;  %v7435_v37 = vsel %vm799_vm8, %v1713_v13, %v7191_v22  ;;  %v1834_v59 = vsel %vm1639_vm9, %v6017_v12, %v1728_v43  ;;  %v1836_v9 = vsel %vm1639_vm9, %v6018_v6, %v1729_v31  ;;  %v10994_v12 = vld [vmem:[#allocation22_spill] sm:$0xff]  ;;  %v1981_v43 = vld [vmem:[%s10975_s5 + $0x38] sm:$0xff] }
 0x24c   : > { %v7446_v60 = vsel %vm798_vm10, %v1834_v59, %v10987_v34  ;;  %v7451_v22 = vsel %vm798_vm10, %v1836_v9, %v10988_v38  ;;  %v10993_v6 = vmax.f32 %v10992_v46, 0.0  ;;  %v2000_v46 = vld [vmem:[%s10975_s5 + $0xd0] sm:$0xff] }
 0x24e   : > { %2143 = vperm.xlu2 %6087, %v2001_v19   ;;  %6105 = vperm.xlu1 %6103, %v6104_v53   ;;  %v1876_v2 = vsel %vm788_vm1, %v10994_v12, %v10993_v6  ;;  %v1985_v6 = vld [vmem:[%s10975_s5 + $0x58] sm:$0xff]  ;;  %v1982_v12 = vld [vmem:[%s10975_s5 + $0x40] sm:$0xff] }
 0x24f   : > { %v7457_v11 = vpop.permute.xlu1 %6037 }
 0x250   : > { %v6040_v62 = vunpack.i.h.bf16 %v7457_v11  ;;  %v6039_v58 = vunpack.i.l.bf16 %v7457_v11 }
 0x252   : > { %v1711_v63 = vsel %vm1705_vm7, %v5987_v49, %v6040_v62  ;;  %v1710_v21 = vsel %vm1705_vm7, %v5986_v41, %v6039_v58 }
 0x253   : > { %v7481_v27 = vsel %vm799_vm8, %v1710_v21, %v7155_v25  ;;  %v7486_v40 = vsel %vm799_vm8, %v1711_v63, %v7168_v4  ;;  %v6023_v25 = vunpack.i.h.bf16 %v7383_v29  ;;  %v2004_v4 = vld [vmem:[%s10975_s5 + $0xf0] sm:$0xff]  ;;  %v1986_v63 = vld [vmem:[%s10975_s5 + $0x60] sm:$0xff]  ;;  %v1989_v21 = vld [vmem:[%s10975_s5 + $0x78] sm:$0xff] }
 0x254   : > { %2083 = vperm.xlu0 %6109, %v1989_v21  }
 0x256   : > { %2128 = vperm.xlu2 %6087, %v1998_v17   ;;  %6110 = vset.pattern.permute.xlu1 %v10957_v51  ;;  %v1874_v51 = vsel %vm788_vm1, %v10991_v35, %v10990_v10  ;;  %v1978_v17 = vld [vmem:[%s10975_s5 + $0x20] sm:$0xff] }
 0x257   : > { %v6048_v56 = vpop.permute.xlu2 %6047  ;;  %2158 = vperm.xlu1 %6110, %v2004_v4  }
 0x258   : > { %v6050_v14 = vunpack.i.h.bf16 %v6048_v56  ;;  %v6049_v44 = vunpack.i.l.bf16 %v6048_v56 }
 0x25a   : > { %v1715_v13 = vsel %vm1705_vm7, %v5997_v33, %v6050_v14  ;;  %v1731_v29 = vsel %vm1705_vm7, %v6050_v14, %v5997_v33  ;;  %v1714_v31 = vsel %vm1705_vm7, %v5996_v15, %v6049_v44  ;;  %v1730_v47 = vsel %vm1705_vm7, %v6049_v44, %v5996_v15 }
 0x25b   : > { %v7522_v19 = vsel %vm799_vm8, %v1714_v31, %v7213_v23  ;;  %v7527_v59 = vsel %vm799_vm8, %v1715_v13, %v7228_v16  ;;  %v1838_v9 = vsel %vm1639_vm9, %v6022_v48, %v1730_v47  ;;  %v1840_v53 = vsel %vm1639_vm9, %v6023_v25, %v1731_v29  ;;  %v2003_v25 = vld [vmem:[%s10975_s5 + $0xe8] sm:$0xff]  ;;  %v2002_v48 = vld [vmem:[%s10975_s5 + $0xe0] sm:$0xff]  ;;  %v7603_v13 = vpop.permute.xlu0 %6004  ;;  %v1980_v29 = vld [vmem:[%s10975_s5 + $0x30] sm:$0xff] }
 0x25c   : > { %v7537_v38 = vsel %vm798_vm10, %v1838_v9, %v1874_v51  ;;  %v7541_v23 = vsel %vm798_vm10, %v1840_v53, %v1876_v2  ;;  %v6012_v33 = vunpack.i.h.bf16 %v7380_v1  ;;  %v6011_v15 = vunpack.i.l.bf16 %v7380_v1  ;;  %2148 = vperm.xlu0 %6109, %v2002_v48   ;;  %v1995_v1 = vld [vmem:[%s10975_s5 + $0xa8] sm:$0xff]  ;;  %v2896_v47 = vld [vmem:[%s10697_s7 + $0x70] sm:$0xff]  ;;  %v1997_v9 = vld [vmem:[%s10975_s5 + $0xb8] sm:$0xff] }
 0x25d   : > { %v1975_v2 = vld [vmem:[%s10975_s5 + $0x8] sm:$0xff]  ;;  %v1996_v53 = vld [vmem:[%s10975_s5 + $0xb0] sm:$0xff] }
 0x25e   : > { %2043 = vperm.xlu2 %6087, %v1981_v43   ;;  %v1999_v31 = vld [vmem:[%s10975_s5 + $0xc8] sm:$0xff] }
 0x25f   : > { %2068 = vperm.xlu1 %6110, %v1986_v63   ;;  %v2913_v63 = vld [vmem:[%s10697_s7 + $0xf8] sm:$0xff] }
 0x263   : > { %v7614_v43 = vpop.permute.xlu0 %6026 }
 0x264   : > { %2063 = vperm.xlu0 %6109, %v1985_v6   ;;  %v6029_v32 = vunpack.i.h.bf16 %v7614_v43 }
 0x266   : > { %2028 = vperm.xlu2 %6087, %v1978_v17   ;;  %v5992_v17 = vunpack.i.h.bf16 %v7336_v26 }
 0x267   : > { %v7554_v56 = vpop.permute.xlu2 %6052  ;;  %2153 = vperm.xlu1 %6110, %v2003_v25  }
 0x268   : > { %v6055_v14 = vunpack.i.h.bf16 %v7554_v56  ;;  %v6054_v44 = vunpack.i.l.bf16 %v7554_v56  ;;  %v5991_v56 = vunpack.i.l.bf16 %v7336_v26  ;;  %v2910_v26 = vld [vmem:[%s10697_s7 + $0xe0] sm:$0xff] }
 0x26a   : > { %v1717_v4 = vsel %vm1705_vm7, %v6012_v33, %v6055_v14  ;;  %v1716_v28 = vsel %vm1705_vm7, %v6011_v15, %v6054_v44 }
 0x26b   : > { %v7576_v10 = vsel %vm799_vm8, %v1716_v28, %v7246_v39  ;;  %v7581_v35 = vsel %vm799_vm8, %v1717_v4, %v7261_v57  ;;  %v1992_v39 = vld [vmem:[%s10975_s5 + $0x90] sm:$0xff]  ;;  %v1983_v57 = vld [vmem:[%s10975_s5 + $0x48] sm:$0xff]  ;;  %v1994_v4 = vld [vmem:[%s10975_s5 + $0xa0] sm:$0xff] }
 0x26c   : > { %v1937_v51 = vpack.c.bf16 %v7581_v35, %v7576_v10  ;;  %2048 = vperm.xlu0 %6109, %v1982_v12   ;;  %v1979_v28 = vld [vmem:[%s10975_s5 + $0x28] sm:$0xff]  ;;  %v2897_v10 = vld [vmem:[%s10697_s7 + $0x78] sm:$0xff] }
 0x26e   : > { %2113 = vperm.xlu2 %6087, %v1995_v1  }
 0x26f   : > { %2138 = vperm.xlu1 %6110, %v2000_v46  }
 0x274   : > { %2133 = vperm.xlu0 %6109, %v1999_v31   ;;  %v1733_v31 = vsel %vm1705_vm7, %v6055_v14, %v6012_v33  ;;  %v2893_v33 = vld [vmem:[%s10697_s7 + $0x58] sm:$0xff] }
 0x276   : > { %2098 = vperm.xlu2 %6087, %v1992_v39  }
 0x277   : > { %2053 = vperm.xlu1 %6110, %v1983_v57  }
 0x27c   : > { %2118 = vperm.xlu0 %6109, %v1996_v53  }
 0x27e   : > { %2013 = vperm.xlu2 %6087, %v1975_v2  }
 0x27f   : > { %2038 = vperm.xlu1 %6110, %v1980_v29  }
 0x284   : > { %2033 = vperm.xlu0 %6109, %v1979_v28  }
 0x286   : > { %2986 = vperm.xlu2 %6087, %v2896_v47   ;;  %v1977_v47 = vld [vmem:[%s10975_s5 + $0x18] sm:$0xff] }
 0x287   : > { %2123 = vperm.xlu1 %6110, %v1997_v9  }
 0x28e   : > { %3071 = vperm.xlu2 %6087, %v2913_v63  }
 0x28f   : > { %v6058_v21 = vpop.permute.xlu0 %6057  ;;  %2108 = vperm.xlu1 %6110, %v1994_v4   ;;  %v10997_v4 = vld [vmem:[#allocation45_spill] sm:$0xff] }
 0x290   : > { %v6060_v25 = vunpack.i.h.bf16 %v6058_v21  ;;  %v6059_v48 = vunpack.i.l.bf16 %v6058_v21  ;;  %v10998_v28 = vmax.f32 %v10997_v4, 0.0 }
 0x292   : > { %v1719_v1 = vsel %vm1705_vm7, %v5992_v17, %v6060_v25  ;;  %v1718_v46 = vsel %vm1705_vm7, %v5991_v56, %v6059_v48 }
 0x293   : > { %v7643_v6 = vsel %vm799_vm8, %v1718_v46, %v7274_v61  ;;  %v7648_v39 = vsel %vm799_vm8, %v1719_v1, %v7294_v54  ;;  %v1732_v61 = vsel %vm1705_vm7, %v6054_v44, %v6011_v15  ;;  %v1976_v54 = vld [vmem:[%s10975_s5 + $0x10] sm:$0xff]  ;;  %v10995_v15 = vld [vmem:[#allocation41_spill] sm:$0xff]  ;;  %v10996_v44 = vld [vmem:[#allocation42_spill] sm:$0xff] }
 0x294   : > { %v1939_v57 = vpack.c.bf16 %v7648_v39, %v7643_v6  ;;  %2018 = vperm.xlu0 %6109, %v1976_v54   ;;  %v10999_v1 = vld [vmem:[#allocation48_spill] sm:$0xff]  ;;  %v11003_v54 = vld [vmem:[#allocation46_spill] sm:$0xff] }
 0x295   : > { %v1886_v46 = vsel %vm788_vm1, %v10999_v1, %v10998_v28  ;;  %v11008_v28 = vld [vmem:[#allocation50_spill] sm:$0xff] }
 0x296   : > { %3056 = vperm.xlu2 %6087, %v2910_v26   ;;  %v11000_v26 = vld [vmem:[#allocation51_spill] sm:$0xff] }
 0x297   : > { %v6063_v12 = vpop.permute.xlu0 %6062  ;;  %2023 = vperm.xlu1 %6110, %v1977_v47   ;;  %v6078_v47 = vpop.permute.xlu2 %6077 }
 0x298   : > { %v6065_v2 = vunpack.i.h.bf16 %v6063_v12  ;;  %v6064_v29 = vunpack.i.l.bf16 %v6063_v12  ;;  %v11001_v12 = vmax.f32 %v11000_v26, 0.0  ;;  %v6007_v26 = vunpack.i.h.bf16 %v7603_v13 }
 0x299   : > { %v6079_v3 = vunpack.i.l.bf16 %v6078_v47 }
 0x29a   : > { %v1842_v9 = vsel %vm1639_vm9, %v6064_v29, %v1732_v61  ;;  %v1844_v53 = vsel %vm1639_vm9, %v6065_v2, %v1733_v31  ;;  %v11002_v2 = vld [vmem:[#allocation52_spill] sm:$0xff]  ;;  %v6035_v31 = vunpack.i.h.bf16 %v7405_v18  ;;  %v6034_v61 = vunpack.i.l.bf16 %v7405_v18 }
 0x29b   : > { %v7672_v14 = vsel %vm798_vm10, %v1842_v9, %v10995_v15  ;;  %v7677_v63 = vsel %vm798_vm10, %v1844_v53, %v10996_v44  ;;  %v1888_v29 = vsel %vm788_vm1, %v11002_v2, %v11001_v12  ;;  %v11004_v9 = vmax.f32 %v11003_v54, 0.0  ;;  %v11005_v53 = vld [vmem:[#allocation49_spill] sm:$0xff]  ;;  %v11006_v44 = vld [vmem:[#allocation47_spill] sm:$0xff] }
 0x29c   : > { %v1936_v21 = vpack.c.bf16 %v7677_v63, %v7672_v14  ;;  %v11007_v4 = vmax.f32 %v11006_v44, 0.0  ;;  %v6006_v12 = vunpack.i.l.bf16 %v7603_v13  ;;  %v1735_v18 = vsel %vm1705_vm7, %v6060_v25, %v5992_v17  ;;  %v1974_v13 = vld [vmem:[%s10975_s5] sm:$0xff]  ;;  %v1993_v17 = vld [vmem:[%s10975_s5 + $0x98] sm:$0xff]  ;;  %v2904_v63 = vld [vmem:[%s10697_s7 + $0xb0] sm:$0xff] }
 0x29d   : > { %v1882_v15 = vsel %vm788_vm1, %v11005_v53, %v11004_v9  ;;  %2103 = vperm.xlu0 %6109, %v1993_v17   ;;  %v11019_v14 = vpack.c.bf16 %v7527_v59, %v7522_v19 }
 0x29e   : > { %2971 = vperm.xlu2 %6087, %v2893_v33   ;;  %v1884_v1 = vsel %vm788_vm1, %v11008_v28, %v11007_v4  ;;  %v1734_v33 = vsel %vm1705_vm7, %v6059_v48, %v5991_v56  ;;  %v6028_v4 = vunpack.i.l.bf16 %v7614_v43  ;;  %v6080_v28 = vunpack.i.h.bf16 %v6078_v47 }
 0x29f   : > { %v6068_v2 = vpop.permute.xlu1 %6067  ;;  %v6083_v54 = vpop.permute.xlu0 %6082  ;;  %2008 = vperm.xlu1 %6110, %v1974_v13  }
 0x2a0   : > { %v6070_v45 = vunpack.i.h.bf16 %v6068_v2  ;;  %v6069_v9 = vunpack.i.l.bf16 %v6068_v2  ;;  %v6085_v53 = vunpack.i.h.bf16 %v6083_v54  ;;  %v6084_v44 = vunpack.i.l.bf16 %v6083_v54  ;;  %v2890_v54 = vld [vmem:[%s10697_s7 + $0x40] sm:$0xff] }
 0x2a2   : > { %v1721_v56 = vsel %vm1705_vm7, %v6007_v26, %v6070_v45  ;;  %v1737_v25 = vsel %vm1705_vm7, %v6070_v45, %v6007_v26  ;;  %v1720_v48 = vsel %vm1705_vm7, %v6006_v12, %v6069_v9  ;;  %v1736_v43 = vsel %vm1705_vm7, %v6069_v9, %v6006_v12 }
 0x2a3   : > { %v1709_v47 = vsel %vm1705_vm7, %v6080_v28, %v6085_v53  ;;  %v1708_v2 = vsel %vm1705_vm7, %v6079_v3, %v6084_v44  ;;  %v1846_v45 = vsel %vm1639_vm9, %v6028_v4, %v1734_v33  ;;  %v1848_v26 = vsel %vm1639_vm9, %v6029_v32, %v1735_v18  ;;  %v11009_v18 = vld [vmem:[#allocation59_spill] sm:$0xff]  ;;  %v11010_v4 = vld [vmem:[#allocation60_spill] sm:$0xff] }
 0x2a4   : > { %v1923_v12 = vsel %vm799_vm8, %v1720_v48, %v7308_v52  ;;  %v1925_v9 = vsel %vm799_vm8, %v1721_v56, %v7334_v20  ;;  %v1850_v13 = vsel %vm1639_vm9, %v6034_v61, %v1736_v43  ;;  %v1852_v16 = vsel %vm1639_vm9, %v6035_v31, %v1737_v25  ;;  %v1991_v43 = vld [vmem:[%s10975_s5 + $0x88] sm:$0xff] }
 0x2a5   : > { %v1941_v34 = vpack.c.bf16 %v1925_v9, %v1923_v12  ;;  %v1922_v33 = vsel %vm798_vm10, %v1850_v13, %v1886_v46  ;;  %v1924_v32 = vsel %vm798_vm10, %v1852_v16, %v1888_v29  ;;  %v7753_v52 = vsel %vm799_vm8, %v1708_v2, %v11009_v18  ;;  %v1990_v2 = vld [vmem:[%s10975_s5 + $0x80] sm:$0xff]  ;;  %v11015_v13 = vld [vmem:[#allocation19_spill] sm:$0xff] }
 0x2a6   : > { %2956 = vperm.xlu2 %6087, %v2890_v54   ;;  %v1940_v20 = vpack.c.bf16 %v1924_v32, %v1922_v33  ;;  %v1918_v61 = vsel %vm798_vm10, %v1846_v45, %v1882_v15  ;;  %v1920_v31 = vsel %vm798_vm10, %v1848_v26, %v1884_v1  ;;  %v7762_v46 = vsel %vm799_vm8, %v1709_v47, %v11010_v4  ;;  %v888_v54 = vpop.permute.xlu2 %887  ;;  %v11013_v26 = vld [vmem:[#allocation56_spill] sm:$0xff]  ;;  %v11014_v9 = vld [vmem:[#allocation57_spill] sm:$0xff] }
 0x2a7   : > { %v1727_v16 = vsel %vm1705_vm7, %v6040_v62, %v5987_v49  ;;  %2645 = vmatpush.bf16.msra.mxu1 %v1941_v34  ;;  %v6073_v29 = vpop.permute.xlu1 %6072  ;;  %v6090_v17 = vpop.permute.xlu0 %6089  ;;  %v1929_v15 = vpack.c.bf16 %v7762_v46, %v7753_v52  ;;  %v1726_v49 = vsel %vm1705_vm7, %v6039_v58, %v5986_v41  ;;  %v1725_v62 = vsel %vm1705_vm7, %v6085_v53, %v6080_v28  ;;  %v11011_v53 = vld [vmem:[#allocation27_spill] sm:$0xff]  ;;  %v11012_v28 = vld [vmem:[#allocation30_spill] sm:$0xff]  ;;  %v11016_v32 = vld [vmem:[#allocation28_spill] sm:$0xff] }
 0x2a8   : > { %v6075_v56 = vunpack.i.h.bf16 %v6073_v29  ;;  %v6074_v1 = vunpack.i.l.bf16 %v6073_v29  ;;  %2556 = vmatpush.bf16.msrb.mxu0 %v1940_v20  ;;  %v6092_v25 = vunpack.i.h.bf16 %v6090_v17  ;;  %v6091_v48 = vunpack.i.l.bf16 %v6090_v17  ;;  %2093 = vperm.xlu1 %6110, %v1991_v43   ;;  %v11018_v17 = vld [vmem:[#allocation26_spill] sm:$0xff]  ;;  %v2884_v46 = vld [vmem:[%s10697_s7 + $0x10] sm:$0xff] }
 0x2a9   : > { %v1724_v34 = vsel %vm1705_vm7, %v6084_v44, %v6079_v3  ;;  %v1938_v47 = vpack.c.bf16 %v1920_v31, %v1918_v61  ;;  %v2907_v3 = vld [vmem:[%s10697_s7 + $0xc8] sm:$0xff]  ;;  %2088 = vperm.xlu0 %6109, %v1990_v2   ;;  %v7815_v33 = vadd.f32 %v11015_v13, %v888_v54  ;;  %v1317_v18 = vadd.f32 %v11016_v32, %v888_v54  ;;  %v2912_v61 = vld [vmem:[%s10697_s7 + $0xf0] sm:$0xff] }
 0x2aa   : > { %v1830_v42 = vsel %vm1639_vm9, %v6074_v1, %v1726_v49  ;;  %v1832_v11 = vsel %vm1639_vm9, %v6075_v56, %v1727_v16  ;;  %v1826_v41 = vsel %vm1639_vm9, %v6091_v48, %v1724_v34  ;;  %v1828_v58 = vsel %vm1639_vm9, %v6092_v25, %v1725_v62  ;;  %v11017_v16 = vld [vmem:[#allocation17_spill] sm:$0xff]  ;;  %v11021_v25 = vld [vmem:[#allocation43_spill] sm:$0xff]  ;;  %v2895_v2 = vld [vmem:[%s10697_s7 + $0x68] sm:$0xff] }
 0x2ab   : > { %2646 = vmatpush.bf16.msra.mxu1 %v1939_v57  ;;  %v1902_v44 = vsel %vm798_vm10, %v1830_v42, %v11011_v53  ;;  %v1904_v45 = vsel %vm798_vm10, %v1832_v11, %v11012_v28  ;;  %v1898_v12 = vsel %vm798_vm10, %v1826_v41, %v11013_v26  ;;  %v1900_v6 = vsel %vm798_vm10, %v1828_v58, %v11014_v9  ;;  %v2887_v58 = vld [vmem:[%s10697_s7 + $0x28] sm:$0xff]  ;;  %v2892_v28 = vld [vmem:[%s10697_s7 + $0x50] sm:$0xff] }
 0x2ac   : > { %2557 = vmatpush.bf16.msrb.mxu0 %v1938_v47  ;;  %v1930_v39 = vpack.c.bf16 %v1904_v45, %v1902_v44  ;;  %v1928_v57 = vpack.c.bf16 %v1900_v6, %v1898_v12  ;;  %v1396_v31 = vmax.f32 %v7815_v33, 0.0  ;;  %v1397_v4 = vmax.f32 %v1317_v18, 0.0  ;;  %v5799_v47 = vld [vmem:[%s11024_s4] sm:$0xff]  ;;  %v2911_v52 = vld [vmem:[%s10697_s7 + $0xe8] sm:$0xff]  ;;  %v2909_v33 = vld [vmem:[%s10697_s7 + $0xd8] sm:$0xff] }
 0x2ad   : > { %v11022_v49 = vpack.c.bf16 %v7435_v37, %v7430_v7  ;;  %v11023_v62 = vpack.c.bf16 %v7451_v22, %v7446_v60  ;;  %v2894_v7 = vld [vmem:[%s10697_s7 + $0x60] sm:$0xff]  ;;  %v11025_v22 = vpack.c.bf16 %v7486_v40, %v7481_v27 }
 0x2ae   : > { %3041 = vperm.xlu2 %6087, %v2907_v3   ;;  %v1593_v19 = vsel %vm778_vm0, %v7391_v30, %v1396_v31  ;;  %v1861_v3 = vsel %vm789_vm5, %v11021_v25, %v1397_v4 }
 0x2af   : > { %2647 = vmatpush.bf16.msra.mxu1 %v1937_v51 }
 0x2b0   : > { %2558 = vmatpush.bf16.msrb.mxu0 %v1936_v21  ;;  %v883_v20 = vpop.permute.xlu1 %882  ;;  %3066 = vperm.xlu1 %6110, %v2912_v61   ;;  %v11020_v21 = vpack.c.bf16 %v7541_v23, %v7537_v38  ;;  %v1594_v38 = vsel %vm779_vm6, %v11021_v25, %v1397_v4  ;;  %v6100_v23 = vpop.permute.xlu2 %6099  ;;  %v2906_v61 = vld [vmem:[%s10697_s7 + $0xc0] sm:$0xff] }
 0x2b1   : > { %v1226_v29 = vadd.f32 %v11017_v16, %v883_v20  ;;  %v1315_v56 = vadd.f32 %v11018_v17, %v883_v20  ;;  %2991 = vperm.xlu0 %6109, %v2897_v10   ;;  %v6102_v54 = vunpack.i.h.bf16 %v6100_v23  ;;  %v6101_v42 = vunpack.i.l.bf16 %v6100_v23  ;;  %v2901_v20 = vld [vmem:[%s10697_s7 + $0x98] sm:$0xff]  ;;  %v2898_v4 = vld [vmem:[%s10697_s7 + $0x80] sm:$0xff]  ;;  %v5801_v16 = vld [vmem:[%s11024_s4 + $0x10] sm:$0xff] }
 0x2b2   : > { %v2888_v17 = vld [vmem:[%s10697_s7 + $0x30] sm:$0xff]  ;;  %v2886_v10 = vld [vmem:[%s10697_s7 + $0x20] sm:$0xff]  ;;  %v2883_v23 = vld [vmem:[%s10697_s7 + $0x8] sm:$0xff] }
 0x2b3   : > { %v1394_v35 = vmax.f32 %v1226_v29, 0.0  ;;  %v1395_v51 = vmax.f32 %v1315_v56, 0.0  ;;  %2648 = vmatpush.bf16.msra.mxu1 %v11019_v14  ;;  %v2889_v29 = vld [vmem:[%s10697_s7 + $0x38] sm:$0xff]  ;;  %v4129_v25 = vld [vmem:[%s10699_s9 + $0x20] sm:$0xff] }
 0x2b4   : > { %2559 = vmatpush.bf16.msrb.mxu0 %v11020_v21  ;;  %v4140_v56 = vld [vmem:[%s10699_s9 + $0x78] sm:$0xff]  ;;  %v2902_v21 = vld [vmem:[%s10697_s7 + $0xa0] sm:$0xff] }
 0x2b5   : > { %v1591_v1 = vsel %vm778_vm0, %v7389_v8, %v1394_v35  ;;  %v1592_v59 = vsel %vm779_vm6, %v7304_v36, %v1395_v51  ;;  %v1859_v53 = vsel %vm789_vm5, %v7304_v36, %v1395_v51  ;;  %v4135_v51 = vld [vmem:[%s10699_s9 + $0x50] sm:$0xff]  ;;  %v5802_v14 = vld [vmem:[%s11024_s4 + $0x18] sm:$0xff] }
 0x2b6   : > { %3026 = vperm.xlu2 %6087, %v2904_v63   ;;  %v1623_v48 = vpack.c.bf16 %v1593_v19, %v1591_v1  ;;  %v1624_v43 = vpack.c.bf16 %v1594_v38, %v1592_v59  ;;  %v2903_v63 = vld [vmem:[%s10697_s7 + $0xa8] sm:$0xff]  ;;  %v2900_v19 = vld [vmem:[%s10697_s7 + $0x90] sm:$0xff]  ;;  %v2885_v59 = vld [vmem:[%s10697_s7 + $0x18] sm:$0xff] }
 0x2b7   : > { %2649 = vmatpush.bf16.msra.mxu1 %v11022_v49  ;;  %v4134_v1 = vld [vmem:[%s10699_s9 + $0x48] sm:$0xff]  ;;  %v5803_v38 = vld [vmem:[%s11024_s4 + $0x20] sm:$0xff]  ;;  %v4139_v49 = vld [vmem:[%s10699_s9 + $0x70] sm:$0xff] }
 0x2b8   : > { %2560 = vmatpush.bf16.msrb.mxu0 %v11023_v62  ;;  %2269 = vmatpush.bf16.msrb.mxu3 %v1623_v48  ;;  %v6095_v34 = vpop.permute.xlu1 %6094  ;;  %v2882_v48 = vld [vmem:[%s10697_s7] sm:$0xff]  ;;  %v2899_v62 = vld [vmem:[%s10697_s7 + $0x88] sm:$0xff] }
 0x2b9   : > { %v6097_v11 = vunpack.i.h.bf16 %v6095_v34  ;;  %v6096_v41 = vunpack.i.l.bf16 %v6095_v34  ;;  %2358 = vmatpush.bf16.msra.mxu2 %v1624_v43  ;;  %2981 = vperm.xlu1 %6110, %v2895_v2   ;;  %v4128_v43 = vld [vmem:[%s10699_s9 + $0x18] sm:$0xff]  ;;  %v4331_v34 = vld [vmem:[%s10701_s11 + $0x70] sm:$0xff]  ;;  %v4138_v2 = vld [vmem:[%s10699_s9 + $0x68] sm:$0xff] }
 0x2ba   : > { %2976 = vperm.xlu0 %6109, %v2894_v7   ;;  %v4325_v7 = vld [vmem:[%s10701_s11 + $0x40] sm:$0xff] }
 0x2bb   : > { %v1706_v37 = vsel %vm1705_vm7, %v6096_v41, %v6101_v42  ;;  %v1707_v60 = vsel %vm1705_vm7, %v6097_v11, %v6102_v54  ;;  %2650 = vmatpush.bf16.msra.mxu1 %v11025_v22  ;;  %2270 = vmatmul.bf16.vlgmr.msrb.gmra.mxu3 %v5799_v47  ;;  %v1722_v12 = vsel %vm1705_vm7, %v6101_v42, %v6096_v41  ;;  %v4330_v42 = vld [vmem:[%s10701_s11 + $0x68] sm:$0xff]  ;;  %v4136_v41 = vld [vmem:[%s10699_s9 + $0x58] sm:$0xff]  ;;  %v4131_v22 = vld [vmem:[%s10699_s9 + $0x30] sm:$0xff] }
 0x2bc   : > { %2359 = vmatmul.bf16.vlgmr.msra.gmra.mxu2 %v5799_v47  ;;  %2561 = vmatpush.bf16.msrb.mxu0 %v1930_v39  ;;  %v1895_v27 = vsel %vm799_vm8, %v1706_v37, %v1859_v53  ;;  %v1897_v40 = vsel %vm799_vm8, %v1707_v60, %v1861_v3  ;;  %v1723_v9 = vsel %vm1705_vm7, %v6102_v54, %v6097_v11  ;;  %v4137_v54 = vld [vmem:[%s10699_s9 + $0x60] sm:$0xff]  ;;  %v5805_v37 = vld [vmem:[%s11024_s4 + $0x30] sm:$0xff]  ;;  %v4132_v60 = vld [vmem:[%s10699_s9 + $0x38] sm:$0xff] }
 0x2bd   : > { %v1927_v26 = vpack.c.bf16 %v1897_v40, %v1895_v27  ;;  %v1858_v39 = vsel %vm788_vm1, %v7389_v8, %v1394_v35  ;;  %v5800_v8 = vld [vmem:[%s11024_s4 + $0x8] sm:$0xff]  ;;  %v2905_v35 = vld [vmem:[%s10697_s7 + $0xb8] sm:$0xff]  ;;  %v4133_v11 = vld [vmem:[%s10699_s9 + $0x40] sm:$0xff] }
 0x2be   : > { %2941 = vperm.xlu2 %6087, %v2887_v58   ;;  %v4324_v58 = vld [vmem:[%s10701_s11 + $0x38] sm:$0xff]  ;;  %v4127_v3 = vld [vmem:[%s10699_s9 + $0x10] sm:$0xff]  ;;  %v4130_v53 = vld [vmem:[%s10699_s9 + $0x28] sm:$0xff] }
 0x2bf   : > { %2651 = vmatpush.bf16.msra.mxu1 %v1929_v15  ;;  %v4319_v27 = vld [vmem:[%s10701_s11 + $0x10] sm:$0xff]  ;;  %v5806_v40 = vld [vmem:[%s11024_s4 + $0x38] sm:$0xff] }
 0x2c0   : > { %v6106_v44 = vpop.permute.xlu1 %6105  ;;  %2562 = vmatpush.bf16.msrb.mxu0 %v1928_v57  ;;  %v1860_v57 = vsel %vm788_vm1, %v7391_v30, %v1396_v31  ;;  %v2908_v30 = vld [vmem:[%s10697_s7 + $0xd0] sm:$0xff]  ;;  %v2891_v31 = vld [vmem:[%s10697_s7 + $0x48] sm:$0xff] }
 0x2c1   : > { %v6108_v36 = vunpack.i.h.bf16 %v6106_v44  ;;  %v6107_v45 = vunpack.i.l.bf16 %v6106_v44  ;;  %2966 = vperm.xlu1 %6110, %v2892_v28   ;;  %v4318_v44 = vld [vmem:[%s10701_s11 + $0x8] sm:$0xff] }
 0x2c2   : > { %3061 = vperm.xlu0 %6109, %v2911_v52   ;;  %v4126_v28 = vld [vmem:[%s10699_s9 + $0x8] sm:$0xff] }
 0x2c3   : > { %2652 = vmatpush.bf16.msra.mxu1 %v1927_v26  ;;  %v1822_v15 = vsel %vm1639_vm9, %v6107_v45, %v1722_v12  ;;  %v1824_v6 = vsel %vm1639_vm9, %v6108_v36, %v1723_v9  ;;  %v4125_v36 = vld [vmem:[%s10699_s9] sm:$0xff]  ;;  %v4625_v45 = vld [vmem:[%s11026_s28 + $0x10] sm:$0xff]  ;;  %v4332_v12 = vld [vmem:[%s10701_s11 + $0x78] sm:$0xff] }
 0x2c4   : > { %v1894_v13 = vsel %vm798_vm10, %v1822_v15, %v1858_v39  ;;  %v1896_v32 = vsel %vm798_vm10, %v1824_v6, %v1860_v57  ;;  %v4329_v26 = vld [vmem:[%s10701_s11 + $0x60] sm:$0xff]  ;;  %v4628_v52 = vld [vmem:[%s11026_s28 + $0x28] sm:$0xff]  ;;  %v4327_v15 = vld [vmem:[%s10701_s11 + $0x50] sm:$0xff] }
 0x2c5   : > { %v1926_v18 = vpack.c.bf16 %v1896_v32, %v1894_v13  ;;  %v5807_v9 = vld [vmem:[%s11024_s4 + $0x40] sm:$0xff]  ;;  %v4323_v32 = vld [vmem:[%s10701_s11 + $0x30] sm:$0xff] }
 0x2c6   : > { %2926 = vperm.xlu2 %6087, %v2884_v46   ;;  %2653 = vmatmul.bf16.vlgmr.msra.gmra.mxu1 %v5799_v47  ;;  %v4328_v46 = vld [vmem:[%s10701_s11 + $0x58] sm:$0xff]  ;;  %v4631_v13 = vld [vmem:[%s11026_s28 + $0x40] sm:$0xff] }
 0x2c7   : > { %2563 = vmatpush.bf16.msrb.mxu0 %v1926_v18  ;;  %v4326_v18 = vld [vmem:[%s10701_s11 + $0x48] sm:$0xff] }
 0x2c9   : > { %3051 = vperm.xlu1 %6110, %v2909_v33  }
 0x2ca   : > { %2564 = vmatmul.bf16.vlgmr.msrb.gmra.mxu0 %v5799_v47  ;;  %3046 = vperm.xlu0 %6109, %v2908_v30   ;;  %v5804_v47 = vld [vmem:[%s11024_s4 + $0x28] sm:$0xff] }
 0x2cb   : > { %2275 = vmatmul.bf16.gmra.mxu3 %v5800_v8 }
 0x2cc   : > { %2364 = vmatmul.bf16.gmra.mxu2 %v5800_v8 }
 0x2ce   : > { %3011 = vperm.xlu2 %6087, %v2901_v20   ;;  %v5808_v20 = vld [vmem:[%s11024_s4 + $0x48] sm:$0xff] }
 0x2d1   : > { %3036 = vperm.xlu1 %6110, %v2906_v61  }
 0x2d2   : > { %2961 = vperm.xlu0 %6109, %v2891_v31   ;;  %v4634_v31 = vld [vmem:[%s11026_s28 + $0x58] sm:$0xff] }
 0x2d6   : > { %2996 = vperm.xlu2 %6087, %v2898_v4   ;;  %2658 = vmatmul.bf16.gmra.mxu1 %v5800_v8  ;;  %v4322_v4 = vld [vmem:[%s10701_s11 + $0x28] sm:$0xff] }
 0x2d9   : > { %2951 = vperm.xlu1 %6110, %v2889_v29  }
 0x2da   : > { %2569 = vmatmul.bf16.gmra.mxu0 %v5800_v8  ;;  %2946 = vperm.xlu0 %6109, %v2888_v17  }
 0x2db   : > { %2280 = vmatmul.bf16.gmra.mxu3 %v5801_v16 }
 0x2dc   : > { %2369 = vmatmul.bf16.gmra.mxu2 %v5801_v16 }
 0x2de   : > { %4218 = vperm.xlu2 %6087, %v4140_v56  }
 0x2e1   : > { %2936 = vperm.xlu1 %6110, %v2886_v10  }
 0x2e2   : > { %3031 = vperm.xlu0 %6109, %v2905_v35   ;;  %v4637_v35 = vld [vmem:[%s11026_s28 + $0x70] sm:$0xff] }
 0x2e6   : > { %4193 = vperm.xlu2 %6087, %v4135_v51   ;;  %2663 = vmatmul.bf16.gmra.mxu1 %v5801_v16  ;;  %v4317_v51 = vld [vmem:[%s10701_s11] sm:$0xff] }
 0x2e9   : > { %3021 = vperm.xlu1 %6110, %v2903_v63  }
 0x2ea   : > { %2574 = vmatmul.bf16.gmra.mxu0 %v5801_v16  ;;  %3016 = vperm.xlu0 %6109, %v2902_v21   ;;  %v4321_v16 = vld [vmem:[%s10701_s11 + $0x20] sm:$0xff] }
 0x2eb   : > { %2285 = vmatmul.bf16.gmra.mxu3 %v5802_v14 }
 0x2ec   : > { %2374 = vmatmul.bf16.gmra.mxu2 %v5802_v14 }
 0x2ee   : > { %4188 = vperm.xlu2 %6087, %v4134_v1  }
 0x2f1   : > { %3006 = vperm.xlu1 %6110, %v2900_v19   ;;  %v5809_v19 = vld [vmem:[%s11024_s4 + $0x50] sm:$0xff] }
 0x2f2   : > { %2931 = vperm.xlu0 %6109, %v2885_v59  }
 0x2f6   : > { %4163 = vperm.xlu2 %6087, %v4129_v25   ;;  %2668 = vmatmul.bf16.gmra.mxu1 %v5802_v14  ;;  %v4624_v25 = vld [vmem:[%s11026_s28 + $0x8] sm:$0xff] }
 0x2f9   : > { %2921 = vperm.xlu1 %6110, %v2883_v23   ;;  %v8151_v23 = vpop.permute.xlu2 %2078 }
 0x2fa   : > { %2579 = vmatmul.bf16.gmra.mxu0 %v5802_v14  ;;  %2916 = vperm.xlu0 %6109, %v2882_v48   ;;  %v4320_v14 = vld [vmem:[%s10701_s11 + $0x18] sm:$0xff]  ;;  %11027 = vst [vmem:[#allocation18_spill] sm:$0xff] %v8151_v23 }
 0x2fb   : > { %2290 = vmatmul.bf16.gmra.mxu3 %v5803_v38 }
 0x2fc   : > { %2379 = vmatmul.bf16.gmra.mxu2 %v5803_v38 }
 0x2fe   : > { %4158 = vperm.xlu2 %6087, %v4128_v43  }
 0x301   : > { %4213 = vperm.xlu1 %6110, %v4139_v49   ;;  %v8157_v49 = vpop.permute.xlu1 %2158 }
 0x302   : > { %3001 = vperm.xlu0 %6109, %v2899_v62   ;;  %11028 = vst [vmem:[#allocation44_spill] sm:$0xff] %v8157_v49 }
 0x306   : > { %4405 = vperm.xlu2 %6087, %v4331_v34   ;;  %2673 = vmatmul.bf16.gmra.mxu1 %v5803_v38 }
 0x309   : > { %4208 = vperm.xlu1 %6110, %v4138_v2   ;;  %v4626_v2 = vld [vmem:[%s11026_s28 + $0x18] sm:$0xff] }
 0x30a   : > { %2584 = vmatmul.bf16.gmra.mxu0 %v5803_v38  ;;  %4203 = vperm.xlu0 %6109, %v4137_v54   ;;  %v4623_v38 = vld [vmem:[%s11026_s28] sm:$0xff]  ;;  %v8169_v54 = vpop.permute.xlu0 %2083 }
 0x30b   : > { %2295 = vmatmul.bf16.gmra.mxu3 %v5804_v47  ;;  %11029 = vst [vmem:[#allocation13_spill] sm:$0xff] %v8169_v54 }
 0x30c   : > { %2384 = vmatmul.bf16.gmra.mxu2 %v5804_v47 }
 0x30e   : > { %4400 = vperm.xlu2 %6087, %v4330_v42  }
 0x311   : > { %4183 = vperm.xlu1 %6110, %v4133_v11  }
 0x312   : > { %4198 = vperm.xlu0 %6109, %v4136_v41   ;;  %v8175_v41 = vpop.permute.xlu2 %2163 }
 0x313   : > { %11030 = vst [vmem:[#allocation40_spill] sm:$0xff] %v8175_v41 }
 0x316   : > { %4375 = vperm.xlu2 %6087, %v4325_v7   ;;  %2678 = vmatmul.bf16.gmra.mxu1 %v5804_v47 }
 0x319   : > { %4178 = vperm.xlu1 %6110, %v4132_v60   ;;  %v8182_v60 = vpop.permute.xlu1 %2068 }
 0x31a   : > { %2589 = vmatmul.bf16.gmra.mxu0 %v5804_v47  ;;  %4173 = vperm.xlu0 %6109, %v4131_v22   ;;  %v4627_v47 = vld [vmem:[%s11026_s28 + $0x20] sm:$0xff]  ;;  %11031 = vst [vmem:[#allocation14_spill] sm:$0xff] %v8182_v60 }
 0x31b   : > { %2300 = vmatmul.bf16.gmra.mxu3 %v5805_v37 }
 0x31c   : > { %2389 = vmatmul.bf16.gmra.mxu2 %v5805_v37 }
 0x31e   : > { %4370 = vperm.xlu2 %6087, %v4324_v58   ;;  %v4630_v58 = vld [vmem:[%s11026_s28 + $0x38] sm:$0xff] }
 0x321   : > { %4153 = vperm.xlu1 %6110, %v4127_v3   ;;  %v4629_v3 = vld [vmem:[%s11026_s28 + $0x30] sm:$0xff] }
 0x322   : > { %4168 = vperm.xlu0 %6109, %v4130_v53   ;;  %v8192_v53 = vpop.permute.xlu0 %2148 }
 0x323   : > { %11032 = vst [vmem:[#allocation20_spill] sm:$0xff] %v8192_v53 }
 0x326   : > { %4345 = vperm.xlu2 %6087, %v4319_v27   ;;  %2683 = vmatmul.bf16.gmra.mxu1 %v5805_v37 }
 0x329   : > { %4148 = vperm.xlu1 %6110, %v4126_v28   ;;  %v8200_v28 = vpop.permute.xlu2 %2073 }
 0x32a   : > { %2594 = vmatmul.bf16.gmra.mxu0 %v5805_v37  ;;  %4143 = vperm.xlu0 %6109, %v4125_v36   ;;  %v5810_v37 = vld [vmem:[%s11024_s4 + $0x58] sm:$0xff]  ;;  %11033 = vst [vmem:[#allocation16_spill] sm:$0xff] %v8200_v28 }
 0x32b   : > { %2305 = vmatmul.bf16.gmra.mxu3 %v5806_v40 }
 0x32c   : > { %2394 = vmatmul.bf16.gmra.mxu2 %v5806_v40 }
 0x32e   : > { %4340 = vperm.xlu2 %6087, %v4318_v44  }
 0x331   : > { %4395 = vperm.xlu1 %6110, %v4329_v26   ;;  %v4632_v26 = vld [vmem:[%s11026_s28 + $0x48] sm:$0xff] }
 0x332   : > { %4410 = vperm.xlu0 %6109, %v4332_v12   ;;  %v8210_v12 = vpop.permute.xlu1 %2153 }
 0x333   : > { %11034 = vst [vmem:[#allocation15_spill] sm:$0xff] %v8210_v12 }
 0x336   : > { %4651 = vperm.xlu2 %6087, %v4625_v45   ;;  %2688 = vmatmul.bf16.gmra.mxu1 %v5806_v40  ;;  %v4633_v45 = vld [vmem:[%s11026_s28 + $0x50] sm:$0xff] }
 0x339   : > { %4390 = vperm.xlu1 %6110, %v4328_v46   ;;  %v8216_v46 = vpop.permute.xlu0 %2063 }
 0x33a   : > { %2599 = vmatmul.bf16.gmra.mxu0 %v5806_v40  ;;  %4385 = vperm.xlu0 %6109, %v4327_v15   ;;  %11035 = vst [vmem:[#allocation35_spill] sm:$0xff] %v8216_v46 }
 0x33b   : > { %2310 = vmatmul.bf16.gmra.mxu3 %v5807_v9 }
 0x33c   : > { %2399 = vmatmul.bf16.gmra.mxu2 %v5807_v9 }
 0x33e   : > { %4666 = vperm.xlu2 %6087, %v4628_v52   ;;  %v8082_v6 = vpop.f32.mrf.mxu3 }
 0x33f   : > { %v8084_v39 = vpop.f32.mrf.mxu2 }
 0x341   : > { %4365 = vperm.xlu1 %6110, %v4323_v32  }
 0x342   : > { %4380 = vperm.xlu0 %6109, %v4326_v18   ;;  %v4636_v18 = vld [vmem:[%s11026_s28 + $0x68] sm:$0xff] }
 0x343   : > { %v8086_v57 = vpop.f32.mrf.mxu1 }
 0x346   : > { %4681 = vperm.xlu2 %6087, %v4631_v13   ;;  %2693 = vmatmul.bf16.gmra.mxu1 %v5807_v9  ;;  %v8097_v8 = vpop.f32.mrf.mxu3  ;;  %v5811_v13 = vld [vmem:[%s11024_s4 + $0x60] sm:$0xff] }
 0x347   : > { %v8099_v33 = vpop.f32.mrf.mxu2  ;;  %v8101_v30 = vpop.f32.mrf.mxu0 }
 0x349   : > { %4360 = vperm.xlu1 %6110, %v4322_v4   ;;  %v8233_v4 = vpop.permute.xlu1 %2138 }
 0x34a   : > { %2604 = vmatmul.bf16.gmra.mxu0 %v5807_v9  ;;  %4355 = vperm.xlu0 %6109, %v4321_v16   ;;  %11038 = vst [vmem:[#allocation36_spill] sm:$0xff] %v8233_v4 }
 0x34b   : > { %v8106_v61 = vpop.f32.mrf.mxu1  ;;  %2315 = vmatmul.bf16.gmra.mxu3 %v5808_v20 }
 0x34c   : > { %2404 = vmatmul.bf16.gmra.mxu2 %v5808_v20 }
 0x34e   : > { %4696 = vperm.xlu2 %6087, %v4634_v31   ;;  %v8117_v29 = vpop.f32.mrf.mxu3  ;;  %v8231_v31 = vpop.permute.xlu2 %2058 }
 0x34f   : > { %v8119_v17 = vpop.f32.mrf.mxu2  ;;  %v8121_v56 = vpop.f32.mrf.mxu0  ;;  %11037 = vst [vmem:[#allocation33_spill] sm:$0xff] %v8231_v31 }
 0x351   : > { %4335 = vperm.xlu1 %6110, %v4317_v51  }
 0x352   : > { %4350 = vperm.xlu0 %6109, %v4320_v14   ;;  %v8241_v14 = vpop.permute.xlu0 %2048 }
 0x353   : > { %v8123_v10 = vpop.f32.mrf.mxu1  ;;  %11042 = vst [vmem:[#allocation31_spill] sm:$0xff] %v8241_v14 }
 0x356   : > { %4711 = vperm.xlu2 %6087, %v4637_v35   ;;  %2698 = vmatmul.bf16.gmra.mxu1 %v5808_v20  ;;  %v8134_v63 = vpop.f32.mrf.mxu3 }
 0x357   : > { %v8136_v21 = vpop.f32.mrf.mxu2  ;;  %v8138_v1 = vpop.f32.mrf.mxu0 }
 0x359   : > { %4646 = vperm.xlu1 %6110, %v4624_v25   ;;  %v4638_v25 = vld [vmem:[%s11026_s28 + $0x78] sm:$0xff] }
 0x35a   : > { %2609 = vmatmul.bf16.gmra.mxu0 %v5808_v20  ;;  %4641 = vperm.xlu0 %6109, %v4623_v38   ;;  %v4635_v20 = vld [vmem:[%s11026_s28 + $0x60] sm:$0xff]  ;;  %v8248_v38 = vpop.permute.xlu2 %2143 }
 0x35b   : > { %v8143_v59 = vpop.f32.mrf.mxu1  ;;  %2320 = vmatmul.bf16.gmra.mxu3 %v5809_v19  ;;  %11044 = vst [vmem:[#allocation34_spill] sm:$0xff] %v8248_v38  ;;  %v5813_v38 = vld [vmem:[%s11024_s4 + $0x70] sm:$0xff] }
 0x35c   : > { %2409 = vmatmul.bf16.gmra.mxu2 %v5809_v19 }
 0x35e   : > { %v8153_v48 = vpop.f32.mrf.mxu3 }
 0x35f   : > { %v8155_v43 = vpop.f32.mrf.mxu2  ;;  %v8159_v62 = vpop.f32.mrf.mxu0 }
 0x361   : > { %4661 = vperm.xlu1 %6110, %v4627_v47  }
 0x362   : > { %4656 = vperm.xlu0 %6109, %v4626_v2  }
 0x363   : > { %v8161_v34 = vpop.f32.mrf.mxu1 }
 0x366   : > { %2703 = vmatmul.bf16.gmra.mxu1 %v5809_v19  ;;  %v8171_v42 = vpop.f32.mrf.mxu3 }
 0x367   : > { %v8173_v11 = vpop.f32.mrf.mxu2  ;;  %v8177_v7 = vpop.f32.mrf.mxu0 }
 0x369   : > { %4676 = vperm.xlu1 %6110, %v4630_v58  }
 0x36a   : > { %2614 = vmatmul.bf16.gmra.mxu0 %v5809_v19  ;;  %4671 = vperm.xlu0 %6109, %v4629_v3   ;;  %v5812_v3 = vld [vmem:[%s11024_s4 + $0x68] sm:$0xff] }
 0x36b   : > { %v8184_v22 = vpop.f32.mrf.mxu1  ;;  %2325 = vmatmul.bf16.gmra.mxu3 %v5810_v37 }
 0x36c   : > { %2414 = vmatmul.bf16.gmra.mxu2 %v5810_v37 }
 0x36e   : > { %v8194_v27 = vpop.f32.mrf.mxu3 }
 0x36f   : > { %v8196_v40 = vpop.f32.mrf.mxu2  ;;  %v8198_v44 = vpop.f32.mrf.mxu0 }
 0x371   : > { %4691 = vperm.xlu1 %6110, %v4633_v45  }
 0x372   : > { %4686 = vperm.xlu0 %6109, %v4632_v26   ;;  %v8263_v26 = vpop.permute.xlu0 %2133 }
 0x373   : > { %v8202_v36 = vpop.f32.mrf.mxu1  ;;  %11050 = vst [vmem:[#allocation42_spill] sm:$0xff] %v8263_v26 }
 0x376   : > { %2708 = vmatmul.bf16.gmra.mxu1 %v5810_v37  ;;  %v8212_v9 = vpop.f32.mrf.mxu3 }
 0x377   : > { %v8214_v52 = vpop.f32.mrf.mxu2  ;;  %v8218_v15 = vpop.f32.mrf.mxu0 }
 0x379   : > { %4706 = vperm.xlu1 %6110, %v4636_v18  }
 0x37a   : > { %2619 = vmatmul.bf16.gmra.mxu0 %v5810_v37  ;;  %4701 = vperm.xlu0 %6109, %v4635_v20   ;;  %v8254_v37 = vpop.permute.xlu1 %2053  ;;  %v8277_v53 = vpop.permute.xlu0 %2118 }
 0x37b   : > { %v8223_v32 = vpop.f32.mrf.mxu1  ;;  %2330 = vmatmul.bf16.gmra.mxu3 %v5811_v13  ;;  %11047 = vst [vmem:[#allocation54_spill] sm:$0xff] %v8254_v37  ;;  %v781_v37 = vand.u32 2, %v7074_v24  ;;  %v791_v24 = vand.u32 2, %v7110_v0 }
 0x37c   : > { %11036 = vst [vmem:[#allocation37_spill] sm:$0xff] %v8223_v32  ;;  %2419 = vmatmul.bf16.gmra.mxu2 %v5811_v13 }
 0x37d   : > { %vm8356_vm12 = vcmp.ne.s32.totalorder %v781_v37, 0  ;;  %vm8371_vm13 = vcmp.ne.s32.totalorder %v791_v24, 0 }
 0x37e   : > { %v8235_v16 = vpop.f32.mrf.mxu3 }
 0x37f   : > { %11039 = vst [vmem:[#allocation38_spill] sm:$0xff] %v8235_v16  ;;  %v8237_v35 = vpop.f32.mrf.mxu2  ;;  %v8239_v51 = vpop.f32.mrf.mxu0 }
 0x380   : > { %11040 = vst [vmem:[#allocation39_spill] sm:$0xff] %v8237_v35 }
 0x381   : > { %11041 = vst [vmem:[#allocation29_spill] sm:$0xff] %v8239_v51 }
 0x382   : > { %4716 = vperm.xlu0 %6109, %v4638_v25   ;;  %v8269_v25 = vpop.permute.xlu2 %2128  ;;  %v8273_v41 = vpop.permute.xlu1 %2038 }
 0x383   : > { %v8243_v19 = vpop.f32.mrf.mxu1  ;;  %11053 = vst [vmem:[#allocation51_spill] sm:$0xff] %v8269_v25  ;;  %v8298_v60 = vpop.permute.xlu0 %2033 }
 0x384   : > { %11043 = vst [vmem:[#allocation32_spill] sm:$0xff] %v8243_v19 }
 0x386   : > { %2713 = vmatmul.bf16.gmra.mxu1 %v5811_v13  ;;  %v8250_v47 = vpop.f32.mrf.mxu3 }
 0x387   : > { %11045 = vst [vmem:[#allocation53_spill] sm:$0xff] %v8250_v47  ;;  %v8252_v2 = vpop.f32.mrf.mxu2  ;;  %v8256_v58 = vpop.f32.mrf.mxu0 }
 0x388   : > { %11046 = vst [vmem:[#allocation21_spill] sm:$0xff] %v8252_v2 }
 0x389   : > { %11048 = vst [vmem:[#allocation22_spill] sm:$0xff] %v8256_v58 }
 0x38a   : > { %2624 = vmatmul.bf16.gmra.mxu0 %v5811_v13  ;;  %v8288_v26 = vpop.permute.xlu2 %2043  ;;  %v8292_v54 = vpop.permute.xlu1 %2123 }
 0x38b   : > { %v8261_v45 = vpop.f32.mrf.mxu1  ;;  %2335 = vmatmul.bf16.gmra.mxu3 %v5812_v3  ;;  %11060 = vst [vmem:[#allocation60_spill] sm:$0xff] %v8292_v54 }
 0x38c   : > { %11049 = vst [vmem:[#allocation41_spill] sm:$0xff] %v8261_v45  ;;  %2424 = vmatmul.bf16.gmra.mxu2 %v5812_v3 }
 0x38e   : > { %v8265_v18 = vpop.f32.mrf.mxu3 }
 0x38f   : > { %11051 = vst [vmem:[#allocation45_spill] sm:$0xff] %v8265_v18  ;;  %v8267_v20 = vpop.f32.mrf.mxu2  ;;  %v8271_v50 = vpop.f32.mrf.mxu0 }
 0x390   : > { %11052 = vst [vmem:[#allocation48_spill] sm:$0xff] %v8267_v20 }
 0x391   : > { %11054 = vst [vmem:[#allocation52_spill] sm:$0xff] %v8271_v50 }
 0x393   : > { %v8275_v12 = vpop.f32.mrf.mxu1 }
 0x394   : > { %11055 = vst [vmem:[#allocation46_spill] sm:$0xff] %v8275_v12 }
 0x396   : > { %2718 = vmatmul.bf16.gmra.mxu1 %v5812_v3  ;;  %v8279_v13 = vpop.f32.mrf.mxu3 }
 0x397   : > { %11056 = vst [vmem:[#allocation49_spill] sm:$0xff] %v8279_v13  ;;  %v8281_v49 = vpop.f32.mrf.mxu2  ;;  %v8283_v4 = vpop.f32.mrf.mxu0 }
 0x398   : > { %11057 = vst [vmem:[#allocation47_spill] sm:$0xff] %v8281_v49  ;;  %v8304_v49 = vpop.permute.xlu2 %2028  ;;  %v8306_v13 = vpop.permute.xlu1 %2108 }
 0x399   : > { %11058 = vst [vmem:[#allocation50_spill] sm:$0xff] %v8283_v4 }
 0x39a   : > { %2629 = vmatmul.bf16.gmra.mxu0 %v5812_v3 }
 0x39b   : > { %v8290_v50 = vpop.f32.mrf.mxu1  ;;  %2340 = vmatmul.bf16.gmra.mxu3 %v5813_v38 }
 0x39c   : > { %11059 = vst [vmem:[#allocation59_spill] sm:$0xff] %v8290_v50  ;;  %2429 = vmatmul.bf16.gmra.mxu2 %v5813_v38 }
 0x39e   : > { %v8294_v23 = vpop.f32.mrf.mxu3 }
 0x39f   : > { %11061 = vst [vmem:[#allocation27_spill] sm:$0xff] %v8294_v23  ;;  %v8296_v28 = vpop.f32.mrf.mxu2  ;;  %v8300_v4 = vpop.f32.mrf.mxu0 }
 0x3a0   : > { %11062 = vst [vmem:[#allocation30_spill] sm:$0xff] %v8296_v28  ;;  %v5814_v28 = vld [vmem:[%s11024_s4 + $0x78] sm:$0xff]  ;;  %v8317_v23 = vpop.permute.xlu0 %2018 }
 0x3a1   : > { %11063 = vst [vmem:[#allocation56_spill] sm:$0xff] %v8300_v4 }
 0x3a3   : > { %v8302_v45 = vpop.f32.mrf.mxu1 }
 0x3a4   : > { %11064 = vst [vmem:[#allocation57_spill] sm:$0xff] %v8302_v45  ;;  %v8321_v45 = vpop.permute.xlu2 %2113 }
 0x3a6   : > { %2723 = vmatmul.bf16.gmra.mxu1 %v5813_v38  ;;  %v8308_v3 = vpop.f32.mrf.mxu3 }
 0x3a7   : > { %11065 = vst [vmem:[#allocation19_spill] sm:$0xff] %v8308_v3  ;;  %v8310_v50 = vpop.f32.mrf.mxu2  ;;  %v8312_v46 = vpop.f32.mrf.mxu0 }
 0x3a8   : > { %11066 = vst [vmem:[#allocation28_spill] sm:$0xff] %v8310_v50  ;;  %v8327_v50 = vpop.permute.xlu1 %2023  ;;  %v8333_v18 = vpop.permute.xlu0 %2103 }
 0x3a9   : > { %11067 = vst [vmem:[#allocation17_spill] sm:$0xff] %v8312_v46 }
 0x3aa   : > { %2634 = vmatmul.bf16.gmra.mxu0 %v5813_v38 }
 0x3ab   : > { %v8319_v4 = vpop.f32.mrf.mxu1  ;;  %2345 = vmatmul.bf16.gmra.mxu3 %v5814_v28 }
 0x3ac   : > { %11068 = vst [vmem:[#allocation26_spill] sm:$0xff] %v8319_v4  ;;  %2434 = vmatmul.bf16.gmra.mxu2 %v5814_v28  ;;  %v8341_v2 = vpop.permute.xlu2 %2098 }
 0x3ae   : > { %v8323_v12 = vpop.f32.mrf.mxu3 }
 0x3af   : > { %11069 = vst [vmem:[#allocation43_spill] sm:$0xff] %v8323_v12  ;;  %v8325_v3 = vpop.f32.mrf.mxu2  ;;  %v8329_v46 = vpop.f32.mrf.mxu0 }
 0x3b0   : > { %11070 = vst [vmem:[#allocation61_spill] sm:$0xff] %v8325_v3  ;;  %v2009_v12 = vpop.permute.xlu1 %2008  ;;  %v2089_v58 = vpop.permute.xlu0 %2088 }
 0x3b1   : > { %11071 = vst [vmem:[#allocation62_spill] sm:$0xff] %v8329_v46  ;;  %v2272_v3 = vadd.f32 %v8082_v6, %v2009_v12  ;;  %v2361_v46 = vadd.f32 %v8084_v39, %v2009_v12  ;;  %v11208_v39 = vld [vmem:[#allocation54_spill] sm:$0xff] }
 0x3b3   : > { %v8331_v20 = vpop.f32.mrf.mxu1  ;;  %v2441_v19 = vmax.f32 %v2361_v46, 0.0 }
 0x3b4   : > { %11072 = vst [vmem:[#allocation63_spill] sm:$0xff] %v8331_v20  ;;  %v780_v20 = vand.u32 2, %v10986_v55  ;;  %v2014_v46 = vpop.permute.xlu2 %2013 }
 0x3b5   : > { %v2274_v37 = vadd.f32 %v8097_v8, %v2014_v46  ;;  %v2657_v32 = vadd.f32 %v8106_v61, %v2014_v46 }
 0x3b6   : > { %2728 = vmatmul.bf16.gmra.mxu1 %v5814_v28  ;;  %v8335_v38 = vpop.f32.mrf.mxu3  ;;  %vm8352_vm11 = vcmp.ne.s32.totalorder %v780_v20, 0 }
 0x3b7   : > { %11073 = vst [vmem:[#allocation64_spill] sm:$0xff] %v8335_v38  ;;  %v8337_v4 = vpop.f32.mrf.mxu2  ;;  %v8339_v31 = vpop.f32.mrf.mxu0  ;;  %v2440_v38 = vmax.f32 %v2272_v3, 0.0 }
 0x3b8   : > { %11074 = vst [vmem:[#allocation65_spill] sm:$0xff] %v8337_v4 }
 0x3b9   : > { %11075 = vst [vmem:[#allocation66_spill] sm:$0xff] %v8339_v31  ;;  %v2655_v31 = vadd.f32 %v8086_v57, %v2009_v12 }
 0x3ba   : > { %2639 = vmatmul.bf16.gmra.mxu0 %v5814_v28 }
 0x3bb   : > { %v8344_v47 = vpop.f32.mrf.mxu1  ;;  %v2735_v16 = vmax.f32 %v2655_v31, 0.0  ;;  %v790_v31 = vand.u32 2, %v6837_v5 }
 0x3bc   : > { %11076 = vst [vmem:[#allocation67_spill] sm:$0xff] %v8344_v47 }
 0x3bd   : > { %vm8382_vm14 = vcmp.ne.s32.totalorder %v790_v31, 0  ;;  %v2660_v31 = vadd.f32 %v8123_v10, %v8317_v23 }
 0x3be   : > { %v2311_v25 = vpop.f32.mrf.mxu3 }
 0x3bf   : > { %v2400_v4 = vpop.f32.mrf.mxu2  ;;  %v2312_v51 = vadd.f32 %v2311_v25, %v2089_v58  ;;  %v8350_v28 = vpop.f32.mrf.mxu0  ;;  %v2363_v25 = vadd.f32 %v8099_v33, %v2014_v46  ;;  %v2442_v33 = vmax.f32 %v2274_v37, 0.0  ;;  %v2739_v10 = vmax.f32 %v2660_v31, 0.0 }
 0x3c0   : > { %v2401_v35 = vadd.f32 %v2400_v4, %v2089_v58  ;;  %11077 = vst [vmem:[#allocation68_spill] sm:$0xff] %v8350_v28  ;;  %v2571_v31 = vadd.f32 %v8138_v1, %v8317_v23 }
 0x3c1   : > { %v2472_v3 = vmax.f32 %v2312_v51, 0.0  ;;  %v2443_v24 = vmax.f32 %v2363_v25, 0.0 }
 0x3c2   : > { %v2473_v55 = vmax.f32 %v2401_v35, 0.0  ;;  %v2094_v35 = vpop.permute.xlu1 %2093 }
 0x3c3   : > { %v2694_v47 = vpop.f32.mrf.mxu1  ;;  %v8363_v4 = vsel %vm8352_vm11, %v2472_v3, %v2440_v38 }
 0x3c4   : > { %v2695_v57 = vadd.f32 %v2694_v47, %v2089_v58  ;;  %11082 = vst [vmem:[#allocation69_spill] sm:$0xff] %v8363_v4  ;;  %v8367_v20 = vsel %vm8356_vm12, %v2473_v55, %v2441_v19  ;;  %v2566_v47 = vadd.f32 %v8101_v30, %v2009_v12  ;;  %v2277_v12 = vadd.f32 %v8117_v29, %v8317_v23  ;;  %v11155_v4 = vld [vmem:[#allocation19_spill] sm:$0xff] }
 0x3c5   : > { %11083 = vst [vmem:[#allocation70_spill] sm:$0xff] %v8367_v20  ;;  %v11148_v20 = vld [vmem:[#allocation14_spill] sm:$0xff] }
 0x3c6   : > { %v2767_v51 = vmax.f32 %v2695_v57, 0.0  ;;  %v2313_v38 = vpop.f32.mrf.mxu3  ;;  %v2734_v30 = vmax.f32 %v2566_v47, 0.0 }
 0x3c7   : > { %v2402_v3 = vpop.f32.mrf.mxu2  ;;  %v2314_v28 = vadd.f32 %v2313_v38, %v2094_v35  ;;  %v2605_v55 = vpop.f32.mrf.mxu0 }
 0x3c8   : > { %v2403_v14 = vadd.f32 %v2402_v3, %v2094_v35  ;;  %v8379_v8 = vsel %vm8371_vm13, %v2767_v51, %v2735_v16  ;;  %v2606_v19 = vadd.f32 %v2605_v55, %v2089_v58  ;;  %v2366_v16 = vadd.f32 %v8119_v17, %v8317_v23 }
 0x3c9   : > { %11086 = vst [vmem:[#allocation71_spill] sm:$0xff] %v8379_v8  ;;  %v2474_v54 = vmax.f32 %v2314_v28, 0.0  ;;  %v2737_v17 = vmax.f32 %v2657_v32, 0.0  ;;  %v2444_v51 = vmax.f32 %v2277_v12, 0.0  ;;  %v2738_v23 = vmax.f32 %v2571_v31, 0.0 }
 0x3ca   : > { %v2475_v57 = vmax.f32 %v2403_v14, 0.0  ;;  %v2766_v38 = vmax.f32 %v2606_v19, 0.0 }
 0x3cb   : > { %v2696_v3 = vpop.f32.mrf.mxu1  ;;  %v8392_v58 = vsel %vm8352_vm11, %v2474_v54, %v2442_v33  ;;  %v2568_v54 = vadd.f32 %v8121_v56, %v2014_v46  ;;  %v2445_v33 = vmax.f32 %v2366_v16, 0.0  ;;  %v2368_v16 = vadd.f32 %v8136_v21, %v8327_v50  ;;  %v11115_v21 = vld [vmem:[#allocation31_spill] sm:$0xff] }
 0x3cc   : > { %v2697_v37 = vadd.f32 %v2696_v3, %v2094_v35  ;;  %11089 = vst [vmem:[#allocation72_spill] sm:$0xff] %v8392_v58  ;;  %v8396_v61 = vsel %vm8356_vm12, %v2475_v57, %v2443_v24  ;;  %v8404_v28 = vsel %vm8382_vm14, %v2766_v38, %v2734_v30  ;;  %v11160_v58 = vld [vmem:[#allocation56_spill] sm:$0xff] }
 0x3cd   : > { %11090 = vst [vmem:[#allocation73_spill] sm:$0xff] %v8396_v61  ;;  %v2736_v38 = vmax.f32 %v2568_v54, 0.0 }
 0x3ce   : > { %11091 = vst [vmem:[#allocation74_spill] sm:$0xff] %v8404_v28  ;;  %v2769_v25 = vmax.f32 %v2697_v37, 0.0  ;;  %v2316_v47 = vpop.f32.mrf.mxu3 }
 0x3cf   : > { %v2405_v55 = vpop.f32.mrf.mxu2  ;;  %v2317_v24 = vadd.f32 %v2316_v47, %v8341_v2  ;;  %v2607_v57 = vpop.f32.mrf.mxu0 }
 0x3d0   : > { %v2406_v19 = vadd.f32 %v2405_v55, %v8341_v2  ;;  %v8413_v30 = vsel %vm8371_vm13, %v2769_v25, %v2737_v17  ;;  %v2608_v32 = vadd.f32 %v2607_v57, %v2094_v35  ;;  %v2279_v25 = vadd.f32 %v8134_v63, %v8327_v50 }
 0x3d1   : > { %11092 = vst [vmem:[#allocation75_spill] sm:$0xff] %v8413_v30  ;;  %v2476_v56 = vmax.f32 %v2317_v24, 0.0  ;;  %v11149_v30 = vld [vmem:[#allocation27_spill] sm:$0xff] }
 0x3d2   : > { %v2477_v46 = vmax.f32 %v2406_v19, 0.0  ;;  %v2768_v3 = vmax.f32 %v2608_v32, 0.0  ;;  %v2447_v19 = vmax.f32 %v2368_v16, 0.0  ;;  %v8707_v61 = vadd.f32 %v11149_v30, %v11148_v20  ;;  %v11152_v30 = vld [vmem:[#allocation50_spill] sm:$0xff] }
 0x3d3   : > { %v2699_v37 = vpop.f32.mrf.mxu1  ;;  %v8422_v55 = vsel %vm8352_vm11, %v2476_v56, %v2444_v51 }
 0x3d4   : > { %v2700_v47 = vadd.f32 %v2699_v37, %v8341_v2  ;;  %11093 = vst [vmem:[#allocation76_spill] sm:$0xff] %v8422_v55  ;;  %v8426_v35 = vsel %vm8356_vm12, %v2477_v46, %v2445_v33  ;;  %v8430_v17 = vsel %vm8382_vm14, %v2768_v3, %v2736_v38  ;;  %v2446_v46 = vmax.f32 %v2279_v25, 0.0 }
 0x3d5   : > { %11094 = vst [vmem:[#allocation77_spill] sm:$0xff] %v8426_v35  ;;  %v2662_v38 = vadd.f32 %v8143_v59, %v8327_v50  ;;  %v11134_v59 = vld [vmem:[#allocation21_spill] sm:$0xff]  ;;  %v11154_v35 = vld [vmem:[#allocation16_spill] sm:$0xff] }
 0x3d6   : > { %11095 = vst [vmem:[#allocation78_spill] sm:$0xff] %v8430_v17  ;;  %v2771_v54 = vmax.f32 %v2700_v47, 0.0  ;;  %v2318_v51 = vpop.f32.mrf.mxu3  ;;  %v11139_v17 = vld [vmem:[#allocation46_spill] sm:$0xff] }
 0x3d7   : > { %v2407_v24 = vpop.f32.mrf.mxu2  ;;  %v2319_v33 = vadd.f32 %v2318_v51, %v8333_v18  ;;  %v2610_v32 = vpop.f32.mrf.mxu0  ;;  %v2741_v31 = vmax.f32 %v2662_v38, 0.0 }
 0x3d8   : > { %v2408_v57 = vadd.f32 %v2407_v24, %v8333_v18  ;;  %v8442_v56 = vsel %vm8371_vm13, %v2771_v54, %v2739_v10  ;;  %v2611_v63 = vadd.f32 %v2610_v32, %v8341_v2  ;;  %v2282_v2 = vadd.f32 %v8153_v48, %v8304_v49 }
 0x3d9   : > { %11096 = vst [vmem:[#allocation79_spill] sm:$0xff] %v8442_v56  ;;  %v2478_v3 = vmax.f32 %v2319_v33, 0.0  ;;  %v2371_v24 = vadd.f32 %v8155_v43, %v8304_v49  ;;  %v11144_v56 = vld [vmem:[#allocation41_spill] sm:$0xff] }
 0x3da   : > { %v2479_v1 = vmax.f32 %v2408_v57, 0.0  ;;  %v2770_v37 = vmax.f32 %v2611_v63, 0.0 }
 0x3db   : > { %v2701_v16 = vpop.f32.mrf.mxu1  ;;  %v8450_v51 = vsel %vm8352_vm11, %v2478_v3, %v2446_v46  ;;  %v11236_v5 = vld [vmem:[#allocation76_spill] sm:$0xff] }
 0x3dc   : > { %v2702_v47 = vadd.f32 %v2701_v16, %v8333_v18  ;;  %11097 = vst [vmem:[#allocation80_spill] sm:$0xff] %v8450_v51  ;;  %v8454_v10 = vsel %vm8356_vm12, %v2479_v1, %v2447_v19  ;;  %v8464_v54 = vsel %vm8382_vm14, %v2770_v37, %v2738_v23  ;;  %v2573_v19 = vadd.f32 %v8159_v62, %v8327_v50 }
 0x3dd   : > { %11098 = vst [vmem:[#allocation81_spill] sm:$0xff] %v8454_v10  ;;  %v2448_v1 = vmax.f32 %v2282_v2, 0.0  ;;  %v2449_v23 = vmax.f32 %v2371_v24, 0.0  ;;  %v2665_v50 = vadd.f32 %v8161_v34, %v8304_v49  ;;  %v8729_v10 = vadd.f32 %v11155_v4, %v11154_v35 }
 0x3de   : > { %11099 = vst [vmem:[#allocation82_spill] sm:$0xff] %v8464_v54  ;;  %v2773_v33 = vmax.f32 %v2702_v47, 0.0  ;;  %v2321_v57 = vpop.f32.mrf.mxu3  ;;  %v2740_v16 = vmax.f32 %v2573_v19, 0.0 }
 0x3df   : > { %v2410_v48 = vpop.f32.mrf.mxu2  ;;  %v2322_v32 = vadd.f32 %v2321_v57, %v8306_v13  ;;  %v2612_v46 = vpop.f32.mrf.mxu0  ;;  %v2743_v24 = vmax.f32 %v2665_v50, 0.0 }
 0x3e0   : > { %v2411_v63 = vadd.f32 %v2410_v48, %v8306_v13  ;;  %v8474_v3 = vsel %vm8371_vm13, %v2773_v33, %v2741_v31  ;;  %v2613_v38 = vadd.f32 %v2612_v46, %v8333_v18  ;;  %v2373_v48 = vadd.f32 %v8173_v11, %v8298_v60  ;;  %v11116_v11 = vld [vmem:[#allocation38_spill] sm:$0xff] }
 0x3e1   : > { %11100 = vst [vmem:[#allocation83_spill] sm:$0xff] %v8474_v3  ;;  %v2480_v62 = vmax.f32 %v2322_v32, 0.0  ;;  %v2284_v33 = vadd.f32 %v8171_v42, %v8298_v60  ;;  %v2576_v32 = vadd.f32 %v8177_v7, %v8304_v49  ;;  %v11146_v3 = vld [vmem:[#allocation59_spill] sm:$0xff] }
 0x3e2   : > { %v2481_v37 = vmax.f32 %v2411_v63, 0.0  ;;  %v2772_v47 = vmax.f32 %v2613_v38, 0.0 }
 0x3e3   : > { %v2704_v57 = vpop.f32.mrf.mxu1  ;;  %v8486_v18 = vsel %vm8352_vm11, %v2480_v62, %v2448_v1  ;;  %v2451_v1 = vmax.f32 %v2373_v48, 0.0  ;;  %v2742_v7 = vmax.f32 %v2576_v32, 0.0  ;;  %v2376_v48 = vadd.f32 %v8196_v40, %v8273_v41 }
 0x3e4   : > { %v2705_v31 = vadd.f32 %v2704_v57, %v8306_v13  ;;  %11101 = vst [vmem:[#allocation84_spill] sm:$0xff] %v8486_v18  ;;  %v8490_v2 = vsel %vm8356_vm12, %v2481_v37, %v2449_v23  ;;  %v8494_v34 = vsel %vm8382_vm14, %v2772_v47, %v2740_v16  ;;  %v2450_v37 = vmax.f32 %v2284_v33, 0.0  ;;  %v11137_v33 = vld [vmem:[#allocation45_spill] sm:$0xff] }
 0x3e5   : > { %11102 = vst [vmem:[#allocation85_spill] sm:$0xff] %v8490_v2  ;;  %v2667_v16 = vadd.f32 %v8184_v22, %v8298_v60  ;;  %v2287_v57 = vadd.f32 %v8194_v27, %v8273_v41  ;;  %v11136_v27 = vld [vmem:[#allocation33_spill] sm:$0xff] }
 0x3e6   : > { %11103 = vst [vmem:[#allocation86_spill] sm:$0xff] %v8494_v34  ;;  %v2775_v19 = vmax.f32 %v2705_v31, 0.0  ;;  %v2323_v63 = vpop.f32.mrf.mxu3  ;;  %v8681_v54 = vadd.f32 %v11139_v17, %v11136_v27  ;;  %v11142_v34 = vld [vmem:[#allocation49_spill] sm:$0xff] }
 0x3e7   : > { %v2412_v46 = vpop.f32.mrf.mxu2  ;;  %v2324_v38 = vadd.f32 %v2323_v63, %v8321_v45  ;;  %v2615_v62 = vpop.f32.mrf.mxu0 }
 0x3e8   : > { %v2413_v23 = vadd.f32 %v2412_v46, %v8321_v45  ;;  %v8506_v50 = vsel %vm8371_vm13, %v2775_v19, %v2743_v24  ;;  %v2616_v42 = vadd.f32 %v2615_v62, %v8306_v13  ;;  %v2745_v19 = vmax.f32 %v2667_v16, 0.0  ;;  %11140 = vst [vmem:[#allocation21_spill] sm:$0xff] %v8681_v54 }
 0x3e9   : > { %11104 = vst [vmem:[#allocation87_spill] sm:$0xff] %v8506_v50  ;;  %v2482_v47 = vmax.f32 %v2324_v38, 0.0  ;;  %v2452_v46 = vmax.f32 %v2287_v57, 0.0  ;;  %v2453_v38 = vmax.f32 %v2376_v48, 0.0 }
 0x3ea   : > { %v2483_v49 = vmax.f32 %v2413_v23, 0.0  ;;  %v2774_v31 = vmax.f32 %v2616_v42, 0.0  ;;  %v2578_v23 = vadd.f32 %v8198_v44, %v8298_v60  ;;  %v2670_v42 = vadd.f32 %v8202_v36, %v8273_v41 }
 0x3eb   : > { %v2706_v63 = vpop.f32.mrf.mxu1  ;;  %v8518_v13 = vsel %vm8352_vm11, %v2482_v47, %v2450_v37 }
 0x3ec   : > { %v2707_v24 = vadd.f32 %v2706_v63, %v8321_v45  ;;  %11105 = vst [vmem:[#allocation88_spill] sm:$0xff] %v8518_v13  ;;  %v8522_v22 = vsel %vm8356_vm12, %v2483_v49, %v2451_v1  ;;  %v8530_v40 = vsel %vm8382_vm14, %v2774_v31, %v2742_v7  ;;  %v2744_v48 = vmax.f32 %v2578_v23, 0.0  ;;  %v11169_v13 = vld [vmem:[#allocation64_spill] sm:$0xff] }
 0x3ed   : > { %11106 = vst [vmem:[#allocation89_spill] sm:$0xff] %v8522_v22  ;;  %v2747_v36 = vmax.f32 %v2670_v42, 0.0  ;;  %v2378_v23 = vadd.f32 %v8214_v52, %v8288_v26 }
 0x3ee   : > { %11107 = vst [vmem:[#allocation90_spill] sm:$0xff] %v8530_v40  ;;  %v2777_v32 = vmax.f32 %v2707_v24, 0.0  ;;  %v2326_v62 = vpop.f32.mrf.mxu3 }
 0x3ef   : > { %v2415_v1 = vpop.f32.mrf.mxu2  ;;  %v2327_v37 = vadd.f32 %v2326_v62, %v8277_v53  ;;  %v2617_v49 = vpop.f32.mrf.mxu0 }
 0x3f0   : > { %v2416_v47 = vadd.f32 %v2415_v1, %v8277_v53  ;;  %v8540_v7 = vsel %vm8371_vm13, %v2777_v32, %v2745_v19  ;;  %v2618_v16 = vadd.f32 %v2617_v49, %v8321_v45  ;;  %v2289_v45 = vadd.f32 %v8212_v9, %v8288_v26 }
 0x3f1   : > { %11108 = vst [vmem:[#allocation91_spill] sm:$0xff] %v8540_v7  ;;  %v2484_v60 = vmax.f32 %v2327_v37, 0.0  ;;  %v8725_v7 = vadd.f32 %v11152_v30, %v11136_v27  ;;  %v11165_v30 = vld [vmem:[#allocation62_spill] sm:$0xff] }
 0x3f2   : > { %v2485_v44 = vmax.f32 %v2416_v47, 0.0  ;;  %v2776_v31 = vmax.f32 %v2618_v16, 0.0  ;;  %v11112_v47 = vld [vmem:[#allocation60_spill] sm:$0xff]  ;;  %v8764_v18 = vadd.f32 %v11165_v30, %v11154_v35  ;;  %v11171_v30 = vld [vmem:[#allocation66_spill] sm:$0xff] }
 0x3f3   : > { %v2709_v63 = vpop.f32.mrf.mxu1  ;;  %v8548_v62 = vsel %vm8352_vm11, %v2484_v60, %v2452_v46  ;;  %v2581_v46 = vadd.f32 %v8218_v15, %v8273_v41 }
 0x3f4   : > { %v2710_v24 = vadd.f32 %v2709_v63, %v8277_v53  ;;  %11109 = vst [vmem:[#allocation92_spill] sm:$0xff] %v8548_v62  ;;  %v8552_v19 = vsel %vm8356_vm12, %v2485_v44, %v2453_v38  ;;  %v8558_v32 = vsel %vm8382_vm14, %v2776_v31, %v2744_v48  ;;  %v2454_v44 = vmax.f32 %v2289_v45, 0.0  ;;  %v11114_v31 = vld [vmem:[#allocation37_spill] sm:$0xff] }
 0x3f5   : > { %11110 = vst [vmem:[#allocation93_spill] sm:$0xff] %v8552_v19  ;;  %v2455_v48 = vmax.f32 %v2378_v23, 0.0  ;;  %v2672_v63 = vadd.f32 %v11114_v31, %v8288_v26  ;;  %v2746_v15 = vmax.f32 %v2581_v46, 0.0  ;;  %v11122_v31 = vld [vmem:[#allocation32_spill] sm:$0xff] }
 0x3f6   : > { %11111 = vst [vmem:[#allocation94_spill] sm:$0xff] %v8558_v32  ;;  %v2779_v1 = vmax.f32 %v2710_v24, 0.0  ;;  %v2328_v37 = vpop.f32.mrf.mxu3  ;;  %v11138_v23 = vld [vmem:[#allocation48_spill] sm:$0xff] }
 0x3f7   : > { %v2417_v38 = vpop.f32.mrf.mxu2  ;;  %v2329_v49 = vadd.f32 %v2328_v37, %v11112_v47  ;;  %v2620_v16 = vpop.f32.mrf.mxu0  ;;  %v2292_v37 = vadd.f32 %v11116_v11, %v11115_v21  ;;  %v2749_v46 = vmax.f32 %v2672_v63, 0.0  ;;  %v8673_v11 = vadd.f32 %v11137_v33, %v11136_v27  ;;  %11153 = vst [vmem:[#allocation48_spill] sm:$0xff] %v8725_v7 }
 0x3f8   : > { %v2418_v9 = vadd.f32 %v2417_v38, %v11112_v47  ;;  %v8570_v60 = vsel %vm8371_vm13, %v2779_v1, %v2747_v36  ;;  %v2621_v52 = vadd.f32 %v2620_v16, %v8277_v53  ;;  %v11117_v38 = vld [vmem:[#allocation39_spill] sm:$0xff]  ;;  %v11121_v16 = vld [vmem:[#allocation29_spill] sm:$0xff]  ;;  %v8677_v28 = vadd.f32 %v11138_v23, %v11136_v27  ;;  %v11150_v23 = vld [vmem:[#allocation30_spill] sm:$0xff]  ;;  %11166 = vst [vmem:[#allocation49_spill] sm:$0xff] %v8764_v18 }
 0x3f9   : > { %11113 = vst [vmem:[#allocation60_spill] sm:$0xff] %v8570_v60  ;;  %v2486_v24 = vmax.f32 %v2329_v49, 0.0  ;;  %v2381_v12 = vadd.f32 %v11117_v38, %v11115_v21  ;;  %v2456_v49 = vmax.f32 %v2292_v37, 0.0 }
 0x3fa   : > { %v2487_v41 = vmax.f32 %v2418_v9, 0.0  ;;  %v2778_v42 = vmax.f32 %v2621_v52, 0.0 }
 0x3fb   : > { %v2711_v43 = vpop.f32.mrf.mxu1  ;;  %v8582_v53 = vsel %vm8352_vm11, %v2486_v24, %v2454_v44  ;;  %v2457_v9 = vmax.f32 %v2381_v12, 0.0  ;;  %v2583_v44 = vadd.f32 %v11121_v16, %v8288_v26  ;;  %v2675_v24 = vadd.f32 %v11122_v31, %v11115_v21 }
 0x3fc   : > { %v2712_v36 = vadd.f32 %v2711_v43, %v11112_v47  ;;  %11118 = vst [vmem:[#allocation37_spill] sm:$0xff] %v8582_v53  ;;  %v8586_v45 = vsel %vm8356_vm12, %v2487_v41, %v2455_v48  ;;  %v8594_v1 = vsel %vm8382_vm14, %v2778_v42, %v2746_v15  ;;  %v11123_v41 = vld [vmem:[#allocation51_spill] sm:$0xff] }
 0x3fd   : > { %11119 = vst [vmem:[#allocation31_spill] sm:$0xff] %v8586_v45  ;;  %v2748_v37 = vmax.f32 %v2583_v44, 0.0  ;;  %v2751_v31 = vmax.f32 %v2675_v24, 0.0 }
 0x3fe   : > { %11120 = vst [vmem:[#allocation38_spill] sm:$0xff] %v8594_v1  ;;  %v2781_v43 = vmax.f32 %v2712_v36, 0.0  ;;  %v2331_v52 = vpop.f32.mrf.mxu3  ;;  %v8715_v1 = vadd.f32 %v11150_v23, %v11148_v20  ;;  %v11156_v23 = vld [vmem:[#allocation28_spill] sm:$0xff] }
 0x3ff   : > { %v2420_v48 = vpop.f32.mrf.mxu2  ;;  %v2332_v38 = vadd.f32 %v2331_v52, %v11123_v41  ;;  %v2622_v14 = vpop.f32.mrf.mxu0  ;;  %v8734_v55 = vadd.f32 %v11156_v23, %v11154_v35  ;;  %v11162_v23 = vld [vmem:[#allocation18_spill] sm:$0xff] }
 0x400   : > { %v2421_v29 = vadd.f32 %v2420_v48, %v11123_v41  ;;  %v8604_v42 = vsel %vm8371_vm13, %v2781_v43, %v2749_v46  ;;  %v2623_v63 = vadd.f32 %v2622_v14, %v11112_v47  ;;  %v11128_v43 = vld [vmem:[#allocation22_spill] sm:$0xff]  ;;  %v8784_v4 = vadd.f32 %v11171_v30, %v11162_v23 }
 0x401   : > { %11124 = vst [vmem:[#allocation39_spill] sm:$0xff] %v8604_v42  ;;  %v2488_v26 = vmax.f32 %v2332_v38, 0.0  ;;  %v2586_v44 = vadd.f32 %v11128_v43, %v11115_v21  ;;  %v11163_v42 = vld [vmem:[#allocation43_spill] sm:$0xff] }
 0x402   : > { %v2489_v15 = vmax.f32 %v2421_v29, 0.0  ;;  %v2780_v36 = vmax.f32 %v2623_v63, 0.0  ;;  %v11133_v29 = vld [vmem:[#allocation53_spill] sm:$0xff]  ;;  %v8754_v2 = vadd.f32 %v11163_v42, %v11162_v23 }
 0x403   : > { %v2714_v16 = vpop.f32.mrf.mxu1  ;;  %v8612_v48 = vsel %vm8352_vm11, %v2488_v26, %v2456_v49  ;;  %v2750_v26 = vmax.f32 %v2586_v44, 0.0  ;;  %v11168_v42 = vld [vmem:[#allocation13_spill] sm:$0xff] }
 0x404   : > { %v2715_v52 = vadd.f32 %v2714_v16, %v11123_v41  ;;  %11125 = vst [vmem:[#allocation29_spill] sm:$0xff] %v8612_v48  ;;  %v8616_v46 = vsel %vm8356_vm12, %v2489_v15, %v2457_v9  ;;  %v8620_v14 = vsel %vm8382_vm14, %v2780_v36, %v2748_v37  ;;  %v2468_v62 = vmax.f32 %v8754_v2, 0.0 }
 0x405   : > { %11126 = vst [vmem:[#allocation32_spill] sm:$0xff] %v8616_v46 }
 0x406   : > { %11127 = vst [vmem:[#allocation51_spill] sm:$0xff] %v8620_v14  ;;  %v2783_v47 = vmax.f32 %v2715_v52, 0.0  ;;  %v8626_v24 = vpop.f32.mrf.mxu3 }
 0x407   : > { %v8628_v38 = vpop.f32.mrf.mxu2  ;;  %v2625_v49 = vpop.f32.mrf.mxu0 }
 0x408   : > { %v8632_v9 = vsel %vm8371_vm13, %v2783_v47, %v2751_v31  ;;  %v2626_v63 = vadd.f32 %v2625_v49, %v11123_v41 }
 0x409   : > { %11129 = vst [vmem:[#allocation22_spill] sm:$0xff] %v8632_v9 }
 0x40a   : > { %v2782_v15 = vmax.f32 %v2626_v63, 0.0 }
 0x40b   : > { %v8635_v37 = vpop.f32.mrf.mxu1 }
 0x40c   : > { %v8639_v36 = vsel %vm8382_vm14, %v2782_v15, %v2750_v26  ;;  %v11132_v15 = vld [vmem:[#allocation54_spill] sm:$0xff] }
 0x40d   : > { %11130 = vst [vmem:[#allocation95_spill] sm:$0xff] %v8639_v36  ;;  %v8663_v57 = vadd.f32 %v11133_v29, %v11132_v15  ;;  %v8669_v12 = vadd.f32 %v11134_v59, %v11132_v15  ;;  %v11141_v29 = vld [vmem:[#allocation35_spill] sm:$0xff]  ;;  %v8699_v17 = vadd.f32 %v11144_v56, %v11132_v15  ;;  %v11151_v56 = vld [vmem:[#allocation57_spill] sm:$0xff]  ;;  %v8773_v36 = vadd.f32 %v11169_v13, %v11168_v42  ;;  %v11179_v15 = vld [vmem:[#allocation20_spill] sm:$0xff] }
 0x40e   : > { %v8641_v21 = vpop.f32.mrf.mxu3  ;;  %v8685_v8 = vadd.f32 %v11142_v34, %v11141_v29  ;;  %v11143_v59 = vld [vmem:[#allocation47_spill] sm:$0xff]  ;;  %v8703_v34 = vadd.f32 %v11146_v3, %v11141_v29  ;;  %v8719_v14 = vadd.f32 %v11151_v56, %v11148_v20  ;;  %v11157_v56 = vld [vmem:[#allocation17_spill] sm:$0xff]  ;;  %v11159_v3 = vld [vmem:[#allocation26_spill] sm:$0xff]  ;;  %v8750_v60 = vadd.f32 %v11160_v58, %v11141_v29 }
 0x40f   : > { %v8643_v16 = vpop.f32.mrf.mxu2  ;;  %v8645_v52 = vpop.f32.mrf.mxu0  ;;  %11135 = vst [vmem:[#allocation53_spill] sm:$0xff] %v8669_v12  ;;  %v8690_v40 = vadd.f32 %v11143_v59, %v11141_v29  ;;  %v8738_v51 = vadd.f32 %v11157_v56, %v11148_v20  ;;  %v8742_v50 = vadd.f32 %v11159_v3, %v11154_v35  ;;  %v11164_v3 = vld [vmem:[#allocation61_spill] sm:$0xff]  ;;  %v11167_v58 = vld [vmem:[#allocation63_spill] sm:$0xff] }
 0x410   : > { %11131 = vst [vmem:[#allocation96_spill] sm:$0xff] %v8645_v52  ;;  %v8760_v22 = vadd.f32 %v11164_v3, %v11162_v23  ;;  %v8769_v29 = vadd.f32 %v11167_v58, %v11162_v23  ;;  %v11170_v56 = vld [vmem:[#allocation65_spill] sm:$0xff]  ;;  %v11172_v13 = vld [vmem:[#allocation67_spill] sm:$0xff]  ;;  %v11174_v3 = vld [vmem:[#allocation42_spill] sm:$0xff] }
 0x411   : > { %11145 = vst [vmem:[#allocation33_spill] sm:$0xff] %v8699_v17  ;;  %v8777_v20 = vadd.f32 %v11170_v56, %v11168_v42  ;;  %v8789_v53 = vadd.f32 %v11172_v13, %v11168_v42  ;;  %v11173_v56 = vld [vmem:[#allocation68_spill] sm:$0xff]  ;;  %v8797_v19 = vadd.f32 %v8626_v24, %v11174_v3  ;;  %v8805_v2 = vadd.f32 %v8628_v38, %v11174_v3  ;;  %v11176_v13 = vld [vmem:[#allocation34_spill] sm:$0xff]  ;;  %v11180_v17 = vld [vmem:[#allocation15_spill] sm:$0xff] }
 0x412   : > { %11147 = vst [vmem:[#allocation45_spill] sm:$0xff] %v8703_v34  ;;  %v8793_v9 = vadd.f32 %v11173_v56, %v11168_v42  ;;  %v2469_v23 = vmax.f32 %v8760_v22, 0.0  ;;  %v2470_v42 = vmax.f32 %v8773_v36, 0.0  ;;  %v11177_v24 = vld [vmem:[#allocation36_spill] sm:$0xff] }
 0x413   : > { %v8647_v43 = vpop.f32.mrf.mxu1  ;;  %11158 = vst [vmem:[#allocation46_spill] sm:$0xff] %v8738_v51  ;;  %v2471_v56 = vmax.f32 %v8777_v20, 0.0  ;;  %v8813_v54 = vadd.f32 %v8641_v21, %v11177_v24  ;;  %v8818_v30 = vadd.f32 %v8643_v16, %v11177_v24  ;;  %v11178_v38 = vld [vmem:[#allocation44_spill] sm:$0xff]  ;;  %v2765_v51 = vmax.f32 %v8789_v53, 0.0 }
 0x414   : > { %11161 = vst [vmem:[#allocation35_spill] sm:$0xff] %v8750_v60 }
 0x415   : > { %11175 = vst [vmem:[#allocation47_spill] sm:$0xff] %v8805_v2  ;;  %v2492_v53 = vmax.f32 %v8813_v54, 0.0  ;;  %v11181_v54 = vld [vmem:[#allocation40_spill] sm:$0xff] }
 0x416   : > { %v2338_v31 = vpop.f32.mrf.mxu3 }
 0x417   : > { %v8649_v47 = vpop.f32.mrf.mxu2  ;;  %v8651_v41 = vpop.f32.mrf.mxu0  ;;  %v2339_v7 = vadd.f32 %v2338_v31, %v11176_v13 }
 0x418   : > { %v2428_v21 = vadd.f32 %v8649_v47, %v11176_v13 }
 0x419   : > { %v2494_v60 = vmax.f32 %v2339_v7, 0.0  ;;  %v2493_v7 = vmax.f32 %v8818_v30, 0.0 }
 0x41b   : > { %v8653_v44 = vpop.f32.mrf.mxu1 }
 0x41e   : > { %v8655_v49 = vpop.f32.mrf.mxu3 }
 0x41f   : > { %v8657_v63 = vpop.f32.mrf.mxu2  ;;  %v8659_v26 = vpop.f32.mrf.mxu0  ;;  %v2342_v16 = vadd.f32 %v8655_v49, %v11179_v15  ;;  %v8844_v49 = vadd.f32 %v8647_v43, %v11177_v24  ;;  %v11182_v43 = vmax.f32 %v8685_v8, 0.0 }
 0x420   : > { %v2431_v36 = vadd.f32 %v8657_v63, %v11179_v15 }
 0x421   : > { %v2496_v30 = vmax.f32 %v2342_v16, 0.0 }
 0x423   : > { %v8665_v25 = vpop.f32.mrf.mxu1 }
 0x426   : > { %v8692_v33 = vpop.f32.mrf.mxu3 }
 0x427   : > { %v8694_v32 = vpop.f32.mrf.mxu2  ;;  %v8709_v59 = vpop.f32.mrf.mxu0 }
 0x428   : > { %v2433_v47 = vadd.f32 %v8694_v32, %v11180_v17  ;;  %v8851_v32 = vadd.f32 %v8653_v44, %v11176_v13 }
 0x42b   : > { %v8744_v27 = vpop.f32.mrf.mxu1 }
 0x42e   : > { %v2346_v58 = vpop.f32.mrf.mxu3 }
 0x42f   : > { %v2435_v45 = vpop.f32.mrf.mxu2  ;;  %v8799_v35 = vpop.f32.mrf.mxu0  ;;  %v2347_v46 = vadd.f32 %v2346_v58, %v11178_v38  ;;  %v2344_v58 = vadd.f32 %v8692_v33, %v11180_v17 }
 0x430   : > { %v2436_v31 = vadd.f32 %v2435_v45, %v11178_v38  ;;  %v8834_v45 = vadd.f32 %v8635_v37, %v11174_v3  ;;  %v2495_v37 = vmax.f32 %v2428_v21, 0.0  ;;  %v2499_v21 = vmax.f32 %v2433_v47, 0.0 }
 0x431   : > { %v2500_v22 = vmax.f32 %v2347_v46, 0.0  ;;  %v2498_v2 = vmax.f32 %v2344_v58, 0.0  ;;  %v2530_v46 = vsel %vm8352_vm11, %v2494_v60, %v11182_v43 }
 0x432   : > { %v2501_v33 = vmax.f32 %v2436_v31, 0.0  ;;  %v2497_v31 = vmax.f32 %v2431_v36, 0.0 }
 0x433   : > { %v2729_v48 = vpop.f32.mrf.mxu1  ;;  %v2536_v44 = vsel %vm8352_vm11, %v2500_v22, %v2468_v62 }
 0x434   : > { %v2730_v34 = vadd.f32 %v2729_v48, %v11178_v38  ;;  %v2537_v16 = vsel %vm8356_vm12, %v2501_v33, %v2469_v23  ;;  %v2636_v33 = vadd.f32 %v8709_v59, %v11179_v15  ;;  %v11190_v59 = vmax.f32 %v8677_v28, 0.0 }
 0x436   : > { %v2348_v20 = vpop.f32.mrf.mxu3  ;;  %v2795_v58 = vmax.f32 %v2730_v34, 0.0  ;;  %v11184_v34 = vmax.f32 %v8707_v61, 0.0  ;;  %v11187_v61 = vmax.f32 %v8715_v1, 0.0 }
 0x437   : > { %v2437_v18 = vpop.f32.mrf.mxu2  ;;  %v2349_v52 = vadd.f32 %v2348_v20, %v11181_v54  ;;  %v2640_v3 = vpop.f32.mrf.mxu0  ;;  %v2725_v20 = vadd.f32 %v8665_v25, %v11179_v15 }
 0x438   : > { %v2438_v63 = vadd.f32 %v2437_v18, %v11181_v54  ;;  %v2727_v18 = vadd.f32 %v8744_v27, %v11180_v17  ;;  %v2641_v25 = vadd.f32 %v2640_v3, %v11178_v38  ;;  %v11186_v3 = vmax.f32 %v8690_v40, 0.0 }
 0x439   : > { %v2502_v12 = vmax.f32 %v2349_v52, 0.0  ;;  %v11188_v40 = vmax.f32 %v8769_v29, 0.0  ;;  %v2529_v29 = vsel %vm8356_vm12, %v2493_v7, %v11190_v59  ;;  %v2787_v7 = vmax.f32 %v8844_v49, 0.0 }
 0x43a   : > { %v2503_v48 = vmax.f32 %v2438_v63, 0.0  ;;  %v11183_v63 = vmax.f32 %v8729_v10, 0.0  ;;  %v2531_v22 = vsel %vm8356_vm12, %v2495_v37, %v11186_v3  ;;  %v2791_v10 = vmax.f32 %v2725_v20, 0.0  ;;  %v11209_v3 = vld [vmem:[#allocation52_spill] sm:$0xff] }
 0x43b   : > { %v2731_v8 = vpop.f32.mrf.mxu1  ;;  %v2538_v60 = vsel %vm8352_vm11, %v2502_v12, %v2470_v42  ;;  %v2532_v12 = vsel %vm8352_vm11, %v2496_v30, %v11184_v34  ;;  %v11185_v42 = vmax.f32 %v8734_v55, 0.0  ;;  %v2793_v38 = vmax.f32 %v2727_v18, 0.0 }
 0x43c   : > { %v2539_v52 = vsel %vm8356_vm12, %v2503_v48, %v2471_v56  ;;  %v2732_v36 = vadd.f32 %v2731_v8, %v11181_v54  ;;  %v2554_v47 = vpack.c.bf16 %v2538_v60, %v2536_v44  ;;  %v2534_v62 = vsel %vm8352_vm11, %v2498_v2, %v11183_v63  ;;  %v11197_v60 = vld [vmem:[#allocation53_spill] sm:$0xff] }
 0x43d   : > { %v2555_v27 = vpack.c.bf16 %v2539_v52, %v2537_v16  ;;  %v2535_v56 = vsel %vm8356_vm12, %v2499_v21, %v11185_v42  ;;  %v2638_v2 = vadd.f32 %v8799_v35, %v11180_v17  ;;  %v2533_v55 = vsel %vm8356_vm12, %v2497_v31, %v11187_v61  ;;  %v11207_v42 = vld [vmem:[#allocation33_spill] sm:$0xff] }
 0x43e   : > { %v2797_v23 = vmax.f32 %v2732_v36, 0.0  ;;  %3170 = vmatpush.bf16.msra.mxu3 %v2554_v47  ;;  %v2831_v37 = vsel %vm8371_vm13, %v2795_v58, %v11188_v40  ;;  %v2552_v17 = vpack.c.bf16 %v2534_v62, %v2532_v12  ;;  %v2794_v35 = vmax.f32 %v2641_v25, 0.0  ;;  %v11202_v47 = vld [vmem:[#allocation96_spill] sm:$0xff] }
 0x43f   : > { %3259 = vmatpush.bf16.msrb.mxu2 %v2555_v27  ;;  %v2642_v43 = vpop.f32.mrf.mxu0  ;;  %v2553_v1 = vpack.c.bf16 %v2535_v56, %v2533_v55  ;;  %v2789_v31 = vmax.f32 %v8851_v32, 0.0  ;;  %v11189_v20 = vmax.f32 %v8673_v11, 0.0  ;;  %v11192_v18 = vmax.f32 %v8797_v19, 0.0 }
 0x440   : > { %v2833_v30 = vsel %vm8371_vm13, %v2797_v23, %v2765_v51  ;;  %v2643_v21 = vadd.f32 %v2642_v43, %v11181_v54  ;;  %v11191_v51 = vmax.f32 %v8663_v57, 0.0  ;;  %v2633_v32 = vadd.f32 %v8659_v26, %v11176_v13  ;;  %v11205_v23 = vld [vmem:[#allocation49_spill] sm:$0xff] }
 0x441   : > { %v2849_v48 = vpack.c.bf16 %v2833_v30, %v2831_v37  ;;  %v2528_v15 = vsel %vm8352_vm11, %v2492_v53, %v11189_v20  ;;  %v2792_v44 = vmax.f32 %v2638_v2, 0.0  ;;  %v11193_v53 = vmax.f32 %v8742_v50, 0.0  ;;  %v11211_v2 = vld [vmem:[#allocation29_spill] sm:$0xff] }
 0x442   : > { %v2526_v54 = vsel %vm8352_vm11, %v11192_v18, %v11191_v51  ;;  %v2796_v11 = vmax.f32 %v2643_v21, 0.0  ;;  %3171 = vmatpush.bf16.msra.mxu3 %v2552_v17  ;;  %v2631_v57 = vadd.f32 %v8651_v41, %v11177_v24  ;;  %v2550_v6 = vpack.c.bf16 %v2530_v46, %v2528_v15  ;;  %v11213_v37 = vld [vmem:[#allocation21_spill] sm:$0xff]  ;;  %v11215_v17 = vld [vmem:[#allocation46_spill] sm:$0xff] }
 0x443   : > { %3260 = vmatpush.bf16.msrb.mxu2 %v2553_v1  ;;  %v2829_v28 = vsel %vm8371_vm13, %v2793_v38, %v11193_v53  ;;  %3553 = vmatpush.bf16.msrb.mxu1 %v2849_v48  ;;  %v2551_v19 = vpack.c.bf16 %v2531_v22, %v2529_v29  ;;  %v2790_v16 = vmax.f32 %v2636_v33, 0.0  ;;  %v11194_v26 = vmax.f32 %v8784_v4, 0.0  ;;  %v11199_v4 = vld [vmem:[#allocation47_spill] sm:$0xff]  ;;  %v11212_v33 = vld [vmem:[#allocation32_spill] sm:$0xff] }
 0x444   : > { %v11195_v8 = vmax.f32 %v8793_v9, 0.0  ;;  %v11196_v58 = vmax.f32 %v8719_v14, 0.0  ;;  %v2785_v41 = vmax.f32 %v8834_v45, 0.0  ;;  %v11198_v52 = vmax.f32 %v11197_v60, 0.0  ;;  %v11201_v9 = vld [vmem:[#allocation42_spill] sm:$0xff]  ;;  %v11203_v14 = vld [vmem:[#allocation45_spill] sm:$0xff] }
 0x445   : > { %v2830_v13 = vsel %vm8382_vm14, %v2794_v35, %v11194_v26  ;;  %v11200_v36 = vmax.f32 %v11199_v4, 0.0  ;;  %v2628_v27 = vadd.f32 %v11202_v47, %v11201_v9  ;;  %v2788_v63 = vmax.f32 %v2633_v32, 0.0  ;;  %v11220_v53 = vld [vmem:[#allocation92_spill] sm:$0xff]  ;;  %v11238_v4 = vld [vmem:[#allocation81_spill] sm:$0xff]  ;;  %v11241_v9 = vld [vmem:[#allocation91_spill] sm:$0xff] }
 0x446   : > { %v2832_v50 = vsel %vm8382_vm14, %v2796_v11, %v11195_v8  ;;  %v2827_v49 = vsel %vm8371_vm13, %v2791_v10, %v11196_v58  ;;  %3172 = vmatpush.bf16.msra.mxu3 %v2550_v6  ;;  %v11204_v62 = vmax.f32 %v11203_v14, 0.0  ;;  %v11206_v34 = vmax.f32 %v11205_v23, 0.0  ;;  %v11210_v10 = vld [vmem:[#allocation35_spill] sm:$0xff]  ;;  %v11219_v11 = vld [vmem:[#allocation37_spill] sm:$0xff]  ;;  %v11226_v26 = vld [vmem:[#allocation88_spill] sm:$0xff] }
 0x447   : > { %v2847_v24 = vpack.c.bf16 %v2829_v28, %v2827_v49  ;;  %v2848_v46 = vpack.c.bf16 %v2832_v50, %v2830_v13  ;;  %v2527_v25 = vsel %vm8356_vm12, %v11200_v36, %v11198_v52  ;;  %3261 = vmatpush.bf16.msrb.mxu2 %v2551_v19  ;;  %v2753_v56 = vmax.f32 %v11207_v42, 0.0  ;;  %v11225_v19 = vld [vmem:[#allocation95_spill] sm:$0xff]  ;;  %v11227_v13 = vld [vmem:[#allocation84_spill] sm:$0xff]  ;;  %v11229_v50 = vld [vmem:[#allocation89_spill] sm:$0xff] }
 0x448   : > { %v2825_v45 = vsel %vm8371_vm13, %v2789_v31, %v11204_v62  ;;  %v2828_v12 = vsel %vm8382_vm14, %v2792_v44, %v11206_v34  ;;  %v2588_v22 = vadd.f32 %v11209_v3, %v11208_v39  ;;  %v2756_v38 = vmax.f32 %v11210_v10, 0.0  ;;  %v11217_v31 = vld [vmem:[#allocation48_spill] sm:$0xff]  ;;  %v11230_v58 = vld [vmem:[#allocation85_spill] sm:$0xff]  ;;  %v11242_v47 = vld [vmem:[#allocation87_spill] sm:$0xff] }
 0x449   : > { %3554 = vmatpush.bf16.msrb.mxu1 %v2847_v24  ;;  %3464 = vmatpush.bf16.msra.mxu0 %v2848_v46  ;;  %v2548_v61 = vpack.c.bf16 %v2526_v54, %v11211_v2  ;;  %v2786_v55 = vmax.f32 %v2631_v57, 0.0  ;;  %v2549_v40 = vpack.c.bf16 %v2527_v25, %v11212_v33  ;;  %v11214_v30 = vmax.f32 %v11213_v37, 0.0  ;;  %v11218_v54 = vld [vmem:[#allocation22_spill] sm:$0xff]  ;;  %v11223_v57 = vld [vmem:[#allocation93_spill] sm:$0xff]  ;;  %v11233_v24 = vld [vmem:[#allocation60_spill] sm:$0xff] }
 0x44a   : > { %v11216_v35 = vmax.f32 %v11215_v17, 0.0  ;;  %v2754_v20 = vmax.f32 %v11217_v31, 0.0  ;;  %v2784_v15 = vmax.f32 %v2628_v27, 0.0  ;;  %v2821_v59 = vsel %vm8371_vm13, %v2785_v41, %v2753_v56  ;;  %v11232_v41 = vld [vmem:[#allocation39_spill] sm:$0xff]  ;;  %v11235_v60 = vld [vmem:[#allocation80_spill] sm:$0xff]  ;;  %v11239_v36 = vld [vmem:[#allocation77_spill] sm:$0xff] }
 0x44b   : > { %v2823_v43 = vsel %vm8371_vm13, %v2787_v7, %v11214_v30  ;;  %3173 = vmatpush.bf16.msra.mxu3 %v2548_v61  ;;  %3262 = vmatpush.bf16.msrb.mxu2 %v2549_v40  ;;  %v2824_v29 = vsel %vm8382_vm14, %v2788_v63, %v2756_v38  ;;  %v2752_v51 = vmax.f32 %v2588_v22, 0.0  ;;  %v2843_v32 = vpack.c.bf16 %v2821_v59, %v11218_v54  ;;  %v11222_v7 = vld [vmem:[#allocation31_spill] sm:$0xff]  ;;  %v11245_v14 = vld [vmem:[#allocation38_spill] sm:$0xff]  ;;  %v11249_v23 = vld [vmem:[#allocation72_spill] sm:$0xff] }
 0x44c   : > { %v2826_v21 = vsel %vm8382_vm14, %v2790_v16, %v11216_v35  ;;  %v2845_v1 = vpack.c.bf16 %v2825_v45, %v2823_v43  ;;  %v2822_v18 = vsel %vm8382_vm14, %v2786_v55, %v2754_v20  ;;  %v11221_v28 = vpack.c.bf16 %v11219_v11, %v11220_v53  ;;  %v11244_v63 = vld [vmem:[#allocation51_spill] sm:$0xff]  ;;  %v5815_v45 = vld [vmem:[%s11247_s19] sm:$0xff]  ;;  %v11253_v56 = vld [vmem:[#allocation70_spill] sm:$0xff]  ;;  %s5755_s19 = sshll.u32 %s11505_s12, 7 }
 0x44d   : > { %v2846_v48 = vpack.c.bf16 %v2828_v12, %v2826_v21  ;;  %v2844_v44 = vpack.c.bf16 %v2824_v29, %v2822_v18  ;;  %v11224_v0 = vpack.c.bf16 %v11222_v7, %v11223_v57  ;;  %v2820_v6 = vsel %vm8382_vm14, %v2784_v15, %v2752_v51  ;;  %v11250_v34 = vld [vmem:[#allocation69_spill] sm:$0xff]  ;;  %v11255_v3 = vld [vmem:[#allocation83_spill] sm:$0xff]  ;;  %v11258_v38 = vld [vmem:[#allocation94_spill] sm:$0xff]  ;;  %s5149_s26 = sadd.s32 %s5755_s19, %s5754_s14  ;;  %s11506_s14 = sld [smem:[#allocation108_spill]] }
 0x44e   : > { %3555 = vmatpush.bf16.msrb.mxu1 %v2845_v1  ;;  %v2842_v16 = vpack.c.bf16 %v2820_v6, %v11225_v19  ;;  %v11228_v8 = vpack.c.bf16 %v11226_v26, %v11227_v13  ;;  %v11231_v49 = vpack.c.bf16 %v11229_v50, %v11230_v58  ;;  %v11234_v46 = vpack.c.bf16 %v11232_v41, %v11233_v24  ;;  %v11252_v42 = vld [vmem:[#allocation73_spill] sm:$0xff]  ;;  %v11256_v22 = vld [vmem:[#allocation79_spill] sm:$0xff]  ;;  %v11259_v2 = vld [vmem:[#allocation90_spill] sm:$0xff]  ;;  %v9082_v26 = vpop.permute.xlu2 %2986 }
 0x44f   : > { %3465 = vmatpush.bf16.msra.mxu0 %v2846_v48  ;;  %3174 = vmatpush.bf16.msra.mxu3 %v11221_v28  ;;  %v11237_v52 = vpack.c.bf16 %v11235_v60, %v11236_v5  ;;  %v11240_v25 = vpack.c.bf16 %v11238_v4, %v11239_v36  ;;  %v11243_v27 = vpack.c.bf16 %v11241_v9, %v11242_v47  ;;  %v11261_v55 = vld [vmem:[#allocation75_spill] sm:$0xff]  ;;  %v11264_v37 = vld [vmem:[#allocation86_spill] sm:$0xff]  ;;  %v5818_v31 = vld [vmem:[%s11248_s13 + $0x18] sm:$0xff]  ;;  %v9103_v5 = vpop.permute.xlu0 %2991  ;;  %v9113_v9 = vpop.permute.xlu1 %3066 }
 0x450   : > { %3263 = vmatpush.bf16.msrb.mxu2 %v11224_v0  ;;  %v11246_v62 = vpack.c.bf16 %v11244_v63, %v11245_v14  ;;  %v11251_v12 = vpack.c.bf16 %v11249_v23, %v11250_v34  ;;  %v11254_v39 = vpack.c.bf16 %v11252_v42, %v11253_v56  ;;  %v11257_v10 = vpack.c.bf16 %v11255_v3, %v11256_v22  ;;  %v11262_v33 = vld [vmem:[#allocation71_spill] sm:$0xff]  ;;  %v11265_v30 = vld [vmem:[#allocation82_spill] sm:$0xff]  ;;  %v5819_v20 = vld [vmem:[%s11248_s13 + $0x20] sm:$0xff] }
 0x451   : > { %v11260_v61 = vpack.c.bf16 %v11258_v38, %v11259_v2  ;;  %v11263_v40 = vpack.c.bf16 %v11261_v55, %v11262_v33  ;;  %v11266_v43 = vpack.c.bf16 %v11264_v37, %v11265_v30  ;;  %v11267_v17 = vld [vmem:[#allocation78_spill] sm:$0xff]  ;;  %v5817_v48 = vld [vmem:[%s11248_s13 + $0x10] sm:$0xff]  ;;  %v5822_v29 = vld [vmem:[%s11248_s13 + $0x38] sm:$0xff]  ;;  %11270 = vst [vmem:[#allocation41_spill] sm:$0xff] %v9082_v26 }
 0x452   : > { %3556 = vmatpush.bf16.msrb.mxu1 %v2843_v32  ;;  %v11268_v35 = vld [vmem:[#allocation74_spill] sm:$0xff]  ;;  %v5821_v59 = vld [vmem:[%s11248_s13 + $0x30] sm:$0xff]  ;;  %v5823_v51 = vld [vmem:[%s11248_s13 + $0x40] sm:$0xff]  ;;  %11272 = vst [vmem:[#allocation14_spill] sm:$0xff] %v9103_v5 }
 0x453   : > { %3466 = vmatpush.bf16.msra.mxu0 %v2844_v44  ;;  %3175 = vmatpush.bf16.msra.mxu3 %v11228_v8  ;;  %v11269_v21 = vpack.c.bf16 %v11267_v17, %v11268_v35  ;;  %v5816_v1 = vld [vmem:[%s11248_s13 + $0x8] sm:$0xff]  ;;  %v5825_v58 = vld [vmem:[%s11248_s13 + $0x50] sm:$0xff]  ;;  %11273 = vst [vmem:[#allocation27_spill] sm:$0xff] %v9113_v9  ;;  %v5826_v47 = vld [vmem:[%s11248_s13 + $0x58] sm:$0xff]  ;;  %s6199_s12 = scalar_lea.hbm %s11506_s14, 2048 }
 0x454   : > { %3264 = vmatpush.bf16.msrb.mxu2 %v11231_v49  ;;  %v5820_v15 = vld [vmem:[%s11248_s13 + $0x28] sm:$0xff] }
 0x455   : > { %v5824_v7 = vld [vmem:[%s11248_s13 + $0x48] sm:$0xff] }
 0x456   : > { %3557 = vmatpush.bf16.msrb.mxu1 %v11234_v46  ;;  %v9095_v41 = vpop.permute.xlu2 %3071 }
 0x457   : > { %3467 = vmatpush.bf16.msra.mxu0 %v2842_v16  ;;  %3176 = vmatpush.bf16.msra.mxu3 %v11237_v52  ;;  %11271 = vst [vmem:[#allocation59_spill] sm:$0xff] %v9095_v41  ;;  %v9120_v63 = vpop.permute.xlu0 %2976  ;;  %v9130_v34 = vpop.permute.xlu1 %2981 }
 0x458   : > { %3265 = vmatpush.bf16.msrb.mxu2 %v11240_v25  ;;  %11275 = vst [vmem:[#allocation57_spill] sm:$0xff] %v9120_v63 }
 0x459   : > { %11276 = vst [vmem:[#allocation50_spill] sm:$0xff] %v9130_v34 }
 0x45a   : > { %3558 = vmatpush.bf16.msrb.mxu1 %v11243_v27 }
 0x45b   : > { %3468 = vmatpush.bf16.msra.mxu0 %v11246_v62  ;;  %3177 = vmatpush.bf16.msra.mxu3 %v11251_v12 }
 0x45c   : > { %3266 = vmatpush.bf16.msrb.mxu2 %v11254_v39 }
 0x45e   : > { %3559 = vmatpush.bf16.msrb.mxu1 %v11257_v10  ;;  %3178 = vmatmul.bf16.vlgmr.msra.gmra.mxu3 %v5815_v45  ;;  %v9118_v27 = vpop.permute.xlu2 %3056  ;;  %v5827_v10 = vld [vmem:[%s11248_s13 + $0x60] sm:$0xff] }
 0x45f   : > { %3469 = vmatpush.bf16.msra.mxu0 %v11260_v61  ;;  %3267 = vmatmul.bf16.vlgmr.msrb.gmra.mxu2 %v5815_v45  ;;  %11274 = vst [vmem:[#allocation30_spill] sm:$0xff] %v9118_v27  ;;  %v9136_v56 = vpop.permute.xlu0 %3061  ;;  %v9149_v2 = vpop.permute.xlu1 %2966 }
 0x460   : > { %11278 = vst [vmem:[#allocation19_spill] sm:$0xff] %v9136_v56  ;;  %v5829_v56 = vld [vmem:[%s11248_s13 + $0x70] sm:$0xff] }
 0x461   : > { %11282 = vst [vmem:[#allocation56_spill] sm:$0xff] %v9149_v2 }
 0x462   : > { %3560 = vmatpush.bf16.msrb.mxu1 %v11263_v40 }
 0x463   : > { %3470 = vmatpush.bf16.msra.mxu0 %v11266_v43 }
 0x465   : > { %3561 = vmatmul.bf16.vlgmr.msrb.gmra.mxu1 %v5815_v45 }
 0x466   : > { %v9134_v42 = vpop.permute.xlu2 %2971 }
 0x467   : > { %3471 = vmatpush.bf16.msra.mxu0 %v11269_v21  ;;  %11277 = vst [vmem:[#allocation16_spill] sm:$0xff] %v9134_v42  ;;  %v9153_v55 = vpop.permute.xlu0 %3046  ;;  %v9164_v17 = vpop.permute.xlu1 %3051  ;;  %v11322_v42 = vld [vmem:[#allocation58_spill] sm:$0xff] }
 0x468   : > { %11284 = vst [vmem:[#allocation43_spill] sm:$0xff] %v9153_v55  ;;  %v11323_v55 = vld [vmem:[#allocation24_spill] sm:$0xff] }
 0x469   : > { %11289 = vst [vmem:[#allocation64_spill] sm:$0xff] %v9164_v17 }
 0x46a   : > { %3472 = vmatmul.bf16.vlgmr.msra.gmra.mxu0 %v5815_v45 }
 0x46e   : > { %3183 = vmatmul.bf16.gmra.mxu3 %v5816_v1  ;;  %v9151_v61 = vpop.permute.xlu2 %2956 }
 0x46f   : > { %3272 = vmatmul.bf16.gmra.mxu2 %v5816_v1  ;;  %11283 = vst [vmem:[#allocation18_spill] sm:$0xff] %v9151_v61 }
 0x475   : > { %3566 = vmatmul.bf16.gmra.mxu1 %v5816_v1 }
 0x47a   : > { %3477 = vmatmul.bf16.gmra.mxu0 %v5816_v1 }
 0x47e   : > { %3188 = vmatmul.bf16.gmra.mxu3 %v5817_v48 }
 0x47f   : > { %3277 = vmatmul.bf16.gmra.mxu2 %v5817_v48 }
 0x485   : > { %3571 = vmatmul.bf16.gmra.mxu1 %v5817_v48 }
 0x48a   : > { %3482 = vmatmul.bf16.gmra.mxu0 %v5817_v48  ;;  %v9172_v48 = vpop.permute.xlu0 %2961 }
 0x48b   : > { %11293 = vst [vmem:[#allocation68_spill] sm:$0xff] %v9172_v48 }
 0x48e   : > { %3193 = vmatmul.bf16.gmra.mxu3 %v5818_v31 }
 0x48f   : > { %3282 = vmatmul.bf16.gmra.mxu2 %v5818_v31 }
 0x495   : > { %3576 = vmatmul.bf16.gmra.mxu1 %v5818_v31 }
 0x49a   : > { %3487 = vmatmul.bf16.gmra.mxu0 %v5818_v31  ;;  %v5828_v31 = vld [vmem:[%s11248_s13 + $0x68] sm:$0xff] }
 0x49e   : > { %3198 = vmatmul.bf16.gmra.mxu3 %v5819_v20 }
 0x49f   : > { %3287 = vmatmul.bf16.gmra.mxu2 %v5819_v20 }
 0x4a5   : > { %3581 = vmatmul.bf16.gmra.mxu1 %v5819_v20 }
 0x4aa   : > { %3492 = vmatmul.bf16.gmra.mxu0 %v5819_v20 }
 0x4ae   : > { %3203 = vmatmul.bf16.gmra.mxu3 %v5820_v15 }
 0x4af   : > { %3292 = vmatmul.bf16.gmra.mxu2 %v5820_v15 }
 0x4b5   : > { %3586 = vmatmul.bf16.gmra.mxu1 %v5820_v15 }
 0x4ba   : > { %3497 = vmatmul.bf16.gmra.mxu0 %v5820_v15  ;;  %v9179_v15 = vpop.permute.xlu2 %3041 }
 0x4bb   : > { %11295 = vst [vmem:[#allocation36_spill] sm:$0xff] %v9179_v15  ;;  %v11324_v15 = vld [vmem:[#allocation55_spill] sm:$0xff] }
 0x4be   : > { %3208 = vmatmul.bf16.gmra.mxu3 %v5821_v59 }
 0x4bf   : > { %3297 = vmatmul.bf16.gmra.mxu2 %v5821_v59 }
 0x4c5   : > { %3591 = vmatmul.bf16.gmra.mxu1 %v5821_v59 }
 0x4ca   : > { %3502 = vmatmul.bf16.gmra.mxu0 %v5821_v59 }
 0x4ce   : > { %3213 = vmatmul.bf16.gmra.mxu3 %v5822_v29 }
 0x4cf   : > { %3302 = vmatmul.bf16.gmra.mxu2 %v5822_v29 }
 0x4d5   : > { %3596 = vmatmul.bf16.gmra.mxu1 %v5822_v29 }
 0x4da   : > { %3507 = vmatmul.bf16.gmra.mxu0 %v5822_v29 }
 0x4de   : > { %3218 = vmatmul.bf16.gmra.mxu3 %v5823_v51 }
 0x4df   : > { %3307 = vmatmul.bf16.gmra.mxu2 %v5823_v51 }
 0x4e1   : > { %v9057_v54 = vpop.f32.mrf.mxu3 }
 0x4e2   : > { %v9055_v18 = vpop.f32.mrf.mxu1  ;;  %v9059_v32 = vpop.f32.mrf.mxu2 }
 0x4e5   : > { %3601 = vmatmul.bf16.gmra.mxu1 %v5823_v51 }
 0x4e7   : > { %v9061_v44 = vpop.f32.mrf.mxu0 }
 0x4e9   : > { %v9065_v53 = vpop.f32.mrf.mxu3 }
 0x4ea   : > { %3512 = vmatmul.bf16.gmra.mxu0 %v5823_v51  ;;  %v9063_v11 = vpop.f32.mrf.mxu1  ;;  %v9067_v28 = vpop.f32.mrf.mxu2 }
 0x4ee   : > { %3223 = vmatmul.bf16.gmra.mxu3 %v5824_v7 }
 0x4ef   : > { %v9072_v57 = vpop.f32.mrf.mxu0  ;;  %3312 = vmatmul.bf16.gmra.mxu2 %v5824_v7 }
 0x4f1   : > { %v9076_v6 = vpop.f32.mrf.mxu3 }
 0x4f2   : > { %v9074_v0 = vpop.f32.mrf.mxu1  ;;  %v9078_v19 = vpop.f32.mrf.mxu2 }
 0x4f5   : > { %3606 = vmatmul.bf16.gmra.mxu1 %v5824_v7 }
 0x4f7   : > { %v9080_v16 = vpop.f32.mrf.mxu0 }
 0x4f9   : > { %v9086_v8 = vpop.f32.mrf.mxu3 }
 0x4fa   : > { %3517 = vmatmul.bf16.gmra.mxu0 %v5824_v7  ;;  %v9084_v13 = vpop.f32.mrf.mxu1  ;;  %v9088_v50 = vpop.f32.mrf.mxu2 }
 0x4fb   : > { %v9185_v7 = vpop.permute.xlu1 %3036 }
 0x4fc   : > { %11298 = vst [vmem:[#allocation15_spill] sm:$0xff] %v9185_v7 }
 0x4fe   : > { %3228 = vmatmul.bf16.gmra.mxu3 %v5825_v58 }
 0x4ff   : > { %v9093_v49 = vpop.f32.mrf.mxu0  ;;  %3317 = vmatmul.bf16.gmra.mxu2 %v5825_v58 }
 0x501   : > { %v9099_v46 = vpop.f32.mrf.mxu3 }
 0x502   : > { %v9097_v24 = vpop.f32.mrf.mxu1  ;;  %v9101_v60 = vpop.f32.mrf.mxu2 }
 0x505   : > { %3611 = vmatmul.bf16.gmra.mxu1 %v5825_v58 }
 0x507   : > { %v9105_v52 = vpop.f32.mrf.mxu0 }
 0x509   : > { %v9109_v36 = vpop.f32.mrf.mxu3 }
 0x50a   : > { %3522 = vmatmul.bf16.gmra.mxu0 %v5825_v58  ;;  %v9107_v4 = vpop.f32.mrf.mxu1  ;;  %v9111_v25 = vpop.f32.mrf.mxu2 }
 0x50e   : > { %3233 = vmatmul.bf16.gmra.mxu3 %v5826_v47 }
 0x50f   : > { %v9122_v14 = vpop.f32.mrf.mxu0  ;;  %3322 = vmatmul.bf16.gmra.mxu2 %v5826_v47 }
 0x511   : > { %v9126_v45 = vpop.f32.mrf.mxu3 }
 0x512   : > { %v9124_v62 = vpop.f32.mrf.mxu1  ;;  %v9128_v23 = vpop.f32.mrf.mxu2 }
 0x515   : > { %3616 = vmatmul.bf16.gmra.mxu1 %v5826_v47 }
 0x517   : > { %v9132_v12 = vpop.f32.mrf.mxu0 }
 0x519   : > { %v9140_v3 = vpop.f32.mrf.mxu3 }
 0x51a   : > { %3527 = vmatmul.bf16.gmra.mxu0 %v5826_v47  ;;  %v9138_v39 = vpop.f32.mrf.mxu1  ;;  %11279 = vst [vmem:[#allocation28_spill] sm:$0xff] %v9140_v3  ;;  %v9142_v22 = vpop.f32.mrf.mxu2 }
 0x51b   : > { %11280 = vst [vmem:[#allocation17_spill] sm:$0xff] %v9142_v22  ;;  %v9190_v47 = vpop.permute.xlu0 %2946 }
 0x51e   : > { %3238 = vmatmul.bf16.gmra.mxu3 %v5827_v10 }
 0x51f   : > { %v9147_v38 = vpop.f32.mrf.mxu0  ;;  %3327 = vmatmul.bf16.gmra.mxu2 %v5827_v10 }
 0x520   : > { %11281 = vst [vmem:[#allocation26_spill] sm:$0xff] %v9147_v38 }
 0x521   : > { %v3199_v40 = vpop.f32.mrf.mxu3 }
 0x522   : > { %v9155_v33 = vpop.f32.mrf.mxu1  ;;  %v9157_v37 = vpop.f32.mrf.mxu2  ;;  %v9160_v30 = vadd.f32 %v3199_v40, %v9151_v61 }
 0x523   : > { %11285 = vst [vmem:[#allocation61_spill] sm:$0xff] %v9155_v33  ;;  %v9194_v40 = vpop.permute.xlu2 %3026  ;;  %v9209_v5 = vpop.permute.xlu0 %3031  ;;  %v11325_v33 = vld [vmem:[#allocation25_spill] sm:$0xff] }
 0x524   : > { %11286 = vst [vmem:[#allocation62_spill] sm:$0xff] %v9157_v37 }
 0x525   : > { %11287 = vst [vmem:[#allocation63_spill] sm:$0xff] %v9160_v30  ;;  %3621 = vmatmul.bf16.gmra.mxu1 %v5827_v10 }
 0x526   : > { %11305 = vst [vmem:[#allocation49_spill] sm:$0xff] %v9209_v5 }
 0x527   : > { %v9162_v43 = vpop.f32.mrf.mxu0 }
 0x528   : > { %11288 = vst [vmem:[#allocation13_spill] sm:$0xff] %v9162_v43 }
 0x529   : > { %v9168_v21 = vpop.f32.mrf.mxu3 }
 0x52a   : > { %3532 = vmatmul.bf16.gmra.mxu0 %v5827_v10  ;;  %v9166_v35 = vpop.f32.mrf.mxu1  ;;  %11291 = vst [vmem:[#allocation66_spill] sm:$0xff] %v9168_v21  ;;  %v9170_v1 = vpop.f32.mrf.mxu2  ;;  %v785_v21 = vand.u32 1, %v11324_v15 }
 0x52b   : > { %11290 = vst [vmem:[#allocation65_spill] sm:$0xff] %v9166_v35 }
 0x52c   : > { %11292 = vst [vmem:[#allocation67_spill] sm:$0xff] %v9170_v1  ;;  %vm9278_vm1 = vcmp.ne.s32.totalorder %v785_v21, 0 }
 0x52e   : > { %3243 = vmatmul.bf16.gmra.mxu3 %v5828_v31 }
 0x52f   : > { %v9177_v20 = vpop.f32.mrf.mxu0  ;;  %3332 = vmatmul.bf16.gmra.mxu2 %v5828_v31 }
 0x530   : > { %11294 = vst [vmem:[#allocation34_spill] sm:$0xff] %v9177_v20 }
 0x531   : > { %v3204_v29 = vpop.f32.mrf.mxu3 }
 0x532   : > { %v9181_v59 = vpop.f32.mrf.mxu1  ;;  %v9183_v51 = vpop.f32.mrf.mxu2  ;;  %v9188_v58 = vadd.f32 %v3204_v29, %v9149_v2 }
 0x533   : > { %11296 = vst [vmem:[#allocation44_spill] sm:$0xff] %v9181_v59  ;;  %v9205_v29 = vpop.permute.xlu1 %2951 }
 0x534   : > { %11297 = vst [vmem:[#allocation20_spill] sm:$0xff] %v9183_v51 }
 0x535   : > { %11299 = vst [vmem:[#allocation40_spill] sm:$0xff] %v9188_v58  ;;  %3626 = vmatmul.bf16.gmra.mxu1 %v5828_v31  ;;  %v795_v58 = vand.u32 1, %v11322_v42 }
 0x537   : > { %v9192_v10 = vpop.f32.mrf.mxu0  ;;  %vm9269_vm15 = vcmp.ne.s32.totalorder %v795_v58, 0 }
 0x538   : > { %11300 = vst [vmem:[#allocation53_spill] sm:$0xff] %v9192_v10  ;;  %v9217_v10 = vpop.permute.xlu2 %2941 }
 0x539   : > { %v9198_v41 = vpop.f32.mrf.mxu3 }
 0x53a   : > { %3537 = vmatmul.bf16.gmra.mxu0 %v5828_v31  ;;  %v9196_v20 = vpop.f32.mrf.mxu1  ;;  %11302 = vst [vmem:[#allocation42_spill] sm:$0xff] %v9198_v41  ;;  %v9200_v27 = vpop.f32.mrf.mxu2 }
 0x53b   : > { %11301 = vst [vmem:[#allocation47_spill] sm:$0xff] %v9196_v20  ;;  %v9221_v51 = vpop.permute.xlu1 %2936 }
 0x53c   : > { %11303 = vst [vmem:[#allocation96_spill] sm:$0xff] %v9200_v27  ;;  %v9223_v27 = vpop.permute.xlu0 %3016 }
 0x53e   : > { %3248 = vmatmul.bf16.gmra.mxu3 %v5829_v56 }
 0x53f   : > { %v9207_v9 = vpop.f32.mrf.mxu0  ;;  %3337 = vmatmul.bf16.gmra.mxu2 %v5829_v56 }
 0x540   : > { %11304 = vst [vmem:[#allocation45_spill] sm:$0xff] %v9207_v9 }
 0x541   : > { %v9213_v26 = vpop.f32.mrf.mxu3 }
 0x542   : > { %v9211_v31 = vpop.f32.mrf.mxu1  ;;  %11307 = vst [vmem:[#allocation54_spill] sm:$0xff] %v9213_v26  ;;  %v9215_v34 = vpop.f32.mrf.mxu2  ;;  %v5830_v26 = vld [vmem:[%s11248_s13 + $0x78] sm:$0xff] }
 0x543   : > { %11306 = vst [vmem:[#allocation33_spill] sm:$0xff] %v9211_v31 }
 0x544   : > { %11308 = vst [vmem:[#allocation52_spill] sm:$0xff] %v9215_v34  ;;  %v9234_v34 = vpop.permute.xlu2 %2926 }
 0x545   : > { %3631 = vmatmul.bf16.gmra.mxu1 %v5829_v56 }
 0x547   : > { %v9219_v63 = vpop.f32.mrf.mxu0 }
 0x548   : > { %11309 = vst [vmem:[#allocation35_spill] sm:$0xff] %v9219_v63  ;;  %v9238_v63 = vpop.permute.xlu1 %3021 }
 0x549   : > { %v9227_v20 = vpop.f32.mrf.mxu3 }
 0x54a   : > { %3542 = vmatmul.bf16.gmra.mxu0 %v5829_v56  ;;  %v9225_v9 = vpop.f32.mrf.mxu1  ;;  %11311 = vst [vmem:[#allocation32_spill] sm:$0xff] %v9227_v20  ;;  %v9229_v59 = vpop.f32.mrf.mxu2 }
 0x54b   : > { %11310 = vst [vmem:[#allocation29_spill] sm:$0xff] %v9225_v9  ;;  %v9246_v20 = vpop.permute.xlu0 %2931 }
 0x54c   : > { %11312 = vst [vmem:[#allocation21_spill] sm:$0xff] %v9229_v59  ;;  %v9250_v1 = vpop.permute.xlu2 %3011 }
 0x54e   : > { %3253 = vmatmul.bf16.gmra.mxu3 %v5830_v26 }
 0x54f   : > { %v9236_v31 = vpop.f32.mrf.mxu0  ;;  %3342 = vmatmul.bf16.gmra.mxu2 %v5830_v26 }
 0x550   : > { %11313 = vst [vmem:[#allocation46_spill] sm:$0xff] %v9236_v31  ;;  %v9258_v41 = vpop.permute.xlu1 %3006 }
 0x551   : > { %v9242_v2 = vpop.f32.mrf.mxu3 }
 0x552   : > { %v9240_v56 = vpop.f32.mrf.mxu1  ;;  %11315 = vst [vmem:[#allocation22_spill] sm:$0xff] %v9242_v2  ;;  %v9244_v9 = vpop.f32.mrf.mxu2 }
 0x553   : > { %11314 = vst [vmem:[#allocation48_spill] sm:$0xff] %v9240_v56  ;;  %v2917_v56 = vpop.permute.xlu0 %2916 }
 0x554   : > { %11316 = vst [vmem:[#allocation37_spill] sm:$0xff] %v9244_v9  ;;  %v3563_v9 = vadd.f32 %v9055_v18, %v2917_v56  ;;  %v794_v18 = vand.u32 1, %v11325_v33 }
 0x555   : > { %3636 = vmatmul.bf16.gmra.mxu1 %v5830_v26 }
 0x556   : > { %vm9286_vm2 = vcmp.ne.s32.totalorder %v794_v18, 0 }
 0x557   : > { %v9248_v59 = vpop.f32.mrf.mxu0 }
 0x558   : > { %11317 = vst [vmem:[#allocation92_spill] sm:$0xff] %v9248_v59  ;;  %v784_v59 = vand.u32 1, %v11323_v55  ;;  %v3474_v55 = vadd.f32 %v9061_v44, %v2917_v56  ;;  %v2922_v44 = vpop.permute.xlu1 %2921 }
 0x559   : > { %v9254_v31 = vpop.f32.mrf.mxu3 }
 0x55a   : > { %3547 = vmatmul.bf16.gmra.mxu0 %v5830_v26  ;;  %v9252_v35 = vpop.f32.mrf.mxu1  ;;  %11319 = vst [vmem:[#allocation93_spill] sm:$0xff] %v9254_v31  ;;  %v9256_v17 = vpop.f32.mrf.mxu2  ;;  %v3269_v31 = vadd.f32 %v9059_v32, %v2917_v56  ;;  %vm9274_vm0 = vcmp.ne.s32.totalorder %v784_v59, 0 }
 0x55b   : > { %11318 = vst [vmem:[#allocation31_spill] sm:$0xff] %v9252_v35  ;;  %v2997_v26 = vpop.permute.xlu2 %2996  ;;  %v3180_v35 = vadd.f32 %v9057_v54, %v2917_v56  ;;  %v11328_v54 = vmov 0  ;;  %v3271_v56 = vadd.f32 %v9067_v28, %v2922_v44 }
 0x55c   : > { %11320 = vst [vmem:[#allocation95_spill] sm:$0xff] %v9256_v17  ;;  %v3643_v17 = vmax.f32 %v3563_v9, 0.0  ;;  %v11329_v54 = vsel %vm9274_vm0, 4294967295, %v11328_v54 }
 0x55d   : > { %11330 = vst [vmem:[#allocation84_spill] sm:$0xff] %v11329_v54  ;;  %v3348_v9 = vmax.f32 %v3180_v35, 0.0  ;;  %v3351_v38 = vmax.f32 %v3271_v56, 0.0  ;;  %v3185_v56 = vadd.f32 %v9076_v6, %v9234_v34  ;;  %v11406_v54 = vld [vmem:[#allocation41_spill] sm:$0xff] }
 0x55f   : > { %v9260_v2 = vpop.f32.mrf.mxu0 }
 0x560   : > { %11321 = vst [vmem:[#allocation88_spill] sm:$0xff] %v9260_v2 }
 0x561   : > { %v3219_v43 = vpop.f32.mrf.mxu3 }
 0x562   : > { %v3602_v48 = vpop.f32.mrf.mxu1  ;;  %v3308_v7 = vpop.f32.mrf.mxu2  ;;  %v3220_v37 = vadd.f32 %v3219_v43, %v2997_v26  ;;  %v3349_v43 = vmax.f32 %v3269_v31, 0.0 }
 0x563   : > { %v3603_v30 = vadd.f32 %v3602_v48, %v2997_v26  ;;  %v3309_v2 = vadd.f32 %v3308_v7, %v2997_v26  ;;  %v3002_v31 = vpop.permute.xlu0 %3001 }
 0x564   : > { %v3380_v48 = vmax.f32 %v3220_v37, 0.0  ;;  %v3565_v37 = vadd.f32 %v9063_v11, %v2922_v44 }
 0x565   : > { %v3675_v15 = vmax.f32 %v3603_v30, 0.0  ;;  %v3381_v7 = vmax.f32 %v3309_v2, 0.0  ;;  %v3642_v2 = vmax.f32 %v3474_v55, 0.0 }
 0x566   : > { %v9296_v35 = vsel %vm9274_vm0, %v3380_v48, %v3348_v9  ;;  %v3476_v9 = vadd.f32 %v9072_v57, %v2922_v44 }
 0x567   : > { %v3513_v33 = vpop.f32.mrf.mxu0  ;;  %v9284_v61 = vsel %vm9269_vm15, %v3675_v15, %v3643_v17  ;;  %v9292_v21 = vsel %vm9278_vm1, %v3381_v7, %v3349_v43  ;;  %11337 = vst [vmem:[#allocation39_spill] sm:$0xff] %v9296_v35  ;;  %v3182_v17 = vadd.f32 %v9065_v53, %v2922_v44 }
 0x568   : > { %v3514_v58 = vadd.f32 %v3513_v33, %v2997_v26  ;;  %11333 = vst [vmem:[#allocation89_spill] sm:$0xff] %v9284_v61  ;;  %v3645_v33 = vmax.f32 %v3565_v37, 0.0  ;;  %v3568_v37 = vadd.f32 %v9074_v0, %v9234_v34 }
 0x569   : > { %11336 = vst [vmem:[#allocation85_spill] sm:$0xff] %v9292_v21  ;;  %v3221_v43 = vpop.f32.mrf.mxu3  ;;  %v11400_v21 = vld [vmem:[#allocation53_spill] sm:$0xff] }
 0x56a   : > { %v3674_v59 = vmax.f32 %v3514_v58, 0.0  ;;  %v3604_v26 = vpop.f32.mrf.mxu1  ;;  %v3310_v7 = vpop.f32.mrf.mxu2  ;;  %v3222_v48 = vadd.f32 %v3221_v43, %v3002_v31  ;;  %v3350_v58 = vmax.f32 %v3182_v17, 0.0  ;;  %v3647_v6 = vmax.f32 %v3568_v37, 0.0 }
 0x56b   : > { %v3605_v15 = vadd.f32 %v3604_v26, %v3002_v31  ;;  %v3311_v55 = vadd.f32 %v3310_v7, %v3002_v31 }
 0x56c   : > { %v9303_v18 = vsel %vm9286_vm2, %v3674_v59, %v3642_v2  ;;  %v3382_v5 = vmax.f32 %v3222_v48, 0.0  ;;  %v3644_v2 = vmax.f32 %v3476_v9, 0.0  ;;  %v11376_v48 = vld [vmem:[#allocation63_spill] sm:$0xff] }
 0x56d   : > { %11338 = vst [vmem:[#allocation60_spill] sm:$0xff] %v9303_v18  ;;  %v3677_v11 = vmax.f32 %v3605_v15, 0.0  ;;  %v3383_v53 = vmax.f32 %v3311_v55, 0.0  ;;  %v11397_v18 = vld [vmem:[#allocation57_spill] sm:$0xff] }
 0x56e   : > { %v9318_v44 = vsel %vm9274_vm0, %v3382_v5, %v3350_v58 }
 0x56f   : > { %v3515_v22 = vpop.f32.mrf.mxu0  ;;  %v9308_v3 = vsel %vm9269_vm15, %v3677_v11, %v3645_v33  ;;  %v9314_v57 = vsel %vm9278_vm1, %v3383_v53, %v3351_v38  ;;  %11341 = vst [vmem:[#allocation81_spill] sm:$0xff] %v9318_v44  ;;  %v3274_v38 = vadd.f32 %v9078_v19, %v9234_v34  ;;  %v3479_v19 = vadd.f32 %v9080_v16, %v9234_v34 }
 0x570   : > { %v3516_v28 = vadd.f32 %v3515_v22, %v3002_v31  ;;  %11339 = vst [vmem:[#allocation80_spill] sm:$0xff] %v9308_v3  ;;  %v3352_v33 = vmax.f32 %v3185_v56, 0.0  ;;  %v3570_v34 = vadd.f32 %v9084_v13, %v9246_v20  ;;  %v3364_v31 = vmax.f32 %v11376_v48, 0.0  ;;  %v11405_v3 = vld [vmem:[#allocation46_spill] sm:$0xff] }
 0x571   : > { %11340 = vst [vmem:[#allocation76_spill] sm:$0xff] %v9314_v57  ;;  %v3224_v15 = vpop.f32.mrf.mxu3  ;;  %v3353_v11 = vmax.f32 %v3274_v38, 0.0  ;;  %v3646_v16 = vmax.f32 %v3479_v19, 0.0  ;;  %v3276_v38 = vadd.f32 %v9088_v50, %v9246_v20  ;;  %v11401_v57 = vld [vmem:[#allocation35_spill] sm:$0xff] }
 0x572   : > { %v3676_v22 = vmax.f32 %v3516_v28, 0.0  ;;  %v3607_v26 = vpop.f32.mrf.mxu1  ;;  %v3313_v43 = vpop.f32.mrf.mxu2  ;;  %v3225_v7 = vadd.f32 %v3224_v15, %v9258_v41 }
 0x573   : > { %v3608_v0 = vadd.f32 %v3607_v26, %v9258_v41  ;;  %v3314_v9 = vadd.f32 %v3313_v43, %v9258_v41  ;;  %v3355_v50 = vmax.f32 %v3276_v38, 0.0 }
 0x574   : > { %v9332_v5 = vsel %vm9286_vm2, %v3676_v22, %v3644_v2  ;;  %v3384_v58 = vmax.f32 %v3225_v7, 0.0 }
 0x575   : > { %11342 = vst [vmem:[#allocation77_spill] sm:$0xff] %v9332_v5  ;;  %v3679_v55 = vmax.f32 %v3608_v0, 0.0  ;;  %v3385_v53 = vmax.f32 %v3314_v9, 0.0  ;;  %v11398_v5 = vld [vmem:[#allocation33_spill] sm:$0xff] }
 0x576   : > { %v9352_v37 = vsel %vm9274_vm0, %v3384_v58, %v3352_v33 }
 0x577   : > { %v3518_v28 = vpop.f32.mrf.mxu0  ;;  %v9344_v22 = vsel %vm9269_vm15, %v3679_v55, %v3647_v6  ;;  %v9348_v26 = vsel %vm9278_vm1, %v3385_v53, %v3353_v11  ;;  %11345 = vst [vmem:[#allocation51_spill] sm:$0xff] %v9352_v37  ;;  %v3481_v6 = vadd.f32 %v9093_v49, %v9246_v20 }
 0x578   : > { %v3519_v2 = vadd.f32 %v3518_v28, %v9258_v41  ;;  %11343 = vst [vmem:[#allocation91_spill] sm:$0xff] %v9344_v22  ;;  %v3187_v41 = vadd.f32 %v9086_v8, %v9246_v20  ;;  %v3649_v8 = vmax.f32 %v3570_v34, 0.0  ;;  %v11412_v22 = vld [vmem:[#allocation95_spill] sm:$0xff] }
 0x579   : > { %11344 = vst [vmem:[#allocation87_spill] sm:$0xff] %v9348_v26  ;;  %v3226_v7 = vpop.f32.mrf.mxu3  ;;  %v11407_v26 = vld [vmem:[#allocation48_spill] sm:$0xff] }
 0x57a   : > { %v3678_v56 = vmax.f32 %v3519_v2, 0.0  ;;  %v3609_v0 = vpop.f32.mrf.mxu1  ;;  %v3315_v9 = vpop.f32.mrf.mxu2  ;;  %v3227_v13 = vadd.f32 %v3226_v7, %v9250_v1  ;;  %v3354_v33 = vmax.f32 %v3187_v41, 0.0 }
 0x57b   : > { %v3610_v43 = vadd.f32 %v3609_v0, %v9250_v1  ;;  %v3316_v19 = vadd.f32 %v3315_v9, %v9250_v1  ;;  %v3190_v0 = vadd.f32 %v9099_v46, %v9221_v51 }
 0x57c   : > { %v9362_v15 = vsel %vm9286_vm2, %v3678_v56, %v3646_v16  ;;  %v3386_v11 = vmax.f32 %v3227_v13, 0.0  ;;  %v3648_v16 = vmax.f32 %v3481_v6, 0.0  ;;  %v3573_v56 = vadd.f32 %v9097_v24, %v9221_v51 }
 0x57d   : > { %11346 = vst [vmem:[#allocation38_spill] sm:$0xff] %v9362_v15  ;;  %v3681_v55 = vmax.f32 %v3610_v43, 0.0  ;;  %v3387_v58 = vmax.f32 %v3316_v19, 0.0  ;;  %v3279_v43 = vadd.f32 %v9101_v60, %v9221_v51  ;;  %v3484_v60 = vadd.f32 %v9105_v52, %v9221_v51  ;;  %v11402_v15 = vld [vmem:[#allocation50_spill] sm:$0xff] }
 0x57e   : > { %v9382_v34 = vsel %vm9274_vm0, %v3386_v11, %v3354_v33  ;;  %v3651_v46 = vmax.f32 %v3573_v56, 0.0  ;;  %v3575_v51 = vadd.f32 %v9107_v4, %v9217_v10 }
 0x57f   : > { %v3520_v53 = vpop.f32.mrf.mxu0  ;;  %v9372_v2 = vsel %vm9269_vm15, %v3681_v55, %v3649_v8  ;;  %v9378_v20 = vsel %vm9278_vm1, %v3387_v58, %v3355_v50  ;;  %11349 = vst [vmem:[#allocation73_spill] sm:$0xff] %v9382_v34  ;;  %v3356_v50 = vmax.f32 %v3190_v0, 0.0  ;;  %v3357_v11 = vmax.f32 %v3279_v43, 0.0 }
 0x580   : > { %v3521_v28 = vadd.f32 %v3520_v53, %v9250_v1  ;;  %11347 = vst [vmem:[#allocation72_spill] sm:$0xff] %v9372_v2  ;;  %v3650_v52 = vmax.f32 %v3484_v60, 0.0  ;;  %v3281_v43 = vadd.f32 %v9111_v25, %v9217_v10 }
 0x581   : > { %11348 = vst [vmem:[#allocation69_spill] sm:$0xff] %v9378_v20  ;;  %v3229_v6 = vpop.f32.mrf.mxu3 }
 0x582   : > { %v3680_v1 = vmax.f32 %v3521_v28, 0.0  ;;  %v3612_v7 = vpop.f32.mrf.mxu1  ;;  %v3318_v13 = vpop.f32.mrf.mxu2  ;;  %v3230_v19 = vadd.f32 %v3229_v6, %v9223_v27  ;;  %v3359_v25 = vmax.f32 %v3281_v43, 0.0  ;;  %v11375_v43 = vld [vmem:[#allocation13_spill] sm:$0xff] }
 0x583   : > { %v3613_v24 = vadd.f32 %v3612_v7, %v9223_v27  ;;  %v3319_v8 = vadd.f32 %v3318_v13, %v9223_v27 }
 0x584   : > { %v9396_v9 = vsel %vm9286_vm2, %v3680_v1, %v3648_v16  ;;  %v3388_v58 = vmax.f32 %v3230_v19, 0.0 }
 0x585   : > { %11350 = vst [vmem:[#allocation70_spill] sm:$0xff] %v9396_v9  ;;  %v3683_v33 = vmax.f32 %v3613_v24, 0.0  ;;  %v3389_v53 = vmax.f32 %v3319_v8, 0.0 }
 0x586   : > { %v9416_v56 = vsel %vm9274_vm0, %v3388_v58, %v3356_v50 }
 0x587   : > { %v3523_v28 = vpop.f32.mrf.mxu0  ;;  %v9408_v1 = vsel %vm9269_vm15, %v3683_v33, %v3651_v46  ;;  %v9412_v7 = vsel %vm9278_vm1, %v3389_v53, %v3357_v11  ;;  %11353 = vst [vmem:[#allocation94_spill] sm:$0xff] %v9416_v56  ;;  %v3486_v46 = vadd.f32 %v9122_v14, %v9217_v10 }
 0x588   : > { %v3524_v16 = vadd.f32 %v3523_v28, %v9223_v27  ;;  %11351 = vst [vmem:[#allocation83_spill] sm:$0xff] %v9408_v1  ;;  %v3192_v27 = vadd.f32 %v9109_v36, %v9217_v10  ;;  %v3653_v36 = vmax.f32 %v3575_v51, 0.0  ;;  %v3744_v1 = vstv %s9673_s8  ;;  %s5756_s8 = sshll.u32 %s5149_s26, 3  ;;  %s5138_s26 = scalar_lea.sflag [#allocation5], %s6542_s18 }
 0x589   : > { %11352 = vst [vmem:[#allocation79_spill] sm:$0xff] %v9412_v7  ;;  %v3231_v19 = vpop.f32.mrf.mxu3  ;;  %vm3745_vm3 = vcmp.eq.s32.totalorder %v3744_v1, 1  ;;  %s5151_s19 = scalar_lea.hbm %s11506_s14, %s5756_s8 }
 0x58a   : > { %v3682_v0 = vmax.f32 %v3524_v16, 0.0  ;;  %v3614_v24 = vpop.f32.mrf.mxu1  ;;  %v3320_v8 = vpop.f32.mrf.mxu2  ;;  %v3232_v4 = vadd.f32 %v3231_v19, %v9238_v63  ;;  %v3358_v50 = vmax.f32 %v3192_v27, 0.0  ;;  %vm9740_vm4 = vmand %vm3745_vm3, %vm1639_vm9  ;;  %s5154_s1 = sshll.u32 %s5151_s19, 4  ;;  %s5155_s1 = int_to_ptr.hbm [resolvable:$true] %s5154_s1 }
 0x58b   : > { %v3615_v13 = vadd.f32 %v3614_v24, %v9238_v63  ;;  %v3321_v60 = vadd.f32 %v3320_v8, %v9238_v63  ;;  %v3195_v24 = vadd.f32 %v9126_v45, %v9190_v47  ;;  %vm5617_vm5 = vmneg %vm9740_vm4  ;;  %s6193_s2 = sshra.s32 %s5155_s1, 4  ;;  %s6194_s2 = int_to_ptr.hbm [resolvable:$true] %s6193_s2 }
 0x58c   : > { %v9426_v6 = vsel %vm9286_vm2, %v3682_v0, %v3650_v52  ;;  %v3390_v11 = vmax.f32 %v3232_v4, 0.0  ;;  %v3652_v52 = vmax.f32 %v3486_v46, 0.0  ;;  %v3578_v0 = vadd.f32 %v9124_v62, %v9190_v47  ;;  %vm9776_vm6 = vmpackc.low %vm5617_vm5, %vm5617_vm5  ;;  %s6195_s3 = scalar_lea.hbm %s6194_s2, 256  ;;  %p6200_p10 = scmp.lt.s32.totalorder %s6194_s2, %s11506_s14 }
 0x58d   : > { %11354 = vst [vmem:[#allocation90_spill] sm:$0xff] %v9426_v6  ;;  %v3685_v33 = vmax.f32 %v3615_v13, 0.0  ;;  %v3391_v58 = vmax.f32 %v3321_v60, 0.0  ;;  %v3284_v13 = vadd.f32 %v9128_v23, %v9190_v47  ;;  %v3489_v23 = vadd.f32 %v9132_v12, %v9190_v47  ;;  %p6196_p7 = scmp.ne.s32.totalorder %s6194_s2, %s6195_s3  ;;  %p6201_p11 = scmp.lt.s32.totalorder %s6199_s12, %s6195_s3 }
 0x58e   : > { %v9446_v51 = vsel %vm9274_vm0, %v3390_v11, %v3358_v50  ;;  %v3655_v45 = vmax.f32 %v3578_v0, 0.0  ;;  %v3580_v47 = vadd.f32 %v9138_v39, %v9205_v29 }
 0x58f   : > { %v3525_v53 = vpop.f32.mrf.mxu0  ;;  %v9436_v16 = vsel %vm9269_vm15, %v3685_v33, %v3653_v36  ;;  %v9442_v10 = vsel %vm9278_vm1, %v3391_v58, %v3359_v25  ;;  %11357 = vst [vmem:[#allocation86_spill] sm:$0xff] %v9446_v51  ;;  %v3360_v25 = vmax.f32 %v3195_v24, 0.0  ;;  %v3361_v11 = vmax.f32 %v3284_v13, 0.0  ;;  %v11362_v13 = vld [vmem:[#allocation28_spill] sm:$0xff]  ;;  %p6197_p8 = pnand %p6196_p7, %p6472_p12  ;;  %p6202_p13 = por %p6201_p11, %p6200_p10 }
 0x590   : > { %v3526_v28 = vadd.f32 %v3525_v53, %v9238_v63  ;;  %11355 = vst [vmem:[#allocation75_spill] sm:$0xff] %v9436_v16  ;;  %v3654_v12 = vmax.f32 %v3489_v23, 0.0  ;;  %v11366_v23 = vld [vmem:[#allocation26_spill] sm:$0xff]  ;;  %v11383_v33 = vld [vmem:[#allocation40_spill] sm:$0xff] }
 0x591   : > { %11356 = vst [vmem:[#allocation71_spill] sm:$0xff] %v9442_v10  ;;  %v3234_v46 = vpop.f32.mrf.mxu3  ;;  %p6198_p9 = pneg %p6197_p8 }
 0x592   : > { %v3684_v63 = vmax.f32 %v3526_v28, 0.0  ;;  %v3617_v19 = vpop.f32.mrf.mxu1  ;;  %v3323_v4 = vpop.f32.mrf.mxu2  ;;  %v3235_v60 = vadd.f32 %v3234_v46, %v9194_v40 }
 0x593   : > { %v3618_v62 = vadd.f32 %v3617_v19, %v9194_v40  ;;  %v3324_v36 = vadd.f32 %v3323_v4, %v9194_v40  ;;  %p6203_p0 = pnand %p6202_p13, %p6198_p9 }
 0x594   : > { %v9460_v8 = vsel %vm9286_vm2, %v3684_v63, %v3652_v52  ;;  %v3392_v58 = vmax.f32 %v3235_v60, 0.0 }
 0x595   : > { %11358 = vst [vmem:[#allocation82_spill] sm:$0xff] %v9460_v8  ;;  %v3687_v50 = vmax.f32 %v3618_v62, 0.0  ;;  %v3393_v53 = vmax.f32 %v3324_v36, 0.0  ;;  %v11363_v62 = vld [vmem:[#allocation17_spill] sm:$0xff]  ;;  %v11410_v8 = vld [vmem:[#allocation14_spill] sm:$0xff] }
 0x596   : > { %v9480_v0 = vsel %vm9274_vm0, %v3392_v58, %v3360_v25  ;;  %v3286_v46 = vadd.f32 %v11363_v62, %v9205_v29  ;;  %v11365_v36 = vld [vmem:[#allocation49_spill] sm:$0xff] }
 0x597   : > { %v3528_v28 = vpop.f32.mrf.mxu0  ;;  %v9472_v63 = vsel %vm9269_vm15, %v3687_v50, %v3655_v45  ;;  %v9476_v19 = vsel %vm9278_vm1, %v3393_v53, %v3361_v11  ;;  %11361 = vst [vmem:[#allocation58_spill] sm:$0xff] %v9480_v0  ;;  %v3491_v11 = vadd.f32 %v11366_v23, %v9205_v29  ;;  %v3657_v53 = vmax.f32 %v3580_v47, 0.0  ;;  %v11372_v23 = vld [vmem:[#allocation62_spill] sm:$0xff] }
 0x598   : > { %v3529_v52 = vadd.f32 %v3528_v28, %v9194_v40  ;;  %11359 = vst [vmem:[#allocation78_spill] sm:$0xff] %v9472_v63  ;;  %v3197_v40 = vadd.f32 %v11362_v13, %v9205_v29  ;;  %v3363_v13 = vmax.f32 %v3286_v46, 0.0  ;;  %v11371_v46 = vld [vmem:[#allocation61_spill] sm:$0xff]  ;;  %v9625_v0 = vadd.f32 %v11398_v5, %v11397_v18 }
 0x599   : > { %11360 = vst [vmem:[#allocation74_spill] sm:$0xff] %v9476_v19  ;;  %v3236_v50 = vpop.f32.mrf.mxu3  ;;  %v11404_v5 = vld [vmem:[#allocation21_spill] sm:$0xff] }
 0x59a   : > { %v3686_v24 = vmax.f32 %v3529_v52, 0.0  ;;  %v3619_v4 = vpop.f32.mrf.mxu1  ;;  %v3325_v25 = vpop.f32.mrf.mxu2  ;;  %v3237_v39 = vadd.f32 %v3236_v50, %v11365_v36  ;;  %v3362_v52 = vmax.f32 %v3197_v40, 0.0  ;;  %v11370_v40 = vld [vmem:[#allocation18_spill] sm:$0xff]  ;;  %v9645_v61 = vadd.f32 %v11404_v5, %v11402_v15  ;;  %v11414_v5 = vld [vmem:[#allocation88_spill] sm:$0xff] }
 0x59b   : > { %v3620_v45 = vadd.f32 %v3619_v4, %v11365_v36  ;;  %v3326_v58 = vadd.f32 %v3325_v25, %v11365_v36  ;;  %v3656_v4 = vmax.f32 %v3491_v11, 0.0  ;;  %v3289_v11 = vadd.f32 %v11372_v23, %v11370_v40 }
 0x59c   : > { %v9490_v60 = vsel %vm9286_vm2, %v3686_v24, %v3654_v12  ;;  %v3394_v62 = vmax.f32 %v3237_v39, 0.0  ;;  %v3494_v23 = vadd.f32 %v11375_v43, %v11370_v40 }
 0x59d   : > { %11364 = vst [vmem:[#allocation24_spill] sm:$0xff] %v9490_v60  ;;  %v3689_v28 = vmax.f32 %v3620_v45, 0.0  ;;  %v3395_v17 = vmax.f32 %v3326_v58, 0.0  ;;  %v3583_v45 = vadd.f32 %v11371_v46, %v11370_v40  ;;  %v11374_v58 = vld [vmem:[#allocation15_spill] sm:$0xff] }
 0x59e   : > { %v9510_v47 = vsel %vm9274_vm0, %v3394_v62, %v3362_v52  ;;  %v3658_v40 = vmax.f32 %v3494_v23, 0.0 }
 0x59f   : > { %v3530_v38 = vpop.f32.mrf.mxu0  ;;  %v9500_v24 = vsel %vm9269_vm15, %v3689_v28, %v3657_v53  ;;  %v9506_v50 = vsel %vm9278_vm1, %v3395_v17, %v3363_v13  ;;  %11369 = vst [vmem:[#allocation28_spill] sm:$0xff] %v9510_v47  ;;  %v3659_v46 = vmax.f32 %v3583_v45, 0.0  ;;  %v11378_v45 = vld [vmem:[#allocation68_spill] sm:$0xff] }
 0x5a0   : > { %v3531_v12 = vadd.f32 %v3530_v38, %v11365_v36  ;;  %11367 = vst [vmem:[#allocation55_spill] sm:$0xff] %v9500_v24  ;;  %v11387_v36 = vld [vmem:[#allocation64_spill] sm:$0xff]  ;;  %v11441_v30 = vld [vmem:[#allocation74_spill] sm:$0xff] }
 0x5a1   : > { %11368 = vst [vmem:[#allocation25_spill] sm:$0xff] %v9506_v50  ;;  %v3239_v28 = vpop.f32.mrf.mxu3  ;;  %v11399_v47 = vld [vmem:[#allocation52_spill] sm:$0xff] }
 0x5a2   : > { %v3688_v38 = vmax.f32 %v3531_v12, 0.0  ;;  %v3622_v39 = vpop.f32.mrf.mxu1  ;;  %v3328_v52 = vpop.f32.mrf.mxu2  ;;  %v3240_v13 = vadd.f32 %v3239_v28, %v11374_v58 }
 0x5a3   : > { %v3623_v53 = vadd.f32 %v3622_v39, %v11374_v58  ;;  %v3329_v62 = vadd.f32 %v3328_v52, %v11374_v58 }
 0x5a4   : > { %v9522_v17 = vsel %vm9286_vm2, %v3688_v38, %v3656_v4  ;;  %v3365_v4 = vmax.f32 %v3289_v11, 0.0  ;;  %v3396_v38 = vmax.f32 %v3240_v13, 0.0  ;;  %v11379_v11 = vld [vmem:[#allocation66_spill] sm:$0xff] }
 0x5a5   : > { %11373 = vst [vmem:[#allocation17_spill] sm:$0xff] %v9522_v17  ;;  %v3691_v25 = vmax.f32 %v3623_v53, 0.0  ;;  %v3397_v55 = vmax.f32 %v3329_v62, 0.0  ;;  %v3202_v53 = vadd.f32 %v11379_v11, %v11378_v45  ;;  %v11382_v11 = vld [vmem:[#allocation43_spill] sm:$0xff] }
 0x5a6   : > { %v9543_v43 = vsel %vm9274_vm0, %v3396_v38, %v3364_v31  ;;  %v11416_v17 = vld [vmem:[#allocation27_spill] sm:$0xff] }
 0x5a7   : > { %v3533_v39 = vpop.f32.mrf.mxu0  ;;  %v9535_v28 = vsel %vm9269_vm15, %v3691_v25, %v3659_v46  ;;  %v9539_v52 = vsel %vm9278_vm1, %v3397_v55, %v3365_v4  ;;  %11377 = vst [vmem:[#allocation49_spill] sm:$0xff] %v9543_v43  ;;  %v11380_v55 = vld [vmem:[#allocation36_spill] sm:$0xff]  ;;  %v3366_v4 = vmax.f32 %v3202_v53, 0.0  ;;  %v11394_v43 = vld [vmem:[#allocation47_spill] sm:$0xff] }
 0x5a8   : > { %v3534_v59 = vadd.f32 %v3533_v39, %v11374_v58 }
 0x5a9   : > { %v3241_v25 = vpop.f32.mrf.mxu3 }
 0x5aa   : > { %v3690_v48 = vmax.f32 %v3534_v59, 0.0  ;;  %v9547_v13 = vpop.f32.mrf.mxu1  ;;  %v9553_v62 = vpop.f32.mrf.mxu2  ;;  %v3242_v46 = vadd.f32 %v3241_v25, %v11380_v55  ;;  %v3368_v25 = vmax.f32 %v11383_v33, 0.0 }
 0x5ab   : > { %v9690_v60 = vadd.f32 %v9547_v13, %v11380_v55 }
 0x5ac   : > { %v9551_v58 = vsel %vm9286_vm2, %v3690_v48, %v3658_v40  ;;  %v3398_v39 = vmax.f32 %v3242_v46, 0.0 }
 0x5ae   : > { %v9560_v59 = vsel %vm9274_vm0, %v3398_v39, %v3366_v4  ;;  %v11385_v4 = vld [vmem:[#allocation16_spill] sm:$0xff]  ;;  %v11386_v39 = vld [vmem:[#allocation42_spill] sm:$0xff] }
 0x5af   : > { %v9556_v31 = vpop.f32.mrf.mxu0  ;;  %11381 = vst [vmem:[#allocation26_spill] sm:$0xff] %v9560_v59  ;;  %v3207_v27 = vadd.f32 %v11386_v39, %v11385_v4  ;;  %v9611_v59 = vadd.f32 %v11394_v43, %v11385_v4  ;;  %v9629_v43 = vadd.f32 %v11399_v47, %v11397_v18  ;;  %v9649_v47 = vadd.f32 %v11405_v3, %v11402_v15  ;;  %v11411_v3 = vld [vmem:[#allocation31_spill] sm:$0xff] }
 0x5b1   : > { %v3244_v40 = vpop.f32.mrf.mxu3  ;;  %v3370_v35 = vmax.f32 %v3207_v27, 0.0 }
 0x5b2   : > { %v9564_v38 = vpop.f32.mrf.mxu1  ;;  %v9566_v48 = vpop.f32.mrf.mxu2  ;;  %v3245_v41 = vadd.f32 %v3244_v40, %v11382_v11 }
 0x5b4   : > { %v3400_v53 = vmax.f32 %v3245_v41, 0.0 }
 0x5b6   : > { %v9574_v49 = vsel %vm9274_vm0, %v3400_v53, %v3368_v25 }
 0x5b7   : > { %v9570_v46 = vpop.f32.mrf.mxu0  ;;  %11384 = vst [vmem:[#allocation18_spill] sm:$0xff] %v9574_v49 }
 0x5b9   : > { %v3246_v12 = vpop.f32.mrf.mxu3 }
 0x5ba   : > { %v3629_v23 = vpop.f32.mrf.mxu1  ;;  %v9578_v14 = vpop.f32.mrf.mxu2  ;;  %v3247_v29 = vadd.f32 %v3246_v12, %v11387_v36  ;;  %v11390_v12 = vld [vmem:[#allocation65_spill] sm:$0xff] }
 0x5bb   : > { %v9595_v27 = vadd.f32 %v11390_v12, %v11378_v45  ;;  %v11395_v12 = vld [vmem:[#allocation96_spill] sm:$0xff] }
 0x5bc   : > { %v3402_v40 = vmax.f32 %v3247_v29, 0.0  ;;  %v11391_v29 = vld [vmem:[#allocation67_spill] sm:$0xff]  ;;  %v9615_v49 = vadd.f32 %v11395_v12, %v11385_v4 }
 0x5bd   : > { %v9599_v34 = vadd.f32 %v11391_v29, %v11378_v45  ;;  %v9637_v29 = vadd.f32 %v11401_v57, %v11397_v18  ;;  %v11409_v18 = vld [vmem:[#allocation92_spill] sm:$0xff] }
 0x5be   : > { %v9585_v41 = vsel %vm9274_vm0, %v3402_v40, %v3370_v35  ;;  %v11392_v35 = vld [vmem:[#allocation56_spill] sm:$0xff] }
 0x5bf   : > { %v9581_v44 = vpop.f32.mrf.mxu0  ;;  %11389 = vst [vmem:[#allocation61_spill] sm:$0xff] %v9585_v41  ;;  %v11393_v40 = vld [vmem:[#allocation44_spill] sm:$0xff]  ;;  %v9633_v12 = vadd.f32 %v11400_v21, %v11392_v35  ;;  %v9653_v21 = vadd.f32 %v11407_v26, %v11406_v54  ;;  %v9669_v26 = vadd.f32 %v11412_v22, %v11410_v8 }
 0x5c0   : > { %v9603_v51 = vadd.f32 %v11393_v40, %v11392_v35  ;;  %v11396_v40 = vld [vmem:[#allocation20_spill] sm:$0xff]  ;;  %v3541_v1 = vadd.f32 %v9581_v44, %v11387_v36 }
 0x5c1   : > { %v9621_v41 = vadd.f32 %v11396_v40, %v11392_v35  ;;  %v11403_v40 = vld [vmem:[#allocation29_spill] sm:$0xff]  ;;  %v3671_v6 = vmax.f32 %v9653_v21, 0.0 }
 0x5c2   : > { %v3632_v25 = vpop.f32.mrf.mxu1  ;;  %v9589_v53 = vpop.f32.mrf.mxu2  ;;  %v9641_v9 = vadd.f32 %v11403_v40, %v11402_v15  ;;  %v11408_v35 = vld [vmem:[#allocation37_spill] sm:$0xff]  ;;  %v9661_v40 = vadd.f32 %v11409_v18, %v11406_v54  ;;  %v3600_v15 = vadd.f32 %v11411_v3, %v11410_v8  ;;  %v9683_v3 = vadd.f32 %v11414_v5, %v11410_v8 }
 0x5c3   : > { %v9657_v57 = vadd.f32 %v11408_v35, %v11406_v54  ;;  %v11413_v35 = vld [vmem:[#allocation45_spill] sm:$0xff] }
 0x5c4   : > { %v9677_v18 = vadd.f32 %v11413_v35, %v11385_v4  ;;  %v3669_v7 = vmax.f32 %v9641_v9, 0.0  ;;  %v9692_v4 = vpop.f32.mrf.mxu3  ;;  %v3670_v5 = vmax.f32 %v9661_v40, 0.0  ;;  %v3673_v22 = vmax.f32 %v3600_v15, 0.0  ;;  %v11417_v40 = vld [vmem:[#allocation19_spill] sm:$0xff] }
 0x5c5   : > { %11415 = vst [vmem:[#allocation62_spill] sm:$0xff] %v9692_v4  ;;  %v3377_v54 = vmax.f32 %v9657_v57, 0.0  ;;  %v3379_v9 = vmax.f32 %v9669_v26, 0.0  ;;  %v3672_v13 = vmax.f32 %v9683_v3, 0.0  ;;  %v9704_v4 = vadd.f32 %v9553_v62, %v11380_v55 }
 0x5c6   : > { %v9707_v35 = vadd.f32 %v3629_v23, %v11387_v36  ;;  %v9713_v15 = vadd.f32 %v9556_v31, %v11380_v55  ;;  %v9722_v62 = vadd.f32 %v9566_v48, %v11382_v11  ;;  %v11418_v23 = vld [vmem:[#allocation30_spill] sm:$0xff]  ;;  %v3336_v55 = vadd.f32 %v9578_v14, %v11387_v36 }
 0x5c7   : > { %v9591_v39 = vpop.f32.mrf.mxu0  ;;  %v3633_v3 = vadd.f32 %v3632_v25, %v11418_v23  ;;  %v3339_v48 = vadd.f32 %v9589_v53, %v11418_v23 }
 0x5c8   : > { %v3544_v53 = vadd.f32 %v9591_v39, %v11418_v23 }
 0x5ca   : > { %v3634_v37 = vpop.f32.mrf.mxu1  ;;  %v3340_v56 = vpop.f32.mrf.mxu2 }
 0x5cb   : > { %v3635_v26 = vadd.f32 %v3634_v37, %v11417_v40  ;;  %v3697_v37 = vmax.f32 %v9707_v35, 0.0  ;;  %v3699_v35 = vmax.f32 %v3633_v3, 0.0 }
 0x5cc   : > { %v9746_v24 = vpop.f32.mrf.mxu3 }
 0x5cf   : > { %v9605_v33 = vpop.f32.mrf.mxu0 }
 0x5d0   : > { %v3546_v14 = vadd.f32 %v9605_v33, %v11417_v40 }
 0x5d2   : > { %v3637_v20 = vpop.f32.mrf.mxu1  ;;  %v3343_v2 = vpop.f32.mrf.mxu2 }
 0x5d3   : > { %v3638_v10 = vadd.f32 %v3637_v20, %v11416_v17  ;;  %v3344_v21 = vadd.f32 %v3343_v2, %v11416_v17  ;;  %v9717_v20 = vadd.f32 %v9564_v38, %v11382_v11  ;;  %v3341_v2 = vadd.f32 %v3340_v56, %v11417_v40  ;;  %v11419_v38 = vld [vmem:[#allocation59_spill] sm:$0xff] }
 0x5d4   : > { %v3701_v56 = vmax.f32 %v3635_v26, 0.0  ;;  %v3405_v26 = vmax.f32 %v3339_v48, 0.0 }
 0x5d5   : > { %v3703_v31 = vmax.f32 %v3638_v10, 0.0  ;;  %v3409_v63 = vmax.f32 %v3344_v21, 0.0  ;;  %v3407_v21 = vmax.f32 %v3341_v2, 0.0  ;;  %v3700_v2 = vmax.f32 %v3546_v14, 0.0 }
 0x5d7   : > { %v3548_v8 = vpop.f32.mrf.mxu0  ;;  %v3739_v44 = vsel %vm9269_vm15, %v3703_v31, %v3671_v6  ;;  %v3445_v3 = vsel %vm9278_vm1, %v3409_v63, %v3377_v54  ;;  %v3403_v31 = vmax.f32 %v3336_v55, 0.0  ;;  %v11423_v54 = vmax.f32 %v9645_v61, 0.0 }
 0x5d8   : > { %v3549_v57 = vadd.f32 %v3548_v8, %v11416_v17  ;;  %v3401_v61 = vmax.f32 %v9722_v62, 0.0  ;;  %v11430_v62 = vld [vmem:[#allocation34_spill] sm:$0xff] }
 0x5d9   : > { %v3443_v63 = vsel %vm9278_vm1, %v3407_v21, %v11423_v54  ;;  %v3496_v21 = vadd.f32 %v11430_v62, %v11378_v45  ;;  %v11443_v54 = vld [vmem:[#allocation75_spill] sm:$0xff] }
 0x5da   : > { %v3639_v16 = vpop.f32.mrf.mxu1  ;;  %v3345_v50 = vpop.f32.mrf.mxu2  ;;  %v3702_v36 = vmax.f32 %v3549_v57, 0.0  ;;  %v3737_v57 = vsel %vm9269_vm15, %v3701_v56, %v3669_v7  ;;  %v11424_v7 = vmax.f32 %v9625_v0, 0.0  ;;  %v11427_v56 = vmax.f32 %v9629_v43, 0.0  ;;  %v11458_v62 = vld [vmem:[#allocation91_spill] sm:$0xff] }
 0x5db   : > { %v3640_v19 = vadd.f32 %v3639_v16, %v11419_v38  ;;  %v3346_v25 = vadd.f32 %v3345_v50, %v11419_v38  ;;  %v3369_v43 = vmax.f32 %v9621_v41, 0.0  ;;  %v11433_v41 = vmax.f32 %v9603_v51, 0.0 }
 0x5dc   : > { %v3738_v48 = vsel %vm9286_vm2, %v3702_v36, %v3670_v5  ;;  %v3441_v5 = vsel %vm9278_vm1, %v3405_v26, %v11427_v56  ;;  %v3662_v36 = vmax.f32 %v9633_v12, 0.0  ;;  %v3254_v26 = vpop.f32.mrf.mxu3  ;;  %v11435_v51 = vmax.f32 %v9690_v60, 0.0 }
 0x5dd   : > { %v3705_v10 = vmax.f32 %v3640_v19, 0.0  ;;  %v3411_v50 = vmax.f32 %v3346_v25, 0.0  ;;  %v3461_v16 = vpack.c.bf16 %v3443_v63, %v3441_v5  ;;  %v11436_v12 = vmax.f32 %v9599_v34, 0.0  ;;  %v11437_v34 = vld [vmem:[#allocation55_spill] sm:$0xff] }
 0x5de   : > { %v11444_v63 = vld [vmem:[#allocation83_spill] sm:$0xff] }
 0x5df   : > { %v3550_v17 = vpop.f32.mrf.mxu0  ;;  %v3741_v19 = vsel %vm9269_vm15, %v3705_v10, %v3673_v22  ;;  %v3447_v39 = vsel %vm9278_vm1, %v3411_v50, %v3379_v9  ;;  %v3695_v22 = vmax.f32 %v9717_v20, 0.0  ;;  %v3698_v9 = vmax.f32 %v3544_v53, 0.0  ;;  %v11454_v5 = vld [vmem:[#allocation27_spill] sm:$0xff] }
 0x5e0   : > { %v3551_v33 = vadd.f32 %v3550_v17, %v11419_v38  ;;  %v3799_v8 = vpack.c.bf16 %v3741_v19, %v3739_v44  ;;  %v3463_v6 = vpack.c.bf16 %v3447_v39, %v3445_v3  ;;  %v3539_v17 = vadd.f32 %v9570_v46, %v11382_v11  ;;  %v5840_v46 = vld [vmem:[%s11469_s23 + $0x48] sm:$0xff] }
 0x5e1   : > { %v3735_v11 = vsel %vm9269_vm15, %v3699_v35, %v11424_v7  ;;  %v11428_v10 = vmax.f32 %v9649_v47, 0.0  ;;  %v11429_v35 = vmax.f32 %v9611_v59, 0.0  ;;  %v3399_v50 = vmax.f32 %v9704_v4, 0.0  ;;  %v11449_v7 = vld [vmem:[#allocation71_spill] sm:$0xff] }
 0x5e2   : > { %v3704_v25 = vmax.f32 %v3551_v33, 0.0  ;;  %3930 = vmatpush.bf16.msra.mxu2 %v3799_v8  ;;  %4076 = vmatpush.bf16.msrb.mxu0 %v3463_v6  ;;  %v3797_v55 = vpack.c.bf16 %v3737_v57, %v3735_v11  ;;  %v11431_v47 = vmax.f32 %v9615_v49, 0.0  ;;  %v3664_v59 = vmax.f32 %v9677_v18, 0.0  ;;  %v11438_v57 = vld [vmem:[#allocation78_spill] sm:$0xff]  ;;  %v11450_v11 = vld [vmem:[#allocation79_spill] sm:$0xff] }
 0x5e3   : > { %v3736_v0 = vsel %vm9286_vm2, %v3700_v2, %v11428_v10  ;;  %v3733_v53 = vsel %vm9269_vm15, %v3697_v37, %v11429_v35  ;;  %v3694_v44 = vmax.f32 %v3539_v17, 0.0  ;;  %v11432_v37 = vmax.f32 %v9637_v29, 0.0  ;;  %v11440_v17 = vld [vmem:[#allocation25_spill] sm:$0xff]  ;;  %v11456_v10 = vld [vmem:[#allocation22_spill] sm:$0xff] }
 0x5e4   : > { %v3740_v14 = vsel %vm9286_vm2, %v3704_v25, %v3672_v13  ;;  %v3696_v13 = vmax.f32 %v3541_v1, 0.0  ;;  %v3439_v1 = vsel %vm9278_vm1, %v3403_v31, %v11431_v47  ;;  %v3731_v4 = vsel %vm9269_vm15, %v3695_v22, %v11433_v41 }
 0x5e5   : > { %v5620_v20 = vpack.c.bf16 %v3740_v14, %v3738_v48  ;;  %v3734_v45 = vsel %vm9286_vm2, %v3698_v9, %v11432_v37  ;;  %v3795_v49 = vpack.c.bf16 %v3733_v53, %v3731_v4  ;;  %v3437_v33 = vsel %vm9278_vm1, %v3401_v61, %v3369_v43  ;;  %v11446_v48 = vld [vmem:[#allocation17_spill] sm:$0xff]  ;;  %v11457_v53 = vld [vmem:[#allocation72_spill] sm:$0xff]  ;;  %v11460_v43 = vld [vmem:[#allocation82_spill] sm:$0xff] }
 0x5e6   : > { %3931 = vmatpush.bf16.msra.mxu2 %v3797_v55  ;;  %4077 = vmatpush.bf16.msrb.mxu0 %v3461_v16  ;;  %v5625_v19 = vpack.c.bf16 %v3736_v0, %v3734_v45  ;;  %v3692_v18 = vmax.f32 %v9713_v15, 0.0  ;;  %v3732_v29 = vsel %vm9286_vm2, %v3696_v13, %v3664_v59  ;;  %v3459_v3 = vpack.c.bf16 %v3439_v1, %v3437_v33  ;;  %v11453_v55 = vld [vmem:[#allocation93_spill] sm:$0xff]  ;;  %v11464_v59 = vld [vmem:[#allocation87_spill] sm:$0xff]  ;;  %v11466_v37 = vld [vmem:[#allocation50_spill] sm:$0xff] }
 0x5e7   : > { %5621 = vmatpush.bf16.msk.msrb.mxu3 %vm9776_vm6, %v5620_v20  ;;  %v11434_v8 = vmax.f32 %v9595_v27, 0.0  ;;  %v3435_v15 = vsel %vm9278_vm1, %v3399_v50, %v11436_v12  ;;  %v3660_v2 = vmax.f32 %v3496_v21, 0.0  ;;  %v3730_v25 = vsel %vm9286_vm2, %v3694_v44, %v3662_v36  ;;  %v11452_v20 = vld [vmem:[#allocation14_spill] sm:$0xff]  ;;  %v11463_v1 = vld [vmem:[#allocation69_spill] sm:$0xff]  ;;  %v11467_v45 = vld [vmem:[#allocation32_spill] sm:$0xff] }
 0x5e8   : > { %v5630_v60 = vpack.c.bf16 %v3732_v29, %v3730_v25  ;;  %v3457_v6 = vpack.c.bf16 %v3435_v15, %v9539_v52  ;;  %v11439_v22 = vpack.c.bf16 %v11437_v34, %v11438_v57  ;;  %v11442_v31 = vpack.c.bf16 %v11440_v17, %v11441_v30  ;;  %v11461_v50 = vld [vmem:[#allocation90_spill] sm:$0xff]  ;;  %v5831_v25 = vld [vmem:[%s11469_s23] sm:$0xff]  ;;  %v11483_v17 = vld [vmem:[#allocation60_spill] sm:$0xff] }
 0x5e9   : > { %v3729_v39 = vsel %vm9269_vm15, %v11435_v51, %v11434_v8  ;;  %v3728_v42 = vsel %vm9286_vm2, %v3692_v18, %v3660_v2  ;;  %v11445_v9 = vpack.c.bf16 %v11443_v54, %v11444_v63  ;;  %v11451_v61 = vpack.c.bf16 %v11449_v7, %v11450_v11  ;;  %v11471_v33 = vld [vmem:[#allocation54_spill] sm:$0xff]  ;;  %v11473_v51 = vld [vmem:[#allocation80_spill] sm:$0xff]  ;;  %v11485_v63 = vld [vmem:[#allocation61_spill] sm:$0xff] }
 0x5ea   : > { %3932 = vmatpush.bf16.msra.mxu2 %v3795_v49  ;;  %4078 = vmatpush.bf16.msrb.mxu0 %v3459_v3  ;;  %v3793_v27 = vpack.c.bf16 %v3729_v39, %v9535_v28  ;;  %v5635_v32 = vpack.c.bf16 %v3728_v42, %v9551_v58  ;;  %v3256_v28 = vpop.f32.mrf.mxu3  ;;  %v11447_v58 = vld [vmem:[#allocation24_spill] sm:$0xff]  ;;  %v3217_v56 = vadd.f32 %v11453_v55, %v11452_v20  ;;  %v5839_v49 = vld [vmem:[%s11469_s23 + $0x40] sm:$0xff]  ;;  %v11476_v15 = vld [vmem:[#allocation70_spill] sm:$0xff] }
 0x5eb   : > { %5626 = vmatpush.bf16.msk.msrb.mxu3 %vm9776_vm6, %v5625_v19  ;;  %v3257_v52 = vadd.f32 %v3256_v28, %v11419_v38  ;;  %v11448_v14 = vpack.c.bf16 %v11446_v48, %v11447_v58  ;;  %v3255_v13 = vadd.f32 %v3254_v26, %v11454_v5  ;;  %v11455_v38 = vld [vmem:[#allocation41_spill] sm:$0xff]  ;;  %v3252_v16 = vadd.f32 %v9746_v24, %v11417_v40  ;;  %v11468_v24 = vld [vmem:[#allocation62_spill] sm:$0xff] }
 0x5ec   : > { %v3215_v0 = vadd.f32 %v11456_v10, %v11455_v38  ;;  %v11459_v21 = vpack.c.bf16 %v11457_v53, %v11458_v62  ;;  %v11462_v47 = vpack.c.bf16 %v11460_v43, %v11461_v50  ;;  %v11465_v44 = vpack.c.bf16 %v11463_v1, %v11464_v59  ;;  %v11470_v19 = vld [vmem:[#allocation57_spill] sm:$0xff]  ;;  %v11477_v2 = vld [vmem:[#allocation38_spill] sm:$0xff]  ;;  %v11498_v10 = vld [vmem:[#allocation51_spill] sm:$0xff] }
 0x5ed   : > { %v3410_v35 = vmax.f32 %v3257_v52, 0.0  ;;  %v3212_v41 = vadd.f32 %v11467_v45, %v11466_v37  ;;  %v3378_v4 = vmax.f32 %v3217_v56, 0.0  ;;  %v3250_v40 = vadd.f32 %v11468_v24, %v11418_v23  ;;  %v11474_v39 = vld [vmem:[#allocation89_spill] sm:$0xff]  ;;  %v5832_v58 = vld [vmem:[%s11469_s23 + $0x8] sm:$0xff]  ;;  %v11501_v62 = vld [vmem:[#allocation39_spill] sm:$0xff] }
 0x5ee   : > { %3933 = vmatpush.bf16.msra.mxu2 %v3793_v27  ;;  %4079 = vmatpush.bf16.msrb.mxu0 %v3457_v6  ;;  %v3408_v36 = vmax.f32 %v3255_v13, 0.0  ;;  %v3210_v18 = vadd.f32 %v11471_v33, %v11470_v19  ;;  %v3376_v29 = vmax.f32 %v3215_v0, 0.0  ;;  %v3406_v26 = vmax.f32 %v3252_v16, 0.0  ;;  %v11479_v27 = vld [vmem:[#allocation76_spill] sm:$0xff]  ;;  %v11482_v28 = vld [vmem:[#allocation77_spill] sm:$0xff]  ;;  %v11492_v20 = vld [vmem:[#allocation58_spill] sm:$0xff] }
 0x5ef   : > { %5631 = vmatpush.bf16.msk.msrb.mxu3 %vm9776_vm6, %v5630_v60  ;;  %v3446_v8 = vsel %vm9274_vm0, %v3410_v35, %v3378_v4  ;;  %v11475_v12 = vpack.c.bf16 %v11473_v51, %v11474_v39  ;;  %v11478_v23 = vpack.c.bf16 %v11476_v15, %v11477_v2  ;;  %v11480_v60 = vld [vmem:[#allocation85_spill] sm:$0xff]  ;;  %v3374_v6 = vmax.f32 %v3212_v41, 0.0  ;;  %v11494_v56 = vld [vmem:[#allocation86_spill] sm:$0xff]  ;;  %v5841_v16 = vld [vmem:[%s11469_s23 + $0x50] sm:$0xff] }
 0x5f0   : > { %v11481_v42 = vpack.c.bf16 %v11479_v27, %v11480_v60  ;;  %v3444_v34 = vsel %vm9274_vm0, %v3408_v36, %v3376_v29  ;;  %v11484_v30 = vpack.c.bf16 %v11482_v28, %v11483_v17  ;;  %v11489_v7 = vld [vmem:[#allocation49_spill] sm:$0xff]  ;;  %v11495_v5 = vld [vmem:[#allocation94_spill] sm:$0xff]  ;;  %v5833_v35 = vld [vmem:[%s11469_s23 + $0x10] sm:$0xff] }
 0x5f1   : > { %v3462_v57 = vpack.c.bf16 %v3446_v8, %v3444_v34  ;;  %v11496_v13 = vpack.c.bf16 %v11494_v56, %v11495_v5  ;;  %v11497_v38 = vld [vmem:[#allocation73_spill] sm:$0xff]  ;;  %v5842_v43 = vld [vmem:[%s11469_s23 + $0x58] sm:$0xff]  ;;  %v5844_v59 = vld [vmem:[%s11469_s23 + $0x68] sm:$0xff] }
 0x5f2   : > { %3934 = vmatpush.bf16.msra.mxu2 %v11439_v22  ;;  %4080 = vmatpush.bf16.msrb.mxu0 %v11442_v31  ;;  %v3372_v22 = vmax.f32 %v3210_v18, 0.0  ;;  %v3442_v31 = vsel %vm9274_vm0, %v3406_v26, %v3374_v6  ;;  %v11499_v0 = vpack.c.bf16 %v11497_v38, %v11498_v10  ;;  %v11500_v53 = vld [vmem:[#allocation81_spill] sm:$0xff]  ;;  %v5834_v50 = vld [vmem:[%s11469_s23 + $0x18] sm:$0xff]  ;;  %v5845_v37 = vld [vmem:[%s11469_s23 + $0x70] sm:$0xff]  ;;  %v10024_v38 = vpop.permute.xlu2 %4218 }
 0x5f3   : > { %5636 = vmatpush.bf16.msk.msrb.mxu3 %vm9776_vm6, %v5635_v32  ;;  %v3404_v32 = vmax.f32 %v3250_v40, 0.0  ;;  %v5835_v1 = vld [vmem:[%s11469_s23 + $0x20] sm:$0xff]  ;;  %v5837_v45 = vld [vmem:[%s11469_s23 + $0x30] sm:$0xff]  ;;  %v5846_v41 = vld [vmem:[%s11469_s23 + $0x78] sm:$0xff] }
 0x5f4   : > { %v9973_v4 = vld [vmem:[%s11469_s23 + $0x38] sm:$0xff] }
 0x5f5   : > { %v3440_v52 = vsel %vm9274_vm0, %v3404_v32, %v3372_v22 }
 0x5f6   : > { %3935 = vmatpush.bf16.msra.mxu2 %v11445_v9  ;;  %4081 = vmatpush.bf16.msrb.mxu0 %v11451_v61  ;;  %v3460_v54 = vpack.c.bf16 %v3442_v31, %v3440_v52  ;;  %v11486_v9 = vld [vmem:[#allocation18_spill] sm:$0xff]  ;;  %v11491_v61 = vld [vmem:[#allocation28_spill] sm:$0xff] }
 0x5f7   : > { %5641 = vmatpush.bf16.msk.msrb.mxu3 %vm9776_vm6, %v11448_v14  ;;  %v11487_v48 = vpack.c.bf16 %v11485_v63, %v11486_v9  ;;  %v11488_v14 = vld [vmem:[#allocation26_spill] sm:$0xff]  ;;  %v11493_v55 = vpack.c.bf16 %v11491_v61, %v11492_v20 }
 0x5f8   : > { %v11490_v11 = vpack.c.bf16 %v11488_v14, %v11489_v7 }
 0x5fa   : > { %3936 = vmatpush.bf16.msra.mxu2 %v11459_v21  ;;  %4082 = vmatpush.bf16.msrb.mxu0 %v11465_v44  ;;  %v11502_v21 = vpack.c.bf16 %v11500_v53, %v11501_v62  ;;  %v5836_v44 = vld [vmem:[%s11469_s23 + $0x28] sm:$0xff]  ;;  %v10032_v62 = vpop.permute.xlu2 %4193 }
 0x5fb   : > { %5646 = vmatpush.bf16.msk.msrb.mxu3 %vm9776_vm6, %v11462_v47  ;;  %v5843_v47 = vld [vmem:[%s11469_s23 + $0x60] sm:$0xff] }
 0x5fe   : > { %3937 = vmatpush.bf16.msra.mxu2 %v11475_v12  ;;  %4083 = vmatpush.bf16.msrb.mxu0 %v11481_v42 }
 0x5ff   : > { %5651 = vmatpush.bf16.msk.msrb.mxu3 %vm9776_vm6, %v11478_v23 }
 0x601   : > { %3938 = vmatmul.bf16.vlgmr.msra.gmra.mxu2 %v5839_v49  ;;  %4084 = vmatmul.bf16.vlgmr.msrb.gmra.mxu0 %v5831_v25 }
 0x603   : > { %5656 = vmatpush.bf16.msk.msrb.mxu3 %vm9776_vm6, %v11484_v30 }
 0x606   : > { %3889 = vmatmul.bf16.vlgmr.msrb.gmra.mxu3 %v5839_v49 }
 0x607   : > { %4027 = vmatpush.bf16.msra.mxu3 %v3462_v57 }
 0x60b   : > { %4028 = vmatpush.bf16.msra.mxu3 %v3460_v54 }
 0x60f   : > { %4029 = vmatpush.bf16.msra.mxu3 %v11487_v48 }
 0x611   : > { %3943 = vmatmul.bf16.gmra.mxu2 %v5840_v46  ;;  %4089 = vmatmul.bf16.gmra.mxu0 %v5832_v58 }
 0x613   : > { %4030 = vmatpush.bf16.msra.mxu3 %v11490_v11 }
 0x616   : > { %3894 = vmatmul.bf16.gmra.mxu3 %v5840_v46 }
 0x617   : > { %4031 = vmatpush.bf16.msra.mxu3 %v11493_v55  ;;  %v10020_v55 = vpop.permute.xlu1 %4213 }
 0x61b   : > { %4032 = vmatpush.bf16.msra.mxu3 %v11496_v13 }
 0x61f   : > { %4033 = vmatpush.bf16.msra.mxu3 %v11499_v0  ;;  %v10026_v0 = vpop.permute.xlu1 %4208 }
 0x621   : > { %3948 = vmatmul.bf16.gmra.mxu2 %v5841_v16  ;;  %4094 = vmatmul.bf16.gmra.mxu0 %v5833_v35 }
 0x623   : > { %4034 = vmatpush.bf16.msra.mxu3 %v11502_v21 }
 0x626   : > { %3899 = vmatmul.bf16.gmra.mxu3 %v5841_v16  ;;  %v10028_v16 = vpop.permute.xlu0 %4203 }
 0x631   : > { %3953 = vmatmul.bf16.gmra.mxu2 %v5842_v43  ;;  %4099 = vmatmul.bf16.gmra.mxu0 %v5834_v50 }
 0x636   : > { %3904 = vmatmul.bf16.gmra.mxu3 %v5842_v43  ;;  %v10035_v43 = vpop.permute.xlu1 %4183 }
 0x641   : > { %3958 = vmatmul.bf16.gmra.mxu2 %v5843_v47  ;;  %4104 = vmatmul.bf16.gmra.mxu0 %v5835_v1 }
 0x646   : > { %3909 = vmatmul.bf16.gmra.mxu3 %v5843_v47 }
 0x651   : > { %3963 = vmatmul.bf16.gmra.mxu2 %v5844_v59  ;;  %4109 = vmatmul.bf16.gmra.mxu0 %v5836_v44 }
 0x656   : > { %3914 = vmatmul.bf16.gmra.mxu3 %v5844_v59 }
 0x661   : > { %3968 = vmatmul.bf16.gmra.mxu2 %v5845_v37  ;;  %4114 = vmatmul.bf16.gmra.mxu0 %v5837_v45 }
 0x666   : > { %3919 = vmatmul.bf16.gmra.mxu3 %v5845_v37 }
 0x671   : > { %3973 = vmatmul.bf16.gmra.mxu2 %v5846_v41  ;;  %4119 = vmatmul.bf16.gmra.mxu0 %v9973_v4 }
 0x676   : > { %3924 = vmatmul.bf16.gmra.mxu3 %v5846_v41 }
 0x67e   : > { %v4085_v24 = vpop.f32.mrf.mxu0 }
 0x684   : > { %v3939_v40 = vpop.f32.mrf.mxu2 }
 0x685   : > { %v9976_v36 = vadd.f32 %v4085_v24, %v3939_v40  ;;  %v10042_v40 = vpop.permute.xlu2 %4188 }
 0x686   : > { %4035 = vmatmul.bf16.vlgmr.msra.gmra.mxu3 %v5831_v25  ;;  %v9978_v49 = vpop.f32.mrf.mxu0 }
 0x689   : > { %v9980_v19 = vpop.f32.mrf.mxu3 }
 0x68c   : > { %v9982_v33 = vpop.f32.mrf.mxu2 }
 0x68e   : > { %v4090_v18 = vpop.f32.mrf.mxu0 }
 0x691   : > { %v9984_v29 = vpop.f32.mrf.mxu3 }
 0x694   : > { %v3944_v26 = vpop.f32.mrf.mxu2 }
 0x695   : > { %v9986_v3 = vadd.f32 %v4090_v18, %v3944_v26 }
 0x696   : > { %4040 = vmatmul.bf16.gmra.mxu3 %v5832_v58  ;;  %v9988_v8 = vpop.f32.mrf.mxu0 }
 0x699   : > { %v9990_v51 = vpop.f32.mrf.mxu3 }
 0x69c   : > { %v9992_v39 = vpop.f32.mrf.mxu2 }
 0x69e   : > { %v4095_v12 = vpop.f32.mrf.mxu0 }
 0x6a1   : > { %v9994_v15 = vpop.f32.mrf.mxu3 }
 0x6a4   : > { %v3949_v2 = vpop.f32.mrf.mxu2 }
 0x6a5   : > { %v9996_v23 = vadd.f32 %v4095_v12, %v3949_v2 }
 0x6a6   : > { %4045 = vmatmul.bf16.gmra.mxu3 %v5833_v35  ;;  %v9998_v25 = vpop.f32.mrf.mxu0 }
 0x6a9   : > { %v10000_v27 = vpop.f32.mrf.mxu3 }
 0x6ac   : > { %v10002_v60 = vpop.f32.mrf.mxu2 }
 0x6ae   : > { %v4100_v42 = vpop.f32.mrf.mxu0 }
 0x6b1   : > { %v10004_v6 = vpop.f32.mrf.mxu3 }
 0x6b4   : > { %v3954_v32 = vpop.f32.mrf.mxu2 }
 0x6b5   : > { %v10006_v34 = vadd.f32 %v4100_v42, %v3954_v32 }
 0x6b6   : > { %4050 = vmatmul.bf16.gmra.mxu3 %v5834_v50  ;;  %v4102_v57 = vpop.f32.mrf.mxu0 }
 0x6b9   : > { %v10008_v22 = vpop.f32.mrf.mxu3 }
 0x6bc   : > { %v3956_v28 = vpop.f32.mrf.mxu2 }
 0x6be   : > { %v4105_v17 = vpop.f32.mrf.mxu0 }
 0x6c1   : > { %v10010_v30 = vpop.f32.mrf.mxu3 }
 0x6c4   : > { %v3959_v31 = vpop.f32.mrf.mxu2 }
 0x6c5   : > { %v4106_v52 = vadd.f32 %v4105_v17, %v3959_v31  ;;  %v10049_v31 = vpop.permute.xlu1 %4178 }
 0x6c6   : > { %4055 = vmatmul.bf16.gmra.mxu3 %v5835_v1  ;;  %v4107_v54 = vpop.f32.mrf.mxu0  ;;  %v10039_v1 = vpop.permute.xlu0 %4198 }
 0x6c9   : > { %v10012_v63 = vpop.f32.mrf.mxu3 }
 0x6cc   : > { %v3961_v9 = vpop.f32.mrf.mxu2 }
 0x6ce   : > { %v4110_v48 = vpop.f32.mrf.mxu0 }
 0x6d1   : > { %v10014_v46 = vpop.f32.mrf.mxu3 }
 0x6d4   : > { %v3964_v58 = vpop.f32.mrf.mxu2 }
 0x6d5   : > { %v4111_v2 = vadd.f32 %v4110_v48, %v3964_v58 }
 0x6d6   : > { %4060 = vmatmul.bf16.gmra.mxu3 %v5836_v44  ;;  %v4112_v14 = vpop.f32.mrf.mxu0 }
 0x6d9   : > { %v10016_v7 = vpop.f32.mrf.mxu3 }
 0x6dc   : > { %v3966_v11 = vpop.f32.mrf.mxu2 }
 0x6dd   : > { %v4113_v18 = vadd.f32 %v4112_v14, %v3966_v11  ;;  %v4242_v14 = vadd.f32 %v10032_v62, %v4111_v2 }
 0x6de   : > { %v4115_v61 = vpop.f32.mrf.mxu0 }
 0x6e1   : > { %v10018_v20 = vpop.f32.mrf.mxu3 }
 0x6e4   : > { %v3969_v56 = vpop.f32.mrf.mxu2 }
 0x6e6   : > { %4065 = vmatmul.bf16.gmra.mxu3 %v5837_v45  ;;  %v4117_v5 = vpop.f32.mrf.mxu0  ;;  %v4116_v45 = vadd.f32 %v4115_v61, %v3969_v56  ;;  %v4108_v61 = vadd.f32 %v4107_v54, %v3961_v9  ;;  %v4244_v56 = vadd.f32 %v10039_v1, %v4113_v18  ;;  %v4238_v54 = vadd.f32 %v10035_v43, %v4106_v52 }
 0x6e7   : > { %v4274_v9 = vmax.f32 %v4242_v14, 0.0  ;;  %v4093_v52 = vadd.f32 %v9988_v8, %v9992_v39 }
 0x6e8   : > { %v4246_v42 = vadd.f32 %v10028_v16, %v4116_v45  ;;  %v4240_v48 = vadd.f32 %v10042_v40, %v4108_v61  ;;  %v4276_v58 = vmax.f32 %v4244_v56, 0.0  ;;  %v4270_v18 = vmax.f32 %v4238_v54, 0.0 }
 0x6e9   : > { %v10022_v13 = vpop.f32.mrf.mxu3 }
 0x6ea   : > { %v4278_v11 = vmax.f32 %v4246_v42, 0.0 }
 0x6ec   : > { %v3971_v10 = vpop.f32.mrf.mxu2 }
 0x6ed   : > { %v4118_v44 = vadd.f32 %v4117_v5, %v3971_v10 }
 0x6ee   : > { %v4120_v53 = vpop.f32.mrf.mxu0 }
 0x6ef   : > { %v4248_v26 = vadd.f32 %v10026_v0, %v4118_v44 }
 0x6f1   : > { %v10030_v35 = vpop.f32.mrf.mxu3  ;;  %v4280_v5 = vmax.f32 %v4248_v26, 0.0 }
 0x6f4   : > { %v3974_v21 = vpop.f32.mrf.mxu2 }
 0x6f5   : > { %v4121_v47 = vadd.f32 %v4120_v53, %v3974_v21  ;;  %v10052_v53 = vpop.permute.xlu0 %4173  ;;  %v4103_v21 = vadd.f32 %v4102_v57, %v3956_v28  ;;  %v10064_v57 = vpop.permute.xlu1 %4153 }
 0x6f6   : > { %4070 = vmatmul.bf16.gmra.mxu3 %v9973_v4  ;;  %v4122_v59 = vpop.f32.mrf.mxu0  ;;  %v4234_v28 = vadd.f32 %v10052_v53, %v10006_v34  ;;  %v4088_v34 = vadd.f32 %v9978_v49, %v9982_v33  ;;  %v4226_v39 = vadd.f32 %v10064_v57, %v9986_v3 }
 0x6f7   : > { %v4250_v41 = vadd.f32 %v10020_v55, %v4121_v47  ;;  %v4314_v47 = vpack.c.bf16 %v4280_v5, %v4278_v11  ;;  %v4236_v45 = vadd.f32 %v10049_v31, %v4103_v21 }
 0x6f8   : > { %v4258_v33 = vmax.f32 %v4226_v39, 0.0 }
 0x6f9   : > { %v10037_v50 = vpop.f32.mrf.mxu3  ;;  %v4282_v32 = vmax.f32 %v4250_v41, 0.0  ;;  %v4272_v41 = vmax.f32 %v4240_v48, 0.0  ;;  %v4268_v2 = vmax.f32 %v4236_v45, 0.0 }
 0x6fc   : > { %v3976_v37 = vpop.f32.mrf.mxu2 }
 0x6fd   : > { %v4123_v24 = vadd.f32 %v4122_v59, %v3976_v37  ;;  %v10056_v59 = vpop.permute.xlu2 %4163  ;;  %v4098_v37 = vadd.f32 %v9998_v25, %v10002_v60  ;;  %v10068_v26 = vpop.permute.xlu0 %4168  ;;  %v4310_v25 = vpack.c.bf16 %v4272_v41, %v4270_v18  ;;  %v10110_v18 = vld [vmem:[%s11503_s25 + $0x10] sm:$0xff] }
 0x6fe   : > { %v4230_v42 = vadd.f32 %v10056_v59, %v9996_v23 }
 0x6ff   : > { %v4252_v4 = vadd.f32 %v10024_v38, %v4123_v24  ;;  %v4312_v24 = vpack.c.bf16 %v4276_v58, %v4274_v9 }
 0x700   : > { %v4262_v5 = vmax.f32 %v4230_v42, 0.0 }
 0x701   : > { %v10046_v12 = vpop.f32.mrf.mxu3  ;;  %v4284_v17 = vmax.f32 %v4252_v4, 0.0  ;;  %v4232_v4 = vadd.f32 %v10068_v26, %v4098_v37  ;;  %v10098_v37 = vld [vmem:[%s11503_s25] sm:$0xff] }
 0x703   : > { %v4316_v10 = vpack.c.bf16 %v4284_v17, %v4282_v32  ;;  %v4266_v32 = vmax.f32 %v4234_v28, 0.0  ;;  %v4264_v56 = vmax.f32 %v4232_v4, 0.0 }
 0x705   : > { %4510 = vmatpush.bf16.msrb.mxu2 %v4316_v10  ;;  %v10077_v17 = vpop.permute.xlu2 %4158  ;;  %v4308_v8 = vpack.c.bf16 %v4268_v2, %v4266_v32  ;;  %v10084_v10 = vpop.permute.xlu1 %4148  ;;  %v4306_v11 = vpack.c.bf16 %v4264_v56, %v4262_v5  ;;  %v10116_v2 = vld [vmem:[%s11503_s25 + $0x18] sm:$0xff]  ;;  %v10122_v32 = vld [vmem:[%s11503_s25 + $0x20] sm:$0xff]  ;;  %v10128_v56 = vld [vmem:[%s11503_s25 + $0x28] sm:$0xff] }
 0x706   : > { %v4228_v61 = vadd.f32 %v10077_v17, %v4093_v52  ;;  %v4224_v23 = vadd.f32 %v10084_v10, %v4088_v34  ;;  %v10087_v21 = vpop.permute.xlu0 %4143 }
 0x707   : > { %v4222_v49 = vadd.f32 %v10087_v21, %v9976_v36  ;;  %v10104_v36 = vld [vmem:[%s11503_s25 + $0x8] sm:$0xff] }
 0x708   : > { %v4260_v14 = vmax.f32 %v4228_v61, 0.0  ;;  %v4256_v58 = vmax.f32 %v4224_v23, 0.0 }
 0x709   : > { %v10058_v44 = vpop.f32.mrf.mxu3  ;;  %4511 = vmatpush.bf16.msrb.mxu2 %v4314_v47  ;;  %v4254_v3 = vmax.f32 %v4222_v49, 0.0 }
 0x70a   : > { %v4304_v47 = vpack.c.bf16 %v4260_v14, %v4258_v33 }
 0x70b   : > { %v4302_v54 = vpack.c.bf16 %v4256_v58, %v4254_v3 }
 0x70d   : > { %4512 = vmatpush.bf16.msrb.mxu2 %v4312_v24  ;;  %v10131_v39 = vpop.permute.xlu2 %4405 }
 0x711   : > { %v10073_v60 = vpop.f32.mrf.mxu3  ;;  %4513 = vmatpush.bf16.msrb.mxu2 %v4310_v25 }
 0x715   : > { %4514 = vmatpush.bf16.msrb.mxu2 %v4308_v8 }
 0x719   : > { %v10089_v48 = vpop.f32.mrf.mxu3  ;;  %4515 = vmatpush.bf16.msrb.mxu2 %v4306_v11  ;;  %v10138_v11 = vld [vmem:[%s11503_s25 + $0x30] sm:$0xff] }
 0x71d   : > { %4516 = vmatpush.bf16.msrb.mxu2 %v4304_v47 }
 0x721   : > { %v10093_v9 = vpop.f32.mrf.mxu3  ;;  %4517 = vmatpush.bf16.msrb.mxu2 %v4302_v54 }
 0x724   : > { %4518 = vmatmul.bf16.vlgmr.msrb.gmra.mxu2 %v10098_v37 }
 0x729   : > { %v4046_v45 = vpop.f32.mrf.mxu3 }
 0x731   : > { %v4048_v41 = vpop.f32.mrf.mxu3 }
 0x734   : > { %4523 = vmatmul.bf16.gmra.mxu2 %v10104_v36 }
 0x739   : > { %v4051_v24 = vpop.f32.mrf.mxu3 }
 0x741   : > { %v4053_v28 = vpop.f32.mrf.mxu3 }
 0x744   : > { %4528 = vmatmul.bf16.gmra.mxu2 %v10110_v18 }
 0x749   : > { %v4056_v52 = vpop.f32.mrf.mxu3 }
 0x751   : > { %v4058_v4 = vpop.f32.mrf.mxu3 }
 0x754   : > { %4533 = vmatmul.bf16.gmra.mxu2 %v10116_v2 }
 0x759   : > { %v4061_v25 = vpop.f32.mrf.mxu3 }
 0x75a   : > { %v4062_v54 = vadd.f32 %v4061_v25, %v10016_v7  ;;  %v4054_v7 = vadd.f32 %v4053_v28, %v10010_v30  ;;  %v10168_v30 = vld [vmem:[%s11503_s25 + $0x38] sm:$0xff] }
 0x761   : > { %v4063_v42 = vpop.f32.mrf.mxu3 }
 0x762   : > { %v4064_v47 = vadd.f32 %v4063_v42, %v10018_v20  ;;  %v4241_v42 = vadd.f32 %v10032_v62, %v4062_v54  ;;  %v4235_v62 = vadd.f32 %v10049_v31, %v4054_v7 }
 0x764   : > { %4538 = vmatmul.bf16.gmra.mxu2 %v10122_v32  ;;  %v4243_v20 = vadd.f32 %v10039_v1, %v4064_v47 }
 0x766   : > { %v4275_v25 = vmax.f32 %v4243_v20, 0.0 }
 0x769   : > { %v4066_v34 = vpop.f32.mrf.mxu3 }
 0x76a   : > { %v4067_v49 = vadd.f32 %v4066_v34, %v10022_v13  ;;  %v10151_v34 = vpop.permute.xlu2 %4400 }
 0x771   : > { %v4068_v61 = vpop.f32.mrf.mxu3 }
 0x772   : > { %v4069_v23 = vadd.f32 %v4068_v61, %v10030_v35  ;;  %v10147_v35 = vpop.permute.xlu1 %4395  ;;  %v4245_v61 = vadd.f32 %v10028_v16, %v4067_v49 }
 0x774   : > { %4543 = vmatmul.bf16.gmra.mxu2 %v10128_v56  ;;  %v4247_v3 = vadd.f32 %v10026_v0, %v4069_v23 }
 0x779   : > { %v4071_v8 = vpop.f32.mrf.mxu3 }
 0x77a   : > { %v4072_v5 = vadd.f32 %v4071_v8, %v10037_v50  ;;  %v10161_v1 = vpop.permute.xlu1 %4390 }
 0x77c   : > { %v4249_v33 = vadd.f32 %v10020_v55, %v4072_v5  ;;  %v4059_v55 = vadd.f32 %v4058_v4, %v10014_v46  ;;  %v4277_v5 = vmax.f32 %v4245_v61, 0.0  ;;  %v4273_v4 = vmax.f32 %v4241_v42, 0.0 }
 0x77e   : > { %v4281_v8 = vmax.f32 %v4249_v33, 0.0  ;;  %v4239_v16 = vadd.f32 %v10042_v40, %v4059_v55  ;;  %v4311_v49 = vpack.c.bf16 %v4275_v25, %v4273_v4  ;;  %v10170_v40 = vpop.permute.xlu2 %4375  ;;  %v4042_v33 = vadd.f32 %v10089_v48, %v9990_v51 }
 0x780   : > { %v4225_v51 = vadd.f32 %v10064_v57, %v4042_v33 }
 0x781   : > { %v4073_v14 = vpop.f32.mrf.mxu3 }
 0x782   : > { %v4074_v58 = vadd.f32 %v4073_v14, %v10046_v12  ;;  %v4279_v12 = vmax.f32 %v4247_v3, 0.0  ;;  %v4052_v14 = vadd.f32 %v4051_v24, %v10008_v22  ;;  %v4047_v22 = vadd.f32 %v4046_v45, %v10000_v27  ;;  %v10181_v27 = vpop.permute.xlu0 %4410  ;;  %v10186_v45 = vpop.permute.xlu1 %4365 }
 0x783   : > { %v4037_v3 = vadd.f32 %v10058_v44, %v9980_v19 }
 0x784   : > { %v4251_v50 = vadd.f32 %v10024_v38, %v4074_v58  ;;  %4548 = vmatmul.bf16.gmra.mxu2 %v10138_v11  ;;  %v4057_v38 = vadd.f32 %v4056_v52, %v10012_v63  ;;  %v4313_v23 = vpack.c.bf16 %v4279_v12, %v4277_v5  ;;  %v4049_v63 = vadd.f32 %v4048_v41, %v10004_v6 }
 0x785   : > { %v4271_v52 = vmax.f32 %v4239_v16, 0.0  ;;  %v4044_v6 = vadd.f32 %v10093_v9, %v9994_v15  ;;  %v4267_v41 = vmax.f32 %v4235_v62, 0.0  ;;  %v4229_v58 = vadd.f32 %v10056_v59, %v4047_v22 }
 0x786   : > { %v4283_v13 = vmax.f32 %v4251_v50, 0.0  ;;  %v4237_v46 = vadd.f32 %v10035_v43, %v4057_v38  ;;  %v4233_v43 = vadd.f32 %v10052_v53, %v4052_v14  ;;  %v4231_v31 = vadd.f32 %v10068_v26, %v4049_v63  ;;  %v10191_v59 = vpop.permute.xlu2 %4370 }
 0x787   : > { %v4039_v53 = vadd.f32 %v10073_v60, %v9984_v29  ;;  %v4227_v15 = vadd.f32 %v10077_v17, %v4044_v6  ;;  %v4261_v48 = vmax.f32 %v4229_v58, 0.0  ;;  %v4221_v29 = vadd.f32 %v10087_v21, %v4037_v3 }
 0x788   : > { %v4315_v0 = vpack.c.bf16 %v4283_v13, %v4281_v8  ;;  %v4269_v24 = vmax.f32 %v4237_v46, 0.0  ;;  %v4265_v47 = vmax.f32 %v4233_v43, 0.0  ;;  %v4263_v9 = vmax.f32 %v4231_v31, 0.0 }
 0x789   : > { %v4223_v50 = vadd.f32 %v10084_v10, %v4039_v53  ;;  %v4259_v54 = vmax.f32 %v4227_v15, 0.0  ;;  %v4257_v60 = vmax.f32 %v4225_v51, 0.0  ;;  %v4253_v55 = vmax.f32 %v4221_v29, 0.0 }
 0x78a   : > { %4461 = vmatpush.bf16.msra.mxu1 %v4315_v0  ;;  %v4309_v28 = vpack.c.bf16 %v4271_v52, %v4269_v24  ;;  %v4307_v26 = vpack.c.bf16 %v4267_v41, %v4265_v47  ;;  %v4305_v61 = vpack.c.bf16 %v4263_v9, %v4261_v48  ;;  %v10195_v13 = vpop.permute.xlu0 %4385  ;;  %v10197_v19 = vpop.permute.xlu1 %4360 }
 0x78b   : > { %v4255_v17 = vmax.f32 %v4223_v50, 0.0  ;;  %v4303_v8 = vpack.c.bf16 %v4259_v54, %v4257_v60 }
 0x78d   : > { %v4301_v44 = vpack.c.bf16 %v4255_v17, %v4253_v55 }
 0x78e   : > { %4462 = vmatpush.bf16.msra.mxu1 %v4313_v23  ;;  %v10199_v57 = vpop.permute.xlu2 %4345 }
 0x792   : > { %4463 = vmatpush.bf16.msra.mxu1 %v4311_v49  ;;  %v10202_v10 = vpop.permute.xlu0 %4380  ;;  %v10204_v21 = vpop.permute.xlu1 %4335 }
 0x794   : > { %4553 = vmatmul.bf16.gmra.mxu2 %v10168_v30 }
 0x796   : > { %4464 = vmatpush.bf16.msra.mxu1 %v4309_v28  ;;  %v10207_v0 = vpop.permute.xlu2 %4340 }
 0x79a   : > { %4465 = vmatpush.bf16.msra.mxu1 %v4307_v26  ;;  %v10212_v25 = vpop.permute.xlu0 %4355 }
 0x79e   : > { %4466 = vmatpush.bf16.msra.mxu1 %v4305_v61 }
 0x7a2   : > { %4467 = vmatpush.bf16.msra.mxu1 %v4303_v8  ;;  %v10216_v14 = vpop.permute.xlu0 %4350 }
 0x7a6   : > { %4468 = vmatpush.bf16.msra.mxu1 %v4301_v44 }
 0x7a7   : > { %v4519_v20 = vpop.f32.mrf.mxu2 }
 0x7a8   : > { %v4520_v12 = vadd.f32 %v4519_v20, %v10204_v21 }
 0x7a9   : > { %4469 = vmatmul.bf16.vlgmr.msra.gmra.mxu1 %v10098_v37 }
 0x7aa   : > { %v4560_v5 = vmax.f32 %v4520_v12, 0.0 }
 0x7af   : > { %v4521_v38 = vpop.f32.mrf.mxu2 }
 0x7b0   : > { %v4522_v42 = vadd.f32 %v4521_v38, %v10207_v0 }
 0x7b2   : > { %v4562_v7 = vmax.f32 %v4522_v42, 0.0 }
 0x7b4   : > { %v10210_v16 = vpack.c.bf16 %v4562_v7, %v4560_v5 }
 0x7b7   : > { %v4524_v23 = vpop.f32.mrf.mxu2 }
 0x7b8   : > { %v4525_v37 = vadd.f32 %v4524_v23, %v10199_v57 }
 0x7b9   : > { %4474 = vmatmul.bf16.gmra.mxu1 %v10104_v36 }
 0x7ba   : > { %v4564_v63 = vmax.f32 %v4525_v37, 0.0 }
 0x7bf   : > { %v4526_v46 = vpop.f32.mrf.mxu2 }
 0x7c0   : > { %v4527_v4 = vadd.f32 %v4526_v46, %v10216_v14 }
 0x7c2   : > { %v4566_v62 = vmax.f32 %v4527_v4, 0.0 }
 0x7c4   : > { %v10219_v52 = vpack.c.bf16 %v4566_v62, %v4564_v63 }
 0x7c7   : > { %v4529_v49 = vpop.f32.mrf.mxu2 }
 0x7c8   : > { %v4530_v22 = vadd.f32 %v4529_v49, %v10212_v25 }
 0x7c9   : > { %4479 = vmatmul.bf16.gmra.mxu1 %v10110_v18 }
 0x7ca   : > { %v4568_v36 = vmax.f32 %v4530_v22, 0.0 }
 0x7cf   : > { %v4531_v43 = vpop.f32.mrf.mxu2 }
 0x7d0   : > { %v4532_v24 = vadd.f32 %v4531_v43, %v10197_v19 }
 0x7d2   : > { %v4570_v6 = vmax.f32 %v4532_v24, 0.0 }
 0x7d4   : > { %v4596_v31 = vpack.c.bf16 %v4570_v6, %v4568_v36 }
 0x7d7   : > { %v4534_v41 = vpop.f32.mrf.mxu2 }
 0x7d8   : > { %v4535_v28 = vadd.f32 %v4534_v41, %v10186_v45 }
 0x7d9   : > { %4484 = vmatmul.bf16.gmra.mxu1 %v10116_v2 }
 0x7da   : > { %v4572_v47 = vmax.f32 %v4535_v28, 0.0 }
 0x7df   : > { %v4536_v33 = vpop.f32.mrf.mxu2 }
 0x7e0   : > { %v4537_v58 = vadd.f32 %v4536_v33, %v10191_v59 }
 0x7e2   : > { %v4574_v53 = vmax.f32 %v4537_v58, 0.0 }
 0x7e4   : > { %v4598_v15 = vpack.c.bf16 %v4574_v53, %v4572_v47  ;;  %v10260_v53 = vld [vmem:[%s11504_s24 + $0x8] sm:$0xff] }
 0x7e7   : > { %v4539_v18 = vpop.f32.mrf.mxu2 }
 0x7e8   : > { %v4540_v42 = vadd.f32 %v4539_v18, %v10170_v40 }
 0x7e9   : > { %4489 = vmatmul.bf16.gmra.mxu1 %v10122_v32 }
 0x7ea   : > { %v4576_v4 = vmax.f32 %v4540_v42, 0.0 }
 0x7ef   : > { %v4541_v9 = vpop.f32.mrf.mxu2 }
 0x7f7   : > { %v4544_v26 = vpop.f32.mrf.mxu2 }
 0x7f8   : > { %v4545_v44 = vadd.f32 %v4544_v26, %v10195_v13 }
 0x7f9   : > { %4494 = vmatmul.bf16.gmra.mxu1 %v10128_v56 }
 0x7fa   : > { %v4580_v5 = vmax.f32 %v4545_v44, 0.0 }
 0x7ff   : > { %v4546_v3 = vpop.f32.mrf.mxu2 }
 0x800   : > { %v4547_v56 = vadd.f32 %v4546_v3, %v10161_v1 }
 0x802   : > { %v4582_v12 = vmax.f32 %v4547_v56, 0.0 }
 0x804   : > { %v4602_v23 = vpack.c.bf16 %v4582_v12, %v4580_v5 }
 0x807   : > { %v4549_v51 = vpop.f32.mrf.mxu2 }
 0x808   : > { %v4550_v32 = vadd.f32 %v4549_v51, %v10147_v35 }
 0x809   : > { %4499 = vmatmul.bf16.gmra.mxu1 %v10138_v11 }
 0x80a   : > { %v4584_v20 = vmax.f32 %v4550_v32, 0.0  ;;  %v10286_v32 = vld [vmem:[%s11504_s24 + $0x28] sm:$0xff] }
 0x80f   : > { %v4551_v2 = vpop.f32.mrf.mxu2 }
 0x810   : > { %v4552_v61 = vadd.f32 %v4551_v2, %v10151_v34 }
 0x812   : > { %v4586_v8 = vmax.f32 %v4552_v61, 0.0 }
 0x814   : > { %v4604_v38 = vpack.c.bf16 %v4586_v8, %v4584_v20 }
 0x817   : > { %v4554_v48 = vpop.f32.mrf.mxu2 }
 0x818   : > { %v4555_v50 = vadd.f32 %v4554_v48, %v10131_v39 }
 0x819   : > { %4504 = vmatmul.bf16.gmra.mxu1 %v10168_v30  ;;  %v4542_v30 = vadd.f32 %v4541_v9, %v10202_v10 }
 0x81a   : > { %v4588_v60 = vmax.f32 %v4555_v50, 0.0  ;;  %v10274_v50 = vld [vmem:[%s11504_s24 + $0x18] sm:$0xff] }
 0x81b   : > { %v4578_v7 = vmax.f32 %v4542_v30, 0.0  ;;  %v10296_v30 = vld [vmem:[%s11504_s24 + $0x30] sm:$0xff] }
 0x81d   : > { %v4600_v62 = vpack.c.bf16 %v4578_v7, %v4576_v4 }
 0x81f   : > { %v4556_v54 = vpop.f32.mrf.mxu2 }
 0x820   : > { %v4557_v29 = vadd.f32 %v4556_v54, %v10181_v27  ;;  %v10280_v54 = vld [vmem:[%s11504_s24 + $0x20] sm:$0xff] }
 0x822   : > { %v4590_v17 = vmax.f32 %v4557_v29, 0.0 }
 0x824   : > { %v4606_v55 = vpack.c.bf16 %v4590_v17, %v4588_v60 }
 0x826   : > { %v4470_v11 = vpop.f32.mrf.mxu1  ;;  %4816 = vmatpush.bf16.msra.mxu0 %v4606_v55 }
 0x827   : > { %v4471_v37 = vadd.f32 %v4470_v11, %v10204_v21 }
 0x829   : > { %v4559_v49 = vmax.f32 %v4471_v37, 0.0 }
 0x82a   : > { %4817 = vmatpush.bf16.msra.mxu0 %v4604_v38 }
 0x82e   : > { %v4472_v46 = vpop.f32.mrf.mxu1  ;;  %4818 = vmatpush.bf16.msra.mxu0 %v4602_v23 }
 0x82f   : > { %v4473_v63 = vadd.f32 %v4472_v46, %v10207_v0  ;;  %v10249_v0 = vld [vmem:[%s11504_s24] sm:$0xff] }
 0x831   : > { %v4561_v22 = vmax.f32 %v4473_v63, 0.0  ;;  %v10309_v63 = vpop.permute.xlu0 %4641 }
 0x832   : > { %4819 = vmatpush.bf16.msra.mxu0 %v4600_v62  ;;  %v10311_v62 = vpop.permute.xlu2 %4651 }
 0x833   : > { %v10241_v43 = vpack.c.bf16 %v4561_v22, %v4559_v49 }
 0x836   : > { %v4475_v24 = vpop.f32.mrf.mxu1  ;;  %4820 = vmatpush.bf16.msra.mxu0 %v4598_v15 }
 0x837   : > { %v4476_v36 = vadd.f32 %v4475_v24, %v10199_v57 }
 0x839   : > { %v4563_v21 = vmax.f32 %v4476_v36, 0.0  ;;  %v10322_v36 = vpop.permute.xlu1 %4646 }
 0x83a   : > { %4821 = vmatpush.bf16.msra.mxu0 %v4596_v31 }
 0x83e   : > { %v4477_v6 = vpop.f32.mrf.mxu1  ;;  %4822 = vmatpush.bf16.msra.mxu0 %v10219_v52 }
 0x83f   : > { %v4478_v41 = vadd.f32 %v4477_v6, %v10216_v14  ;;  %v10324_v6 = vpop.permute.xlu0 %4656 }
 0x841   : > { %v4565_v28 = vmax.f32 %v4478_v41, 0.0 }
 0x842   : > { %4823 = vmatpush.bf16.msra.mxu0 %v10210_v16 }
 0x843   : > { %v10251_v33 = vpack.c.bf16 %v4565_v28, %v4563_v21 }
 0x845   : > { %4824 = vmatmul.bf16.vlgmr.msra.gmra.mxu0 %v10249_v0 }
 0x846   : > { %v4480_v31 = vpop.f32.mrf.mxu1 }
 0x847   : > { %v4481_v57 = vadd.f32 %v4480_v31, %v10212_v25 }
 0x849   : > { %v4567_v52 = vmax.f32 %v4481_v57, 0.0 }
 0x84e   : > { %v4482_v58 = vpop.f32.mrf.mxu1 }
 0x84f   : > { %v4483_v14 = vadd.f32 %v4482_v58, %v10197_v19  ;;  %v10268_v19 = vld [vmem:[%s11504_s24 + $0x10] sm:$0xff] }
 0x851   : > { %v4569_v47 = vmax.f32 %v4483_v14, 0.0  ;;  %v10341_v14 = vpop.permute.xlu2 %4666 }
 0x853   : > { %v4595_v15 = vpack.c.bf16 %v4569_v47, %v4567_v52 }
 0x855   : > { %4829 = vmatmul.bf16.gmra.mxu0 %v10260_v53 }
 0x856   : > { %v4485_v18 = vpop.f32.mrf.mxu1 }
 0x857   : > { %v4486_v16 = vadd.f32 %v4485_v18, %v10186_v45 }
 0x859   : > { %v4571_v25 = vmax.f32 %v4486_v16, 0.0 }
 0x85e   : > { %v4487_v9 = vpop.f32.mrf.mxu1 }
 0x85f   : > { %v4488_v26 = vadd.f32 %v4487_v9, %v10191_v59 }
 0x861   : > { %v4573_v3 = vmax.f32 %v4488_v26, 0.0 }
 0x863   : > { %v4597_v51 = vpack.c.bf16 %v4573_v3, %v4571_v25 }
 0x865   : > { %4834 = vmatmul.bf16.gmra.mxu0 %v10268_v19 }
 0x866   : > { %v4490_v2 = vpop.f32.mrf.mxu1 }
 0x867   : > { %v4491_v7 = vadd.f32 %v4490_v2, %v10170_v40 }
 0x869   : > { %v4575_v4 = vmax.f32 %v4491_v7, 0.0 }
 0x86e   : > { %v4492_v48 = vpop.f32.mrf.mxu1 }
 0x875   : > { %4839 = vmatmul.bf16.gmra.mxu0 %v10274_v50 }
 0x876   : > { %v4495_v45 = vpop.f32.mrf.mxu1 }
 0x87e   : > { %v4497_v59 = vpop.f32.mrf.mxu1 }
 0x87f   : > { %v4498_v12 = vadd.f32 %v4497_v59, %v10161_v1 }
 0x885   : > { %4844 = vmatmul.bf16.gmra.mxu0 %v10280_v54 }
 0x886   : > { %v4500_v61 = vpop.f32.mrf.mxu1 }
 0x887   : > { %v4501_v11 = vadd.f32 %v4500_v61, %v10147_v35  ;;  %v4581_v35 = vmax.f32 %v4498_v12, 0.0 }
 0x889   : > { %v4583_v5 = vmax.f32 %v4501_v11, 0.0 }
 0x88e   : > { %v4502_v29 = vpop.f32.mrf.mxu1 }
 0x88f   : > { %v4503_v8 = vadd.f32 %v4502_v29, %v10151_v34  ;;  %v4493_v34 = vadd.f32 %v4492_v48, %v10202_v10 }
 0x891   : > { %v4585_v38 = vmax.f32 %v4503_v8, 0.0  ;;  %v4577_v37 = vmax.f32 %v4493_v34, 0.0 }
 0x893   : > { %v4599_v1 = vpack.c.bf16 %v4577_v37, %v4575_v4 }
 0x895   : > { %4849 = vmatmul.bf16.gmra.mxu0 %v10286_v32 }
 0x896   : > { %v4505_v60 = vpop.f32.mrf.mxu1 }
 0x897   : > { %v4506_v17 = vadd.f32 %v4505_v60, %v10131_v39  ;;  %v4496_v39 = vadd.f32 %v4495_v45, %v10195_v13  ;;  %v5862_v13 = vld [vmem:[%s11504_s24 + $0x38] sm:$0xff]  ;;  %v10359_v45 = vpop.permute.xlu2 %4681 }
 0x899   : > { %v4587_v44 = vmax.f32 %v4506_v17, 0.0  ;;  %v4579_v23 = vmax.f32 %v4496_v39, 0.0 }
 0x89b   : > { %v4601_v46 = vpack.c.bf16 %v4581_v35, %v4579_v23 }
 0x89e   : > { %v4507_v56 = vpop.f32.mrf.mxu1 }
 0x89f   : > { %v4508_v55 = vadd.f32 %v4507_v56, %v10181_v27  ;;  %v4603_v27 = vpack.c.bf16 %v4585_v38, %v4583_v5  ;;  %v10365_v29 = vpop.permute.xlu2 %4696 }
 0x8a1   : > { %v4589_v20 = vmax.f32 %v4508_v55, 0.0 }
 0x8a3   : > { %v4605_v42 = vpack.c.bf16 %v4589_v20, %v4587_v44 }
 0x8a5   : > { %4767 = vmatpush.bf16.msrb.mxu3 %v4605_v42  ;;  %4854 = vmatmul.bf16.gmra.mxu0 %v10296_v30 }
 0x8a7   : > { %v10395_v42 = vpop.permute.xlu2 %4711 }
 0x8a9   : > { %4768 = vmatpush.bf16.msrb.mxu3 %v4603_v27 }
 0x8ad   : > { %4769 = vmatpush.bf16.msrb.mxu3 %v4601_v46 }
 0x8b1   : > { %4770 = vmatpush.bf16.msrb.mxu3 %v4599_v1 }
 0x8b5   : > { %4771 = vmatpush.bf16.msrb.mxu3 %v4597_v51  ;;  %4859 = vmatmul.bf16.gmra.mxu0 %v5862_v13 }
 0x8b9   : > { %4772 = vmatpush.bf16.msrb.mxu3 %v4595_v15  ;;  %v10347_v15 = vpop.permute.xlu0 %4671 }
 0x8bd   : > { %4773 = vmatpush.bf16.msrb.mxu3 %v10251_v33  ;;  %v10334_v33 = vpop.permute.xlu1 %4661 }
 0x8c1   : > { %4774 = vmatpush.bf16.msrb.mxu3 %v10241_v43  ;;  %v10361_v59 = vpop.permute.xlu0 %4686 }
 0x8c2   : > { %v4825_v40 = vpop.f32.mrf.mxu0 }
 0x8c3   : > { %v10314_v22 = vadd.f32 %v4825_v40, %v10309_v63 }
 0x8c4   : > { %4775 = vmatmul.bf16.vlgmr.msrb.gmra.mxu3 %v10249_v0 }
 0x8c5   : > { %v10356_v2 = vpop.permute.xlu1 %4676 }
 0x8ca   : > { %v4827_v10 = vpop.f32.mrf.mxu0 }
 0x8cb   : > { %v10327_v21 = vadd.f32 %v4827_v10, %v10322_v36 }
 0x8cd   : > { %v10363_v61 = vpop.permute.xlu1 %4691 }
 0x8d2   : > { %v4830_v49 = vpop.f32.mrf.mxu0 }
 0x8d3   : > { %v10317_v24 = vadd.f32 %v4830_v49, %v10311_v62 }
 0x8d4   : > { %4780 = vmatmul.bf16.gmra.mxu3 %v10260_v53 }
 0x8d5   : > { %v4886_v43 = vmax.f32 %v10314_v22, %v10317_v24  ;;  %v10385_v44 = vpop.permute.xlu1 %4706 }
 0x8da   : > { %v4832_v41 = vpop.f32.mrf.mxu0 }
 0x8db   : > { %v10330_v28 = vadd.f32 %v4832_v41, %v10324_v6 }
 0x8dd   : > { %v4887_v0 = vmax.f32 %v10327_v21, %v10330_v28 }
 0x8e2   : > { %v4835_v31 = vpop.f32.mrf.mxu0 }
 0x8e3   : > { %v10337_v57 = vadd.f32 %v4835_v31, %v10334_v33 }
 0x8e4   : > { %4785 = vmatmul.bf16.gmra.mxu3 %v10268_v19 }
 0x8e5   : > { %v4888_v58 = vmax.f32 %v4886_v43, %v10337_v57 }
 0x8ea   : > { %v4837_v52 = vpop.f32.mrf.mxu0 }
 0x8eb   : > { %v10344_v47 = vadd.f32 %v4837_v52, %v10341_v14 }
 0x8ed   : > { %v4889_v53 = vmax.f32 %v4887_v0, %v10344_v47 }
 0x8f2   : > { %v4840_v18 = vpop.f32.mrf.mxu0 }
 0x8f3   : > { %v10350_v16 = vadd.f32 %v4840_v18, %v10347_v15 }
 0x8f4   : > { %4790 = vmatmul.bf16.gmra.mxu3 %v10274_v50 }
 0x8f5   : > { %v4890_v9 = vmax.f32 %v4888_v58, %v10350_v16 }
 0x8fa   : > { %v4842_v26 = vpop.f32.mrf.mxu0 }
 0x8fb   : > { %v10370_v60 = vadd.f32 %v4842_v26, %v10356_v2 }
 0x8fd   : > { %v4891_v8 = vmax.f32 %v4889_v53, %v10370_v60 }
 0x902   : > { %v4845_v25 = vpop.f32.mrf.mxu0 }
 0x903   : > { %v10373_v17 = vadd.f32 %v4845_v25, %v10359_v45 }
 0x904   : > { %4795 = vmatmul.bf16.gmra.mxu3 %v10280_v54  ;;  %v10367_v54 = vpop.permute.xlu0 %4701 }
 0x905   : > { %v4892_v20 = vmax.f32 %v4890_v9, %v10373_v17 }
 0x90a   : > { %v4847_v3 = vpop.f32.mrf.mxu0 }
 0x90b   : > { %v10376_v56 = vadd.f32 %v4847_v3, %v10361_v59 }
 0x90c   : > { %v10402_v35 = vpop.permute.xlu0 %4716 }
 0x912   : > { %v4850_v19 = vpop.f32.mrf.mxu0 }
 0x913   : > { %v10380_v55 = vadd.f32 %v4850_v19, %v10363_v61 }
 0x914   : > { %4800 = vmatmul.bf16.gmra.mxu3 %v10286_v32 }
 0x915   : > { %v4894_v39 = vmax.f32 %v4892_v20, %v10380_v55 }
 0x91a   : > { %v4852_v51 = vpop.f32.mrf.mxu0 }
 0x91b   : > { %v10383_v11 = vadd.f32 %v4852_v51, %v10365_v29 }
 0x922   : > { %v4855_v48 = vpop.f32.mrf.mxu0 }
 0x923   : > { %v10390_v12 = vadd.f32 %v4855_v48, %v10367_v54 }
 0x924   : > { %4805 = vmatmul.bf16.gmra.mxu3 %v10296_v30  ;;  %v4893_v30 = vmax.f32 %v4891_v8, %v10376_v56 }
 0x925   : > { %v4896_v7 = vmax.f32 %v4894_v39, %v10390_v12 }
 0x926   : > { %v4895_v5 = vmax.f32 %v4893_v30, %v10383_v11 }
 0x92a   : > { %v4857_v50 = vpop.f32.mrf.mxu0 }
 0x92b   : > { %v10393_v38 = vadd.f32 %v4857_v50, %v10385_v44 }
 0x92d   : > { %v4897_v23 = vmax.f32 %v4895_v5, %v10393_v38 }
 0x932   : > { %v4860_v32 = vpop.f32.mrf.mxu0 }
 0x933   : > { %v10400_v34 = vadd.f32 %v4860_v32, %v10395_v42 }
 0x934   : > { %4810 = vmatmul.bf16.gmra.mxu3 %v5862_v13 }
 0x935   : > { %v4898_v46 = vmax.f32 %v4896_v7, %v10400_v34 }
 0x93a   : > { %v4862_v27 = vpop.f32.mrf.mxu0 }
 0x93b   : > { %v10407_v37 = vadd.f32 %v4862_v27, %v10402_v35 }
 0x93d   : > { %v4899_v4 = vmax.f32 %v4897_v23, %v10407_v37 }
 0x93f   : > { %v4900_v1 = vmax.f32 %v4898_v46, %v4899_v4 }
 0x941   : > { %v4901_v13 = vrot.slane %v4900_v1, 4 }
 0x943   : > { %v4902_v40 = vmax.f32 %v4900_v1, %v4901_v13 }
 0x945   : > { %v4903_v10 = vrot.slane %v4902_v40, 2 }
 0x947   : > { %v4776_v49 = vpop.f32.mrf.mxu3  ;;  %v4904_v43 = vmax.f32 %v4902_v40, %v4903_v10 }
 0x949   : > { %v4905_v41 = vrot.slane %v4904_v43, 1 }
 0x94b   : > { %v10411_v0 = vmax.f32 %v4904_v43, %v4905_v41 }
 0x94d   : > { %v4908_v31 = vsub.f32 %v10314_v22, %v10411_v0  ;;  %v4910_v58 = vsub.f32 %v10327_v21, %v10411_v0  ;;  %v4912_v52 = vsub.f32 %v10317_v24, %v10411_v0  ;;  %v4914_v53 = vsub.f32 %v10330_v28, %v10411_v0 }
 0x94e   : > { %v4916_v18 = vsub.f32 %v10337_v57, %v10411_v0  ;;  %v4918_v9 = vsub.f32 %v10344_v47, %v10411_v0  ;;  %v4920_v26 = vsub.f32 %v10350_v16, %v10411_v0  ;;  %v10428_v28 = vadd.f32 %v4776_v49, %v10309_v63 }
 0x94f   : > { %v4778_v25 = vpop.f32.mrf.mxu3  ;;  %v4941_v22 = vmul.f32 1.442695, %v4908_v31  ;;  %v4945_v3 = vmul.f32 1.442695, %v4910_v58  ;;  %v4949_v19 = vmul.f32 1.442695, %v4912_v52  ;;  %v4922_v47 = vsub.f32 %v10370_v60, %v10411_v0 }
 0x950   : > { %v4953_v21 = vmul.f32 1.442695, %v4914_v53  ;;  %v4957_v24 = vmul.f32 1.442695, %v4916_v18  ;;  %v4961_v16 = vmul.f32 1.442695, %v4918_v9  ;;  %v4924_v8 = vsub.f32 %v10373_v17, %v10411_v0 }
 0x951   : > { %6111 = vpow2.f32 %v4941_v22  ;;  %v4965_v63 = vmul.f32 1.442695, %v4920_v26  ;;  %v4926_v60 = vsub.f32 %v10376_v56, %v10411_v0  ;;  %v4969_v30 = vmul.f32 1.442695, %v4922_v47 }
 0x952   : > { %6113 = vpow2.f32 %v4945_v3  ;;  %v4928_v27 = vsub.f32 %v10380_v55, %v10411_v0  ;;  %v4973_v17 = vmul.f32 1.442695, %v4924_v8  ;;  %v10456_v46 = vadd.f32 %v4778_v25, %v10322_v36 }
 0x953   : > { %6115 = vpow2.f32 %v4949_v19  ;;  %v4930_v1 = vsub.f32 %v10383_v11, %v10411_v0  ;;  %v4977_v13 = vmul.f32 1.442695, %v4926_v60  ;;  %v4932_v36 = vsub.f32 %v10390_v12, %v10411_v0 }
 0x954   : > { %6117 = vpow2.f32 %v4953_v21  ;;  %v4934_v11 = vsub.f32 %v10393_v38, %v10411_v0  ;;  %v4936_v52 = vsub.f32 %v10400_v34, %v10411_v0  ;;  %v4938_v38 = vsub.f32 %v10407_v37, %v10411_v0 }
 0x955   : > { %6119 = vpow2.f32 %v4957_v24  ;;  %v4985_v41 = vmul.f32 1.442695, %v4930_v1  ;;  %v4989_v12 = vmul.f32 1.442695, %v4932_v36 }
 0x956   : > { %6121 = vpow2.f32 %v4961_v16  ;;  %v4993_v25 = vmul.f32 1.442695, %v4934_v11  ;;  %v4997_v19 = vmul.f32 1.442695, %v4936_v52 }
 0x957   : > { %v4781_v51 = vpop.f32.mrf.mxu3  ;;  %v10435_v48 = vpop.eup %6111  ;;  %6123 = vpow2.f32 %v4965_v63 }
 0x958   : > { %v10431_v57 = vadd.f32 %v4781_v51, %v10311_v62  ;;  %v10439_v32 = vpop.eup %6113  ;;  %6125 = vpow2.f32 %v4969_v30 }
 0x959   : > { %v5024_v62 = vadd.f32 %v10439_v32, %v10435_v48  ;;  %v10445_v20 = vpop.eup %6115  ;;  %6127 = vpow2.f32 %v4973_v17 }
 0x95a   : > { %v4865_v50 = vmax.f32 %v10428_v28, %v10431_v57  ;;  %v10450_v5 = vpop.eup %6117  ;;  %6129 = vpow2.f32 %v4977_v13 }
 0x95b   : > { %v5025_v39 = vadd.f32 %v10445_v20, %v5024_v62  ;;  %v10461_v56 = vpop.eup %6119 }
 0x95c   : > { %v10468_v10 = vpop.eup %6121 }
 0x95d   : > { %v5026_v23 = vadd.f32 %v10450_v5, %v5025_v39  ;;  %v10473_v43 = vpop.eup %6123 }
 0x95e   : > { %v10478_v58 = vpop.eup %6125 }
 0x95f   : > { %v4783_v7 = vpop.f32.mrf.mxu3  ;;  %v5027_v55 = vadd.f32 %v10461_v56, %v5026_v23  ;;  %v10486_v26 = vpop.eup %6127 }
 0x960   : > { %v10459_v4 = vadd.f32 %v4783_v7, %v10324_v6  ;;  %v4981_v6 = vmul.f32 1.442695, %v4928_v27  ;;  %v6130_v34 = vpop.eup %6129 }
 0x961   : > { %v5028_v49 = vadd.f32 %v10468_v10, %v5027_v55 }
 0x962   : > { %v4866_v40 = vmax.f32 %v10456_v46, %v10459_v4  ;;  %6131 = vpow2.f32 %v4981_v6 }
 0x963   : > { %v5029_v31 = vadd.f32 %v10473_v43, %v5028_v49  ;;  %6133 = vpow2.f32 %v4985_v41 }
 0x964   : > { %6135 = vpow2.f32 %v4989_v12 }
 0x965   : > { %v5030_v18 = vadd.f32 %v10478_v58, %v5029_v31  ;;  %6137 = vpow2.f32 %v4993_v25 }
 0x966   : > { %6139 = vpow2.f32 %v4997_v19 }
 0x967   : > { %v4786_v53 = vpop.f32.mrf.mxu3  ;;  %v5031_v22 = vadd.f32 %v10486_v26, %v5030_v18 }
 0x968   : > { %v10484_v9 = vadd.f32 %v4786_v53, %v10334_v33  ;;  %v6132_v24 = vpop.eup %6131  ;;  %v5001_v33 = vmul.f32 1.442695, %v4938_v38 }
 0x969   : > { %v5032_v21 = vadd.f32 %v6130_v34, %v5031_v22  ;;  %v6134_v47 = vpop.eup %6133 }
 0x96a   : > { %v10492_v3 = vmax.f32 %v4865_v50, %v10484_v9  ;;  %v6136_v0 = vpop.eup %6135  ;;  %6141 = vpow2.f32 %v5001_v33 }
 0x96b   : > { %v5033_v51 = vadd.f32 %v6132_v24, %v5032_v21  ;;  %v6138_v62 = vpop.eup %6137 }
 0x96c   : > { %v6140_v30 = vpop.eup %6139 }
 0x96d   : > { %v5034_v8 = vadd.f32 %v6134_v47, %v5033_v51 }
 0x96f   : > { %v4788_v16 = vpop.f32.mrf.mxu3  ;;  %v5035_v63 = vadd.f32 %v6136_v0, %v5034_v8 }
 0x970   : > { %v10495_v37 = vadd.f32 %v4788_v16, %v10341_v14  ;;  %v6142_v27 = vpop.eup %6141 }
 0x971   : > { %v5036_v60 = vadd.f32 %v6138_v62, %v5035_v63 }
 0x972   : > { %v10498_v50 = vmax.f32 %v4866_v40, %v10495_v37 }
 0x973   : > { %v5037_v39 = vadd.f32 %v6140_v30, %v5036_v60 }
 0x975   : > { %v5038_v7 = vadd.f32 %v6142_v27, %v5037_v39 }
 0x977   : > { %v4791_v17 = vpop.f32.mrf.mxu3  ;;  %v5039_v1 = vrot.slane %v5038_v7, 4 }
 0x978   : > { %v10501_v23 = vadd.f32 %v4791_v17, %v10347_v15 }
 0x979   : > { %v5040_v13 = vadd.f32 %v5039_v1, %v5038_v7 }
 0x97a   : > { %v4869_v14 = vmax.f32 %v10492_v3, %v10501_v23 }
 0x97b   : > { %v5041_v55 = vrot.slane %v5040_v13, 2 }
 0x97d   : > { %v5042_v40 = vadd.f32 %v5041_v55, %v5040_v13 }
 0x97f   : > { %v4793_v36 = vpop.f32.mrf.mxu3  ;;  %v5043_v6 = vrot.slane %v5042_v40, 1 }
 0x981   : > { %v5044_v49 = vadd.f32 %v5043_v6, %v5042_v40 }
 0x983   : > { %6143 = vrcp.f32 %v5044_v49  ;;  %v5070_v53 = vand.u32 2147483648, %v5044_v49  ;;  %v5068_v18 = vand.u32 2147483647, %v5044_v49  ;;  %vm5064_vm8 = vweird.f32 %v5044_v49 }
 0x985   : > { %v5071_v25 = vor.u32 1.1754944e-38, %v5070_v53  ;;  %vm5069_vm10 = vcmp.eq.f32.partialorder %v5068_v18, 8.507059e+37 }
 0x987   : > { %v4796_v11 = vpop.f32.mrf.mxu3 }
 0x989   : > { %v6144_v41 = vpop.eup %6143 }
 0x98a   : > { %v5060_v31 = vmul.f32 %v6144_v41, %v5044_v49  ;;  %vm5065_vm7 = vweird.f32 %v6144_v41 }
 0x98b   : > { %vm5066_vm9 = vmor %vm5064_vm8, %vm5065_vm7 }
 0x98c   : > { %v5061_v52 = vsub.f32 1.0, %v5060_v31 }
 0x98e   : > { %v5062_v15 = vmul.f32 %v6144_v41, %v5061_v52 }
 0x98f   : > { %v4798_v12 = vpop.f32.mrf.mxu3 }
 0x990   : > { %v5063_v38 = vadd.f32 %v6144_v41, %v5062_v15 }
 0x992   : > { %v5067_v22 = vsel %vm5066_vm9, %v6144_v41, %v5063_v38 }
 0x993   : > { %v5072_v19 = vsel %vm5069_vm10, %v5071_v25, %v5067_v22 }
 0x994   : > { %v5074_v21 = vmul.f32 %v10435_v48, %v5072_v19  ;;  %v5076_v33 = vmul.f32 %v10439_v32, %v5072_v19  ;;  %v5078_v51 = vmul.f32 %v10445_v20, %v5072_v19  ;;  %v5080_v16 = vmul.f32 %v10450_v5, %v5072_v19 }
 0x995   : > { %v5082_v63 = vmul.f32 %v10461_v56, %v5072_v19  ;;  %v5084_v60 = vmul.f32 %v10468_v10, %v5072_v19  ;;  %v5086_v39 = vmul.f32 %v10473_v43, %v5072_v19  ;;  %v5088_v17 = vmul.f32 %v10478_v58, %v5072_v19 }
 0x996   : > { %v5090_v7 = vmul.f32 %v10486_v26, %v5072_v19  ;;  %v5092_v1 = vmul.f32 %v6130_v34, %v5072_v19  ;;  %v5094_v13 = vmul.f32 %v6132_v24, %v5072_v19  ;;  %v5096_v48 = vmul.f32 %v6134_v47, %v5072_v19  ;;  %5106 = vst [vmem:[%s10515_s6 + $0x8] sm:$0xff] %v5074_v21 }
 0x997   : > { %v4801_v8 = vpop.f32.mrf.mxu3  ;;  %v5098_v32 = vmul.f32 %v6136_v0, %v5072_v19  ;;  %v5100_v20 = vmul.f32 %v6138_v62, %v5072_v19  ;;  %v5102_v5 = vmul.f32 %v6140_v30, %v5072_v19  ;;  %v5104_v56 = vmul.f32 %v6142_v27, %v5072_v19  ;;  %5108 = vst [vmem:[%s10515_s6 + $0x18] sm:$0xff] %v5076_v33 }
 0x998   : > { %5110 = vst [vmem:[%s10515_s6 + $0x28] sm:$0xff] %v5078_v51  ;;  %v4794_v26 = vadd.f32 %v4793_v36, %v10356_v2  ;;  %v4797_v24 = vadd.f32 %v4796_v11, %v10359_v45  ;;  %v4799_v47 = vadd.f32 %v4798_v12, %v10361_v59  ;;  %v10538_v62 = vadd.f32 %v4801_v8, %v10363_v61 }
 0x999   : > { %5112 = vst [vmem:[%s10515_s6 + $0x38] sm:$0xff] %v5080_v16 }
 0x99a   : > { %5114 = vst [vmem:[%s10515_s6 + $0x48] sm:$0xff] %v5082_v63  ;;  %v4870_v0 = vmax.f32 %v10498_v50, %v4794_v26  ;;  %v4871_v27 = vmax.f32 %v4869_v14, %v4797_v24 }
 0x99b   : > { %5116 = vst [vmem:[%s10515_s6 + $0x58] sm:$0xff] %v5084_v60 }
 0x99c   : > { %5118 = vst [vmem:[%s10515_s6 + $0x68] sm:$0xff] %v5086_v39  ;;  %v4872_v55 = vmax.f32 %v4870_v0, %v4799_v47  ;;  %v4873_v59 = vmax.f32 %v4871_v27, %v10538_v62 }
 0x99d   : > { %5120 = vst [vmem:[%s10515_s6 + $0x78] sm:$0xff] %v5088_v17 }
 0x99e   : > { %5122 = vst [vmem:[%s10515_s6 + $0x88] sm:$0xff] %v5090_v7 }
 0x99f   : > { %v4803_v10 = vpop.f32.mrf.mxu3  ;;  %5124 = vst [vmem:[%s10515_s6 + $0x98] sm:$0xff] %v5092_v1 }
 0x9a0   : > { %5126 = vst [vmem:[%s10515_s6 + $0xa8] sm:$0xff] %v5094_v13  ;;  %v10541_v30 = vadd.f32 %v4803_v10, %v10365_v29 }
 0x9a1   : > { %5128 = vst [vmem:[%s10515_s6 + $0xb8] sm:$0xff] %v5096_v48 }
 0x9a2   : > { %5130 = vst [vmem:[%s10515_s6 + $0xc8] sm:$0xff] %v5098_v32  ;;  %v4874_v50 = vmax.f32 %v4872_v55, %v10541_v30 }
 0x9a3   : > { %5132 = vst [vmem:[%s10515_s6 + $0xd8] sm:$0xff] %v5100_v20 }
 0x9a4   : > { %5134 = vst [vmem:[%s10515_s6 + $0xe8] sm:$0xff] %v5102_v5 }
 0x9a5   : > { %5136 = vst [vmem:[%s10515_s6 + $0xf8] sm:$0xff] %v5104_v56 }
 0x9a7   : > { %v4806_v43 = vpop.f32.mrf.mxu3 }
 0x9a8   : > { %v10547_v2 = vadd.f32 %v4806_v43, %v10367_v54 }
 0x9aa   : > { %v4875_v36 = vmax.f32 %v4873_v59, %v10547_v2 }
 0x9af   : > { %v4808_v58 = vpop.f32.mrf.mxu3 }
 0x9b0   : > { %v10550_v45 = vadd.f32 %v4808_v58, %v10385_v44 }
 0x9b2   : > { %v4876_v3 = vmax.f32 %v4874_v50, %v10550_v45 }
 0x9b7   : > { %v4811_v34 = vpop.f32.mrf.mxu3 }
 0x9b8   : > { %v10555_v61 = vadd.f32 %v4811_v34, %v10395_v42 }
 0x9ba   : > { %v4877_v54 = vmax.f32 %v4875_v36, %v10555_v61 }
 0x9bf   : > { %v4813_v29 = vpop.f32.mrf.mxu3 }
 0x9c0   : > { %v10560_v14 = vadd.f32 %v4813_v29, %v10402_v35 }
 0x9c2   : > { %v4878_v44 = vmax.f32 %v4876_v3, %v10560_v14 }
 0x9c4   : > { %v4879_v40 = vmax.f32 %v4877_v54, %v4878_v44 }
 0x9c6   : > { %v4880_v6 = vrot.slane %v4879_v40, 4 }
 0x9c8   : > { %v4881_v49 = vmax.f32 %v4879_v40, %v4880_v6 }
 0x9ca   : > { %v4882_v11 = vrot.slane %v4881_v49, 2 }
 0x9cc   : > { %v4883_v41 = vmax.f32 %v4881_v49, %v4882_v11 }
 0x9ce   : > { %v4884_v31 = vrot.slane %v4883_v41, 1 }
 0x9d0   : > { %v10564_v42 = vmax.f32 %v4883_v41, %v4884_v31 }
 0x9d2   : > { %v4907_v52 = vsub.f32 %v10428_v28, %v10564_v42  ;;  %v4909_v12 = vsub.f32 %v10456_v46, %v10564_v42  ;;  %v4911_v35 = vsub.f32 %v10431_v57, %v10564_v42  ;;  %v4913_v53 = vsub.f32 %v10459_v4, %v10564_v42 }
 0x9d3   : > { %v4915_v15 = vsub.f32 %v10484_v9, %v10564_v42  ;;  %v4917_v18 = vsub.f32 %v10495_v37, %v10564_v42  ;;  %v4919_v38 = vsub.f32 %v10501_v23, %v10564_v42  ;;  %v4921_v19 = vsub.f32 %v4794_v26, %v10564_v42 }
 0x9d4   : > { %v4939_v25 = vmul.f32 1.442695, %v4907_v52  ;;  %v4943_v28 = vmul.f32 1.442695, %v4909_v12  ;;  %v4947_v22 = vmul.f32 1.442695, %v4911_v35  ;;  %v4923_v37 = vsub.f32 %v4797_v24, %v10564_v42 }
 0x9d5   : > { %v4951_v46 = vmul.f32 1.442695, %v4913_v53  ;;  %v4955_v57 = vmul.f32 1.442695, %v4915_v15  ;;  %v4959_v4 = vmul.f32 1.442695, %v4917_v18  ;;  %v4925_v16 = vsub.f32 %v4799_v47, %v10564_v42 }
 0x9d6   : > { %6145 = vpow2.f32 %v4939_v25  ;;  %v4963_v23 = vmul.f32 1.442695, %v4919_v38  ;;  %v4967_v8 = vmul.f32 1.442695, %v4921_v19  ;;  %v4927_v39 = vsub.f32 %v10538_v62, %v10564_v42 }
 0x9d7   : > { %6147 = vpow2.f32 %v4943_v28  ;;  %v4971_v17 = vmul.f32 1.442695, %v4923_v37  ;;  %v4929_v13 = vsub.f32 %v10541_v30, %v10564_v42  ;;  %v4975_v48 = vmul.f32 1.442695, %v4925_v16 }
 0x9d8   : > { %6149 = vpow2.f32 %v4947_v22  ;;  %v4931_v5 = vsub.f32 %v10547_v2, %v10564_v42  ;;  %v4979_v56 = vmul.f32 1.442695, %v4927_v39  ;;  %v4933_v58 = vsub.f32 %v10550_v45, %v10564_v42 }
 0x9d9   : > { %6151 = vpow2.f32 %v4951_v46  ;;  %v4983_v26 = vmul.f32 1.442695, %v4929_v13  ;;  %v4935_v47 = vsub.f32 %v10555_v61, %v10564_v42  ;;  %v4937_v27 = vsub.f32 %v10560_v14, %v10564_v42 }
 0x9da   : > { %6153 = vpow2.f32 %v4955_v57  ;;  %v4987_v0 = vmul.f32 1.442695, %v4931_v5  ;;  %v4991_v55 = vmul.f32 1.442695, %v4933_v58 }
 0x9db   : > { %6155 = vpow2.f32 %v4959_v4  ;;  %v4995_v45 = vmul.f32 1.442695, %v4935_v47  ;;  %v4999_v36 = vmul.f32 1.442695, %v4937_v27 }
 0x9dc   : > { %v10581_v21 = vpop.eup %6145  ;;  %6157 = vpow2.f32 %v4963_v23 }
 0x9dd   : > { %v10583_v9 = vpop.eup %6147  ;;  %6159 = vpow2.f32 %v4967_v8 }
 0x9de   : > { %v5003_v33 = vadd.f32 %v10583_v9, %v10581_v21  ;;  %v10588_v51 = vpop.eup %6149  ;;  %6161 = vpow2.f32 %v4971_v17 }
 0x9df   : > { %v10592_v60 = vpop.eup %6151  ;;  %6163 = vpow2.f32 %v4975_v48 }
 0x9e0   : > { %v5004_v63 = vadd.f32 %v10588_v51, %v5003_v33  ;;  %v10597_v1 = vpop.eup %6153  ;;  %6165 = vpow2.f32 %v4979_v56 }
 0x9e1   : > { %v10602_v20 = vpop.eup %6155  ;;  %6167 = vpow2.f32 %v4983_v26 }
 0x9e2   : > { %v5005_v7 = vadd.f32 %v10592_v60, %v5004_v63  ;;  %v10607_v43 = vpop.eup %6157  ;;  %6169 = vpow2.f32 %v4987_v0 }
 0x9e3   : > { %v6160_v24 = vpop.eup %6159  ;;  %6171 = vpow2.f32 %v4991_v55 }
 0x9e4   : > { %v5006_v32 = vadd.f32 %v10597_v1, %v5005_v7  ;;  %v6162_v30 = vpop.eup %6161  ;;  %6173 = vpow2.f32 %v4995_v45 }
 0x9e5   : > { %v6164_v59 = vpop.eup %6163  ;;  %6175 = vpow2.f32 %v4999_v36 }
 0x9e6   : > { %v5007_v10 = vadd.f32 %v10602_v20, %v5006_v32  ;;  %v6166_v29 = vpop.eup %6165 }
 0x9e7   : > { %v6168_v54 = vpop.eup %6167 }
 0x9e8   : > { %v5008_v34 = vadd.f32 %v10607_v43, %v5007_v10  ;;  %v6170_v44 = vpop.eup %6169 }
 0x9e9   : > { %v6172_v6 = vpop.eup %6171 }
 0x9ea   : > { %v5009_v62 = vadd.f32 %v6160_v24, %v5008_v34  ;;  %v6174_v14 = vpop.eup %6173 }
 0x9eb   : > { %v6176_v41 = vpop.eup %6175 }
 0x9ec   : > { %v5010_v2 = vadd.f32 %v6162_v30, %v5009_v62 }
 0x9ee   : > { %v5011_v50 = vadd.f32 %v6164_v59, %v5010_v2 }
 0x9f0   : > { %v5012_v3 = vadd.f32 %v6166_v29, %v5011_v50 }
 0x9f2   : > { %v5013_v61 = vadd.f32 %v6168_v54, %v5012_v3 }
 0x9f4   : > { %v5014_v40 = vadd.f32 %v6170_v44, %v5013_v61 }
 0x9f6   : > { %v5015_v49 = vadd.f32 %v6172_v6, %v5014_v40 }
 0x9f8   : > { %v5016_v11 = vadd.f32 %v6174_v14, %v5015_v49 }
 0x9fa   : > { %v5017_v31 = vadd.f32 %v6176_v41, %v5016_v11 }
 0x9fc   : > { %v5018_v42 = vrot.slane %v5017_v31, 4 }
 0x9fe   : > { %v5019_v52 = vadd.f32 %v5018_v42, %v5017_v31 }
 0xa00   : > { %v5020_v12 = vrot.slane %v5019_v52, 2 }
 0xa02   : > { %v5021_v35 = vadd.f32 %v5020_v12, %v5019_v52 }
 0xa04   : > { %v5022_v53 = vrot.slane %v5021_v35, 1 }
 0xa06   : > { %v5023_v15 = vadd.f32 %v5022_v53, %v5021_v35 }
 0xa08   : > { %6177 = vrcp.f32 %v5023_v15  ;;  %v5056_v28 = vand.u32 2147483648, %v5023_v15  ;;  %v5054_v46 = vand.u32 2147483647, %v5023_v15  ;;  %vm5050_vm12 = vweird.f32 %v5023_v15 }
 0xa0a   : > { %v5057_v19 = vor.u32 1.1754944e-38, %v5056_v28  ;;  %vm5055_vm14 = vcmp.eq.f32.partialorder %v5054_v46, 8.507059e+37 }
 0xa0e   : > { %v6178_v18 = vpop.eup %6177 }
 0xa0f   : > { %v5046_v38 = vmul.f32 %v6178_v18, %v5023_v15  ;;  %vm5051_vm11 = vweird.f32 %v6178_v18 }
 0xa10   : > { %vm5052_vm13 = vmor %vm5050_vm12, %vm5051_vm11 }
 0xa11   : > { %v5047_v25 = vsub.f32 1.0, %v5046_v38 }
 0xa13   : > { %v5048_v22 = vmul.f32 %v6178_v18, %v5047_v25 }
 0xa15   : > { %v5049_v57 = vadd.f32 %v6178_v18, %v5048_v22 }
 0xa17   : > { %v5053_v4 = vsel %vm5052_vm13, %v6178_v18, %v5049_v57 }
 0xa18   : > { %v5058_v37 = vsel %vm5055_vm14, %v5057_v19, %v5053_v4 }
 0xa19   : > { %v5073_v23 = vmul.f32 %v10581_v21, %v5058_v37  ;;  %v5075_v33 = vmul.f32 %v10583_v9, %v5058_v37  ;;  %v5077_v16 = vmul.f32 %v10588_v51, %v5058_v37  ;;  %v5079_v8 = vmul.f32 %v10592_v60, %v5058_v37 }
 0xa1a   : > { %v5081_v63 = vmul.f32 %v10597_v1, %v5058_v37  ;;  %v5083_v39 = vmul.f32 %v10602_v20, %v5058_v37  ;;  %v5085_v17 = vmul.f32 %v10607_v43, %v5058_v37  ;;  %v5087_v7 = vmul.f32 %v6160_v24, %v5058_v37 }
 0xa1b   : > { %v5089_v13 = vmul.f32 %v6162_v30, %v5058_v37  ;;  %v5091_v21 = vmul.f32 %v6164_v59, %v5058_v37  ;;  %v5093_v9 = vmul.f32 %v6166_v29, %v5058_v37  ;;  %v5095_v51 = vmul.f32 %v6168_v54, %v5058_v37  ;;  %5105 = vst [vmem:[%s10515_s6] sm:$0xff] %v5073_v23 }
 0xa1c   : > { %v5097_v60 = vmul.f32 %v6170_v44, %v5058_v37  ;;  %v5099_v1 = vmul.f32 %v6172_v6, %v5058_v37  ;;  %v5101_v48 = vmul.f32 %v6174_v14, %v5058_v37  ;;  %v5103_v32 = vmul.f32 %v6176_v41, %v5058_v37  ;;  %5107 = vst [vmem:[%s10515_s6 + $0x10] sm:$0xff] %v5075_v33 }
 0xa1d   : > { %5109 = vst [vmem:[%s10515_s6 + $0x20] sm:$0xff] %v5077_v16 }
 0xa1e   : > { %5111 = vst [vmem:[%s10515_s6 + $0x30] sm:$0xff] %v5079_v8 }
 0xa1f   : > { %5113 = vst [vmem:[%s10515_s6 + $0x40] sm:$0xff] %v5081_v63 }
 0xa20   : > { %5115 = vst [vmem:[%s10515_s6 + $0x50] sm:$0xff] %v5083_v39 }
 0xa21   : > { %5117 = vst [vmem:[%s10515_s6 + $0x60] sm:$0xff] %v5085_v17 }
 0xa22   : > { %5119 = vst [vmem:[%s10515_s6 + $0x70] sm:$0xff] %v5087_v7 }
 0xa23   : > { %5121 = vst [vmem:[%s10515_s6 + $0x80] sm:$0xff] %v5089_v13 }
 0xa24   : > { %5123 = vst [vmem:[%s10515_s6 + $0x90] sm:$0xff] %v5091_v21 }
 0xa25   : > { %5125 = vst [vmem:[%s10515_s6 + $0xa0] sm:$0xff] %v5093_v9 }
 0xa26   : > { %5127 = vst [vmem:[%s10515_s6 + $0xb0] sm:$0xff] %v5095_v51 }
 0xa27   : > { %5129 = vst [vmem:[%s10515_s6 + $0xc0] sm:$0xff] %v5097_v60 }
 0xa28   : > { %5131 = vst [vmem:[%s10515_s6 + $0xd0] sm:$0xff] %v5099_v1 }
 0xa29   : > { %5133 = vst [vmem:[%s10515_s6 + $0xe0] sm:$0xff] %v5101_v48 }
 0xa2a   : > { %5135 = vst [vmem:[%s10515_s6 + $0xf0] sm:$0xff] %v5103_v32 }
 0xa2b   : > { %6206 = shalt.err (!%p6203_p0)
}
 0xa2c   : > { %s6294_s18 = smov 256   ;;  %s6295_s6 = smov 1024  }
 0xa2d   : > { %s6296_s5 = smov 16  }
 0xa2e   : > { %5887 = dma.vmem_to_hbm [thread:$0]  (%p6472_p12), %s5153_s0, 4096, %s5155_s1, %s5138_s26, %s6294_s18, %s6295_s6, %s6296_s5  }
 0xa2f PF: > { %p5893_p2 = scmp.ge.s32.totalorder %s6289_s22, 2  ;;  %s5169_s8 = sand.u32 1, %s6253_s29  }
 0xa30   : > { %s5170_s2 = scalar_lea.sflag [#allocation5], %s5169_s8 }
 0xa31   : > { %p5890_p1 = pnand %p5893_p2, %p6481_p4 }
 0xa33   : > { %p5891_p3 = pneg %p5890_p1 }
 0xa35   : > { %6248 = dma.done.wait (%p5891_p3), %s5170_s2, 4096  }
 0xa36   : > { %6250 = vsyncadd (%p5891_p3), %s5170_s2, 4294963200  ;;  %s27_s22 = sadd.s32 1, %s6289_s22   ;;  %s11507_s3 = sld [smem:[#allocation12_spill]] }
 0xa37   : > { %p24_p5 = scmp.ge.s32.totalorder %s27_s22, 10   ;;  %s11508_s0 = sld [smem:[#allocation11_spill]] }
 0xa38   : > { %s11509_s1 = sld [smem:[#allocation9_spill]]  ;;  %s11511_s29 = smov %s6265_s16 }
 0xa39   : > { %s11510_s4 = sld [smem:[#allocation10_spill]]  ;;  %s11512_s30 = smov %s6261_s15 }
 0xa3a   : > { %s11514_s16 = smov %s6269_s17  ;;  %s11516_s18 = smov %s6281_s20 }
 0xa3b   : > { %s11517_s19 = smov %s6285_s21  ;;  %26 = sbr.rel (!%p24_p5) target bundleno = 19 (0x13), region = 204 }
 0xa3c   : > { %s11513_s15 = smov %s11507_s3 }
 0xa3d   : > { %s11515_s17 = smov %s11508_s0 }
 0xa3e   : > { %s11518_s20 = smov %s11509_s1 }
 0xa3f   : > { %s11519_s21 = smov %s11510_s4 }
 0xa40   :  { %5176 = vsyncpa [#allocation5], 1 }
 0xa41   :  { %5178 = vsyncpa [#allocation5 + $0x1], 1 }

</bundles_post_ra>
